<compile_context>
chip_gen: v6e
topology: v6e:2x2x1
jax: 0.10.0
libtpu: 0.0.40
codegen_flags: <defaults>
</compile_context>

<pallas_src>
import functools
import math

import jax
import jax.numpy as jnp
from jax.experimental import pallas as pl
from jax.experimental.pallas import tpu as pltpu

# ----------------------------- config ---------------------------------------
BATCH = 2
IMG_H = IMG_W = 32
IMG_C = 3
PATCH = 8                      # backbone stem: 8x8 conv, stride 8
BACKBONE_CH = 64               # stand-in for ResNet-50 C5 (2048 in real DETR)
HIDDEN = 32                    # transformer d_model (256 in real DETR)
NUM_HEADS = 4
HEAD_DIM = HIDDEN // NUM_HEADS
FFN_DIM = 64                   # dim_feedforward (2048 in real DETR)
ENC_LAYERS = 2                 # TODO(synk): 6 in real DETR
DEC_LAYERS = 2                 # TODO(synk): 6 in real DETR
NUM_QUERIES = 8
NUM_CLASSES = 16               # class_embed replaced: Linear(in_features, num_classes)
FEAT_H = IMG_H // PATCH
FEAT_W = IMG_W // PATCH
NUM_TOKENS = FEAT_H * FEAT_W   # 16
PATCH_DIM = PATCH * PATCH * IMG_C


# ----------------------------- in-kernel helpers -----------------------------
def _mxu_dot(x, w):
    """MXU matmul: bf16 operands, f32 accumulation."""
    return jnp.dot(x.astype(jnp.bfloat16), w.astype(jnp.bfloat16),
                   preferred_element_type=jnp.float32)


def _linear(x, w, b, act=None):
    """y = act(x @ w + b); x:(M,K) w:(K,N) b:(1,N)."""
    y = _mxu_dot(x, w) + b
    if act == "relu":
        y = jnp.maximum(y, 0.0)
    elif act == "sigmoid":
        y = jax.nn.sigmoid(y)
    return y


def _layernorm(x, g, b, eps=1e-5):
    """LayerNorm over last axis, f32 math; g,b:(1,d)."""
    mu = jnp.mean(x, axis=-1, keepdims=True)
    var = jnp.mean((x - mu) ** 2, axis=-1, keepdims=True)
    return (x - mu) * jax.lax.rsqrt(var + eps) * g + b


def _mha(q_in, k_in, v_in, wq, bq, wk, bk, wv, bv, wo, bo, *, num_heads):
    """Multi-head attention fully in-kernel.

    q_in:(Tq,d) k_in,v_in:(Tk,d); weights (d,d), biases (1,d).
    Output projection is accumulated per head:  concat(o_h) @ wo == sum_h o_h @ wo[rows_h].
    """
    d = wq.shape[0]
    dk = d // num_heads
    scale = 1.0 / math.sqrt(dk)
    q = _mxu_dot(q_in, wq) + bq      # (Tq, d)
    k = _mxu_dot(k_in, wk) + bk      # (Tk, d)
    v = _mxu_dot(v_in, wv) + bv      # (Tk, d)
    out = jnp.zeros((q_in.shape[0], d), jnp.float32)
    for h in range(num_heads):
        sl = slice(h * dk, (h + 1) * dk)
        qh, kh, vh = q[:, sl], k[:, sl], v[:, sl]
        s = jnp.dot(qh, kh.T, preferred_element_type=jnp.float32) * scale   # (Tq, Tk)
        s = s - jnp.max(s, axis=-1, keepdims=True)
        p = jnp.exp(s)
        p = p * pl.reciprocal(jnp.sum(p, axis=-1, keepdims=True), approx=True)
        oh = jnp.dot(p, vh, preferred_element_type=jnp.float32)             # (Tq, dk)
        out = out + jnp.dot(oh, wo[sl, :], preferred_element_type=jnp.float32)
    return out + bo


# ----------------------------- Pallas kernels -------------------------------
def _encoder_kernel(patch_ref, pos_ref,
                    stem_w_ref, stem_b_ref, proj_w_ref, proj_b_ref,
                    aw_ref, ab_ref, fw1_ref, fb1_ref, fw2_ref, fb2_ref,
                    lng_ref, lnb_ref,
                    mem_ref):
    """One batch element: stem conv + input_proj + ENC_LAYERS encoder layers."""
    x = patch_ref[0]                                               # (T, PATCH_DIM)
    feat = _linear(x, stem_w_ref[...], stem_b_ref[...], act="relu")  # (T, BACKBONE_CH)
    src = _linear(feat, proj_w_ref[...], proj_b_ref[...])            # (T, d)
    pos = pos_ref[...]                                               # (T, d)
    for l in range(ENC_LAYERS):
        q_in = src + pos
        sa = _mha(q_in, q_in, src,
                  aw_ref[4 * l + 0], ab_ref[4 * l + 0],
                  aw_ref[4 * l + 1], ab_ref[4 * l + 1],
                  aw_ref[4 * l + 2], ab_ref[4 * l + 2],
                  aw_ref[4 * l + 3], ab_ref[4 * l + 3],
                  num_heads=NUM_HEADS)
        src = _layernorm(src + sa, lng_ref[2 * l + 0], lnb_ref[2 * l + 0])
        h = _linear(src, fw1_ref[l], fb1_ref[l], act="relu")
        h = _linear(h, fw2_ref[l], fb2_ref[l])
        src = _layernorm(src + h, lng_ref[2 * l + 1], lnb_ref[2 * l + 1])
    mem_ref[0] = src.astype(mem_ref.dtype)


def _decoder_kernel(mem_ref, pos_ref, qemb_ref,
                    aw_ref, ab_ref, fw1_ref, fb1_ref, fw2_ref, fb2_ref,
                    lng_ref, lnb_ref,
                    dng_ref, dnb_ref,
                    clsw_ref, clsb_ref,
                    bw1_ref, bb1_ref, bw2_ref, bb2_ref, bw3_ref, bb3_ref,
                    logits_ref, boxes_ref):
    """One batch element: DEC_LAYERS decoder layers + final norm + prediction heads."""
    memory = mem_ref[0]              # (T, d)
    pos = pos_ref[...]               # (T, d)
    query_pos = qemb_ref[...]        # (Q, d)
    kmem = memory + pos              # keys for cross-attention
    tgt = jnp.zeros((NUM_QUERIES, HIDDEN), jnp.float32)
    for l in range(DEC_LAYERS):
        q_in = tgt + query_pos
        sa = _mha(q_in, q_in, tgt,
                  aw_ref[8 * l + 0], ab_ref[8 * l + 0],
                  aw_ref[8 * l + 1], ab_ref[8 * l + 1],
                  aw_ref[8 * l + 2], ab_ref[8 * l + 2],
                  aw_ref[8 * l + 3], ab_ref[8 * l + 3],
                  num_heads=NUM_HEADS)
        tgt = _layernorm(tgt + sa, lng_ref[3 * l + 0], lnb_ref[3 * l + 0])
        ca = _mha(tgt + query_pos, kmem, memory,
                  aw_ref[8 * l + 4], ab_ref[8 * l + 4],
                  aw_ref[8 * l + 5], ab_ref[8 * l + 5],
                  aw_ref[8 * l + 6], ab_ref[8 * l + 6],
                  aw_ref[8 * l + 7], ab_ref[8 * l + 7],
                  num_heads=NUM_HEADS)
        tgt = _layernorm(tgt + ca, lng_ref[3 * l + 1], lnb_ref[3 * l + 1])
        h = _linear(tgt, fw1_ref[l], fb1_ref[l], act="relu")
        h = _linear(h, fw2_ref[l], fb2_ref[l])
        tgt = _layernorm(tgt + h, lng_ref[3 * l + 2], lnb_ref[3 * l + 2])
    hs = _layernorm(tgt, dng_ref[...], dnb_ref[...])                 # (Q, d)
    # prediction heads (last decoder layer only, as in DETR forward)
    logits_ref[0] = _linear(hs, clsw_ref[...], clsb_ref[...]).astype(logits_ref.dtype)
    bh = _linear(hs, bw1_ref[...], bb1_ref[...], act="relu")
    bh = _linear(bh, bw2_ref[...], bb2_ref[...], act="relu")
    boxes_ref[0] = _linear(bh, bw3_ref[...], bb3_ref[...],
                           act="sigmoid").astype(boxes_ref.dtype)


# ----------------------------- pallas_call wrappers ---------------------------
def _const_spec(arr):
    """Full-array block, same block for every grid step (weights, pos)."""
    nd = arr.ndim
    return pl.BlockSpec(tuple(arr.shape), lambda b, _n=nd: (0,) * _n)


def run_encoder(pk, patches, pos):
    B = patches.shape[0]
    weight_args = [pk["stem_w"], pk["stem_b"], pk["proj_w"], pk["proj_b"],
                   pk["enc_attn_w"], pk["enc_attn_b"],
                   pk["enc_ffn_w1"], pk["enc_ffn_b1"],
                   pk["enc_ffn_w2"], pk["enc_ffn_b2"],
                   pk["enc_ln_g"], pk["enc_ln_b"]]
    in_specs = ([pl.BlockSpec((1, NUM_TOKENS, PATCH_DIM), lambda b: (b, 0, 0)),
                 _const_spec(pos)]
                + [_const_spec(w) for w in weight_args])
    return pl.pallas_call(
        _encoder_kernel,
        out_shape=jax.ShapeDtypeStruct((B, NUM_TOKENS, HIDDEN), jnp.float32),
        grid=(B,),
        in_specs=in_specs,
        out_specs=pl.BlockSpec((1, NUM_TOKENS, HIDDEN), lambda b: (b, 0, 0)),
        compiler_params=pltpu.CompilerParams(dimension_semantics=("parallel",)),
    )(patches, pos, *weight_args)


def run_decoder(pk, memory, pos):
    B = memory.shape[0]
    weight_args = [pk["query_embed"],
                   pk["dec_attn_w"], pk["dec_attn_b"],
                   pk["dec_ffn_w1"], pk["dec_ffn_b1"],
                   pk["dec_ffn_w2"], pk["dec_ffn_b2"],
                   pk["dec_ln_g"], pk["dec_ln_b"],
                   pk["dec_norm_g"], pk["dec_norm_b"],
                   pk["cls_w"], pk["cls_b"],
                   pk["bbox_w1"], pk["bbox_b1"],
                   pk["bbox_w2"], pk["bbox_b2"],
                   pk["bbox_w3"], pk["bbox_b3"]]
    in_specs = ([pl.BlockSpec((1, NUM_TOKENS, HIDDEN), lambda b: (b, 0, 0)),
                 _const_spec(pos)]
                + [_const_spec(w) for w in weight_args])
    return pl.pallas_call(
        _decoder_kernel,
        out_shape=(jax.ShapeDtypeStruct((B, NUM_QUERIES, NUM_CLASSES), jnp.float32),
                   jax.ShapeDtypeStruct((B, NUM_QUERIES, 4), jnp.float32)),
        grid=(B,),
        in_specs=in_specs,
        out_specs=(pl.BlockSpec((1, NUM_QUERIES, NUM_CLASSES), lambda b: (b, 0, 0)),
                   pl.BlockSpec((1, NUM_QUERIES, 4), lambda b: (b, 0, 0))),
        compiler_params=pltpu.CompilerParams(dimension_semantics=("parallel",)),
    )(memory, pos, *weight_args)


# ----------------------------- positional embedding ---------------------------
def sine_pos_embed(h, w, d, temperature=10000.0):
    """DETR PositionEmbeddingSine (normalised), returns (h*w, d)."""
    num_pos_feats = d // 2
    eps, scale = 1e-6, 2 * math.pi
    y_embed = jnp.cumsum(jnp.ones((h, w), jnp.float32), axis=0)
    x_embed = jnp.cumsum(jnp.ones((h, w), jnp.float32), axis=1)
    y_embed = y_embed / (y_embed[-1:, :] + eps) * scale
    x_embed = x_embed / (x_embed[:, -1:] + eps) * scale
    dim_t = temperature ** (2 * (jnp.arange(num_pos_feats) // 2) / num_pos_feats)
    pos_x = x_embed[..., None] / dim_t
    pos_y = y_embed[..., None] / dim_t
    pos_x = jnp.stack([jnp.sin(pos_x[..., 0::2]), jnp.cos(pos_x[..., 1::2])], axis=-1).reshape(h, w, -1)
    pos_y = jnp.stack([jnp.sin(pos_y[..., 0::2]), jnp.cos(pos_y[..., 1::2])], axis=-1).reshape(h, w, -1)
    return jnp.concatenate([pos_y, pos_x], axis=-1).reshape(h * w, d)


# ----------------------------- params ----------------------------------------
class _KeyGen:
    def __init__(self, key):
        self._key = key

    def __call__(self):
        self._key, sub = jax.random.split(self._key)
        return sub


def _dense(kg, fan_in, fan_out):
    w = jax.random.normal(kg(), (fan_in, fan_out), jnp.float32) / math.sqrt(fan_in)
    b = jnp.zeros((fan_out,), jnp.float32)
    return w, b


def _mha_params(kg, d):
    p = {}
    for name in ("q", "k", "v", "o"):
        p[f"w{name}"], p[f"b{name}"] = _dense(kg, d, d)
    return p


def _ln_params(d):
    return jnp.ones((d,), jnp.float32), jnp.zeros((d,), jnp.float32)


def _enc_layer_params(kg, d, ffn):
    p = {"self_attn": _mha_params(kg, d)}
    p["ffn_w1"], p["ffn_b1"] = _dense(kg, d, ffn)
    p["ffn_w2"], p["ffn_b2"] = _dense(kg, ffn, d)
    p["ln1_g"], p["ln1_b"] = _ln_params(d)
    p["ln2_g"], p["ln2_b"] = _ln_params(d)
    return p


def _dec_layer_params(kg, d, ffn):
    p = {"self_attn": _mha_params(kg, d), "cross_attn": _mha_params(kg, d)}
    p["ffn_w1"], p["ffn_b1"] = _dense(kg, d, ffn)
    p["ffn_w2"], p["ffn_b2"] = _dense(kg, ffn, d)
    p["ln1_g"], p["ln1_b"] = _ln_params(d)
    p["ln2_g"], p["ln2_b"] = _ln_params(d)
    p["ln3_g"], p["ln3_b"] = _ln_params(d)
    return p


def init_detr_params(key):
    kg = _KeyGen(key)
    p = {}
    p["stem_w"], p["stem_b"] = _dense(kg, PATCH_DIM, BACKBONE_CH)       # backbone stem
    p["proj_w"], p["proj_b"] = _dense(kg, BACKBONE_CH, HIDDEN)          # 1x1 input_proj
    p["query_embed"] = jax.random.normal(kg(), (NUM_QUERIES, HIDDEN), jnp.float32)
    p["enc"] = [_enc_layer_params(kg, HIDDEN, FFN_DIM) for _ in range(ENC_LAYERS)]
    p["dec"] = [_dec_layer_params(kg, HIDDEN, FFN_DIM) for _ in range(DEC_LAYERS)]
    p["dec_norm_g"], p["dec_norm_b"] = _ln_params(HIDDEN)
    p["cls_w"], p["cls_b"] = _dense(kg, HIDDEN, NUM_CLASSES)            # class_embed
    p["bbox_w1"], p["bbox_b1"] = _dense(kg, HIDDEN, HIDDEN)             # bbox_embed MLP
    p["bbox_w2"], p["bbox_b2"] = _dense(kg, HIDDEN, HIDDEN)
    p["bbox_w3"], p["bbox_b3"] = _dense(kg, HIDDEN, 4)
    return p


def pack_params(p):
    """Stack per-layer weights into a few VMEM-resident arrays for the fused kernels."""
    r2 = lambda a: a.reshape(1, -1)
    pk = {
        "stem_w": p["stem_w"], "stem_b": r2(p["stem_b"]),
        "proj_w": p["proj_w"], "proj_b": r2(p["proj_b"]),
        "query_embed": p["query_embed"],
        "dec_norm_g": r2(p["dec_norm_g"]), "dec_norm_b": r2(p["dec_norm_b"]),
        "cls_w": p["cls_w"], "cls_b": r2(p["cls_b"]),
        "bbox_w1": p["bbox_w1"], "bbox_b1": r2(p["bbox_b1"]),
        "bbox_w2": p["bbox_w2"], "bbox_b2": r2(p["bbox_b2"]),
        "bbox_w3": p["bbox_w3"], "bbox_b3": r2(p["bbox_b3"]),
    }

    def attn_lists(ap):
        ws = [ap["wq"], ap["wk"], ap["wv"], ap["wo"]]
        bs = [r2(ap["bq"]), r2(ap["bk"]), r2(ap["bv"]), r2(ap["bo"])]
        return ws, bs

    # encoder: (4L, d, d) attn weights, (4L, 1, d) biases, (2L, 1, d) ln params
    ew, eb, eg, ebn = [], [], [], []
    efw1, efb1, efw2, efb2 = [], [], [], []
    for lp in p["enc"]:
        ws, bs = attn_lists(lp["self_attn"])
        ew += ws; eb += bs
        efw1.append(lp["ffn_w1"]); efb1.append(r2(lp["ffn_b1"]))
        efw2.append(lp["ffn_w2"]); efb2.append(r2(lp["ffn_b2"]))
        eg += [r2(lp["ln1_g"]), r2(lp["ln2_g"])]
        ebn += [r2(lp["ln1_b"]), r2(lp["ln2_b"])]
    pk["enc_attn_w"] = jnp.stack(ew); pk["enc_attn_b"] = jnp.stack(eb)
    pk["enc_ffn_w1"] = jnp.stack(efw1); pk["enc_ffn_b1"] = jnp.stack(efb1)
    pk["enc_ffn_w2"] = jnp.stack(efw2); pk["enc_ffn_b2"] = jnp.stack(efb2)
    pk["enc_ln_g"] = jnp.stack(eg); pk["enc_ln_b"] = jnp.stack(ebn)

    # decoder: (8L, d, d) attn weights [sa q,k,v,o | ca q,k,v,o], (3L, 1, d) ln params
    dw, db, dg, dbn = [], [], [], []
    dfw1, dfb1, dfw2, dfb2 = [], [], [], []
    for lp in p["dec"]:
        ws, bs = attn_lists(lp["self_attn"]); dw += ws; db += bs
        ws, bs = attn_lists(lp["cross_attn"]); dw += ws; db += bs
        dfw1.append(lp["ffn_w1"]); dfb1.append(r2(lp["ffn_b1"]))
        dfw2.append(lp["ffn_w2"]); dfb2.append(r2(lp["ffn_b2"]))
        dg += [r2(lp["ln1_g"]), r2(lp["ln2_g"]), r2(lp["ln3_g"])]
        dbn += [r2(lp["ln1_b"]), r2(lp["ln2_b"]), r2(lp["ln3_b"])]
    pk["dec_attn_w"] = jnp.stack(dw); pk["dec_attn_b"] = jnp.stack(db)
    pk["dec_ffn_w1"] = jnp.stack(dfw1); pk["dec_ffn_b1"] = jnp.stack(dfb1)
    pk["dec_ffn_w2"] = jnp.stack(dfw2); pk["dec_ffn_b2"] = jnp.stack(dfb2)
    pk["dec_ln_g"] = jnp.stack(dg); pk["dec_ln_b"] = jnp.stack(dbn)
    return pk


# ----------------------------- forward ----------------------------------------
def detr_forward(packed, images_nchw):
    """images_nchw: (B, 3, H, W) float32 -> {'pred_logits', 'pred_boxes'}."""
    B = images_nchw.shape[0]
    x = images_nchw.transpose(0, 2, 3, 1)                                   # NCHW -> NHWC
    # im2col for the PATCHxPATCH stride-PATCH stem conv
    x = x.reshape(B, FEAT_H, PATCH, FEAT_W, PATCH, IMG_C)
    patches = x.transpose(0, 1, 3, 2, 4, 5).reshape(B, NUM_TOKENS, PATCH_DIM)

    pos = sine_pos_embed(FEAT_H, FEAT_W, HIDDEN)                            # (T, d)

    memory = run_encoder(packed, patches, pos)                              # (B, T, d)
    pred_logits, pred_boxes = run_decoder(packed, memory, pos)
    return {"pred_logits": pred_logits, "pred_boxes": pred_boxes}


# ----------------------------- main --------------------------------------------
if __name__ == "__main__":
    key = jax.random.PRNGKey(0)
    k_img, k_param = jax.random.split(key)
    images = jax.random.normal(k_img, (BATCH, IMG_C, IMG_H, IMG_W), jnp.float32)
    params = init_detr_params(k_param)
    packed = pack_params(params)

    fwd = jax.jit(detr_forward)
    out = fwd(packed, images)
    jax.block_until_ready(out)

    assert out["pred_logits"].shape == (BATCH, NUM_QUERIES, NUM_CLASSES)
    assert out["pred_boxes"].shape == (BATCH, NUM_QUERIES, 4)
    assert bool(jnp.all(jnp.isfinite(out["pred_logits"])))
    assert bool(jnp.all(jnp.isfinite(out["pred_boxes"])))
    assert bool(jnp.all((out["pred_boxes"] >= 0.0) & (out["pred_boxes"] <= 1.0)))
    print("KERNEL_OK")
</pallas_src>

<mosaic_0001>
module attributes {stable_mosaic.version = 11 : i64} {
  func.func @_encoder_kernel(%arg0: i32, %arg1: memref<1x16x192xf32, #tpu.memory_space<vmem>>, %arg2: memref<16x32xf32, #tpu.memory_space<vmem>>, %arg3: memref<192x64xf32, #tpu.memory_space<vmem>>, %arg4: memref<1x64xf32, #tpu.memory_space<vmem>>, %arg5: memref<64x32xf32, #tpu.memory_space<vmem>>, %arg6: memref<1x32xf32, #tpu.memory_space<vmem>>, %arg7: memref<8x32x32xf32, #tpu.memory_space<vmem>>, %arg8: memref<8x1x32xf32, #tpu.memory_space<vmem>>, %arg9: memref<2x32x64xf32, #tpu.memory_space<vmem>>, %arg10: memref<2x1x64xf32, #tpu.memory_space<vmem>>, %arg11: memref<2x64x32xf32, #tpu.memory_space<vmem>>, %arg12: memref<2x1x32xf32, #tpu.memory_space<vmem>>, %arg13: memref<4x1x32xf32, #tpu.memory_space<vmem>>, %arg14: memref<4x1x32xf32, #tpu.memory_space<vmem>>, %arg15: memref<1x16x32xf32, #tpu.memory_space<vmem>>) attributes {dimension_semantics = [#tpu.dimension_semantics<parallel>], iteration_bounds = array<i64: 2>, scalar_prefetch = 0 : i64, scratch_operands = 0 : i64, tpu.core_type = #tpu.core_type<tc>, window_params = [{transform_indices = @transform_0, window_bounds = array<i64: 1, 16, 192>}, {pipeline_mode = #tpu.pipeline_mode<synchronous>, transform_indices = @transform_1, window_bounds = array<i64: 16, 32>}, {pipeline_mode = #tpu.pipeline_mode<synchronous>, transform_indices = @transform_2, window_bounds = array<i64: 192, 64>}, {pipeline_mode = #tpu.pipeline_mode<synchronous>, transform_indices = @transform_3, window_bounds = array<i64: 1, 64>}, {pipeline_mode = #tpu.pipeline_mode<synchronous>, transform_indices = @transform_4, window_bounds = array<i64: 64, 32>}, {pipeline_mode = #tpu.pipeline_mode<synchronous>, transform_indices = @transform_5, window_bounds = array<i64: 1, 32>}, {pipeline_mode = #tpu.pipeline_mode<synchronous>, transform_indices = @transform_6, window_bounds = array<i64: 8, 32, 32>}, {pipeline_mode = #tpu.pipeline_mode<synchronous>, transform_indices = @transform_7, window_bounds = array<i64: 8, 1, 32>}, {pipeline_mode = #tpu.pipeline_mode<synchronous>, transform_indices = @transform_8, window_bounds = array<i64: 2, 32, 64>}, {pipeline_mode = #tpu.pipeline_mode<synchronous>, transform_indices = @transform_9, window_bounds = array<i64: 2, 1, 64>}, {pipeline_mode = #tpu.pipeline_mode<synchronous>, transform_indices = @transform_10, window_bounds = array<i64: 2, 64, 32>}, {pipeline_mode = #tpu.pipeline_mode<synchronous>, transform_indices = @transform_11, window_bounds = array<i64: 2, 1, 32>}, {pipeline_mode = #tpu.pipeline_mode<synchronous>, transform_indices = @transform_12, window_bounds = array<i64: 4, 1, 32>}, {pipeline_mode = #tpu.pipeline_mode<synchronous>, transform_indices = @transform_13, window_bounds = array<i64: 4, 1, 32>}, {transform_indices = @transform_14, window_bounds = array<i64: 1, 16, 32>}]} {
    %c0 = arith.constant 0 : index
    %c0_0 = arith.constant 0 : index
    %c0_1 = arith.constant 0 : index
    %0 = vector.load %arg1[%c0, %c0_0, %c0_1] : memref<1x16x192xf32, #tpu.memory_space<vmem>>, vector<1x16x192xf32>
    %1 = vector.shape_cast %0 : vector<1x16x192xf32> to vector<16x192xf32>
    %c0_2 = arith.constant 0 : index
    %c0_3 = arith.constant 0 : index
    %2 = vector.load %arg3[%c0_2, %c0_3] : memref<192x64xf32, #tpu.memory_space<vmem>>, vector<192x64xf32>
    %c0_4 = arith.constant 0 : index
    %c0_5 = arith.constant 0 : index
    %3 = vector.load %arg4[%c0_4, %c0_5] : memref<1x64xf32, #tpu.memory_space<vmem>>, vector<1x64xf32>
    %4 = arith.truncf %1 : vector<16x192xf32> to vector<16x192xbf16>
    %5 = arith.truncf %2 : vector<192x64xf32> to vector<192x64xbf16>
    %cst = arith.constant dense<0.000000e+00> : vector<16x64xf32>
    %6 = tpu.matmul %4, %5, %cst {dimension_numbers = #tpu.dot_dimension_numbers<[1], [0], [0], [1], [0, 0, 1, 1], [], []>} : vector<16x192xbf16>, vector<192x64xbf16>, vector<16x64xf32> -> vector<16x64xf32>
    %7 = vector.broadcast %3 : vector<1x64xf32> to vector<16x64xf32>
    %8 = arith.addf %6, %7 : vector<16x64xf32>
    %cst_6 = arith.constant 0.000000e+00 : f32
    %9 = vector.broadcast %cst_6 : f32 to vector<16x64xf32>
    %10 = arith.maximumf %8, %9 : vector<16x64xf32>
    %c0_7 = arith.constant 0 : index
    %c0_8 = arith.constant 0 : index
    %11 = vector.load %arg5[%c0_7, %c0_8] : memref<64x32xf32, #tpu.memory_space<vmem>>, vector<64x32xf32>
    %c0_9 = arith.constant 0 : index
    %c0_10 = arith.constant 0 : index
    %12 = vector.load %arg6[%c0_9, %c0_10] : memref<1x32xf32, #tpu.memory_space<vmem>>, vector<1x32xf32>
    %13 = arith.truncf %10 : vector<16x64xf32> to vector<16x64xbf16>
    %14 = arith.truncf %11 : vector<64x32xf32> to vector<64x32xbf16>
    %cst_11 = arith.constant dense<0.000000e+00> : vector<16x32xf32>
    %15 = tpu.matmul %13, %14, %cst_11 {dimension_numbers = #tpu.dot_dimension_numbers<[1], [0], [0], [1], [0, 0, 1, 1], [], []>} : vector<16x64xbf16>, vector<64x32xbf16>, vector<16x32xf32> -> vector<16x32xf32>
    %16 = vector.broadcast %12 : vector<1x32xf32> to vector<16x32xf32>
    %17 = arith.addf %15, %16 : vector<16x32xf32>
    %c0_12 = arith.constant 0 : index
    %c0_13 = arith.constant 0 : index
    %18 = vector.load %arg2[%c0_12, %c0_13] : memref<16x32xf32, #tpu.memory_space<vmem>>, vector<16x32xf32>
    %19 = arith.addf %17, %18 : vector<16x32xf32>
    %c0_14 = arith.constant 0 : index
    %c0_15 = arith.constant 0 : index
    %c0_16 = arith.constant 0 : index
    %20 = vector.load %arg7[%c0_14, %c0_15, %c0_16] : memref<8x32x32xf32, #tpu.memory_space<vmem>>, vector<1x32x32xf32>
    %21 = vector.shape_cast %20 : vector<1x32x32xf32> to vector<32x32xf32>
    %c0_17 = arith.constant 0 : index
    %c0_18 = arith.constant 0 : index
    %c0_19 = arith.constant 0 : index
    %22 = vector.load %arg8[%c0_17, %c0_18, %c0_19] : memref<8x1x32xf32, #tpu.memory_space<vmem>>, vector<1x1x32xf32>
    %23 = vector.shape_cast %22 : vector<1x1x32xf32> to vector<1x32xf32>
    %c1 = arith.constant 1 : index
    %c0_20 = arith.constant 0 : index
    %c0_21 = arith.constant 0 : index
    %24 = vector.load %arg7[%c1, %c0_20, %c0_21] : memref<8x32x32xf32, #tpu.memory_space<vmem>>, vector<1x32x32xf32>
    %25 = vector.shape_cast %24 : vector<1x32x32xf32> to vector<32x32xf32>
    %c1_22 = arith.constant 1 : index
    %c0_23 = arith.constant 0 : index
    %c0_24 = arith.constant 0 : index
    %26 = vector.load %arg8[%c1_22, %c0_23, %c0_24] : memref<8x1x32xf32, #tpu.memory_space<vmem>>, vector<1x1x32xf32>
    %27 = vector.shape_cast %26 : vector<1x1x32xf32> to vector<1x32xf32>
    %c2 = arith.constant 2 : index
    %c0_25 = arith.constant 0 : index
    %c0_26 = arith.constant 0 : index
    %28 = vector.load %arg7[%c2, %c0_25, %c0_26] : memref<8x32x32xf32, #tpu.memory_space<vmem>>, vector<1x32x32xf32>
    %29 = vector.shape_cast %28 : vector<1x32x32xf32> to vector<32x32xf32>
    %c2_27 = arith.constant 2 : index
    %c0_28 = arith.constant 0 : index
    %c0_29 = arith.constant 0 : index
    %30 = vector.load %arg8[%c2_27, %c0_28, %c0_29] : memref<8x1x32xf32, #tpu.memory_space<vmem>>, vector<1x1x32xf32>
    %31 = vector.shape_cast %30 : vector<1x1x32xf32> to vector<1x32xf32>
    %c3 = arith.constant 3 : index
    %c0_30 = arith.constant 0 : index
    %c0_31 = arith.constant 0 : index
    %32 = vector.load %arg7[%c3, %c0_30, %c0_31] : memref<8x32x32xf32, #tpu.memory_space<vmem>>, vector<1x32x32xf32>
    %33 = vector.shape_cast %32 : vector<1x32x32xf32> to vector<32x32xf32>
    %c3_32 = arith.constant 3 : index
    %c0_33 = arith.constant 0 : index
    %c0_34 = arith.constant 0 : index
    %34 = vector.load %arg8[%c3_32, %c0_33, %c0_34] : memref<8x1x32xf32, #tpu.memory_space<vmem>>, vector<1x1x32xf32>
    %35 = vector.shape_cast %34 : vector<1x1x32xf32> to vector<1x32xf32>
    %36 = arith.truncf %19 : vector<16x32xf32> to vector<16x32xbf16>
    %37 = arith.truncf %21 : vector<32x32xf32> to vector<32x32xbf16>
    %cst_35 = arith.constant dense<0.000000e+00> : vector<16x32xf32>
    %38 = tpu.matmul %36, %37, %cst_35 {dimension_numbers = #tpu.dot_dimension_numbers<[1], [0], [0], [1], [0, 0, 1, 1], [], []>} : vector<16x32xbf16>, vector<32x32xbf16>, vector<16x32xf32> -> vector<16x32xf32>
    %39 = vector.broadcast %23 : vector<1x32xf32> to vector<16x32xf32>
    %40 = arith.addf %38, %39 : vector<16x32xf32>
    %41 = arith.truncf %19 : vector<16x32xf32> to vector<16x32xbf16>
    %42 = arith.truncf %25 : vector<32x32xf32> to vector<32x32xbf16>
    %cst_36 = arith.constant dense<0.000000e+00> : vector<16x32xf32>
    %43 = tpu.matmul %41, %42, %cst_36 {dimension_numbers = #tpu.dot_dimension_numbers<[1], [0], [0], [1], [0, 0, 1, 1], [], []>} : vector<16x32xbf16>, vector<32x32xbf16>, vector<16x32xf32> -> vector<16x32xf32>
    %44 = vector.broadcast %27 : vector<1x32xf32> to vector<16x32xf32>
    %45 = arith.addf %43, %44 : vector<16x32xf32>
    %46 = arith.truncf %17 : vector<16x32xf32> to vector<16x32xbf16>
    %47 = arith.truncf %29 : vector<32x32xf32> to vector<32x32xbf16>
    %cst_37 = arith.constant dense<0.000000e+00> : vector<16x32xf32>
    %48 = tpu.matmul %46, %47, %cst_37 {dimension_numbers = #tpu.dot_dimension_numbers<[1], [0], [0], [1], [0, 0, 1, 1], [], []>} : vector<16x32xbf16>, vector<32x32xbf16>, vector<16x32xf32> -> vector<16x32xf32>
    %49 = vector.broadcast %31 : vector<1x32xf32> to vector<16x32xf32>
    %50 = arith.addf %48, %49 : vector<16x32xf32>
    %cst_38 = arith.constant 0.000000e+00 : f32
    %51 = vector.broadcast %cst_38 : f32 to vector<16x32xf32>
    %52 = vector.extract_strided_slice %40 {offsets = [0, 0], sizes = [16, 8], strides = [1, 1]} : vector<16x32xf32> to vector<16x8xf32>
    %53 = vector.extract_strided_slice %45 {offsets = [0, 0], sizes = [16, 8], strides = [1, 1]} : vector<16x32xf32> to vector<16x8xf32>
    %54 = vector.extract_strided_slice %50 {offsets = [0, 0], sizes = [16, 8], strides = [1, 1]} : vector<16x32xf32> to vector<16x8xf32>
    %55 = tpu.transpose %53, [1, 0] : vector<16x8xf32> -> vector<8x16xf32>
    %cst_39 = arith.constant dense<0.000000e+00> : vector<16x16xf32>
    %56 = tpu.matmul %52, %55, %cst_39 {dimension_numbers = #tpu.dot_dimension_numbers<[1], [0], [0], [1], [0, 0, 1, 1], [], []>} : vector<16x8xf32>, vector<8x16xf32>, vector<16x16xf32> -> vector<16x16xf32>
    %cst_40 = arith.constant 0.353553385 : f32
    %57 = vector.broadcast %cst_40 : f32 to vector<16x16xf32>
    %58 = arith.mulf %56, %57 : vector<16x16xf32>
    %cst_41 = arith.constant dense<0xFF800000> : vector<16xf32>
    %59 = vector.multi_reduction <maximumf>, %58, %cst_41 [1] : vector<16x16xf32> to vector<16xf32>
    %60 = vector.shape_cast %59 : vector<16xf32> to vector<16x1xf32>
    %61 = vector.broadcast %60 : vector<16x1xf32> to vector<16x16xf32>
    %62 = arith.subf %58, %61 : vector<16x16xf32>
    %63 = math.exp %62 : vector<16x16xf32>
    %cst_42 = arith.constant dense<0.000000e+00> : vector<16xf32>
    %64 = vector.multi_reduction <add>, %63, %cst_42 [1] : vector<16x16xf32> to vector<16xf32>
    %65 = vector.shape_cast %64 : vector<16xf32> to vector<16x1xf32>
    %66 = tpu.reciprocal %65 {approx = true} : vector<16x1xf32> -> vector<16x1xf32>
    %67 = vector.broadcast %66 : vector<16x1xf32> to vector<16x16xf32>
    %68 = arith.mulf %63, %67 : vector<16x16xf32>
    %cst_43 = arith.constant dense<0.000000e+00> : vector<16x8xf32>
    %69 = tpu.matmul %68, %54, %cst_43 {dimension_numbers = #tpu.dot_dimension_numbers<[1], [0], [0], [1], [0, 0, 1, 1], [], []>} : vector<16x16xf32>, vector<16x8xf32>, vector<16x8xf32> -> vector<16x8xf32>
    %70 = vector.extract_strided_slice %33 {offsets = [0, 0], sizes = [8, 32], strides = [1, 1]} : vector<32x32xf32> to vector<8x32xf32>
    %cst_44 = arith.constant dense<0.000000e+00> : vector<16x32xf32>
    %71 = tpu.matmul %69, %70, %cst_44 {dimension_numbers = #tpu.dot_dimension_numbers<[1], [0], [0], [1], [0, 0, 1, 1], [], []>} : vector<16x8xf32>, vector<8x32xf32>, vector<16x32xf32> -> vector<16x32xf32>
    %72 = arith.addf %51, %71 : vector<16x32xf32>
    %73 = vector.extract_strided_slice %40 {offsets = [0, 8], sizes = [16, 8], strides = [1, 1]} : vector<16x32xf32> to vector<16x8xf32>
    %74 = vector.extract_strided_slice %45 {offsets = [0, 8], sizes = [16, 8], strides = [1, 1]} : vector<16x32xf32> to vector<16x8xf32>
    %75 = vector.extract_strided_slice %50 {offsets = [0, 8], sizes = [16, 8], strides = [1, 1]} : vector<16x32xf32> to vector<16x8xf32>
    %76 = tpu.transpose %74, [1, 0] : vector<16x8xf32> -> vector<8x16xf32>
    %cst_45 = arith.constant dense<0.000000e+00> : vector<16x16xf32>
    %77 = tpu.matmul %73, %76, %cst_45 {dimension_numbers = #tpu.dot_dimension_numbers<[1], [0], [0], [1], [0, 0, 1, 1], [], []>} : vector<16x8xf32>, vector<8x16xf32>, vector<16x16xf32> -> vector<16x16xf32>
    %cst_46 = arith.constant 0.353553385 : f32
    %78 = vector.broadcast %cst_46 : f32 to vector<16x16xf32>
    %79 = arith.mulf %77, %78 : vector<16x16xf32>
    %cst_47 = arith.constant dense<0xFF800000> : vector<16xf32>
    %80 = vector.multi_reduction <maximumf>, %79, %cst_47 [1] : vector<16x16xf32> to vector<16xf32>
    %81 = vector.shape_cast %80 : vector<16xf32> to vector<16x1xf32>
    %82 = vector.broadcast %81 : vector<16x1xf32> to vector<16x16xf32>
    %83 = arith.subf %79, %82 : vector<16x16xf32>
    %84 = math.exp %83 : vector<16x16xf32>
    %cst_48 = arith.constant dense<0.000000e+00> : vector<16xf32>
    %85 = vector.multi_reduction <add>, %84, %cst_48 [1] : vector<16x16xf32> to vector<16xf32>
    %86 = vector.shape_cast %85 : vector<16xf32> to vector<16x1xf32>
    %87 = tpu.reciprocal %86 {approx = true} : vector<16x1xf32> -> vector<16x1xf32>
    %88 = vector.broadcast %87 : vector<16x1xf32> to vector<16x16xf32>
    %89 = arith.mulf %84, %88 : vector<16x16xf32>
    %cst_49 = arith.constant dense<0.000000e+00> : vector<16x8xf32>
    %90 = tpu.matmul %89, %75, %cst_49 {dimension_numbers = #tpu.dot_dimension_numbers<[1], [0], [0], [1], [0, 0, 1, 1], [], []>} : vector<16x16xf32>, vector<16x8xf32>, vector<16x8xf32> -> vector<16x8xf32>
    %91 = vector.extract_strided_slice %33 {offsets = [8, 0], sizes = [8, 32], strides = [1, 1]} : vector<32x32xf32> to vector<8x32xf32>
    %cst_50 = arith.constant dense<0.000000e+00> : vector<16x32xf32>
    %92 = tpu.matmul %90, %91, %cst_50 {dimension_numbers = #tpu.dot_dimension_numbers<[1], [0], [0], [1], [0, 0, 1, 1], [], []>} : vector<16x8xf32>, vector<8x32xf32>, vector<16x32xf32> -> vector<16x32xf32>
    %93 = arith.addf %72, %92 : vector<16x32xf32>
    %94 = vector.extract_strided_slice %40 {offsets = [0, 16], sizes = [16, 8], strides = [1, 1]} : vector<16x32xf32> to vector<16x8xf32>
    %95 = vector.extract_strided_slice %45 {offsets = [0, 16], sizes = [16, 8], strides = [1, 1]} : vector<16x32xf32> to vector<16x8xf32>
    %96 = vector.extract_strided_slice %50 {offsets = [0, 16], sizes = [16, 8], strides = [1, 1]} : vector<16x32xf32> to vector<16x8xf32>
    %97 = tpu.transpose %95, [1, 0] : vector<16x8xf32> -> vector<8x16xf32>
    %cst_51 = arith.constant dense<0.000000e+00> : vector<16x16xf32>
    %98 = tpu.matmul %94, %97, %cst_51 {dimension_numbers = #tpu.dot_dimension_numbers<[1], [0], [0], [1], [0, 0, 1, 1], [], []>} : vector<16x8xf32>, vector<8x16xf32>, vector<16x16xf32> -> vector<16x16xf32>
    %cst_52 = arith.constant 0.353553385 : f32
    %99 = vector.broadcast %cst_52 : f32 to vector<16x16xf32>
    %100 = arith.mulf %98, %99 : vector<16x16xf32>
    %cst_53 = arith.constant dense<0xFF800000> : vector<16xf32>
    %101 = vector.multi_reduction <maximumf>, %100, %cst_53 [1] : vector<16x16xf32> to vector<16xf32>
    %102 = vector.shape_cast %101 : vector<16xf32> to vector<16x1xf32>
    %103 = vector.broadcast %102 : vector<16x1xf32> to vector<16x16xf32>
    %104 = arith.subf %100, %103 : vector<16x16xf32>
    %105 = math.exp %104 : vector<16x16xf32>
    %cst_54 = arith.constant dense<0.000000e+00> : vector<16xf32>
    %106 = vector.multi_reduction <add>, %105, %cst_54 [1] : vector<16x16xf32> to vector<16xf32>
    %107 = vector.shape_cast %106 : vector<16xf32> to vector<16x1xf32>
    %108 = tpu.reciprocal %107 {approx = true} : vector<16x1xf32> -> vector<16x1xf32>
    %109 = vector.broadcast %108 : vector<16x1xf32> to vector<16x16xf32>
    %110 = arith.mulf %105, %109 : vector<16x16xf32>
    %cst_55 = arith.constant dense<0.000000e+00> : vector<16x8xf32>
    %111 = tpu.matmul %110, %96, %cst_55 {dimension_numbers = #tpu.dot_dimension_numbers<[1], [0], [0], [1], [0, 0, 1, 1], [], []>} : vector<16x16xf32>, vector<16x8xf32>, vector<16x8xf32> -> vector<16x8xf32>
    %112 = vector.extract_strided_slice %33 {offsets = [16, 0], sizes = [8, 32], strides = [1, 1]} : vector<32x32xf32> to vector<8x32xf32>
    %cst_56 = arith.constant dense<0.000000e+00> : vector<16x32xf32>
    %113 = tpu.matmul %111, %112, %cst_56 {dimension_numbers = #tpu.dot_dimension_numbers<[1], [0], [0], [1], [0, 0, 1, 1], [], []>} : vector<16x8xf32>, vector<8x32xf32>, vector<16x32xf32> -> vector<16x32xf32>
    %114 = arith.addf %93, %113 : vector<16x32xf32>
    %115 = vector.extract_strided_slice %40 {offsets = [0, 24], sizes = [16, 8], strides = [1, 1]} : vector<16x32xf32> to vector<16x8xf32>
    %116 = vector.extract_strided_slice %45 {offsets = [0, 24], sizes = [16, 8], strides = [1, 1]} : vector<16x32xf32> to vector<16x8xf32>
    %117 = vector.extract_strided_slice %50 {offsets = [0, 24], sizes = [16, 8], strides = [1, 1]} : vector<16x32xf32> to vector<16x8xf32>
    %118 = tpu.transpose %116, [1, 0] : vector<16x8xf32> -> vector<8x16xf32>
    %cst_57 = arith.constant dense<0.000000e+00> : vector<16x16xf32>
    %119 = tpu.matmul %115, %118, %cst_57 {dimension_numbers = #tpu.dot_dimension_numbers<[1], [0], [0], [1], [0, 0, 1, 1], [], []>} : vector<16x8xf32>, vector<8x16xf32>, vector<16x16xf32> -> vector<16x16xf32>
    %cst_58 = arith.constant 0.353553385 : f32
    %120 = vector.broadcast %cst_58 : f32 to vector<16x16xf32>
    %121 = arith.mulf %119, %120 : vector<16x16xf32>
    %cst_59 = arith.constant dense<0xFF800000> : vector<16xf32>
    %122 = vector.multi_reduction <maximumf>, %121, %cst_59 [1] : vector<16x16xf32> to vector<16xf32>
    %123 = vector.shape_cast %122 : vector<16xf32> to vector<16x1xf32>
    %124 = vector.broadcast %123 : vector<16x1xf32> to vector<16x16xf32>
    %125 = arith.subf %121, %124 : vector<16x16xf32>
    %126 = math.exp %125 : vector<16x16xf32>
    %cst_60 = arith.constant dense<0.000000e+00> : vector<16xf32>
    %127 = vector.multi_reduction <add>, %126, %cst_60 [1] : vector<16x16xf32> to vector<16xf32>
    %128 = vector.shape_cast %127 : vector<16xf32> to vector<16x1xf32>
    %129 = tpu.reciprocal %128 {approx = true} : vector<16x1xf32> -> vector<16x1xf32>
    %130 = vector.broadcast %129 : vector<16x1xf32> to vector<16x16xf32>
    %131 = arith.mulf %126, %130 : vector<16x16xf32>
    %cst_61 = arith.constant dense<0.000000e+00> : vector<16x8xf32>
    %132 = tpu.matmul %131, %117, %cst_61 {dimension_numbers = #tpu.dot_dimension_numbers<[1], [0], [0], [1], [0, 0, 1, 1], [], []>} : vector<16x16xf32>, vector<16x8xf32>, vector<16x8xf32> -> vector<16x8xf32>
    %133 = vector.extract_strided_slice %33 {offsets = [24, 0], sizes = [8, 32], strides = [1, 1]} : vector<32x32xf32> to vector<8x32xf32>
    %cst_62 = arith.constant dense<0.000000e+00> : vector<16x32xf32>
    %134 = tpu.matmul %132, %133, %cst_62 {dimension_numbers = #tpu.dot_dimension_numbers<[1], [0], [0], [1], [0, 0, 1, 1], [], []>} : vector<16x8xf32>, vector<8x32xf32>, vector<16x32xf32> -> vector<16x32xf32>
    %135 = arith.addf %114, %134 : vector<16x32xf32>
    %136 = vector.broadcast %35 : vector<1x32xf32> to vector<16x32xf32>
    %137 = arith.addf %135, %136 : vector<16x32xf32>
    %138 = arith.addf %17, %137 : vector<16x32xf32>
    %c0_63 = arith.constant 0 : index
    %c0_64 = arith.constant 0 : index
    %c0_65 = arith.constant 0 : index
    %139 = vector.load %arg13[%c0_63, %c0_64, %c0_65] : memref<4x1x32xf32, #tpu.memory_space<vmem>>, vector<1x1x32xf32>
    %140 = vector.shape_cast %139 : vector<1x1x32xf32> to vector<1x32xf32>
    %c0_66 = arith.constant 0 : index
    %c0_67 = arith.constant 0 : index
    %c0_68 = arith.constant 0 : index
    %141 = vector.load %arg14[%c0_66, %c0_67, %c0_68] : memref<4x1x32xf32, #tpu.memory_space<vmem>>, vector<1x1x32xf32>
    %142 = vector.shape_cast %141 : vector<1x1x32xf32> to vector<1x32xf32>
    %cst_69 = arith.constant dense<0.000000e+00> : vector<16xf32>
    %143 = vector.multi_reduction <add>, %138, %cst_69 [1] : vector<16x32xf32> to vector<16xf32>
    %144 = vector.shape_cast %143 : vector<16xf32> to vector<16x1xf32>
    %cst_70 = arith.constant 3.200000e+01 : f32
    %145 = vector.broadcast %cst_70 : f32 to vector<16x1xf32>
    %146 = arith.divf %144, %145 : vector<16x1xf32>
    %147 = vector.broadcast %146 : vector<16x1xf32> to vector<16x32xf32>
    %148 = arith.subf %138, %147 : vector<16x32xf32>
    %149 = arith.mulf %148, %148 : vector<16x32xf32>
    %cst_71 = arith.constant dense<0.000000e+00> : vector<16xf32>
    %150 = vector.multi_reduction <add>, %149, %cst_71 [1] : vector<16x32xf32> to vector<16xf32>
    %151 = vector.shape_cast %150 : vector<16xf32> to vector<16x1xf32>
    %cst_72 = arith.constant 3.200000e+01 : f32
    %152 = vector.broadcast %cst_72 : f32 to vector<16x1xf32>
    %153 = arith.divf %151, %152 : vector<16x1xf32>
    %154 = vector.broadcast %146 : vector<16x1xf32> to vector<16x32xf32>
    %155 = arith.subf %138, %154 : vector<16x32xf32>
    %cst_73 = arith.constant 9.99999974E-6 : f32
    %156 = vector.broadcast %cst_73 : f32 to vector<16x1xf32>
    %157 = arith.addf %153, %156 : vector<16x1xf32>
    %158 = math.rsqrt %157 : vector<16x1xf32>
    %159 = vector.broadcast %158 : vector<16x1xf32> to vector<16x32xf32>
    %160 = arith.mulf %155, %159 : vector<16x32xf32>
    %161 = vector.broadcast %140 : vector<1x32xf32> to vector<16x32xf32>
    %162 = arith.mulf %160, %161 : vector<16x32xf32>
    %163 = vector.broadcast %142 : vector<1x32xf32> to vector<16x32xf32>
    %164 = arith.addf %162, %163 : vector<16x32xf32>
    %c0_74 = arith.constant 0 : index
    %c0_75 = arith.constant 0 : index
    %c0_76 = arith.constant 0 : index
    %165 = vector.load %arg9[%c0_74, %c0_75, %c0_76] : memref<2x32x64xf32, #tpu.memory_space<vmem>>, vector<1x32x64xf32>
    %166 = vector.shape_cast %165 : vector<1x32x64xf32> to vector<32x64xf32>
    %c0_77 = arith.constant 0 : index
    %c0_78 = arith.constant 0 : index
    %c0_79 = arith.constant 0 : index
    %167 = vector.load %arg10[%c0_77, %c0_78, %c0_79] : memref<2x1x64xf32, #tpu.memory_space<vmem>>, vector<1x1x64xf32>
    %168 = vector.shape_cast %167 : vector<1x1x64xf32> to vector<1x64xf32>
    %169 = arith.truncf %164 : vector<16x32xf32> to vector<16x32xbf16>
    %170 = arith.truncf %166 : vector<32x64xf32> to vector<32x64xbf16>
    %cst_80 = arith.constant dense<0.000000e+00> : vector<16x64xf32>
    %171 = tpu.matmul %169, %170, %cst_80 {dimension_numbers = #tpu.dot_dimension_numbers<[1], [0], [0], [1], [0, 0, 1, 1], [], []>} : vector<16x32xbf16>, vector<32x64xbf16>, vector<16x64xf32> -> vector<16x64xf32>
    %172 = vector.broadcast %168 : vector<1x64xf32> to vector<16x64xf32>
    %173 = arith.addf %171, %172 : vector<16x64xf32>
    %cst_81 = arith.constant 0.000000e+00 : f32
    %174 = vector.broadcast %cst_81 : f32 to vector<16x64xf32>
    %175 = arith.maximumf %173, %174 : vector<16x64xf32>
    %c0_82 = arith.constant 0 : index
    %c0_83 = arith.constant 0 : index
    %c0_84 = arith.constant 0 : index
    %176 = vector.load %arg11[%c0_82, %c0_83, %c0_84] : memref<2x64x32xf32, #tpu.memory_space<vmem>>, vector<1x64x32xf32>
    %177 = vector.shape_cast %176 : vector<1x64x32xf32> to vector<64x32xf32>
    %c0_85 = arith.constant 0 : index
    %c0_86 = arith.constant 0 : index
    %c0_87 = arith.constant 0 : index
    %178 = vector.load %arg12[%c0_85, %c0_86, %c0_87] : memref<2x1x32xf32, #tpu.memory_space<vmem>>, vector<1x1x32xf32>
    %179 = vector.shape_cast %178 : vector<1x1x32xf32> to vector<1x32xf32>
    %180 = arith.truncf %175 : vector<16x64xf32> to vector<16x64xbf16>
    %181 = arith.truncf %177 : vector<64x32xf32> to vector<64x32xbf16>
    %cst_88 = arith.constant dense<0.000000e+00> : vector<16x32xf32>
    %182 = tpu.matmul %180, %181, %cst_88 {dimension_numbers = #tpu.dot_dimension_numbers<[1], [0], [0], [1], [0, 0, 1, 1], [], []>} : vector<16x64xbf16>, vector<64x32xbf16>, vector<16x32xf32> -> vector<16x32xf32>
    %183 = vector.broadcast %179 : vector<1x32xf32> to vector<16x32xf32>
    %184 = arith.addf %182, %183 : vector<16x32xf32>
    %185 = arith.addf %164, %184 : vector<16x32xf32>
    %c1_89 = arith.constant 1 : index
    %c0_90 = arith.constant 0 : index
    %c0_91 = arith.constant 0 : index
    %186 = vector.load %arg13[%c1_89, %c0_90, %c0_91] : memref<4x1x32xf32, #tpu.memory_space<vmem>>, vector<1x1x32xf32>
    %187 = vector.shape_cast %186 : vector<1x1x32xf32> to vector<1x32xf32>
    %c1_92 = arith.constant 1 : index
    %c0_93 = arith.constant 0 : index
    %c0_94 = arith.constant 0 : index
    %188 = vector.load %arg14[%c1_92, %c0_93, %c0_94] : memref<4x1x32xf32, #tpu.memory_space<vmem>>, vector<1x1x32xf32>
    %189 = vector.shape_cast %188 : vector<1x1x32xf32> to vector<1x32xf32>
    %cst_95 = arith.constant dense<0.000000e+00> : vector<16xf32>
    %190 = vector.multi_reduction <add>, %185, %cst_95 [1] : vector<16x32xf32> to vector<16xf32>
    %191 = vector.shape_cast %190 : vector<16xf32> to vector<16x1xf32>
    %cst_96 = arith.constant 3.200000e+01 : f32
    %192 = vector.broadcast %cst_96 : f32 to vector<16x1xf32>
    %193 = arith.divf %191, %192 : vector<16x1xf32>
    %194 = vector.broadcast %193 : vector<16x1xf32> to vector<16x32xf32>
    %195 = arith.subf %185, %194 : vector<16x32xf32>
    %196 = arith.mulf %195, %195 : vector<16x32xf32>
    %cst_97 = arith.constant dense<0.000000e+00> : vector<16xf32>
    %197 = vector.multi_reduction <add>, %196, %cst_97 [1] : vector<16x32xf32> to vector<16xf32>
    %198 = vector.shape_cast %197 : vector<16xf32> to vector<16x1xf32>
    %cst_98 = arith.constant 3.200000e+01 : f32
    %199 = vector.broadcast %cst_98 : f32 to vector<16x1xf32>
    %200 = arith.divf %198, %199 : vector<16x1xf32>
    %201 = vector.broadcast %193 : vector<16x1xf32> to vector<16x32xf32>
    %202 = arith.subf %185, %201 : vector<16x32xf32>
    %cst_99 = arith.constant 9.99999974E-6 : f32
    %203 = vector.broadcast %cst_99 : f32 to vector<16x1xf32>
    %204 = arith.addf %200, %203 : vector<16x1xf32>
    %205 = math.rsqrt %204 : vector<16x1xf32>
    %206 = vector.broadcast %205 : vector<16x1xf32> to vector<16x32xf32>
    %207 = arith.mulf %202, %206 : vector<16x32xf32>
    %208 = vector.broadcast %187 : vector<1x32xf32> to vector<16x32xf32>
    %209 = arith.mulf %207, %208 : vector<16x32xf32>
    %210 = vector.broadcast %189 : vector<1x32xf32> to vector<16x32xf32>
    %211 = arith.addf %209, %210 : vector<16x32xf32>
    %212 = arith.addf %211, %18 : vector<16x32xf32>
    %c4 = arith.constant 4 : index
    %c0_100 = arith.constant 0 : index
    %c0_101 = arith.constant 0 : index
    %213 = vector.load %arg7[%c4, %c0_100, %c0_101] : memref<8x32x32xf32, #tpu.memory_space<vmem>>, vector<1x32x32xf32>
    %214 = vector.shape_cast %213 : vector<1x32x32xf32> to vector<32x32xf32>
    %c4_102 = arith.constant 4 : index
    %c0_103 = arith.constant 0 : index
    %c0_104 = arith.constant 0 : index
    %215 = vector.load %arg8[%c4_102, %c0_103, %c0_104] : memref<8x1x32xf32, #tpu.memory_space<vmem>>, vector<1x1x32xf32>
    %216 = vector.shape_cast %215 : vector<1x1x32xf32> to vector<1x32xf32>
    %c5 = arith.constant 5 : index
    %c0_105 = arith.constant 0 : index
    %c0_106 = arith.constant 0 : index
    %217 = vector.load %arg7[%c5, %c0_105, %c0_106] : memref<8x32x32xf32, #tpu.memory_space<vmem>>, vector<1x32x32xf32>
    %218 = vector.shape_cast %217 : vector<1x32x32xf32> to vector<32x32xf32>
    %c5_107 = arith.constant 5 : index
    %c0_108 = arith.constant 0 : index
    %c0_109 = arith.constant 0 : index
    %219 = vector.load %arg8[%c5_107, %c0_108, %c0_109] : memref<8x1x32xf32, #tpu.memory_space<vmem>>, vector<1x1x32xf32>
    %220 = vector.shape_cast %219 : vector<1x1x32xf32> to vector<1x32xf32>
    %c6 = arith.constant 6 : index
    %c0_110 = arith.constant 0 : index
    %c0_111 = arith.constant 0 : index
    %221 = vector.load %arg7[%c6, %c0_110, %c0_111] : memref<8x32x32xf32, #tpu.memory_space<vmem>>, vector<1x32x32xf32>
    %222 = vector.shape_cast %221 : vector<1x32x32xf32> to vector<32x32xf32>
    %c6_112 = arith.constant 6 : index
    %c0_113 = arith.constant 0 : index
    %c0_114 = arith.constant 0 : index
    %223 = vector.load %arg8[%c6_112, %c0_113, %c0_114] : memref<8x1x32xf32, #tpu.memory_space<vmem>>, vector<1x1x32xf32>
    %224 = vector.shape_cast %223 : vector<1x1x32xf32> to vector<1x32xf32>
    %c7 = arith.constant 7 : index
    %c0_115 = arith.constant 0 : index
    %c0_116 = arith.constant 0 : index
    %225 = vector.load %arg7[%c7, %c0_115, %c0_116] : memref<8x32x32xf32, #tpu.memory_space<vmem>>, vector<1x32x32xf32>
    %226 = vector.shape_cast %225 : vector<1x32x32xf32> to vector<32x32xf32>
    %c7_117 = arith.constant 7 : index
    %c0_118 = arith.constant 0 : index
    %c0_119 = arith.constant 0 : index
    %227 = vector.load %arg8[%c7_117, %c0_118, %c0_119] : memref<8x1x32xf32, #tpu.memory_space<vmem>>, vector<1x1x32xf32>
    %228 = vector.shape_cast %227 : vector<1x1x32xf32> to vector<1x32xf32>
    %229 = arith.truncf %212 : vector<16x32xf32> to vector<16x32xbf16>
    %230 = arith.truncf %214 : vector<32x32xf32> to vector<32x32xbf16>
    %cst_120 = arith.constant dense<0.000000e+00> : vector<16x32xf32>
    %231 = tpu.matmul %229, %230, %cst_120 {dimension_numbers = #tpu.dot_dimension_numbers<[1], [0], [0], [1], [0, 0, 1, 1], [], []>} : vector<16x32xbf16>, vector<32x32xbf16>, vector<16x32xf32> -> vector<16x32xf32>
    %232 = vector.broadcast %216 : vector<1x32xf32> to vector<16x32xf32>
    %233 = arith.addf %231, %232 : vector<16x32xf32>
    %234 = arith.truncf %212 : vector<16x32xf32> to vector<16x32xbf16>
    %235 = arith.truncf %218 : vector<32x32xf32> to vector<32x32xbf16>
    %cst_121 = arith.constant dense<0.000000e+00> : vector<16x32xf32>
    %236 = tpu.matmul %234, %235, %cst_121 {dimension_numbers = #tpu.dot_dimension_numbers<[1], [0], [0], [1], [0, 0, 1, 1], [], []>} : vector<16x32xbf16>, vector<32x32xbf16>, vector<16x32xf32> -> vector<16x32xf32>
    %237 = vector.broadcast %220 : vector<1x32xf32> to vector<16x32xf32>
    %238 = arith.addf %236, %237 : vector<16x32xf32>
    %239 = arith.truncf %211 : vector<16x32xf32> to vector<16x32xbf16>
    %240 = arith.truncf %222 : vector<32x32xf32> to vector<32x32xbf16>
    %cst_122 = arith.constant dense<0.000000e+00> : vector<16x32xf32>
    %241 = tpu.matmul %239, %240, %cst_122 {dimension_numbers = #tpu.dot_dimension_numbers<[1], [0], [0], [1], [0, 0, 1, 1], [], []>} : vector<16x32xbf16>, vector<32x32xbf16>, vector<16x32xf32> -> vector<16x32xf32>
    %242 = vector.broadcast %224 : vector<1x32xf32> to vector<16x32xf32>
    %243 = arith.addf %241, %242 : vector<16x32xf32>
    %cst_123 = arith.constant 0.000000e+00 : f32
    %244 = vector.broadcast %cst_123 : f32 to vector<16x32xf32>
    %245 = vector.extract_strided_slice %233 {offsets = [0, 0], sizes = [16, 8], strides = [1, 1]} : vector<16x32xf32> to vector<16x8xf32>
    %246 = vector.extract_strided_slice %238 {offsets = [0, 0], sizes = [16, 8], strides = [1, 1]} : vector<16x32xf32> to vector<16x8xf32>
    %247 = vector.extract_strided_slice %243 {offsets = [0, 0], sizes = [16, 8], strides = [1, 1]} : vector<16x32xf32> to vector<16x8xf32>
    %248 = tpu.transpose %246, [1, 0] : vector<16x8xf32> -> vector<8x16xf32>
    %cst_124 = arith.constant dense<0.000000e+00> : vector<16x16xf32>
    %249 = tpu.matmul %245, %248, %cst_124 {dimension_numbers = #tpu.dot_dimension_numbers<[1], [0], [0], [1], [0, 0, 1, 1], [], []>} : vector<16x8xf32>, vector<8x16xf32>, vector<16x16xf32> -> vector<16x16xf32>
    %cst_125 = arith.constant 0.353553385 : f32
    %250 = vector.broadcast %cst_125 : f32 to vector<16x16xf32>
    %251 = arith.mulf %249, %250 : vector<16x16xf32>
    %cst_126 = arith.constant dense<0xFF800000> : vector<16xf32>
    %252 = vector.multi_reduction <maximumf>, %251, %cst_126 [1] : vector<16x16xf32> to vector<16xf32>
    %253 = vector.shape_cast %252 : vector<16xf32> to vector<16x1xf32>
    %254 = vector.broadcast %253 : vector<16x1xf32> to vector<16x16xf32>
    %255 = arith.subf %251, %254 : vector<16x16xf32>
    %256 = math.exp %255 : vector<16x16xf32>
    %cst_127 = arith.constant dense<0.000000e+00> : vector<16xf32>
    %257 = vector.multi_reduction <add>, %256, %cst_127 [1] : vector<16x16xf32> to vector<16xf32>
    %258 = vector.shape_cast %257 : vector<16xf32> to vector<16x1xf32>
    %259 = tpu.reciprocal %258 {approx = true} : vector<16x1xf32> -> vector<16x1xf32>
    %260 = vector.broadcast %259 : vector<16x1xf32> to vector<16x16xf32>
    %261 = arith.mulf %256, %260 : vector<16x16xf32>
    %cst_128 = arith.constant dense<0.000000e+00> : vector<16x8xf32>
    %262 = tpu.matmul %261, %247, %cst_128 {dimension_numbers = #tpu.dot_dimension_numbers<[1], [0], [0], [1], [0, 0, 1, 1], [], []>} : vector<16x16xf32>, vector<16x8xf32>, vector<16x8xf32> -> vector<16x8xf32>
    %263 = vector.extract_strided_slice %226 {offsets = [0, 0], sizes = [8, 32], strides = [1, 1]} : vector<32x32xf32> to vector<8x32xf32>
    %cst_129 = arith.constant dense<0.000000e+00> : vector<16x32xf32>
    %264 = tpu.matmul %262, %263, %cst_129 {dimension_numbers = #tpu.dot_dimension_numbers<[1], [0], [0], [1], [0, 0, 1, 1], [], []>} : vector<16x8xf32>, vector<8x32xf32>, vector<16x32xf32> -> vector<16x32xf32>
    %265 = arith.addf %244, %264 : vector<16x32xf32>
    %266 = vector.extract_strided_slice %233 {offsets = [0, 8], sizes = [16, 8], strides = [1, 1]} : vector<16x32xf32> to vector<16x8xf32>
    %267 = vector.extract_strided_slice %238 {offsets = [0, 8], sizes = [16, 8], strides = [1, 1]} : vector<16x32xf32> to vector<16x8xf32>
    %268 = vector.extract_strided_slice %243 {offsets = [0, 8], sizes = [16, 8], strides = [1, 1]} : vector<16x32xf32> to vector<16x8xf32>
    %269 = tpu.transpose %267, [1, 0] : vector<16x8xf32> -> vector<8x16xf32>
    %cst_130 = arith.constant dense<0.000000e+00> : vector<16x16xf32>
    %270 = tpu.matmul %266, %269, %cst_130 {dimension_numbers = #tpu.dot_dimension_numbers<[1], [0], [0], [1], [0, 0, 1, 1], [], []>} : vector<16x8xf32>, vector<8x16xf32>, vector<16x16xf32> -> vector<16x16xf32>
    %cst_131 = arith.constant 0.353553385 : f32
    %271 = vector.broadcast %cst_131 : f32 to vector<16x16xf32>
    %272 = arith.mulf %270, %271 : vector<16x16xf32>
    %cst_132 = arith.constant dense<0xFF800000> : vector<16xf32>
    %273 = vector.multi_reduction <maximumf>, %272, %cst_132 [1] : vector<16x16xf32> to vector<16xf32>
    %274 = vector.shape_cast %273 : vector<16xf32> to vector<16x1xf32>
    %275 = vector.broadcast %274 : vector<16x1xf32> to vector<16x16xf32>
    %276 = arith.subf %272, %275 : vector<16x16xf32>
    %277 = math.exp %276 : vector<16x16xf32>
    %cst_133 = arith.constant dense<0.000000e+00> : vector<16xf32>
    %278 = vector.multi_reduction <add>, %277, %cst_133 [1] : vector<16x16xf32> to vector<16xf32>
    %279 = vector.shape_cast %278 : vector<16xf32> to vector<16x1xf32>
    %280 = tpu.reciprocal %279 {approx = true} : vector<16x1xf32> -> vector<16x1xf32>
    %281 = vector.broadcast %280 : vector<16x1xf32> to vector<16x16xf32>
    %282 = arith.mulf %277, %281 : vector<16x16xf32>
    %cst_134 = arith.constant dense<0.000000e+00> : vector<16x8xf32>
    %283 = tpu.matmul %282, %268, %cst_134 {dimension_numbers = #tpu.dot_dimension_numbers<[1], [0], [0], [1], [0, 0, 1, 1], [], []>} : vector<16x16xf32>, vector<16x8xf32>, vector<16x8xf32> -> vector<16x8xf32>
    %284 = vector.extract_strided_slice %226 {offsets = [8, 0], sizes = [8, 32], strides = [1, 1]} : vector<32x32xf32> to vector<8x32xf32>
    %cst_135 = arith.constant dense<0.000000e+00> : vector<16x32xf32>
    %285 = tpu.matmul %283, %284, %cst_135 {dimension_numbers = #tpu.dot_dimension_numbers<[1], [0], [0], [1], [0, 0, 1, 1], [], []>} : vector<16x8xf32>, vector<8x32xf32>, vector<16x32xf32> -> vector<16x32xf32>
    %286 = arith.addf %265, %285 : vector<16x32xf32>
    %287 = vector.extract_strided_slice %233 {offsets = [0, 16], sizes = [16, 8], strides = [1, 1]} : vector<16x32xf32> to vector<16x8xf32>
    %288 = vector.extract_strided_slice %238 {offsets = [0, 16], sizes = [16, 8], strides = [1, 1]} : vector<16x32xf32> to vector<16x8xf32>
    %289 = vector.extract_strided_slice %243 {offsets = [0, 16], sizes = [16, 8], strides = [1, 1]} : vector<16x32xf32> to vector<16x8xf32>
    %290 = tpu.transpose %288, [1, 0] : vector<16x8xf32> -> vector<8x16xf32>
    %cst_136 = arith.constant dense<0.000000e+00> : vector<16x16xf32>
    %291 = tpu.matmul %287, %290, %cst_136 {dimension_numbers = #tpu.dot_dimension_numbers<[1], [0], [0], [1], [0, 0, 1, 1], [], []>} : vector<16x8xf32>, vector<8x16xf32>, vector<16x16xf32> -> vector<16x16xf32>
    %cst_137 = arith.constant 0.353553385 : f32
    %292 = vector.broadcast %cst_137 : f32 to vector<16x16xf32>
    %293 = arith.mulf %291, %292 : vector<16x16xf32>
    %cst_138 = arith.constant dense<0xFF800000> : vector<16xf32>
    %294 = vector.multi_reduction <maximumf>, %293, %cst_138 [1] : vector<16x16xf32> to vector<16xf32>
    %295 = vector.shape_cast %294 : vector<16xf32> to vector<16x1xf32>
    %296 = vector.broadcast %295 : vector<16x1xf32> to vector<16x16xf32>
    %297 = arith.subf %293, %296 : vector<16x16xf32>
    %298 = math.exp %297 : vector<16x16xf32>
    %cst_139 = arith.constant dense<0.000000e+00> : vector<16xf32>
    %299 = vector.multi_reduction <add>, %298, %cst_139 [1] : vector<16x16xf32> to vector<16xf32>
    %300 = vector.shape_cast %299 : vector<16xf32> to vector<16x1xf32>
    %301 = tpu.reciprocal %300 {approx = true} : vector<16x1xf32> -> vector<16x1xf32>
    %302 = vector.broadcast %301 : vector<16x1xf32> to vector<16x16xf32>
    %303 = arith.mulf %298, %302 : vector<16x16xf32>
    %cst_140 = arith.constant dense<0.000000e+00> : vector<16x8xf32>
    %304 = tpu.matmul %303, %289, %cst_140 {dimension_numbers = #tpu.dot_dimension_numbers<[1], [0], [0], [1], [0, 0, 1, 1], [], []>} : vector<16x16xf32>, vector<16x8xf32>, vector<16x8xf32> -> vector<16x8xf32>
    %305 = vector.extract_strided_slice %226 {offsets = [16, 0], sizes = [8, 32], strides = [1, 1]} : vector<32x32xf32> to vector<8x32xf32>
    %cst_141 = arith.constant dense<0.000000e+00> : vector<16x32xf32>
    %306 = tpu.matmul %304, %305, %cst_141 {dimension_numbers = #tpu.dot_dimension_numbers<[1], [0], [0], [1], [0, 0, 1, 1], [], []>} : vector<16x8xf32>, vector<8x32xf32>, vector<16x32xf32> -> vector<16x32xf32>
    %307 = arith.addf %286, %306 : vector<16x32xf32>
    %308 = vector.extract_strided_slice %233 {offsets = [0, 24], sizes = [16, 8], strides = [1, 1]} : vector<16x32xf32> to vector<16x8xf32>
    %309 = vector.extract_strided_slice %238 {offsets = [0, 24], sizes = [16, 8], strides = [1, 1]} : vector<16x32xf32> to vector<16x8xf32>
    %310 = vector.extract_strided_slice %243 {offsets = [0, 24], sizes = [16, 8], strides = [1, 1]} : vector<16x32xf32> to vector<16x8xf32>
    %311 = tpu.transpose %309, [1, 0] : vector<16x8xf32> -> vector<8x16xf32>
    %cst_142 = arith.constant dense<0.000000e+00> : vector<16x16xf32>
    %312 = tpu.matmul %308, %311, %cst_142 {dimension_numbers = #tpu.dot_dimension_numbers<[1], [0], [0], [1], [0, 0, 1, 1], [], []>} : vector<16x8xf32>, vector<8x16xf32>, vector<16x16xf32> -> vector<16x16xf32>
    %cst_143 = arith.constant 0.353553385 : f32
    %313 = vector.broadcast %cst_143 : f32 to vector<16x16xf32>
    %314 = arith.mulf %312, %313 : vector<16x16xf32>
    %cst_144 = arith.constant dense<0xFF800000> : vector<16xf32>
    %315 = vector.multi_reduction <maximumf>, %314, %cst_144 [1] : vector<16x16xf32> to vector<16xf32>
    %316 = vector.shape_cast %315 : vector<16xf32> to vector<16x1xf32>
    %317 = vector.broadcast %316 : vector<16x1xf32> to vector<16x16xf32>
    %318 = arith.subf %314, %317 : vector<16x16xf32>
    %319 = math.exp %318 : vector<16x16xf32>
    %cst_145 = arith.constant dense<0.000000e+00> : vector<16xf32>
    %320 = vector.multi_reduction <add>, %319, %cst_145 [1] : vector<16x16xf32> to vector<16xf32>
    %321 = vector.shape_cast %320 : vector<16xf32> to vector<16x1xf32>
    %322 = tpu.reciprocal %321 {approx = true} : vector<16x1xf32> -> vector<16x1xf32>
    %323 = vector.broadcast %322 : vector<16x1xf32> to vector<16x16xf32>
    %324 = arith.mulf %319, %323 : vector<16x16xf32>
    %cst_146 = arith.constant dense<0.000000e+00> : vector<16x8xf32>
    %325 = tpu.matmul %324, %310, %cst_146 {dimension_numbers = #tpu.dot_dimension_numbers<[1], [0], [0], [1], [0, 0, 1, 1], [], []>} : vector<16x16xf32>, vector<16x8xf32>, vector<16x8xf32> -> vector<16x8xf32>
    %326 = vector.extract_strided_slice %226 {offsets = [24, 0], sizes = [8, 32], strides = [1, 1]} : vector<32x32xf32> to vector<8x32xf32>
    %cst_147 = arith.constant dense<0.000000e+00> : vector<16x32xf32>
    %327 = tpu.matmul %325, %326, %cst_147 {dimension_numbers = #tpu.dot_dimension_numbers<[1], [0], [0], [1], [0, 0, 1, 1], [], []>} : vector<16x8xf32>, vector<8x32xf32>, vector<16x32xf32> -> vector<16x32xf32>
    %328 = arith.addf %307, %327 : vector<16x32xf32>
    %329 = vector.broadcast %228 : vector<1x32xf32> to vector<16x32xf32>
    %330 = arith.addf %328, %329 : vector<16x32xf32>
    %331 = arith.addf %211, %330 : vector<16x32xf32>
    %c2_148 = arith.constant 2 : index
    %c0_149 = arith.constant 0 : index
    %c0_150 = arith.constant 0 : index
    %332 = vector.load %arg13[%c2_148, %c0_149, %c0_150] : memref<4x1x32xf32, #tpu.memory_space<vmem>>, vector<1x1x32xf32>
    %333 = vector.shape_cast %332 : vector<1x1x32xf32> to vector<1x32xf32>
    %c2_151 = arith.constant 2 : index
    %c0_152 = arith.constant 0 : index
    %c0_153 = arith.constant 0 : index
    %334 = vector.load %arg14[%c2_151, %c0_152, %c0_153] : memref<4x1x32xf32, #tpu.memory_space<vmem>>, vector<1x1x32xf32>
    %335 = vector.shape_cast %334 : vector<1x1x32xf32> to vector<1x32xf32>
    %cst_154 = arith.constant dense<0.000000e+00> : vector<16xf32>
    %336 = vector.multi_reduction <add>, %331, %cst_154 [1] : vector<16x32xf32> to vector<16xf32>
    %337 = vector.shape_cast %336 : vector<16xf32> to vector<16x1xf32>
    %cst_155 = arith.constant 3.200000e+01 : f32
    %338 = vector.broadcast %cst_155 : f32 to vector<16x1xf32>
    %339 = arith.divf %337, %338 : vector<16x1xf32>
    %340 = vector.broadcast %339 : vector<16x1xf32> to vector<16x32xf32>
    %341 = arith.subf %331, %340 : vector<16x32xf32>
    %342 = arith.mulf %341, %341 : vector<16x32xf32>
    %cst_156 = arith.constant dense<0.000000e+00> : vector<16xf32>
    %343 = vector.multi_reduction <add>, %342, %cst_156 [1] : vector<16x32xf32> to vector<16xf32>
    %344 = vector.shape_cast %343 : vector<16xf32> to vector<16x1xf32>
    %cst_157 = arith.constant 3.200000e+01 : f32
    %345 = vector.broadcast %cst_157 : f32 to vector<16x1xf32>
    %346 = arith.divf %344, %345 : vector<16x1xf32>
    %347 = vector.broadcast %339 : vector<16x1xf32> to vector<16x32xf32>
    %348 = arith.subf %331, %347 : vector<16x32xf32>
    %cst_158 = arith.constant 9.99999974E-6 : f32
    %349 = vector.broadcast %cst_158 : f32 to vector<16x1xf32>
    %350 = arith.addf %346, %349 : vector<16x1xf32>
    %351 = math.rsqrt %350 : vector<16x1xf32>
    %352 = vector.broadcast %351 : vector<16x1xf32> to vector<16x32xf32>
    %353 = arith.mulf %348, %352 : vector<16x32xf32>
    %354 = vector.broadcast %333 : vector<1x32xf32> to vector<16x32xf32>
    %355 = arith.mulf %353, %354 : vector<16x32xf32>
    %356 = vector.broadcast %335 : vector<1x32xf32> to vector<16x32xf32>
    %357 = arith.addf %355, %356 : vector<16x32xf32>
    %c1_159 = arith.constant 1 : index
    %c0_160 = arith.constant 0 : index
    %c0_161 = arith.constant 0 : index
    %358 = vector.load %arg9[%c1_159, %c0_160, %c0_161] : memref<2x32x64xf32, #tpu.memory_space<vmem>>, vector<1x32x64xf32>
    %359 = vector.shape_cast %358 : vector<1x32x64xf32> to vector<32x64xf32>
    %c1_162 = arith.constant 1 : index
    %c0_163 = arith.constant 0 : index
    %c0_164 = arith.constant 0 : index
    %360 = vector.load %arg10[%c1_162, %c0_163, %c0_164] : memref<2x1x64xf32, #tpu.memory_space<vmem>>, vector<1x1x64xf32>
    %361 = vector.shape_cast %360 : vector<1x1x64xf32> to vector<1x64xf32>
    %362 = arith.truncf %357 : vector<16x32xf32> to vector<16x32xbf16>
    %363 = arith.truncf %359 : vector<32x64xf32> to vector<32x64xbf16>
    %cst_165 = arith.constant dense<0.000000e+00> : vector<16x64xf32>
    %364 = tpu.matmul %362, %363, %cst_165 {dimension_numbers = #tpu.dot_dimension_numbers<[1], [0], [0], [1], [0, 0, 1, 1], [], []>} : vector<16x32xbf16>, vector<32x64xbf16>, vector<16x64xf32> -> vector<16x64xf32>
    %365 = vector.broadcast %361 : vector<1x64xf32> to vector<16x64xf32>
    %366 = arith.addf %364, %365 : vector<16x64xf32>
    %cst_166 = arith.constant 0.000000e+00 : f32
    %367 = vector.broadcast %cst_166 : f32 to vector<16x64xf32>
    %368 = arith.maximumf %366, %367 : vector<16x64xf32>
    %c1_167 = arith.constant 1 : index
    %c0_168 = arith.constant 0 : index
    %c0_169 = arith.constant 0 : index
    %369 = vector.load %arg11[%c1_167, %c0_168, %c0_169] : memref<2x64x32xf32, #tpu.memory_space<vmem>>, vector<1x64x32xf32>
    %370 = vector.shape_cast %369 : vector<1x64x32xf32> to vector<64x32xf32>
    %c1_170 = arith.constant 1 : index
    %c0_171 = arith.constant 0 : index
    %c0_172 = arith.constant 0 : index
    %371 = vector.load %arg12[%c1_170, %c0_171, %c0_172] : memref<2x1x32xf32, #tpu.memory_space<vmem>>, vector<1x1x32xf32>
    %372 = vector.shape_cast %371 : vector<1x1x32xf32> to vector<1x32xf32>
    %373 = arith.truncf %368 : vector<16x64xf32> to vector<16x64xbf16>
    %374 = arith.truncf %370 : vector<64x32xf32> to vector<64x32xbf16>
    %cst_173 = arith.constant dense<0.000000e+00> : vector<16x32xf32>
    %375 = tpu.matmul %373, %374, %cst_173 {dimension_numbers = #tpu.dot_dimension_numbers<[1], [0], [0], [1], [0, 0, 1, 1], [], []>} : vector<16x64xbf16>, vector<64x32xbf16>, vector<16x32xf32> -> vector<16x32xf32>
    %376 = vector.broadcast %372 : vector<1x32xf32> to vector<16x32xf32>
    %377 = arith.addf %375, %376 : vector<16x32xf32>
    %378 = arith.addf %357, %377 : vector<16x32xf32>
    %c3_174 = arith.constant 3 : index
    %c0_175 = arith.constant 0 : index
    %c0_176 = arith.constant 0 : index
    %379 = vector.load %arg13[%c3_174, %c0_175, %c0_176] : memref<4x1x32xf32, #tpu.memory_space<vmem>>, vector<1x1x32xf32>
    %380 = vector.shape_cast %379 : vector<1x1x32xf32> to vector<1x32xf32>
    %c3_177 = arith.constant 3 : index
    %c0_178 = arith.constant 0 : index
    %c0_179 = arith.constant 0 : index
    %381 = vector.load %arg14[%c3_177, %c0_178, %c0_179] : memref<4x1x32xf32, #tpu.memory_space<vmem>>, vector<1x1x32xf32>
    %382 = vector.shape_cast %381 : vector<1x1x32xf32> to vector<1x32xf32>
    %cst_180 = arith.constant dense<0.000000e+00> : vector<16xf32>
    %383 = vector.multi_reduction <add>, %378, %cst_180 [1] : vector<16x32xf32> to vector<16xf32>
    %384 = vector.shape_cast %383 : vector<16xf32> to vector<16x1xf32>
    %cst_181 = arith.constant 3.200000e+01 : f32
    %385 = vector.broadcast %cst_181 : f32 to vector<16x1xf32>
    %386 = arith.divf %384, %385 : vector<16x1xf32>
    %387 = vector.broadcast %386 : vector<16x1xf32> to vector<16x32xf32>
    %388 = arith.subf %378, %387 : vector<16x32xf32>
    %389 = arith.mulf %388, %388 : vector<16x32xf32>
    %cst_182 = arith.constant dense<0.000000e+00> : vector<16xf32>
    %390 = vector.multi_reduction <add>, %389, %cst_182 [1] : vector<16x32xf32> to vector<16xf32>
    %391 = vector.shape_cast %390 : vector<16xf32> to vector<16x1xf32>
    %cst_183 = arith.constant 3.200000e+01 : f32
    %392 = vector.broadcast %cst_183 : f32 to vector<16x1xf32>
    %393 = arith.divf %391, %392 : vector<16x1xf32>
    %394 = vector.broadcast %386 : vector<16x1xf32> to vector<16x32xf32>
    %395 = arith.subf %378, %394 : vector<16x32xf32>
    %cst_184 = arith.constant 9.99999974E-6 : f32
    %396 = vector.broadcast %cst_184 : f32 to vector<16x1xf32>
    %397 = arith.addf %393, %396 : vector<16x1xf32>
    %398 = math.rsqrt %397 : vector<16x1xf32>
    %399 = vector.broadcast %398 : vector<16x1xf32> to vector<16x32xf32>
    %400 = arith.mulf %395, %399 : vector<16x32xf32>
    %401 = vector.broadcast %380 : vector<1x32xf32> to vector<16x32xf32>
    %402 = arith.mulf %400, %401 : vector<16x32xf32>
    %403 = vector.broadcast %382 : vector<1x32xf32> to vector<16x32xf32>
    %404 = arith.addf %402, %403 : vector<16x32xf32>
    %c0_185 = arith.constant 0 : index
    %c0_186 = arith.constant 0 : index
    %c0_187 = arith.constant 0 : index
    %405 = vector.load %arg15[%c0_185, %c0_186, %c0_187] : memref<1x16x32xf32, #tpu.memory_space<vmem>>, vector<1x16x32xf32>
    %406 = vector.shape_cast %405 : vector<1x16x32xf32> to vector<16x32xf32>
    %407 = vector.shape_cast %404 : vector<16x32xf32> to vector<1x16x32xf32>
    tpu.vector_store %arg15[%c0_185, %c0_186, %c0_187], %407 {strides = array<i32>} : memref<1x16x32xf32, #tpu.memory_space<vmem>>, vector<1x16x32xf32>,
    return
  }
  func.func @transform_0(%arg0: i32) -> (i32, i32, i32) {
    %c0_i32 = arith.constant 0 : i32
    %c0_i32_0 = arith.constant 0 : i32
    %c0_i32_1 = arith.constant 0 : i32
    return %arg0, %c0_i32, %c0_i32_0 : i32, i32, i32
  }
  func.func @transform_1(%arg0: i32) -> (i32, i32) {
    %c0_i32 = arith.constant 0 : i32
    %c0_i32_0 = arith.constant 0 : i32
    %c0_i32_1 = arith.constant 0 : i32
    return %c0_i32, %c0_i32_0 : i32, i32
  }
  func.func @transform_2(%arg0: i32) -> (i32, i32) {
    %c0_i32 = arith.constant 0 : i32
    %c0_i32_0 = arith.constant 0 : i32
    %c0_i32_1 = arith.constant 0 : i32
    return %c0_i32, %c0_i32_0 : i32, i32
  }
  func.func @transform_3(%arg0: i32) -> (i32, i32) {
    %c0_i32 = arith.constant 0 : i32
    %c0_i32_0 = arith.constant 0 : i32
    %c0_i32_1 = arith.constant 0 : i32
    return %c0_i32, %c0_i32_0 : i32, i32
  }
  func.func @transform_4(%arg0: i32) -> (i32, i32) {
    %c0_i32 = arith.constant 0 : i32
    %c0_i32_0 = arith.constant 0 : i32
    %c0_i32_1 = arith.constant 0 : i32
    return %c0_i32, %c0_i32_0 : i32, i32
  }
  func.func @transform_5(%arg0: i32) -> (i32, i32) {
    %c0_i32 = arith.constant 0 : i32
    %c0_i32_0 = arith.constant 0 : i32
    %c0_i32_1 = arith.constant 0 : i32
    return %c0_i32, %c0_i32_0 : i32, i32
  }
  func.func @transform_6(%arg0: i32) -> (i32, i32, i32) {
    %c0_i32 = arith.constant 0 : i32
    %c0_i32_0 = arith.constant 0 : i32
    %c0_i32_1 = arith.constant 0 : i32
    %c0_i32_2 = arith.constant 0 : i32
    return %c0_i32, %c0_i32_0, %c0_i32_1 : i32, i32, i32
  }
  func.func @transform_7(%arg0: i32) -> (i32, i32, i32) {
    %c0_i32 = arith.constant 0 : i32
    %c0_i32_0 = arith.constant 0 : i32
    %c0_i32_1 = arith.constant 0 : i32
    %c0_i32_2 = arith.constant 0 : i32
    return %c0_i32, %c0_i32_0, %c0_i32_1 : i32, i32, i32
  }
  func.func @transform_8(%arg0: i32) -> (i32, i32, i32) {
    %c0_i32 = arith.constant 0 : i32
    %c0_i32_0 = arith.constant 0 : i32
    %c0_i32_1 = arith.constant 0 : i32
    %c0_i32_2 = arith.constant 0 : i32
    return %c0_i32, %c0_i32_0, %c0_i32_1 : i32, i32, i32
  }
  func.func @transform_9(%arg0: i32) -> (i32, i32, i32) {
    %c0_i32 = arith.constant 0 : i32
    %c0_i32_0 = arith.constant 0 : i32
    %c0_i32_1 = arith.constant 0 : i32
    %c0_i32_2 = arith.constant 0 : i32
    return %c0_i32, %c0_i32_0, %c0_i32_1 : i32, i32, i32
  }
  func.func @transform_10(%arg0: i32) -> (i32, i32, i32) {
    %c0_i32 = arith.constant 0 : i32
    %c0_i32_0 = arith.constant 0 : i32
    %c0_i32_1 = arith.constant 0 : i32
    %c0_i32_2 = arith.constant 0 : i32
    return %c0_i32, %c0_i32_0, %c0_i32_1 : i32, i32, i32
  }
  func.func @transform_11(%arg0: i32) -> (i32, i32, i32) {
    %c0_i32 = arith.constant 0 : i32
    %c0_i32_0 = arith.constant 0 : i32
    %c0_i32_1 = arith.constant 0 : i32
    %c0_i32_2 = arith.constant 0 : i32
    return %c0_i32, %c0_i32_0, %c0_i32_1 : i32, i32, i32
  }
  func.func @transform_12(%arg0: i32) -> (i32, i32, i32) {
    %c0_i32 = arith.constant 0 : i32
    %c0_i32_0 = arith.constant 0 : i32
    %c0_i32_1 = arith.constant 0 : i32
    %c0_i32_2 = arith.constant 0 : i32
    return %c0_i32, %c0_i32_0, %c0_i32_1 : i32, i32, i32
  }
  func.func @transform_13(%arg0: i32) -> (i32, i32, i32) {
    %c0_i32 = arith.constant 0 : i32
    %c0_i32_0 = arith.constant 0 : i32
    %c0_i32_1 = arith.constant 0 : i32
    %c0_i32_2 = arith.constant 0 : i32
    return %c0_i32, %c0_i32_0, %c0_i32_1 : i32, i32, i32
  }
  func.func @transform_14(%arg0: i32) -> (i32, i32, i32) {
    %c0_i32 = arith.constant 0 : i32
    %c0_i32_0 = arith.constant 0 : i32
    %c0_i32_1 = arith.constant 0 : i32
    return %arg0, %c0_i32, %c0_i32_0 : i32, i32, i32
  }
}

module attributes {stable_mosaic.version = 11 : i64} {
  func.func @_decoder_kernel(%arg0: i32, %arg1: memref<1x16x32xf32, #tpu.memory_space<vmem>>, %arg2: memref<16x32xf32, #tpu.memory_space<vmem>>, %arg3: memref<8x32xf32, #tpu.memory_space<vmem>>, %arg4: memref<16x32x32xf32, #tpu.memory_space<vmem>>, %arg5: memref<16x1x32xf32, #tpu.memory_space<vmem>>, %arg6: memref<2x32x64xf32, #tpu.memory_space<vmem>>, %arg7: memref<2x1x64xf32, #tpu.memory_space<vmem>>, %arg8: memref<2x64x32xf32, #tpu.memory_space<vmem>>, %arg9: memref<2x1x32xf32, #tpu.memory_space<vmem>>, %arg10: memref<6x1x32xf32, #tpu.memory_space<vmem>>, %arg11: memref<6x1x32xf32, #tpu.memory_space<vmem>>, %arg12: memref<1x32xf32, #tpu.memory_space<vmem>>, %arg13: memref<1x32xf32, #tpu.memory_space<vmem>>, %arg14: memref<32x16xf32, #tpu.memory_space<vmem>>, %arg15: memref<1x16xf32, #tpu.memory_space<vmem>>, %arg16: memref<32x32xf32, #tpu.memory_space<vmem>>, %arg17: memref<1x32xf32, #tpu.memory_space<vmem>>, %arg18: memref<32x32xf32, #tpu.memory_space<vmem>>, %arg19: memref<1x32xf32, #tpu.memory_space<vmem>>, %arg20: memref<32x4xf32, #tpu.memory_space<vmem>>, %arg21: memref<1x4xf32, #tpu.memory_space<vmem>>, %arg22: memref<1x8x16xf32, #tpu.memory_space<vmem>>, %arg23: memref<1x8x4xf32, #tpu.memory_space<vmem>>) attributes {dimension_semantics = [#tpu.dimension_semantics<parallel>], iteration_bounds = array<i64: 2>, scalar_prefetch = 0 : i64, scratch_operands = 0 : i64, tpu.core_type = #tpu.core_type<tc>, window_params = [{transform_indices = @transform_0, window_bounds = array<i64: 1, 16, 32>}, {pipeline_mode = #tpu.pipeline_mode<synchronous>, transform_indices = @transform_1, window_bounds = array<i64: 16, 32>}, {pipeline_mode = #tpu.pipeline_mode<synchronous>, transform_indices = @transform_2, window_bounds = array<i64: 8, 32>}, {pipeline_mode = #tpu.pipeline_mode<synchronous>, transform_indices = @transform_3, window_bounds = array<i64: 16, 32, 32>}, {pipeline_mode = #tpu.pipeline_mode<synchronous>, transform_indices = @transform_4, window_bounds = array<i64: 16, 1, 32>}, {pipeline_mode = #tpu.pipeline_mode<synchronous>, transform_indices = @transform_5, window_bounds = array<i64: 2, 32, 64>}, {pipeline_mode = #tpu.pipeline_mode<synchronous>, transform_indices = @transform_6, window_bounds = array<i64: 2, 1, 64>}, {pipeline_mode = #tpu.pipeline_mode<synchronous>, transform_indices = @transform_7, window_bounds = array<i64: 2, 64, 32>}, {pipeline_mode = #tpu.pipeline_mode<synchronous>, transform_indices = @transform_8, window_bounds = array<i64: 2, 1, 32>}, {pipeline_mode = #tpu.pipeline_mode<synchronous>, transform_indices = @transform_9, window_bounds = array<i64: 6, 1, 32>}, {pipeline_mode = #tpu.pipeline_mode<synchronous>, transform_indices = @transform_10, window_bounds = array<i64: 6, 1, 32>}, {pipeline_mode = #tpu.pipeline_mode<synchronous>, transform_indices = @transform_11, window_bounds = array<i64: 1, 32>}, {pipeline_mode = #tpu.pipeline_mode<synchronous>, transform_indices = @transform_12, window_bounds = array<i64: 1, 32>}, {pipeline_mode = #tpu.pipeline_mode<synchronous>, transform_indices = @transform_13, window_bounds = array<i64: 32, 16>}, {pipeline_mode = #tpu.pipeline_mode<synchronous>, transform_indices = @transform_14, window_bounds = array<i64: 1, 16>}, {pipeline_mode = #tpu.pipeline_mode<synchronous>, transform_indices = @transform_15, window_bounds = array<i64: 32, 32>}, {pipeline_mode = #tpu.pipeline_mode<synchronous>, transform_indices = @transform_16, window_bounds = array<i64: 1, 32>}, {pipeline_mode = #tpu.pipeline_mode<synchronous>, transform_indices = @transform_17, window_bounds = array<i64: 32, 32>}, {pipeline_mode = #tpu.pipeline_mode<synchronous>, transform_indices = @transform_18, window_bounds = array<i64: 1, 32>}, {pipeline_mode = #tpu.pipeline_mode<synchronous>, transform_indices = @transform_19, window_bounds = array<i64: 32, 4>}, {pipeline_mode = #tpu.pipeline_mode<synchronous>, transform_indices = @transform_20, window_bounds = array<i64: 1, 4>}, {transform_indices = @transform_21, window_bounds = array<i64: 1, 8, 16>}, {transform_indices = @transform_22, window_bounds = array<i64: 1, 8, 4>}]} {
    %c0 = arith.constant 0 : index
    %c0_0 = arith.constant 0 : index
    %c0_1 = arith.constant 0 : index
    %0 = vector.load %arg1[%c0, %c0_0, %c0_1] : memref<1x16x32xf32, #tpu.memory_space<vmem>>, vector<1x16x32xf32>
    %1 = vector.shape_cast %0 : vector<1x16x32xf32> to vector<16x32xf32>
    %c0_2 = arith.constant 0 : index
    %c0_3 = arith.constant 0 : index
    %2 = vector.load %arg2[%c0_2, %c0_3] : memref<16x32xf32, #tpu.memory_space<vmem>>, vector<16x32xf32>
    %c0_4 = arith.constant 0 : index
    %c0_5 = arith.constant 0 : index
    %3 = vector.load %arg3[%c0_4, %c0_5] : memref<8x32xf32, #tpu.memory_space<vmem>>, vector<8x32xf32>
    %4 = arith.addf %1, %2 : vector<16x32xf32>
    %cst = arith.constant 0.000000e+00 : f32
    %5 = vector.broadcast %cst : f32 to vector<8x32xf32>
    %6 = arith.addf %5, %3 : vector<8x32xf32>
    %c0_6 = arith.constant 0 : index
    %c0_7 = arith.constant 0 : index
    %c0_8 = arith.constant 0 : index
    %7 = vector.load %arg4[%c0_6, %c0_7, %c0_8] : memref<16x32x32xf32, #tpu.memory_space<vmem>>, vector<1x32x32xf32>
    %8 = vector.shape_cast %7 : vector<1x32x32xf32> to vector<32x32xf32>
    %c0_9 = arith.constant 0 : index
    %c0_10 = arith.constant 0 : index
    %c0_11 = arith.constant 0 : index
    %9 = vector.load %arg5[%c0_9, %c0_10, %c0_11] : memref<16x1x32xf32, #tpu.memory_space<vmem>>, vector<1x1x32xf32>
    %10 = vector.shape_cast %9 : vector<1x1x32xf32> to vector<1x32xf32>
    %c1 = arith.constant 1 : index
    %c0_12 = arith.constant 0 : index
    %c0_13 = arith.constant 0 : index
    %11 = vector.load %arg4[%c1, %c0_12, %c0_13] : memref<16x32x32xf32, #tpu.memory_space<vmem>>, vector<1x32x32xf32>
    %12 = vector.shape_cast %11 : vector<1x32x32xf32> to vector<32x32xf32>
    %c1_14 = arith.constant 1 : index
    %c0_15 = arith.constant 0 : index
    %c0_16 = arith.constant 0 : index
    %13 = vector.load %arg5[%c1_14, %c0_15, %c0_16] : memref<16x1x32xf32, #tpu.memory_space<vmem>>, vector<1x1x32xf32>
    %14 = vector.shape_cast %13 : vector<1x1x32xf32> to vector<1x32xf32>
    %c2 = arith.constant 2 : index
    %c0_17 = arith.constant 0 : index
    %c0_18 = arith.constant 0 : index
    %15 = vector.load %arg4[%c2, %c0_17, %c0_18] : memref<16x32x32xf32, #tpu.memory_space<vmem>>, vector<1x32x32xf32>
    %16 = vector.shape_cast %15 : vector<1x32x32xf32> to vector<32x32xf32>
    %c2_19 = arith.constant 2 : index
    %c0_20 = arith.constant 0 : index
    %c0_21 = arith.constant 0 : index
    %17 = vector.load %arg5[%c2_19, %c0_20, %c0_21] : memref<16x1x32xf32, #tpu.memory_space<vmem>>, vector<1x1x32xf32>
    %18 = vector.shape_cast %17 : vector<1x1x32xf32> to vector<1x32xf32>
    %c3 = arith.constant 3 : index
    %c0_22 = arith.constant 0 : index
    %c0_23 = arith.constant 0 : index
    %19 = vector.load %arg4[%c3, %c0_22, %c0_23] : memref<16x32x32xf32, #tpu.memory_space<vmem>>, vector<1x32x32xf32>
    %20 = vector.shape_cast %19 : vector<1x32x32xf32> to vector<32x32xf32>
    %c3_24 = arith.constant 3 : index
    %c0_25 = arith.constant 0 : index
    %c0_26 = arith.constant 0 : index
    %21 = vector.load %arg5[%c3_24, %c0_25, %c0_26] : memref<16x1x32xf32, #tpu.memory_space<vmem>>, vector<1x1x32xf32>
    %22 = vector.shape_cast %21 : vector<1x1x32xf32> to vector<1x32xf32>
    %23 = arith.truncf %6 : vector<8x32xf32> to vector<8x32xbf16>
    %24 = arith.truncf %8 : vector<32x32xf32> to vector<32x32xbf16>
    %cst_27 = arith.constant dense<0.000000e+00> : vector<8x32xf32>
    %25 = tpu.matmul %23, %24, %cst_27 {dimension_numbers = #tpu.dot_dimension_numbers<[1], [0], [0], [1], [0, 0, 1, 1], [], []>} : vector<8x32xbf16>, vector<32x32xbf16>, vector<8x32xf32> -> vector<8x32xf32>
    %26 = vector.broadcast %10 : vector<1x32xf32> to vector<8x32xf32>
    %27 = arith.addf %25, %26 : vector<8x32xf32>
    %28 = arith.truncf %6 : vector<8x32xf32> to vector<8x32xbf16>
    %29 = arith.truncf %12 : vector<32x32xf32> to vector<32x32xbf16>
    %cst_28 = arith.constant dense<0.000000e+00> : vector<8x32xf32>
    %30 = tpu.matmul %28, %29, %cst_28 {dimension_numbers = #tpu.dot_dimension_numbers<[1], [0], [0], [1], [0, 0, 1, 1], [], []>} : vector<8x32xbf16>, vector<32x32xbf16>, vector<8x32xf32> -> vector<8x32xf32>
    %31 = vector.broadcast %14 : vector<1x32xf32> to vector<8x32xf32>
    %32 = arith.addf %30, %31 : vector<8x32xf32>
    %33 = arith.truncf %5 : vector<8x32xf32> to vector<8x32xbf16>
    %34 = arith.truncf %16 : vector<32x32xf32> to vector<32x32xbf16>
    %cst_29 = arith.constant dense<0.000000e+00> : vector<8x32xf32>
    %35 = tpu.matmul %33, %34, %cst_29 {dimension_numbers = #tpu.dot_dimension_numbers<[1], [0], [0], [1], [0, 0, 1, 1], [], []>} : vector<8x32xbf16>, vector<32x32xbf16>, vector<8x32xf32> -> vector<8x32xf32>
    %36 = vector.broadcast %18 : vector<1x32xf32> to vector<8x32xf32>
    %37 = arith.addf %35, %36 : vector<8x32xf32>
    %cst_30 = arith.constant 0.000000e+00 : f32
    %38 = vector.broadcast %cst_30 : f32 to vector<8x32xf32>
    %39 = vector.extract_strided_slice %27 {offsets = [0, 0], sizes = [8, 8], strides = [1, 1]} : vector<8x32xf32> to vector<8x8xf32>
    %40 = vector.extract_strided_slice %32 {offsets = [0, 0], sizes = [8, 8], strides = [1, 1]} : vector<8x32xf32> to vector<8x8xf32>
    %41 = vector.extract_strided_slice %37 {offsets = [0, 0], sizes = [8, 8], strides = [1, 1]} : vector<8x32xf32> to vector<8x8xf32>
    %42 = tpu.transpose %40, [1, 0] : vector<8x8xf32> -> vector<8x8xf32>
    %cst_31 = arith.constant dense<0.000000e+00> : vector<8x8xf32>
    %43 = tpu.matmul %39, %42, %cst_31 {dimension_numbers = #tpu.dot_dimension_numbers<[1], [0], [0], [1], [0, 0, 1, 1], [], []>} : vector<8x8xf32>, vector<8x8xf32>, vector<8x8xf32> -> vector<8x8xf32>
    %cst_32 = arith.constant 0.353553385 : f32
    %44 = vector.broadcast %cst_32 : f32 to vector<8x8xf32>
    %45 = arith.mulf %43, %44 : vector<8x8xf32>
    %cst_33 = arith.constant dense<0xFF800000> : vector<8xf32>
    %46 = vector.multi_reduction <maximumf>, %45, %cst_33 [1] : vector<8x8xf32> to vector<8xf32>
    %47 = vector.shape_cast %46 : vector<8xf32> to vector<8x1xf32>
    %48 = vector.broadcast %47 : vector<8x1xf32> to vector<8x8xf32>
    %49 = arith.subf %45, %48 : vector<8x8xf32>
    %50 = math.exp %49 : vector<8x8xf32>
    %cst_34 = arith.constant dense<0.000000e+00> : vector<8xf32>
    %51 = vector.multi_reduction <add>, %50, %cst_34 [1] : vector<8x8xf32> to vector<8xf32>
    %52 = vector.shape_cast %51 : vector<8xf32> to vector<8x1xf32>
    %53 = tpu.reciprocal %52 {approx = true} : vector<8x1xf32> -> vector<8x1xf32>
    %54 = vector.broadcast %53 : vector<8x1xf32> to vector<8x8xf32>
    %55 = arith.mulf %50, %54 : vector<8x8xf32>
    %cst_35 = arith.constant dense<0.000000e+00> : vector<8x8xf32>
    %56 = tpu.matmul %55, %41, %cst_35 {dimension_numbers = #tpu.dot_dimension_numbers<[1], [0], [0], [1], [0, 0, 1, 1], [], []>} : vector<8x8xf32>, vector<8x8xf32>, vector<8x8xf32> -> vector<8x8xf32>
    %57 = vector.extract_strided_slice %20 {offsets = [0, 0], sizes = [8, 32], strides = [1, 1]} : vector<32x32xf32> to vector<8x32xf32>
    %cst_36 = arith.constant dense<0.000000e+00> : vector<8x32xf32>
    %58 = tpu.matmul %56, %57, %cst_36 {dimension_numbers = #tpu.dot_dimension_numbers<[1], [0], [0], [1], [0, 0, 1, 1], [], []>} : vector<8x8xf32>, vector<8x32xf32>, vector<8x32xf32> -> vector<8x32xf32>
    %59 = arith.addf %38, %58 : vector<8x32xf32>
    %60 = vector.extract_strided_slice %27 {offsets = [0, 8], sizes = [8, 8], strides = [1, 1]} : vector<8x32xf32> to vector<8x8xf32>
    %61 = vector.extract_strided_slice %32 {offsets = [0, 8], sizes = [8, 8], strides = [1, 1]} : vector<8x32xf32> to vector<8x8xf32>
    %62 = vector.extract_strided_slice %37 {offsets = [0, 8], sizes = [8, 8], strides = [1, 1]} : vector<8x32xf32> to vector<8x8xf32>
    %63 = tpu.transpose %61, [1, 0] : vector<8x8xf32> -> vector<8x8xf32>
    %cst_37 = arith.constant dense<0.000000e+00> : vector<8x8xf32>
    %64 = tpu.matmul %60, %63, %cst_37 {dimension_numbers = #tpu.dot_dimension_numbers<[1], [0], [0], [1], [0, 0, 1, 1], [], []>} : vector<8x8xf32>, vector<8x8xf32>, vector<8x8xf32> -> vector<8x8xf32>
    %cst_38 = arith.constant 0.353553385 : f32
    %65 = vector.broadcast %cst_38 : f32 to vector<8x8xf32>
    %66 = arith.mulf %64, %65 : vector<8x8xf32>
    %cst_39 = arith.constant dense<0xFF800000> : vector<8xf32>
    %67 = vector.multi_reduction <maximumf>, %66, %cst_39 [1] : vector<8x8xf32> to vector<8xf32>
    %68 = vector.shape_cast %67 : vector<8xf32> to vector<8x1xf32>
    %69 = vector.broadcast %68 : vector<8x1xf32> to vector<8x8xf32>
    %70 = arith.subf %66, %69 : vector<8x8xf32>
    %71 = math.exp %70 : vector<8x8xf32>
    %cst_40 = arith.constant dense<0.000000e+00> : vector<8xf32>
    %72 = vector.multi_reduction <add>, %71, %cst_40 [1] : vector<8x8xf32> to vector<8xf32>
    %73 = vector.shape_cast %72 : vector<8xf32> to vector<8x1xf32>
    %74 = tpu.reciprocal %73 {approx = true} : vector<8x1xf32> -> vector<8x1xf32>
    %75 = vector.broadcast %74 : vector<8x1xf32> to vector<8x8xf32>
    %76 = arith.mulf %71, %75 : vector<8x8xf32>
    %cst_41 = arith.constant dense<0.000000e+00> : vector<8x8xf32>
    %77 = tpu.matmul %76, %62, %cst_41 {dimension_numbers = #tpu.dot_dimension_numbers<[1], [0], [0], [1], [0, 0, 1, 1], [], []>} : vector<8x8xf32>, vector<8x8xf32>, vector<8x8xf32> -> vector<8x8xf32>
    %78 = vector.extract_strided_slice %20 {offsets = [8, 0], sizes = [8, 32], strides = [1, 1]} : vector<32x32xf32> to vector<8x32xf32>
    %cst_42 = arith.constant dense<0.000000e+00> : vector<8x32xf32>
    %79 = tpu.matmul %77, %78, %cst_42 {dimension_numbers = #tpu.dot_dimension_numbers<[1], [0], [0], [1], [0, 0, 1, 1], [], []>} : vector<8x8xf32>, vector<8x32xf32>, vector<8x32xf32> -> vector<8x32xf32>
    %80 = arith.addf %59, %79 : vector<8x32xf32>
    %81 = vector.extract_strided_slice %27 {offsets = [0, 16], sizes = [8, 8], strides = [1, 1]} : vector<8x32xf32> to vector<8x8xf32>
    %82 = vector.extract_strided_slice %32 {offsets = [0, 16], sizes = [8, 8], strides = [1, 1]} : vector<8x32xf32> to vector<8x8xf32>
    %83 = vector.extract_strided_slice %37 {offsets = [0, 16], sizes = [8, 8], strides = [1, 1]} : vector<8x32xf32> to vector<8x8xf32>
    %84 = tpu.transpose %82, [1, 0] : vector<8x8xf32> -> vector<8x8xf32>
    %cst_43 = arith.constant dense<0.000000e+00> : vector<8x8xf32>
    %85 = tpu.matmul %81, %84, %cst_43 {dimension_numbers = #tpu.dot_dimension_numbers<[1], [0], [0], [1], [0, 0, 1, 1], [], []>} : vector<8x8xf32>, vector<8x8xf32>, vector<8x8xf32> -> vector<8x8xf32>
    %cst_44 = arith.constant 0.353553385 : f32
    %86 = vector.broadcast %cst_44 : f32 to vector<8x8xf32>
    %87 = arith.mulf %85, %86 : vector<8x8xf32>
    %cst_45 = arith.constant dense<0xFF800000> : vector<8xf32>
    %88 = vector.multi_reduction <maximumf>, %87, %cst_45 [1] : vector<8x8xf32> to vector<8xf32>
    %89 = vector.shape_cast %88 : vector<8xf32> to vector<8x1xf32>
    %90 = vector.broadcast %89 : vector<8x1xf32> to vector<8x8xf32>
    %91 = arith.subf %87, %90 : vector<8x8xf32>
    %92 = math.exp %91 : vector<8x8xf32>
    %cst_46 = arith.constant dense<0.000000e+00> : vector<8xf32>
    %93 = vector.multi_reduction <add>, %92, %cst_46 [1] : vector<8x8xf32> to vector<8xf32>
    %94 = vector.shape_cast %93 : vector<8xf32> to vector<8x1xf32>
    %95 = tpu.reciprocal %94 {approx = true} : vector<8x1xf32> -> vector<8x1xf32>
    %96 = vector.broadcast %95 : vector<8x1xf32> to vector<8x8xf32>
    %97 = arith.mulf %92, %96 : vector<8x8xf32>
    %cst_47 = arith.constant dense<0.000000e+00> : vector<8x8xf32>
    %98 = tpu.matmul %97, %83, %cst_47 {dimension_numbers = #tpu.dot_dimension_numbers<[1], [0], [0], [1], [0, 0, 1, 1], [], []>} : vector<8x8xf32>, vector<8x8xf32>, vector<8x8xf32> -> vector<8x8xf32>
    %99 = vector.extract_strided_slice %20 {offsets = [16, 0], sizes = [8, 32], strides = [1, 1]} : vector<32x32xf32> to vector<8x32xf32>
    %cst_48 = arith.constant dense<0.000000e+00> : vector<8x32xf32>
    %100 = tpu.matmul %98, %99, %cst_48 {dimension_numbers = #tpu.dot_dimension_numbers<[1], [0], [0], [1], [0, 0, 1, 1], [], []>} : vector<8x8xf32>, vector<8x32xf32>, vector<8x32xf32> -> vector<8x32xf32>
    %101 = arith.addf %80, %100 : vector<8x32xf32>
    %102 = vector.extract_strided_slice %27 {offsets = [0, 24], sizes = [8, 8], strides = [1, 1]} : vector<8x32xf32> to vector<8x8xf32>
    %103 = vector.extract_strided_slice %32 {offsets = [0, 24], sizes = [8, 8], strides = [1, 1]} : vector<8x32xf32> to vector<8x8xf32>
    %104 = vector.extract_strided_slice %37 {offsets = [0, 24], sizes = [8, 8], strides = [1, 1]} : vector<8x32xf32> to vector<8x8xf32>
    %105 = tpu.transpose %103, [1, 0] : vector<8x8xf32> -> vector<8x8xf32>
    %cst_49 = arith.constant dense<0.000000e+00> : vector<8x8xf32>
    %106 = tpu.matmul %102, %105, %cst_49 {dimension_numbers = #tpu.dot_dimension_numbers<[1], [0], [0], [1], [0, 0, 1, 1], [], []>} : vector<8x8xf32>, vector<8x8xf32>, vector<8x8xf32> -> vector<8x8xf32>
    %cst_50 = arith.constant 0.353553385 : f32
    %107 = vector.broadcast %cst_50 : f32 to vector<8x8xf32>
    %108 = arith.mulf %106, %107 : vector<8x8xf32>
    %cst_51 = arith.constant dense<0xFF800000> : vector<8xf32>
    %109 = vector.multi_reduction <maximumf>, %108, %cst_51 [1] : vector<8x8xf32> to vector<8xf32>
    %110 = vector.shape_cast %109 : vector<8xf32> to vector<8x1xf32>
    %111 = vector.broadcast %110 : vector<8x1xf32> to vector<8x8xf32>
    %112 = arith.subf %108, %111 : vector<8x8xf32>
    %113 = math.exp %112 : vector<8x8xf32>
    %cst_52 = arith.constant dense<0.000000e+00> : vector<8xf32>
    %114 = vector.multi_reduction <add>, %113, %cst_52 [1] : vector<8x8xf32> to vector<8xf32>
    %115 = vector.shape_cast %114 : vector<8xf32> to vector<8x1xf32>
    %116 = tpu.reciprocal %115 {approx = true} : vector<8x1xf32> -> vector<8x1xf32>
    %117 = vector.broadcast %116 : vector<8x1xf32> to vector<8x8xf32>
    %118 = arith.mulf %113, %117 : vector<8x8xf32>
    %cst_53 = arith.constant dense<0.000000e+00> : vector<8x8xf32>
    %119 = tpu.matmul %118, %104, %cst_53 {dimension_numbers = #tpu.dot_dimension_numbers<[1], [0], [0], [1], [0, 0, 1, 1], [], []>} : vector<8x8xf32>, vector<8x8xf32>, vector<8x8xf32> -> vector<8x8xf32>
    %120 = vector.extract_strided_slice %20 {offsets = [24, 0], sizes = [8, 32], strides = [1, 1]} : vector<32x32xf32> to vector<8x32xf32>
    %cst_54 = arith.constant dense<0.000000e+00> : vector<8x32xf32>
    %121 = tpu.matmul %119, %120, %cst_54 {dimension_numbers = #tpu.dot_dimension_numbers<[1], [0], [0], [1], [0, 0, 1, 1], [], []>} : vector<8x8xf32>, vector<8x32xf32>, vector<8x32xf32> -> vector<8x32xf32>
    %122 = arith.addf %101, %121 : vector<8x32xf32>
    %123 = vector.broadcast %22 : vector<1x32xf32> to vector<8x32xf32>
    %124 = arith.addf %122, %123 : vector<8x32xf32>
    %125 = arith.addf %5, %124 : vector<8x32xf32>
    %c0_55 = arith.constant 0 : index
    %c0_56 = arith.constant 0 : index
    %c0_57 = arith.constant 0 : index
    %126 = vector.load %arg10[%c0_55, %c0_56, %c0_57] : memref<6x1x32xf32, #tpu.memory_space<vmem>>, vector<1x1x32xf32>
    %127 = vector.shape_cast %126 : vector<1x1x32xf32> to vector<1x32xf32>
    %c0_58 = arith.constant 0 : index
    %c0_59 = arith.constant 0 : index
    %c0_60 = arith.constant 0 : index
    %128 = vector.load %arg11[%c0_58, %c0_59, %c0_60] : memref<6x1x32xf32, #tpu.memory_space<vmem>>, vector<1x1x32xf32>
    %129 = vector.shape_cast %128 : vector<1x1x32xf32> to vector<1x32xf32>
    %cst_61 = arith.constant dense<0.000000e+00> : vector<8xf32>
    %130 = vector.multi_reduction <add>, %125, %cst_61 [1] : vector<8x32xf32> to vector<8xf32>
    %131 = vector.shape_cast %130 : vector<8xf32> to vector<8x1xf32>
    %cst_62 = arith.constant 3.200000e+01 : f32
    %132 = vector.broadcast %cst_62 : f32 to vector<8x1xf32>
    %133 = arith.divf %131, %132 : vector<8x1xf32>
    %134 = vector.broadcast %133 : vector<8x1xf32> to vector<8x32xf32>
    %135 = arith.subf %125, %134 : vector<8x32xf32>
    %136 = arith.mulf %135, %135 : vector<8x32xf32>
    %cst_63 = arith.constant dense<0.000000e+00> : vector<8xf32>
    %137 = vector.multi_reduction <add>, %136, %cst_63 [1] : vector<8x32xf32> to vector<8xf32>
    %138 = vector.shape_cast %137 : vector<8xf32> to vector<8x1xf32>
    %cst_64 = arith.constant 3.200000e+01 : f32
    %139 = vector.broadcast %cst_64 : f32 to vector<8x1xf32>
    %140 = arith.divf %138, %139 : vector<8x1xf32>
    %141 = vector.broadcast %133 : vector<8x1xf32> to vector<8x32xf32>
    %142 = arith.subf %125, %141 : vector<8x32xf32>
    %cst_65 = arith.constant 9.99999974E-6 : f32
    %143 = vector.broadcast %cst_65 : f32 to vector<8x1xf32>
    %144 = arith.addf %140, %143 : vector<8x1xf32>
    %145 = math.rsqrt %144 : vector<8x1xf32>
    %146 = vector.broadcast %145 : vector<8x1xf32> to vector<8x32xf32>
    %147 = arith.mulf %142, %146 : vector<8x32xf32>
    %148 = vector.broadcast %127 : vector<1x32xf32> to vector<8x32xf32>
    %149 = arith.mulf %147, %148 : vector<8x32xf32>
    %150 = vector.broadcast %129 : vector<1x32xf32> to vector<8x32xf32>
    %151 = arith.addf %149, %150 : vector<8x32xf32>
    %152 = arith.addf %151, %3 : vector<8x32xf32>
    %c4 = arith.constant 4 : index
    %c0_66 = arith.constant 0 : index
    %c0_67 = arith.constant 0 : index
    %153 = vector.load %arg4[%c4, %c0_66, %c0_67] : memref<16x32x32xf32, #tpu.memory_space<vmem>>, vector<1x32x32xf32>
    %154 = vector.shape_cast %153 : vector<1x32x32xf32> to vector<32x32xf32>
    %c4_68 = arith.constant 4 : index
    %c0_69 = arith.constant 0 : index
    %c0_70 = arith.constant 0 : index
    %155 = vector.load %arg5[%c4_68, %c0_69, %c0_70] : memref<16x1x32xf32, #tpu.memory_space<vmem>>, vector<1x1x32xf32>
    %156 = vector.shape_cast %155 : vector<1x1x32xf32> to vector<1x32xf32>
    %c5 = arith.constant 5 : index
    %c0_71 = arith.constant 0 : index
    %c0_72 = arith.constant 0 : index
    %157 = vector.load %arg4[%c5, %c0_71, %c0_72] : memref<16x32x32xf32, #tpu.memory_space<vmem>>, vector<1x32x32xf32>
    %158 = vector.shape_cast %157 : vector<1x32x32xf32> to vector<32x32xf32>
    %c5_73 = arith.constant 5 : index
    %c0_74 = arith.constant 0 : index
    %c0_75 = arith.constant 0 : index
    %159 = vector.load %arg5[%c5_73, %c0_74, %c0_75] : memref<16x1x32xf32, #tpu.memory_space<vmem>>, vector<1x1x32xf32>
    %160 = vector.shape_cast %159 : vector<1x1x32xf32> to vector<1x32xf32>
    %c6 = arith.constant 6 : index
    %c0_76 = arith.constant 0 : index
    %c0_77 = arith.constant 0 : index
    %161 = vector.load %arg4[%c6, %c0_76, %c0_77] : memref<16x32x32xf32, #tpu.memory_space<vmem>>, vector<1x32x32xf32>
    %162 = vector.shape_cast %161 : vector<1x32x32xf32> to vector<32x32xf32>
    %c6_78 = arith.constant 6 : index
    %c0_79 = arith.constant 0 : index
    %c0_80 = arith.constant 0 : index
    %163 = vector.load %arg5[%c6_78, %c0_79, %c0_80] : memref<16x1x32xf32, #tpu.memory_space<vmem>>, vector<1x1x32xf32>
    %164 = vector.shape_cast %163 : vector<1x1x32xf32> to vector<1x32xf32>
    %c7 = arith.constant 7 : index
    %c0_81 = arith.constant 0 : index
    %c0_82 = arith.constant 0 : index
    %165 = vector.load %arg4[%c7, %c0_81, %c0_82] : memref<16x32x32xf32, #tpu.memory_space<vmem>>, vector<1x32x32xf32>
    %166 = vector.shape_cast %165 : vector<1x32x32xf32> to vector<32x32xf32>
    %c7_83 = arith.constant 7 : index
    %c0_84 = arith.constant 0 : index
    %c0_85 = arith.constant 0 : index
    %167 = vector.load %arg5[%c7_83, %c0_84, %c0_85] : memref<16x1x32xf32, #tpu.memory_space<vmem>>, vector<1x1x32xf32>
    %168 = vector.shape_cast %167 : vector<1x1x32xf32> to vector<1x32xf32>
    %169 = arith.truncf %152 : vector<8x32xf32> to vector<8x32xbf16>
    %170 = arith.truncf %154 : vector<32x32xf32> to vector<32x32xbf16>
    %cst_86 = arith.constant dense<0.000000e+00> : vector<8x32xf32>
    %171 = tpu.matmul %169, %170, %cst_86 {dimension_numbers = #tpu.dot_dimension_numbers<[1], [0], [0], [1], [0, 0, 1, 1], [], []>} : vector<8x32xbf16>, vector<32x32xbf16>, vector<8x32xf32> -> vector<8x32xf32>
    %172 = vector.broadcast %156 : vector<1x32xf32> to vector<8x32xf32>
    %173 = arith.addf %171, %172 : vector<8x32xf32>
    %174 = arith.truncf %4 : vector<16x32xf32> to vector<16x32xbf16>
    %175 = arith.truncf %158 : vector<32x32xf32> to vector<32x32xbf16>
    %cst_87 = arith.constant dense<0.000000e+00> : vector<16x32xf32>
    %176 = tpu.matmul %174, %175, %cst_87 {dimension_numbers = #tpu.dot_dimension_numbers<[1], [0], [0], [1], [0, 0, 1, 1], [], []>} : vector<16x32xbf16>, vector<32x32xbf16>, vector<16x32xf32> -> vector<16x32xf32>
    %177 = vector.broadcast %160 : vector<1x32xf32> to vector<16x32xf32>
    %178 = arith.addf %176, %177 : vector<16x32xf32>
    %179 = arith.truncf %1 : vector<16x32xf32> to vector<16x32xbf16>
    %180 = arith.truncf %162 : vector<32x32xf32> to vector<32x32xbf16>
    %cst_88 = arith.constant dense<0.000000e+00> : vector<16x32xf32>
    %181 = tpu.matmul %179, %180, %cst_88 {dimension_numbers = #tpu.dot_dimension_numbers<[1], [0], [0], [1], [0, 0, 1, 1], [], []>} : vector<16x32xbf16>, vector<32x32xbf16>, vector<16x32xf32> -> vector<16x32xf32>
    %182 = vector.broadcast %164 : vector<1x32xf32> to vector<16x32xf32>
    %183 = arith.addf %181, %182 : vector<16x32xf32>
    %cst_89 = arith.constant 0.000000e+00 : f32
    %184 = vector.broadcast %cst_89 : f32 to vector<8x32xf32>
    %185 = vector.extract_strided_slice %173 {offsets = [0, 0], sizes = [8, 8], strides = [1, 1]} : vector<8x32xf32> to vector<8x8xf32>
    %186 = vector.extract_strided_slice %178 {offsets = [0, 0], sizes = [16, 8], strides = [1, 1]} : vector<16x32xf32> to vector<16x8xf32>
    %187 = vector.extract_strided_slice %183 {offsets = [0, 0], sizes = [16, 8], strides = [1, 1]} : vector<16x32xf32> to vector<16x8xf32>
    %188 = tpu.transpose %186, [1, 0] : vector<16x8xf32> -> vector<8x16xf32>
    %cst_90 = arith.constant dense<0.000000e+00> : vector<8x16xf32>
    %189 = tpu.matmul %185, %188, %cst_90 {dimension_numbers = #tpu.dot_dimension_numbers<[1], [0], [0], [1], [0, 0, 1, 1], [], []>} : vector<8x8xf32>, vector<8x16xf32>, vector<8x16xf32> -> vector<8x16xf32>
    %cst_91 = arith.constant 0.353553385 : f32
    %190 = vector.broadcast %cst_91 : f32 to vector<8x16xf32>
    %191 = arith.mulf %189, %190 : vector<8x16xf32>
    %cst_92 = arith.constant dense<0xFF800000> : vector<8xf32>
    %192 = vector.multi_reduction <maximumf>, %191, %cst_92 [1] : vector<8x16xf32> to vector<8xf32>
    %193 = vector.shape_cast %192 : vector<8xf32> to vector<8x1xf32>
    %194 = vector.broadcast %193 : vector<8x1xf32> to vector<8x16xf32>
    %195 = arith.subf %191, %194 : vector<8x16xf32>
    %196 = math.exp %195 : vector<8x16xf32>
    %cst_93 = arith.constant dense<0.000000e+00> : vector<8xf32>
    %197 = vector.multi_reduction <add>, %196, %cst_93 [1] : vector<8x16xf32> to vector<8xf32>
    %198 = vector.shape_cast %197 : vector<8xf32> to vector<8x1xf32>
    %199 = tpu.reciprocal %198 {approx = true} : vector<8x1xf32> -> vector<8x1xf32>
    %200 = vector.broadcast %199 : vector<8x1xf32> to vector<8x16xf32>
    %201 = arith.mulf %196, %200 : vector<8x16xf32>
    %cst_94 = arith.constant dense<0.000000e+00> : vector<8x8xf32>
    %202 = tpu.matmul %201, %187, %cst_94 {dimension_numbers = #tpu.dot_dimension_numbers<[1], [0], [0], [1], [0, 0, 1, 1], [], []>} : vector<8x16xf32>, vector<16x8xf32>, vector<8x8xf32> -> vector<8x8xf32>
    %203 = vector.extract_strided_slice %166 {offsets = [0, 0], sizes = [8, 32], strides = [1, 1]} : vector<32x32xf32> to vector<8x32xf32>
    %cst_95 = arith.constant dense<0.000000e+00> : vector<8x32xf32>
    %204 = tpu.matmul %202, %203, %cst_95 {dimension_numbers = #tpu.dot_dimension_numbers<[1], [0], [0], [1], [0, 0, 1, 1], [], []>} : vector<8x8xf32>, vector<8x32xf32>, vector<8x32xf32> -> vector<8x32xf32>
    %205 = arith.addf %184, %204 : vector<8x32xf32>
    %206 = vector.extract_strided_slice %173 {offsets = [0, 8], sizes = [8, 8], strides = [1, 1]} : vector<8x32xf32> to vector<8x8xf32>
    %207 = vector.extract_strided_slice %178 {offsets = [0, 8], sizes = [16, 8], strides = [1, 1]} : vector<16x32xf32> to vector<16x8xf32>
    %208 = vector.extract_strided_slice %183 {offsets = [0, 8], sizes = [16, 8], strides = [1, 1]} : vector<16x32xf32> to vector<16x8xf32>
    %209 = tpu.transpose %207, [1, 0] : vector<16x8xf32> -> vector<8x16xf32>
    %cst_96 = arith.constant dense<0.000000e+00> : vector<8x16xf32>
    %210 = tpu.matmul %206, %209, %cst_96 {dimension_numbers = #tpu.dot_dimension_numbers<[1], [0], [0], [1], [0, 0, 1, 1], [], []>} : vector<8x8xf32>, vector<8x16xf32>, vector<8x16xf32> -> vector<8x16xf32>
    %cst_97 = arith.constant 0.353553385 : f32
    %211 = vector.broadcast %cst_97 : f32 to vector<8x16xf32>
    %212 = arith.mulf %210, %211 : vector<8x16xf32>
    %cst_98 = arith.constant dense<0xFF800000> : vector<8xf32>
    %213 = vector.multi_reduction <maximumf>, %212, %cst_98 [1] : vector<8x16xf32> to vector<8xf32>
    %214 = vector.shape_cast %213 : vector<8xf32> to vector<8x1xf32>
    %215 = vector.broadcast %214 : vector<8x1xf32> to vector<8x16xf32>
    %216 = arith.subf %212, %215 : vector<8x16xf32>
    %217 = math.exp %216 : vector<8x16xf32>
    %cst_99 = arith.constant dense<0.000000e+00> : vector<8xf32>
    %218 = vector.multi_reduction <add>, %217, %cst_99 [1] : vector<8x16xf32> to vector<8xf32>
    %219 = vector.shape_cast %218 : vector<8xf32> to vector<8x1xf32>
    %220 = tpu.reciprocal %219 {approx = true} : vector<8x1xf32> -> vector<8x1xf32>
    %221 = vector.broadcast %220 : vector<8x1xf32> to vector<8x16xf32>
    %222 = arith.mulf %217, %221 : vector<8x16xf32>
    %cst_100 = arith.constant dense<0.000000e+00> : vector<8x8xf32>
    %223 = tpu.matmul %222, %208, %cst_100 {dimension_numbers = #tpu.dot_dimension_numbers<[1], [0], [0], [1], [0, 0, 1, 1], [], []>} : vector<8x16xf32>, vector<16x8xf32>, vector<8x8xf32> -> vector<8x8xf32>
    %224 = vector.extract_strided_slice %166 {offsets = [8, 0], sizes = [8, 32], strides = [1, 1]} : vector<32x32xf32> to vector<8x32xf32>
    %cst_101 = arith.constant dense<0.000000e+00> : vector<8x32xf32>
    %225 = tpu.matmul %223, %224, %cst_101 {dimension_numbers = #tpu.dot_dimension_numbers<[1], [0], [0], [1], [0, 0, 1, 1], [], []>} : vector<8x8xf32>, vector<8x32xf32>, vector<8x32xf32> -> vector<8x32xf32>
    %226 = arith.addf %205, %225 : vector<8x32xf32>
    %227 = vector.extract_strided_slice %173 {offsets = [0, 16], sizes = [8, 8], strides = [1, 1]} : vector<8x32xf32> to vector<8x8xf32>
    %228 = vector.extract_strided_slice %178 {offsets = [0, 16], sizes = [16, 8], strides = [1, 1]} : vector<16x32xf32> to vector<16x8xf32>
    %229 = vector.extract_strided_slice %183 {offsets = [0, 16], sizes = [16, 8], strides = [1, 1]} : vector<16x32xf32> to vector<16x8xf32>
    %230 = tpu.transpose %228, [1, 0] : vector<16x8xf32> -> vector<8x16xf32>
    %cst_102 = arith.constant dense<0.000000e+00> : vector<8x16xf32>
    %231 = tpu.matmul %227, %230, %cst_102 {dimension_numbers = #tpu.dot_dimension_numbers<[1], [0], [0], [1], [0, 0, 1, 1], [], []>} : vector<8x8xf32>, vector<8x16xf32>, vector<8x16xf32> -> vector<8x16xf32>
    %cst_103 = arith.constant 0.353553385 : f32
    %232 = vector.broadcast %cst_103 : f32 to vector<8x16xf32>
    %233 = arith.mulf %231, %232 : vector<8x16xf32>
    %cst_104 = arith.constant dense<0xFF800000> : vector<8xf32>
    %234 = vector.multi_reduction <maximumf>, %233, %cst_104 [1] : vector<8x16xf32> to vector<8xf32>
    %235 = vector.shape_cast %234 : vector<8xf32> to vector<8x1xf32>
    %236 = vector.broadcast %235 : vector<8x1xf32> to vector<8x16xf32>
    %237 = arith.subf %233, %236 : vector<8x16xf32>
    %238 = math.exp %237 : vector<8x16xf32>
    %cst_105 = arith.constant dense<0.000000e+00> : vector<8xf32>
    %239 = vector.multi_reduction <add>, %238, %cst_105 [1] : vector<8x16xf32> to vector<8xf32>
    %240 = vector.shape_cast %239 : vector<8xf32> to vector<8x1xf32>
    %241 = tpu.reciprocal %240 {approx = true} : vector<8x1xf32> -> vector<8x1xf32>
    %242 = vector.broadcast %241 : vector<8x1xf32> to vector<8x16xf32>
    %243 = arith.mulf %238, %242 : vector<8x16xf32>
    %cst_106 = arith.constant dense<0.000000e+00> : vector<8x8xf32>
    %244 = tpu.matmul %243, %229, %cst_106 {dimension_numbers = #tpu.dot_dimension_numbers<[1], [0], [0], [1], [0, 0, 1, 1], [], []>} : vector<8x16xf32>, vector<16x8xf32>, vector<8x8xf32> -> vector<8x8xf32>
    %245 = vector.extract_strided_slice %166 {offsets = [16, 0], sizes = [8, 32], strides = [1, 1]} : vector<32x32xf32> to vector<8x32xf32>
    %cst_107 = arith.constant dense<0.000000e+00> : vector<8x32xf32>
    %246 = tpu.matmul %244, %245, %cst_107 {dimension_numbers = #tpu.dot_dimension_numbers<[1], [0], [0], [1], [0, 0, 1, 1], [], []>} : vector<8x8xf32>, vector<8x32xf32>, vector<8x32xf32> -> vector<8x32xf32>
    %247 = arith.addf %226, %246 : vector<8x32xf32>
    %248 = vector.extract_strided_slice %173 {offsets = [0, 24], sizes = [8, 8], strides = [1, 1]} : vector<8x32xf32> to vector<8x8xf32>
    %249 = vector.extract_strided_slice %178 {offsets = [0, 24], sizes = [16, 8], strides = [1, 1]} : vector<16x32xf32> to vector<16x8xf32>
    %250 = vector.extract_strided_slice %183 {offsets = [0, 24], sizes = [16, 8], strides = [1, 1]} : vector<16x32xf32> to vector<16x8xf32>
    %251 = tpu.transpose %249, [1, 0] : vector<16x8xf32> -> vector<8x16xf32>
    %cst_108 = arith.constant dense<0.000000e+00> : vector<8x16xf32>
    %252 = tpu.matmul %248, %251, %cst_108 {dimension_numbers = #tpu.dot_dimension_numbers<[1], [0], [0], [1], [0, 0, 1, 1], [], []>} : vector<8x8xf32>, vector<8x16xf32>, vector<8x16xf32> -> vector<8x16xf32>
    %cst_109 = arith.constant 0.353553385 : f32
    %253 = vector.broadcast %cst_109 : f32 to vector<8x16xf32>
    %254 = arith.mulf %252, %253 : vector<8x16xf32>
    %cst_110 = arith.constant dense<0xFF800000> : vector<8xf32>
    %255 = vector.multi_reduction <maximumf>, %254, %cst_110 [1] : vector<8x16xf32> to vector<8xf32>
    %256 = vector.shape_cast %255 : vector<8xf32> to vector<8x1xf32>
    %257 = vector.broadcast %256 : vector<8x1xf32> to vector<8x16xf32>
    %258 = arith.subf %254, %257 : vector<8x16xf32>
    %259 = math.exp %258 : vector<8x16xf32>
    %cst_111 = arith.constant dense<0.000000e+00> : vector<8xf32>
    %260 = vector.multi_reduction <add>, %259, %cst_111 [1] : vector<8x16xf32> to vector<8xf32>
    %261 = vector.shape_cast %260 : vector<8xf32> to vector<8x1xf32>
    %262 = tpu.reciprocal %261 {approx = true} : vector<8x1xf32> -> vector<8x1xf32>
    %263 = vector.broadcast %262 : vector<8x1xf32> to vector<8x16xf32>
    %264 = arith.mulf %259, %263 : vector<8x16xf32>
    %cst_112 = arith.constant dense<0.000000e+00> : vector<8x8xf32>
    %265 = tpu.matmul %264, %250, %cst_112 {dimension_numbers = #tpu.dot_dimension_numbers<[1], [0], [0], [1], [0, 0, 1, 1], [], []>} : vector<8x16xf32>, vector<16x8xf32>, vector<8x8xf32> -> vector<8x8xf32>
    %266 = vector.extract_strided_slice %166 {offsets = [24, 0], sizes = [8, 32], strides = [1, 1]} : vector<32x32xf32> to vector<8x32xf32>
    %cst_113 = arith.constant dense<0.000000e+00> : vector<8x32xf32>
    %267 = tpu.matmul %265, %266, %cst_113 {dimension_numbers = #tpu.dot_dimension_numbers<[1], [0], [0], [1], [0, 0, 1, 1], [], []>} : vector<8x8xf32>, vector<8x32xf32>, vector<8x32xf32> -> vector<8x32xf32>
    %268 = arith.addf %247, %267 : vector<8x32xf32>
    %269 = vector.broadcast %168 : vector<1x32xf32> to vector<8x32xf32>
    %270 = arith.addf %268, %269 : vector<8x32xf32>
    %271 = arith.addf %151, %270 : vector<8x32xf32>
    %c1_114 = arith.constant 1 : index
    %c0_115 = arith.constant 0 : index
    %c0_116 = arith.constant 0 : index
    %272 = vector.load %arg10[%c1_114, %c0_115, %c0_116] : memref<6x1x32xf32, #tpu.memory_space<vmem>>, vector<1x1x32xf32>
    %273 = vector.shape_cast %272 : vector<1x1x32xf32> to vector<1x32xf32>
    %c1_117 = arith.constant 1 : index
    %c0_118 = arith.constant 0 : index
    %c0_119 = arith.constant 0 : index
    %274 = vector.load %arg11[%c1_117, %c0_118, %c0_119] : memref<6x1x32xf32, #tpu.memory_space<vmem>>, vector<1x1x32xf32>
    %275 = vector.shape_cast %274 : vector<1x1x32xf32> to vector<1x32xf32>
    %cst_120 = arith.constant dense<0.000000e+00> : vector<8xf32>
    %276 = vector.multi_reduction <add>, %271, %cst_120 [1] : vector<8x32xf32> to vector<8xf32>
    %277 = vector.shape_cast %276 : vector<8xf32> to vector<8x1xf32>
    %cst_121 = arith.constant 3.200000e+01 : f32
    %278 = vector.broadcast %cst_121 : f32 to vector<8x1xf32>
    %279 = arith.divf %277, %278 : vector<8x1xf32>
    %280 = vector.broadcast %279 : vector<8x1xf32> to vector<8x32xf32>
    %281 = arith.subf %271, %280 : vector<8x32xf32>
    %282 = arith.mulf %281, %281 : vector<8x32xf32>
    %cst_122 = arith.constant dense<0.000000e+00> : vector<8xf32>
    %283 = vector.multi_reduction <add>, %282, %cst_122 [1] : vector<8x32xf32> to vector<8xf32>
    %284 = vector.shape_cast %283 : vector<8xf32> to vector<8x1xf32>
    %cst_123 = arith.constant 3.200000e+01 : f32
    %285 = vector.broadcast %cst_123 : f32 to vector<8x1xf32>
    %286 = arith.divf %284, %285 : vector<8x1xf32>
    %287 = vector.broadcast %279 : vector<8x1xf32> to vector<8x32xf32>
    %288 = arith.subf %271, %287 : vector<8x32xf32>
    %cst_124 = arith.constant 9.99999974E-6 : f32
    %289 = vector.broadcast %cst_124 : f32 to vector<8x1xf32>
    %290 = arith.addf %286, %289 : vector<8x1xf32>
    %291 = math.rsqrt %290 : vector<8x1xf32>
    %292 = vector.broadcast %291 : vector<8x1xf32> to vector<8x32xf32>
    %293 = arith.mulf %288, %292 : vector<8x32xf32>
    %294 = vector.broadcast %273 : vector<1x32xf32> to vector<8x32xf32>
    %295 = arith.mulf %293, %294 : vector<8x32xf32>
    %296 = vector.broadcast %275 : vector<1x32xf32> to vector<8x32xf32>
    %297 = arith.addf %295, %296 : vector<8x32xf32>
    %c0_125 = arith.constant 0 : index
    %c0_126 = arith.constant 0 : index
    %c0_127 = arith.constant 0 : index
    %298 = vector.load %arg6[%c0_125, %c0_126, %c0_127] : memref<2x32x64xf32, #tpu.memory_space<vmem>>, vector<1x32x64xf32>
    %299 = vector.shape_cast %298 : vector<1x32x64xf32> to vector<32x64xf32>
    %c0_128 = arith.constant 0 : index
    %c0_129 = arith.constant 0 : index
    %c0_130 = arith.constant 0 : index
    %300 = vector.load %arg7[%c0_128, %c0_129, %c0_130] : memref<2x1x64xf32, #tpu.memory_space<vmem>>, vector<1x1x64xf32>
    %301 = vector.shape_cast %300 : vector<1x1x64xf32> to vector<1x64xf32>
    %302 = arith.truncf %297 : vector<8x32xf32> to vector<8x32xbf16>
    %303 = arith.truncf %299 : vector<32x64xf32> to vector<32x64xbf16>
    %cst_131 = arith.constant dense<0.000000e+00> : vector<8x64xf32>
    %304 = tpu.matmul %302, %303, %cst_131 {dimension_numbers = #tpu.dot_dimension_numbers<[1], [0], [0], [1], [0, 0, 1, 1], [], []>} : vector<8x32xbf16>, vector<32x64xbf16>, vector<8x64xf32> -> vector<8x64xf32>
    %305 = vector.broadcast %301 : vector<1x64xf32> to vector<8x64xf32>
    %306 = arith.addf %304, %305 : vector<8x64xf32>
    %cst_132 = arith.constant 0.000000e+00 : f32
    %307 = vector.broadcast %cst_132 : f32 to vector<8x64xf32>
    %308 = arith.maximumf %306, %307 : vector<8x64xf32>
    %c0_133 = arith.constant 0 : index
    %c0_134 = arith.constant 0 : index
    %c0_135 = arith.constant 0 : index
    %309 = vector.load %arg8[%c0_133, %c0_134, %c0_135] : memref<2x64x32xf32, #tpu.memory_space<vmem>>, vector<1x64x32xf32>
    %310 = vector.shape_cast %309 : vector<1x64x32xf32> to vector<64x32xf32>
    %c0_136 = arith.constant 0 : index
    %c0_137 = arith.constant 0 : index
    %c0_138 = arith.constant 0 : index
    %311 = vector.load %arg9[%c0_136, %c0_137, %c0_138] : memref<2x1x32xf32, #tpu.memory_space<vmem>>, vector<1x1x32xf32>
    %312 = vector.shape_cast %311 : vector<1x1x32xf32> to vector<1x32xf32>
    %313 = arith.truncf %308 : vector<8x64xf32> to vector<8x64xbf16>
    %314 = arith.truncf %310 : vector<64x32xf32> to vector<64x32xbf16>
    %cst_139 = arith.constant dense<0.000000e+00> : vector<8x32xf32>
    %315 = tpu.matmul %313, %314, %cst_139 {dimension_numbers = #tpu.dot_dimension_numbers<[1], [0], [0], [1], [0, 0, 1, 1], [], []>} : vector<8x64xbf16>, vector<64x32xbf16>, vector<8x32xf32> -> vector<8x32xf32>
    %316 = vector.broadcast %312 : vector<1x32xf32> to vector<8x32xf32>
    %317 = arith.addf %315, %316 : vector<8x32xf32>
    %318 = arith.addf %297, %317 : vector<8x32xf32>
    %c2_140 = arith.constant 2 : index
    %c0_141 = arith.constant 0 : index
    %c0_142 = arith.constant 0 : index
    %319 = vector.load %arg10[%c2_140, %c0_141, %c0_142] : memref<6x1x32xf32, #tpu.memory_space<vmem>>, vector<1x1x32xf32>
    %320 = vector.shape_cast %319 : vector<1x1x32xf32> to vector<1x32xf32>
    %c2_143 = arith.constant 2 : index
    %c0_144 = arith.constant 0 : index
    %c0_145 = arith.constant 0 : index
    %321 = vector.load %arg11[%c2_143, %c0_144, %c0_145] : memref<6x1x32xf32, #tpu.memory_space<vmem>>, vector<1x1x32xf32>
    %322 = vector.shape_cast %321 : vector<1x1x32xf32> to vector<1x32xf32>
    %cst_146 = arith.constant dense<0.000000e+00> : vector<8xf32>
    %323 = vector.multi_reduction <add>, %318, %cst_146 [1] : vector<8x32xf32> to vector<8xf32>
    %324 = vector.shape_cast %323 : vector<8xf32> to vector<8x1xf32>
    %cst_147 = arith.constant 3.200000e+01 : f32
    %325 = vector.broadcast %cst_147 : f32 to vector<8x1xf32>
    %326 = arith.divf %324, %325 : vector<8x1xf32>
    %327 = vector.broadcast %326 : vector<8x1xf32> to vector<8x32xf32>
    %328 = arith.subf %318, %327 : vector<8x32xf32>
    %329 = arith.mulf %328, %328 : vector<8x32xf32>
    %cst_148 = arith.constant dense<0.000000e+00> : vector<8xf32>
    %330 = vector.multi_reduction <add>, %329, %cst_148 [1] : vector<8x32xf32> to vector<8xf32>
    %331 = vector.shape_cast %330 : vector<8xf32> to vector<8x1xf32>
    %cst_149 = arith.constant 3.200000e+01 : f32
    %332 = vector.broadcast %cst_149 : f32 to vector<8x1xf32>
    %333 = arith.divf %331, %332 : vector<8x1xf32>
    %334 = vector.broadcast %326 : vector<8x1xf32> to vector<8x32xf32>
    %335 = arith.subf %318, %334 : vector<8x32xf32>
    %cst_150 = arith.constant 9.99999974E-6 : f32
    %336 = vector.broadcast %cst_150 : f32 to vector<8x1xf32>
    %337 = arith.addf %333, %336 : vector<8x1xf32>
    %338 = math.rsqrt %337 : vector<8x1xf32>
    %339 = vector.broadcast %338 : vector<8x1xf32> to vector<8x32xf32>
    %340 = arith.mulf %335, %339 : vector<8x32xf32>
    %341 = vector.broadcast %320 : vector<1x32xf32> to vector<8x32xf32>
    %342 = arith.mulf %340, %341 : vector<8x32xf32>
    %343 = vector.broadcast %322 : vector<1x32xf32> to vector<8x32xf32>
    %344 = arith.addf %342, %343 : vector<8x32xf32>
    %345 = arith.addf %344, %3 : vector<8x32xf32>
    %c8 = arith.constant 8 : index
    %c0_151 = arith.constant 0 : index
    %c0_152 = arith.constant 0 : index
    %346 = vector.load %arg4[%c8, %c0_151, %c0_152] : memref<16x32x32xf32, #tpu.memory_space<vmem>>, vector<1x32x32xf32>
    %347 = vector.shape_cast %346 : vector<1x32x32xf32> to vector<32x32xf32>
    %c8_153 = arith.constant 8 : index
    %c0_154 = arith.constant 0 : index
    %c0_155 = arith.constant 0 : index
    %348 = vector.load %arg5[%c8_153, %c0_154, %c0_155] : memref<16x1x32xf32, #tpu.memory_space<vmem>>, vector<1x1x32xf32>
    %349 = vector.shape_cast %348 : vector<1x1x32xf32> to vector<1x32xf32>
    %c9 = arith.constant 9 : index
    %c0_156 = arith.constant 0 : index
    %c0_157 = arith.constant 0 : index
    %350 = vector.load %arg4[%c9, %c0_156, %c0_157] : memref<16x32x32xf32, #tpu.memory_space<vmem>>, vector<1x32x32xf32>
    %351 = vector.shape_cast %350 : vector<1x32x32xf32> to vector<32x32xf32>
    %c9_158 = arith.constant 9 : index
    %c0_159 = arith.constant 0 : index
    %c0_160 = arith.constant 0 : index
    %352 = vector.load %arg5[%c9_158, %c0_159, %c0_160] : memref<16x1x32xf32, #tpu.memory_space<vmem>>, vector<1x1x32xf32>
    %353 = vector.shape_cast %352 : vector<1x1x32xf32> to vector<1x32xf32>
    %c10 = arith.constant 10 : index
    %c0_161 = arith.constant 0 : index
    %c0_162 = arith.constant 0 : index
    %354 = vector.load %arg4[%c10, %c0_161, %c0_162] : memref<16x32x32xf32, #tpu.memory_space<vmem>>, vector<1x32x32xf32>
    %355 = vector.shape_cast %354 : vector<1x32x32xf32> to vector<32x32xf32>
    %c10_163 = arith.constant 10 : index
    %c0_164 = arith.constant 0 : index
    %c0_165 = arith.constant 0 : index
    %356 = vector.load %arg5[%c10_163, %c0_164, %c0_165] : memref<16x1x32xf32, #tpu.memory_space<vmem>>, vector<1x1x32xf32>
    %357 = vector.shape_cast %356 : vector<1x1x32xf32> to vector<1x32xf32>
    %c11 = arith.constant 11 : index
    %c0_166 = arith.constant 0 : index
    %c0_167 = arith.constant 0 : index
    %358 = vector.load %arg4[%c11, %c0_166, %c0_167] : memref<16x32x32xf32, #tpu.memory_space<vmem>>, vector<1x32x32xf32>
    %359 = vector.shape_cast %358 : vector<1x32x32xf32> to vector<32x32xf32>
    %c11_168 = arith.constant 11 : index
    %c0_169 = arith.constant 0 : index
    %c0_170 = arith.constant 0 : index
    %360 = vector.load %arg5[%c11_168, %c0_169, %c0_170] : memref<16x1x32xf32, #tpu.memory_space<vmem>>, vector<1x1x32xf32>
    %361 = vector.shape_cast %360 : vector<1x1x32xf32> to vector<1x32xf32>
    %362 = arith.truncf %345 : vector<8x32xf32> to vector<8x32xbf16>
    %363 = arith.truncf %347 : vector<32x32xf32> to vector<32x32xbf16>
    %cst_171 = arith.constant dense<0.000000e+00> : vector<8x32xf32>
    %364 = tpu.matmul %362, %363, %cst_171 {dimension_numbers = #tpu.dot_dimension_numbers<[1], [0], [0], [1], [0, 0, 1, 1], [], []>} : vector<8x32xbf16>, vector<32x32xbf16>, vector<8x32xf32> -> vector<8x32xf32>
    %365 = vector.broadcast %349 : vector<1x32xf32> to vector<8x32xf32>
    %366 = arith.addf %364, %365 : vector<8x32xf32>
    %367 = arith.truncf %345 : vector<8x32xf32> to vector<8x32xbf16>
    %368 = arith.truncf %351 : vector<32x32xf32> to vector<32x32xbf16>
    %cst_172 = arith.constant dense<0.000000e+00> : vector<8x32xf32>
    %369 = tpu.matmul %367, %368, %cst_172 {dimension_numbers = #tpu.dot_dimension_numbers<[1], [0], [0], [1], [0, 0, 1, 1], [], []>} : vector<8x32xbf16>, vector<32x32xbf16>, vector<8x32xf32> -> vector<8x32xf32>
    %370 = vector.broadcast %353 : vector<1x32xf32> to vector<8x32xf32>
    %371 = arith.addf %369, %370 : vector<8x32xf32>
    %372 = arith.truncf %344 : vector<8x32xf32> to vector<8x32xbf16>
    %373 = arith.truncf %355 : vector<32x32xf32> to vector<32x32xbf16>
    %cst_173 = arith.constant dense<0.000000e+00> : vector<8x32xf32>
    %374 = tpu.matmul %372, %373, %cst_173 {dimension_numbers = #tpu.dot_dimension_numbers<[1], [0], [0], [1], [0, 0, 1, 1], [], []>} : vector<8x32xbf16>, vector<32x32xbf16>, vector<8x32xf32> -> vector<8x32xf32>
    %375 = vector.broadcast %357 : vector<1x32xf32> to vector<8x32xf32>
    %376 = arith.addf %374, %375 : vector<8x32xf32>
    %cst_174 = arith.constant 0.000000e+00 : f32
    %377 = vector.broadcast %cst_174 : f32 to vector<8x32xf32>
    %378 = vector.extract_strided_slice %366 {offsets = [0, 0], sizes = [8, 8], strides = [1, 1]} : vector<8x32xf32> to vector<8x8xf32>
    %379 = vector.extract_strided_slice %371 {offsets = [0, 0], sizes = [8, 8], strides = [1, 1]} : vector<8x32xf32> to vector<8x8xf32>
    %380 = vector.extract_strided_slice %376 {offsets = [0, 0], sizes = [8, 8], strides = [1, 1]} : vector<8x32xf32> to vector<8x8xf32>
    %381 = tpu.transpose %379, [1, 0] : vector<8x8xf32> -> vector<8x8xf32>
    %cst_175 = arith.constant dense<0.000000e+00> : vector<8x8xf32>
    %382 = tpu.matmul %378, %381, %cst_175 {dimension_numbers = #tpu.dot_dimension_numbers<[1], [0], [0], [1], [0, 0, 1, 1], [], []>} : vector<8x8xf32>, vector<8x8xf32>, vector<8x8xf32> -> vector<8x8xf32>
    %cst_176 = arith.constant 0.353553385 : f32
    %383 = vector.broadcast %cst_176 : f32 to vector<8x8xf32>
    %384 = arith.mulf %382, %383 : vector<8x8xf32>
    %cst_177 = arith.constant dense<0xFF800000> : vector<8xf32>
    %385 = vector.multi_reduction <maximumf>, %384, %cst_177 [1] : vector<8x8xf32> to vector<8xf32>
    %386 = vector.shape_cast %385 : vector<8xf32> to vector<8x1xf32>
    %387 = vector.broadcast %386 : vector<8x1xf32> to vector<8x8xf32>
    %388 = arith.subf %384, %387 : vector<8x8xf32>
    %389 = math.exp %388 : vector<8x8xf32>
    %cst_178 = arith.constant dense<0.000000e+00> : vector<8xf32>
    %390 = vector.multi_reduction <add>, %389, %cst_178 [1] : vector<8x8xf32> to vector<8xf32>
    %391 = vector.shape_cast %390 : vector<8xf32> to vector<8x1xf32>
    %392 = tpu.reciprocal %391 {approx = true} : vector<8x1xf32> -> vector<8x1xf32>
    %393 = vector.broadcast %392 : vector<8x1xf32> to vector<8x8xf32>
    %394 = arith.mulf %389, %393 : vector<8x8xf32>
    %cst_179 = arith.constant dense<0.000000e+00> : vector<8x8xf32>
    %395 = tpu.matmul %394, %380, %cst_179 {dimension_numbers = #tpu.dot_dimension_numbers<[1], [0], [0], [1], [0, 0, 1, 1], [], []>} : vector<8x8xf32>, vector<8x8xf32>, vector<8x8xf32> -> vector<8x8xf32>
    %396 = vector.extract_strided_slice %359 {offsets = [0, 0], sizes = [8, 32], strides = [1, 1]} : vector<32x32xf32> to vector<8x32xf32>
    %cst_180 = arith.constant dense<0.000000e+00> : vector<8x32xf32>
    %397 = tpu.matmul %395, %396, %cst_180 {dimension_numbers = #tpu.dot_dimension_numbers<[1], [0], [0], [1], [0, 0, 1, 1], [], []>} : vector<8x8xf32>, vector<8x32xf32>, vector<8x32xf32> -> vector<8x32xf32>
    %398 = arith.addf %377, %397 : vector<8x32xf32>
    %399 = vector.extract_strided_slice %366 {offsets = [0, 8], sizes = [8, 8], strides = [1, 1]} : vector<8x32xf32> to vector<8x8xf32>
    %400 = vector.extract_strided_slice %371 {offsets = [0, 8], sizes = [8, 8], strides = [1, 1]} : vector<8x32xf32> to vector<8x8xf32>
    %401 = vector.extract_strided_slice %376 {offsets = [0, 8], sizes = [8, 8], strides = [1, 1]} : vector<8x32xf32> to vector<8x8xf32>
    %402 = tpu.transpose %400, [1, 0] : vector<8x8xf32> -> vector<8x8xf32>
    %cst_181 = arith.constant dense<0.000000e+00> : vector<8x8xf32>
    %403 = tpu.matmul %399, %402, %cst_181 {dimension_numbers = #tpu.dot_dimension_numbers<[1], [0], [0], [1], [0, 0, 1, 1], [], []>} : vector<8x8xf32>, vector<8x8xf32>, vector<8x8xf32> -> vector<8x8xf32>
    %cst_182 = arith.constant 0.353553385 : f32
    %404 = vector.broadcast %cst_182 : f32 to vector<8x8xf32>
    %405 = arith.mulf %403, %404 : vector<8x8xf32>
    %cst_183 = arith.constant dense<0xFF800000> : vector<8xf32>
    %406 = vector.multi_reduction <maximumf>, %405, %cst_183 [1] : vector<8x8xf32> to vector<8xf32>
    %407 = vector.shape_cast %406 : vector<8xf32> to vector<8x1xf32>
    %408 = vector.broadcast %407 : vector<8x1xf32> to vector<8x8xf32>
    %409 = arith.subf %405, %408 : vector<8x8xf32>
    %410 = math.exp %409 : vector<8x8xf32>
    %cst_184 = arith.constant dense<0.000000e+00> : vector<8xf32>
    %411 = vector.multi_reduction <add>, %410, %cst_184 [1] : vector<8x8xf32> to vector<8xf32>
    %412 = vector.shape_cast %411 : vector<8xf32> to vector<8x1xf32>
    %413 = tpu.reciprocal %412 {approx = true} : vector<8x1xf32> -> vector<8x1xf32>
    %414 = vector.broadcast %413 : vector<8x1xf32> to vector<8x8xf32>
    %415 = arith.mulf %410, %414 : vector<8x8xf32>
    %cst_185 = arith.constant dense<0.000000e+00> : vector<8x8xf32>
    %416 = tpu.matmul %415, %401, %cst_185 {dimension_numbers = #tpu.dot_dimension_numbers<[1], [0], [0], [1], [0, 0, 1, 1], [], []>} : vector<8x8xf32>, vector<8x8xf32>, vector<8x8xf32> -> vector<8x8xf32>
    %417 = vector.extract_strided_slice %359 {offsets = [8, 0], sizes = [8, 32], strides = [1, 1]} : vector<32x32xf32> to vector<8x32xf32>
    %cst_186 = arith.constant dense<0.000000e+00> : vector<8x32xf32>
    %418 = tpu.matmul %416, %417, %cst_186 {dimension_numbers = #tpu.dot_dimension_numbers<[1], [0], [0], [1], [0, 0, 1, 1], [], []>} : vector<8x8xf32>, vector<8x32xf32>, vector<8x32xf32> -> vector<8x32xf32>
    %419 = arith.addf %398, %418 : vector<8x32xf32>
    %420 = vector.extract_strided_slice %366 {offsets = [0, 16], sizes = [8, 8], strides = [1, 1]} : vector<8x32xf32> to vector<8x8xf32>
    %421 = vector.extract_strided_slice %371 {offsets = [0, 16], sizes = [8, 8], strides = [1, 1]} : vector<8x32xf32> to vector<8x8xf32>
    %422 = vector.extract_strided_slice %376 {offsets = [0, 16], sizes = [8, 8], strides = [1, 1]} : vector<8x32xf32> to vector<8x8xf32>
    %423 = tpu.transpose %421, [1, 0] : vector<8x8xf32> -> vector<8x8xf32>
    %cst_187 = arith.constant dense<0.000000e+00> : vector<8x8xf32>
    %424 = tpu.matmul %420, %423, %cst_187 {dimension_numbers = #tpu.dot_dimension_numbers<[1], [0], [0], [1], [0, 0, 1, 1], [], []>} : vector<8x8xf32>, vector<8x8xf32>, vector<8x8xf32> -> vector<8x8xf32>
    %cst_188 = arith.constant 0.353553385 : f32
    %425 = vector.broadcast %cst_188 : f32 to vector<8x8xf32>
    %426 = arith.mulf %424, %425 : vector<8x8xf32>
    %cst_189 = arith.constant dense<0xFF800000> : vector<8xf32>
    %427 = vector.multi_reduction <maximumf>, %426, %cst_189 [1] : vector<8x8xf32> to vector<8xf32>
    %428 = vector.shape_cast %427 : vector<8xf32> to vector<8x1xf32>
    %429 = vector.broadcast %428 : vector<8x1xf32> to vector<8x8xf32>
    %430 = arith.subf %426, %429 : vector<8x8xf32>
    %431 = math.exp %430 : vector<8x8xf32>
    %cst_190 = arith.constant dense<0.000000e+00> : vector<8xf32>
    %432 = vector.multi_reduction <add>, %431, %cst_190 [1] : vector<8x8xf32> to vector<8xf32>
    %433 = vector.shape_cast %432 : vector<8xf32> to vector<8x1xf32>
    %434 = tpu.reciprocal %433 {approx = true} : vector<8x1xf32> -> vector<8x1xf32>
    %435 = vector.broadcast %434 : vector<8x1xf32> to vector<8x8xf32>
    %436 = arith.mulf %431, %435 : vector<8x8xf32>
    %cst_191 = arith.constant dense<0.000000e+00> : vector<8x8xf32>
    %437 = tpu.matmul %436, %422, %cst_191 {dimension_numbers = #tpu.dot_dimension_numbers<[1], [0], [0], [1], [0, 0, 1, 1], [], []>} : vector<8x8xf32>, vector<8x8xf32>, vector<8x8xf32> -> vector<8x8xf32>
    %438 = vector.extract_strided_slice %359 {offsets = [16, 0], sizes = [8, 32], strides = [1, 1]} : vector<32x32xf32> to vector<8x32xf32>
    %cst_192 = arith.constant dense<0.000000e+00> : vector<8x32xf32>
    %439 = tpu.matmul %437, %438, %cst_192 {dimension_numbers = #tpu.dot_dimension_numbers<[1], [0], [0], [1], [0, 0, 1, 1], [], []>} : vector<8x8xf32>, vector<8x32xf32>, vector<8x32xf32> -> vector<8x32xf32>
    %440 = arith.addf %419, %439 : vector<8x32xf32>
    %441 = vector.extract_strided_slice %366 {offsets = [0, 24], sizes = [8, 8], strides = [1, 1]} : vector<8x32xf32> to vector<8x8xf32>
    %442 = vector.extract_strided_slice %371 {offsets = [0, 24], sizes = [8, 8], strides = [1, 1]} : vector<8x32xf32> to vector<8x8xf32>
    %443 = vector.extract_strided_slice %376 {offsets = [0, 24], sizes = [8, 8], strides = [1, 1]} : vector<8x32xf32> to vector<8x8xf32>
    %444 = tpu.transpose %442, [1, 0] : vector<8x8xf32> -> vector<8x8xf32>
    %cst_193 = arith.constant dense<0.000000e+00> : vector<8x8xf32>
    %445 = tpu.matmul %441, %444, %cst_193 {dimension_numbers = #tpu.dot_dimension_numbers<[1], [0], [0], [1], [0, 0, 1, 1], [], []>} : vector<8x8xf32>, vector<8x8xf32>, vector<8x8xf32> -> vector<8x8xf32>
    %cst_194 = arith.constant 0.353553385 : f32
    %446 = vector.broadcast %cst_194 : f32 to vector<8x8xf32>
    %447 = arith.mulf %445, %446 : vector<8x8xf32>
    %cst_195 = arith.constant dense<0xFF800000> : vector<8xf32>
    %448 = vector.multi_reduction <maximumf>, %447, %cst_195 [1] : vector<8x8xf32> to vector<8xf32>
    %449 = vector.shape_cast %448 : vector<8xf32> to vector<8x1xf32>
    %450 = vector.broadcast %449 : vector<8x1xf32> to vector<8x8xf32>
    %451 = arith.subf %447, %450 : vector<8x8xf32>
    %452 = math.exp %451 : vector<8x8xf32>
    %cst_196 = arith.constant dense<0.000000e+00> : vector<8xf32>
    %453 = vector.multi_reduction <add>, %452, %cst_196 [1] : vector<8x8xf32> to vector<8xf32>
    %454 = vector.shape_cast %453 : vector<8xf32> to vector<8x1xf32>
    %455 = tpu.reciprocal %454 {approx = true} : vector<8x1xf32> -> vector<8x1xf32>
    %456 = vector.broadcast %455 : vector<8x1xf32> to vector<8x8xf32>
    %457 = arith.mulf %452, %456 : vector<8x8xf32>
    %cst_197 = arith.constant dense<0.000000e+00> : vector<8x8xf32>
    %458 = tpu.matmul %457, %443, %cst_197 {dimension_numbers = #tpu.dot_dimension_numbers<[1], [0], [0], [1], [0, 0, 1, 1], [], []>} : vector<8x8xf32>, vector<8x8xf32>, vector<8x8xf32> -> vector<8x8xf32>
    %459 = vector.extract_strided_slice %359 {offsets = [24, 0], sizes = [8, 32], strides = [1, 1]} : vector<32x32xf32> to vector<8x32xf32>
    %cst_198 = arith.constant dense<0.000000e+00> : vector<8x32xf32>
    %460 = tpu.matmul %458, %459, %cst_198 {dimension_numbers = #tpu.dot_dimension_numbers<[1], [0], [0], [1], [0, 0, 1, 1], [], []>} : vector<8x8xf32>, vector<8x32xf32>, vector<8x32xf32> -> vector<8x32xf32>
    %461 = arith.addf %440, %460 : vector<8x32xf32>
    %462 = vector.broadcast %361 : vector<1x32xf32> to vector<8x32xf32>
    %463 = arith.addf %461, %462 : vector<8x32xf32>
    %464 = arith.addf %344, %463 : vector<8x32xf32>
    %c3_199 = arith.constant 3 : index
    %c0_200 = arith.constant 0 : index
    %c0_201 = arith.constant 0 : index
    %465 = vector.load %arg10[%c3_199, %c0_200, %c0_201] : memref<6x1x32xf32, #tpu.memory_space<vmem>>, vector<1x1x32xf32>
    %466 = vector.shape_cast %465 : vector<1x1x32xf32> to vector<1x32xf32>
    %c3_202 = arith.constant 3 : index
    %c0_203 = arith.constant 0 : index
    %c0_204 = arith.constant 0 : index
    %467 = vector.load %arg11[%c3_202, %c0_203, %c0_204] : memref<6x1x32xf32, #tpu.memory_space<vmem>>, vector<1x1x32xf32>
    %468 = vector.shape_cast %467 : vector<1x1x32xf32> to vector<1x32xf32>
    %cst_205 = arith.constant dense<0.000000e+00> : vector<8xf32>
    %469 = vector.multi_reduction <add>, %464, %cst_205 [1] : vector<8x32xf32> to vector<8xf32>
    %470 = vector.shape_cast %469 : vector<8xf32> to vector<8x1xf32>
    %cst_206 = arith.constant 3.200000e+01 : f32
    %471 = vector.broadcast %cst_206 : f32 to vector<8x1xf32>
    %472 = arith.divf %470, %471 : vector<8x1xf32>
    %473 = vector.broadcast %472 : vector<8x1xf32> to vector<8x32xf32>
    %474 = arith.subf %464, %473 : vector<8x32xf32>
    %475 = arith.mulf %474, %474 : vector<8x32xf32>
    %cst_207 = arith.constant dense<0.000000e+00> : vector<8xf32>
    %476 = vector.multi_reduction <add>, %475, %cst_207 [1] : vector<8x32xf32> to vector<8xf32>
    %477 = vector.shape_cast %476 : vector<8xf32> to vector<8x1xf32>
    %cst_208 = arith.constant 3.200000e+01 : f32
    %478 = vector.broadcast %cst_208 : f32 to vector<8x1xf32>
    %479 = arith.divf %477, %478 : vector<8x1xf32>
    %480 = vector.broadcast %472 : vector<8x1xf32> to vector<8x32xf32>
    %481 = arith.subf %464, %480 : vector<8x32xf32>
    %cst_209 = arith.constant 9.99999974E-6 : f32
    %482 = vector.broadcast %cst_209 : f32 to vector<8x1xf32>
    %483 = arith.addf %479, %482 : vector<8x1xf32>
    %484 = math.rsqrt %483 : vector<8x1xf32>
    %485 = vector.broadcast %484 : vector<8x1xf32> to vector<8x32xf32>
    %486 = arith.mulf %481, %485 : vector<8x32xf32>
    %487 = vector.broadcast %466 : vector<1x32xf32> to vector<8x32xf32>
    %488 = arith.mulf %486, %487 : vector<8x32xf32>
    %489 = vector.broadcast %468 : vector<1x32xf32> to vector<8x32xf32>
    %490 = arith.addf %488, %489 : vector<8x32xf32>
    %491 = arith.addf %490, %3 : vector<8x32xf32>
    %c12 = arith.constant 12 : index
    %c0_210 = arith.constant 0 : index
    %c0_211 = arith.constant 0 : index
    %492 = vector.load %arg4[%c12, %c0_210, %c0_211] : memref<16x32x32xf32, #tpu.memory_space<vmem>>, vector<1x32x32xf32>
    %493 = vector.shape_cast %492 : vector<1x32x32xf32> to vector<32x32xf32>
    %c12_212 = arith.constant 12 : index
    %c0_213 = arith.constant 0 : index
    %c0_214 = arith.constant 0 : index
    %494 = vector.load %arg5[%c12_212, %c0_213, %c0_214] : memref<16x1x32xf32, #tpu.memory_space<vmem>>, vector<1x1x32xf32>
    %495 = vector.shape_cast %494 : vector<1x1x32xf32> to vector<1x32xf32>
    %c13 = arith.constant 13 : index
    %c0_215 = arith.constant 0 : index
    %c0_216 = arith.constant 0 : index
    %496 = vector.load %arg4[%c13, %c0_215, %c0_216] : memref<16x32x32xf32, #tpu.memory_space<vmem>>, vector<1x32x32xf32>
    %497 = vector.shape_cast %496 : vector<1x32x32xf32> to vector<32x32xf32>
    %c13_217 = arith.constant 13 : index
    %c0_218 = arith.constant 0 : index
    %c0_219 = arith.constant 0 : index
    %498 = vector.load %arg5[%c13_217, %c0_218, %c0_219] : memref<16x1x32xf32, #tpu.memory_space<vmem>>, vector<1x1x32xf32>
    %499 = vector.shape_cast %498 : vector<1x1x32xf32> to vector<1x32xf32>
    %c14 = arith.constant 14 : index
    %c0_220 = arith.constant 0 : index
    %c0_221 = arith.constant 0 : index
    %500 = vector.load %arg4[%c14, %c0_220, %c0_221] : memref<16x32x32xf32, #tpu.memory_space<vmem>>, vector<1x32x32xf32>
    %501 = vector.shape_cast %500 : vector<1x32x32xf32> to vector<32x32xf32>
    %c14_222 = arith.constant 14 : index
    %c0_223 = arith.constant 0 : index
    %c0_224 = arith.constant 0 : index
    %502 = vector.load %arg5[%c14_222, %c0_223, %c0_224] : memref<16x1x32xf32, #tpu.memory_space<vmem>>, vector<1x1x32xf32>
    %503 = vector.shape_cast %502 : vector<1x1x32xf32> to vector<1x32xf32>
    %c15 = arith.constant 15 : index
    %c0_225 = arith.constant 0 : index
    %c0_226 = arith.constant 0 : index
    %504 = vector.load %arg4[%c15, %c0_225, %c0_226] : memref<16x32x32xf32, #tpu.memory_space<vmem>>, vector<1x32x32xf32>
    %505 = vector.shape_cast %504 : vector<1x32x32xf32> to vector<32x32xf32>
    %c15_227 = arith.constant 15 : index
    %c0_228 = arith.constant 0 : index
    %c0_229 = arith.constant 0 : index
    %506 = vector.load %arg5[%c15_227, %c0_228, %c0_229] : memref<16x1x32xf32, #tpu.memory_space<vmem>>, vector<1x1x32xf32>
    %507 = vector.shape_cast %506 : vector<1x1x32xf32> to vector<1x32xf32>
    %508 = arith.truncf %491 : vector<8x32xf32> to vector<8x32xbf16>
    %509 = arith.truncf %493 : vector<32x32xf32> to vector<32x32xbf16>
    %cst_230 = arith.constant dense<0.000000e+00> : vector<8x32xf32>
    %510 = tpu.matmul %508, %509, %cst_230 {dimension_numbers = #tpu.dot_dimension_numbers<[1], [0], [0], [1], [0, 0, 1, 1], [], []>} : vector<8x32xbf16>, vector<32x32xbf16>, vector<8x32xf32> -> vector<8x32xf32>
    %511 = vector.broadcast %495 : vector<1x32xf32> to vector<8x32xf32>
    %512 = arith.addf %510, %511 : vector<8x32xf32>
    %513 = arith.truncf %4 : vector<16x32xf32> to vector<16x32xbf16>
    %514 = arith.truncf %497 : vector<32x32xf32> to vector<32x32xbf16>
    %cst_231 = arith.constant dense<0.000000e+00> : vector<16x32xf32>
    %515 = tpu.matmul %513, %514, %cst_231 {dimension_numbers = #tpu.dot_dimension_numbers<[1], [0], [0], [1], [0, 0, 1, 1], [], []>} : vector<16x32xbf16>, vector<32x32xbf16>, vector<16x32xf32> -> vector<16x32xf32>
    %516 = vector.broadcast %499 : vector<1x32xf32> to vector<16x32xf32>
    %517 = arith.addf %515, %516 : vector<16x32xf32>
    %518 = arith.truncf %1 : vector<16x32xf32> to vector<16x32xbf16>
    %519 = arith.truncf %501 : vector<32x32xf32> to vector<32x32xbf16>
    %cst_232 = arith.constant dense<0.000000e+00> : vector<16x32xf32>
    %520 = tpu.matmul %518, %519, %cst_232 {dimension_numbers = #tpu.dot_dimension_numbers<[1], [0], [0], [1], [0, 0, 1, 1], [], []>} : vector<16x32xbf16>, vector<32x32xbf16>, vector<16x32xf32> -> vector<16x32xf32>
    %521 = vector.broadcast %503 : vector<1x32xf32> to vector<16x32xf32>
    %522 = arith.addf %520, %521 : vector<16x32xf32>
    %cst_233 = arith.constant 0.000000e+00 : f32
    %523 = vector.broadcast %cst_233 : f32 to vector<8x32xf32>
    %524 = vector.extract_strided_slice %512 {offsets = [0, 0], sizes = [8, 8], strides = [1, 1]} : vector<8x32xf32> to vector<8x8xf32>
    %525 = vector.extract_strided_slice %517 {offsets = [0, 0], sizes = [16, 8], strides = [1, 1]} : vector<16x32xf32> to vector<16x8xf32>
    %526 = vector.extract_strided_slice %522 {offsets = [0, 0], sizes = [16, 8], strides = [1, 1]} : vector<16x32xf32> to vector<16x8xf32>
    %527 = tpu.transpose %525, [1, 0] : vector<16x8xf32> -> vector<8x16xf32>
    %cst_234 = arith.constant dense<0.000000e+00> : vector<8x16xf32>
    %528 = tpu.matmul %524, %527, %cst_234 {dimension_numbers = #tpu.dot_dimension_numbers<[1], [0], [0], [1], [0, 0, 1, 1], [], []>} : vector<8x8xf32>, vector<8x16xf32>, vector<8x16xf32> -> vector<8x16xf32>
    %cst_235 = arith.constant 0.353553385 : f32
    %529 = vector.broadcast %cst_235 : f32 to vector<8x16xf32>
    %530 = arith.mulf %528, %529 : vector<8x16xf32>
    %cst_236 = arith.constant dense<0xFF800000> : vector<8xf32>
    %531 = vector.multi_reduction <maximumf>, %530, %cst_236 [1] : vector<8x16xf32> to vector<8xf32>
    %532 = vector.shape_cast %531 : vector<8xf32> to vector<8x1xf32>
    %533 = vector.broadcast %532 : vector<8x1xf32> to vector<8x16xf32>
    %534 = arith.subf %530, %533 : vector<8x16xf32>
    %535 = math.exp %534 : vector<8x16xf32>
    %cst_237 = arith.constant dense<0.000000e+00> : vector<8xf32>
    %536 = vector.multi_reduction <add>, %535, %cst_237 [1] : vector<8x16xf32> to vector<8xf32>
    %537 = vector.shape_cast %536 : vector<8xf32> to vector<8x1xf32>
    %538 = tpu.reciprocal %537 {approx = true} : vector<8x1xf32> -> vector<8x1xf32>
    %539 = vector.broadcast %538 : vector<8x1xf32> to vector<8x16xf32>
    %540 = arith.mulf %535, %539 : vector<8x16xf32>
    %cst_238 = arith.constant dense<0.000000e+00> : vector<8x8xf32>
    %541 = tpu.matmul %540, %526, %cst_238 {dimension_numbers = #tpu.dot_dimension_numbers<[1], [0], [0], [1], [0, 0, 1, 1], [], []>} : vector<8x16xf32>, vector<16x8xf32>, vector<8x8xf32> -> vector<8x8xf32>
    %542 = vector.extract_strided_slice %505 {offsets = [0, 0], sizes = [8, 32], strides = [1, 1]} : vector<32x32xf32> to vector<8x32xf32>
    %cst_239 = arith.constant dense<0.000000e+00> : vector<8x32xf32>
    %543 = tpu.matmul %541, %542, %cst_239 {dimension_numbers = #tpu.dot_dimension_numbers<[1], [0], [0], [1], [0, 0, 1, 1], [], []>} : vector<8x8xf32>, vector<8x32xf32>, vector<8x32xf32> -> vector<8x32xf32>
    %544 = arith.addf %523, %543 : vector<8x32xf32>
    %545 = vector.extract_strided_slice %512 {offsets = [0, 8], sizes = [8, 8], strides = [1, 1]} : vector<8x32xf32> to vector<8x8xf32>
    %546 = vector.extract_strided_slice %517 {offsets = [0, 8], sizes = [16, 8], strides = [1, 1]} : vector<16x32xf32> to vector<16x8xf32>
    %547 = vector.extract_strided_slice %522 {offsets = [0, 8], sizes = [16, 8], strides = [1, 1]} : vector<16x32xf32> to vector<16x8xf32>
    %548 = tpu.transpose %546, [1, 0] : vector<16x8xf32> -> vector<8x16xf32>
    %cst_240 = arith.constant dense<0.000000e+00> : vector<8x16xf32>
    %549 = tpu.matmul %545, %548, %cst_240 {dimension_numbers = #tpu.dot_dimension_numbers<[1], [0], [0], [1], [0, 0, 1, 1], [], []>} : vector<8x8xf32>, vector<8x16xf32>, vector<8x16xf32> -> vector<8x16xf32>
    %cst_241 = arith.constant 0.353553385 : f32
    %550 = vector.broadcast %cst_241 : f32 to vector<8x16xf32>
    %551 = arith.mulf %549, %550 : vector<8x16xf32>
    %cst_242 = arith.constant dense<0xFF800000> : vector<8xf32>
    %552 = vector.multi_reduction <maximumf>, %551, %cst_242 [1] : vector<8x16xf32> to vector<8xf32>
    %553 = vector.shape_cast %552 : vector<8xf32> to vector<8x1xf32>
    %554 = vector.broadcast %553 : vector<8x1xf32> to vector<8x16xf32>
    %555 = arith.subf %551, %554 : vector<8x16xf32>
    %556 = math.exp %555 : vector<8x16xf32>
    %cst_243 = arith.constant dense<0.000000e+00> : vector<8xf32>
    %557 = vector.multi_reduction <add>, %556, %cst_243 [1] : vector<8x16xf32> to vector<8xf32>
    %558 = vector.shape_cast %557 : vector<8xf32> to vector<8x1xf32>
    %559 = tpu.reciprocal %558 {approx = true} : vector<8x1xf32> -> vector<8x1xf32>
    %560 = vector.broadcast %559 : vector<8x1xf32> to vector<8x16xf32>
    %561 = arith.mulf %556, %560 : vector<8x16xf32>
    %cst_244 = arith.constant dense<0.000000e+00> : vector<8x8xf32>
    %562 = tpu.matmul %561, %547, %cst_244 {dimension_numbers = #tpu.dot_dimension_numbers<[1], [0], [0], [1], [0, 0, 1, 1], [], []>} : vector<8x16xf32>, vector<16x8xf32>, vector<8x8xf32> -> vector<8x8xf32>
    %563 = vector.extract_strided_slice %505 {offsets = [8, 0], sizes = [8, 32], strides = [1, 1]} : vector<32x32xf32> to vector<8x32xf32>
    %cst_245 = arith.constant dense<0.000000e+00> : vector<8x32xf32>
    %564 = tpu.matmul %562, %563, %cst_245 {dimension_numbers = #tpu.dot_dimension_numbers<[1], [0], [0], [1], [0, 0, 1, 1], [], []>} : vector<8x8xf32>, vector<8x32xf32>, vector<8x32xf32> -> vector<8x32xf32>
    %565 = arith.addf %544, %564 : vector<8x32xf32>
    %566 = vector.extract_strided_slice %512 {offsets = [0, 16], sizes = [8, 8], strides = [1, 1]} : vector<8x32xf32> to vector<8x8xf32>
    %567 = vector.extract_strided_slice %517 {offsets = [0, 16], sizes = [16, 8], strides = [1, 1]} : vector<16x32xf32> to vector<16x8xf32>
    %568 = vector.extract_strided_slice %522 {offsets = [0, 16], sizes = [16, 8], strides = [1, 1]} : vector<16x32xf32> to vector<16x8xf32>
    %569 = tpu.transpose %567, [1, 0] : vector<16x8xf32> -> vector<8x16xf32>
    %cst_246 = arith.constant dense<0.000000e+00> : vector<8x16xf32>
    %570 = tpu.matmul %566, %569, %cst_246 {dimension_numbers = #tpu.dot_dimension_numbers<[1], [0], [0], [1], [0, 0, 1, 1], [], []>} : vector<8x8xf32>, vector<8x16xf32>, vector<8x16xf32> -> vector<8x16xf32>
    %cst_247 = arith.constant 0.353553385 : f32
    %571 = vector.broadcast %cst_247 : f32 to vector<8x16xf32>
    %572 = arith.mulf %570, %571 : vector<8x16xf32>
    %cst_248 = arith.constant dense<0xFF800000> : vector<8xf32>
    %573 = vector.multi_reduction <maximumf>, %572, %cst_248 [1] : vector<8x16xf32> to vector<8xf32>
    %574 = vector.shape_cast %573 : vector<8xf32> to vector<8x1xf32>
    %575 = vector.broadcast %574 : vector<8x1xf32> to vector<8x16xf32>
    %576 = arith.subf %572, %575 : vector<8x16xf32>
    %577 = math.exp %576 : vector<8x16xf32>
    %cst_249 = arith.constant dense<0.000000e+00> : vector<8xf32>
    %578 = vector.multi_reduction <add>, %577, %cst_249 [1] : vector<8x16xf32> to vector<8xf32>
    %579 = vector.shape_cast %578 : vector<8xf32> to vector<8x1xf32>
    %580 = tpu.reciprocal %579 {approx = true} : vector<8x1xf32> -> vector<8x1xf32>
    %581 = vector.broadcast %580 : vector<8x1xf32> to vector<8x16xf32>
    %582 = arith.mulf %577, %581 : vector<8x16xf32>
    %cst_250 = arith.constant dense<0.000000e+00> : vector<8x8xf32>
    %583 = tpu.matmul %582, %568, %cst_250 {dimension_numbers = #tpu.dot_dimension_numbers<[1], [0], [0], [1], [0, 0, 1, 1], [], []>} : vector<8x16xf32>, vector<16x8xf32>, vector<8x8xf32> -> vector<8x8xf32>
    %584 = vector.extract_strided_slice %505 {offsets = [16, 0], sizes = [8, 32], strides = [1, 1]} : vector<32x32xf32> to vector<8x32xf32>
    %cst_251 = arith.constant dense<0.000000e+00> : vector<8x32xf32>
    %585 = tpu.matmul %583, %584, %cst_251 {dimension_numbers = #tpu.dot_dimension_numbers<[1], [0], [0], [1], [0, 0, 1, 1], [], []>} : vector<8x8xf32>, vector<8x32xf32>, vector<8x32xf32> -> vector<8x32xf32>
    %586 = arith.addf %565, %585 : vector<8x32xf32>
    %587 = vector.extract_strided_slice %512 {offsets = [0, 24], sizes = [8, 8], strides = [1, 1]} : vector<8x32xf32> to vector<8x8xf32>
    %588 = vector.extract_strided_slice %517 {offsets = [0, 24], sizes = [16, 8], strides = [1, 1]} : vector<16x32xf32> to vector<16x8xf32>
    %589 = vector.extract_strided_slice %522 {offsets = [0, 24], sizes = [16, 8], strides = [1, 1]} : vector<16x32xf32> to vector<16x8xf32>
    %590 = tpu.transpose %588, [1, 0] : vector<16x8xf32> -> vector<8x16xf32>
    %cst_252 = arith.constant dense<0.000000e+00> : vector<8x16xf32>
    %591 = tpu.matmul %587, %590, %cst_252 {dimension_numbers = #tpu.dot_dimension_numbers<[1], [0], [0], [1], [0, 0, 1, 1], [], []>} : vector<8x8xf32>, vector<8x16xf32>, vector<8x16xf32> -> vector<8x16xf32>
    %cst_253 = arith.constant 0.353553385 : f32
    %592 = vector.broadcast %cst_253 : f32 to vector<8x16xf32>
    %593 = arith.mulf %591, %592 : vector<8x16xf32>
    %cst_254 = arith.constant dense<0xFF800000> : vector<8xf32>
    %594 = vector.multi_reduction <maximumf>, %593, %cst_254 [1] : vector<8x16xf32> to vector<8xf32>
    %595 = vector.shape_cast %594 : vector<8xf32> to vector<8x1xf32>
    %596 = vector.broadcast %595 : vector<8x1xf32> to vector<8x16xf32>
    %597 = arith.subf %593, %596 : vector<8x16xf32>
    %598 = math.exp %597 : vector<8x16xf32>
    %cst_255 = arith.constant dense<0.000000e+00> : vector<8xf32>
    %599 = vector.multi_reduction <add>, %598, %cst_255 [1] : vector<8x16xf32> to vector<8xf32>
    %600 = vector.shape_cast %599 : vector<8xf32> to vector<8x1xf32>
    %601 = tpu.reciprocal %600 {approx = true} : vector<8x1xf32> -> vector<8x1xf32>
    %602 = vector.broadcast %601 : vector<8x1xf32> to vector<8x16xf32>
    %603 = arith.mulf %598, %602 : vector<8x16xf32>
    %cst_256 = arith.constant dense<0.000000e+00> : vector<8x8xf32>
    %604 = tpu.matmul %603, %589, %cst_256 {dimension_numbers = #tpu.dot_dimension_numbers<[1], [0], [0], [1], [0, 0, 1, 1], [], []>} : vector<8x16xf32>, vector<16x8xf32>, vector<8x8xf32> -> vector<8x8xf32>
    %605 = vector.extract_strided_slice %505 {offsets = [24, 0], sizes = [8, 32], strides = [1, 1]} : vector<32x32xf32> to vector<8x32xf32>
    %cst_257 = arith.constant dense<0.000000e+00> : vector<8x32xf32>
    %606 = tpu.matmul %604, %605, %cst_257 {dimension_numbers = #tpu.dot_dimension_numbers<[1], [0], [0], [1], [0, 0, 1, 1], [], []>} : vector<8x8xf32>, vector<8x32xf32>, vector<8x32xf32> -> vector<8x32xf32>
    %607 = arith.addf %586, %606 : vector<8x32xf32>
    %608 = vector.broadcast %507 : vector<1x32xf32> to vector<8x32xf32>
    %609 = arith.addf %607, %608 : vector<8x32xf32>
    %610 = arith.addf %490, %609 : vector<8x32xf32>
    %c4_258 = arith.constant 4 : index
    %c0_259 = arith.constant 0 : index
    %c0_260 = arith.constant 0 : index
    %611 = vector.load %arg10[%c4_258, %c0_259, %c0_260] : memref<6x1x32xf32, #tpu.memory_space<vmem>>, vector<1x1x32xf32>
    %612 = vector.shape_cast %611 : vector<1x1x32xf32> to vector<1x32xf32>
    %c4_261 = arith.constant 4 : index
    %c0_262 = arith.constant 0 : index
    %c0_263 = arith.constant 0 : index
    %613 = vector.load %arg11[%c4_261, %c0_262, %c0_263] : memref<6x1x32xf32, #tpu.memory_space<vmem>>, vector<1x1x32xf32>
    %614 = vector.shape_cast %613 : vector<1x1x32xf32> to vector<1x32xf32>
    %cst_264 = arith.constant dense<0.000000e+00> : vector<8xf32>
    %615 = vector.multi_reduction <add>, %610, %cst_264 [1] : vector<8x32xf32> to vector<8xf32>
    %616 = vector.shape_cast %615 : vector<8xf32> to vector<8x1xf32>
    %cst_265 = arith.constant 3.200000e+01 : f32
    %617 = vector.broadcast %cst_265 : f32 to vector<8x1xf32>
    %618 = arith.divf %616, %617 : vector<8x1xf32>
    %619 = vector.broadcast %618 : vector<8x1xf32> to vector<8x32xf32>
    %620 = arith.subf %610, %619 : vector<8x32xf32>
    %621 = arith.mulf %620, %620 : vector<8x32xf32>
    %cst_266 = arith.constant dense<0.000000e+00> : vector<8xf32>
    %622 = vector.multi_reduction <add>, %621, %cst_266 [1] : vector<8x32xf32> to vector<8xf32>
    %623 = vector.shape_cast %622 : vector<8xf32> to vector<8x1xf32>
    %cst_267 = arith.constant 3.200000e+01 : f32
    %624 = vector.broadcast %cst_267 : f32 to vector<8x1xf32>
    %625 = arith.divf %623, %624 : vector<8x1xf32>
    %626 = vector.broadcast %618 : vector<8x1xf32> to vector<8x32xf32>
    %627 = arith.subf %610, %626 : vector<8x32xf32>
    %cst_268 = arith.constant 9.99999974E-6 : f32
    %628 = vector.broadcast %cst_268 : f32 to vector<8x1xf32>
    %629 = arith.addf %625, %628 : vector<8x1xf32>
    %630 = math.rsqrt %629 : vector<8x1xf32>
    %631 = vector.broadcast %630 : vector<8x1xf32> to vector<8x32xf32>
    %632 = arith.mulf %627, %631 : vector<8x32xf32>
    %633 = vector.broadcast %612 : vector<1x32xf32> to vector<8x32xf32>
    %634 = arith.mulf %632, %633 : vector<8x32xf32>
    %635 = vector.broadcast %614 : vector<1x32xf32> to vector<8x32xf32>
    %636 = arith.addf %634, %635 : vector<8x32xf32>
    %c1_269 = arith.constant 1 : index
    %c0_270 = arith.constant 0 : index
    %c0_271 = arith.constant 0 : index
    %637 = vector.load %arg6[%c1_269, %c0_270, %c0_271] : memref<2x32x64xf32, #tpu.memory_space<vmem>>, vector<1x32x64xf32>
    %638 = vector.shape_cast %637 : vector<1x32x64xf32> to vector<32x64xf32>
    %c1_272 = arith.constant 1 : index
    %c0_273 = arith.constant 0 : index
    %c0_274 = arith.constant 0 : index
    %639 = vector.load %arg7[%c1_272, %c0_273, %c0_274] : memref<2x1x64xf32, #tpu.memory_space<vmem>>, vector<1x1x64xf32>
    %640 = vector.shape_cast %639 : vector<1x1x64xf32> to vector<1x64xf32>
    %641 = arith.truncf %636 : vector<8x32xf32> to vector<8x32xbf16>
    %642 = arith.truncf %638 : vector<32x64xf32> to vector<32x64xbf16>
    %cst_275 = arith.constant dense<0.000000e+00> : vector<8x64xf32>
    %643 = tpu.matmul %641, %642, %cst_275 {dimension_numbers = #tpu.dot_dimension_numbers<[1], [0], [0], [1], [0, 0, 1, 1], [], []>} : vector<8x32xbf16>, vector<32x64xbf16>, vector<8x64xf32> -> vector<8x64xf32>
    %644 = vector.broadcast %640 : vector<1x64xf32> to vector<8x64xf32>
    %645 = arith.addf %643, %644 : vector<8x64xf32>
    %cst_276 = arith.constant 0.000000e+00 : f32
    %646 = vector.broadcast %cst_276 : f32 to vector<8x64xf32>
    %647 = arith.maximumf %645, %646 : vector<8x64xf32>
    %c1_277 = arith.constant 1 : index
    %c0_278 = arith.constant 0 : index
    %c0_279 = arith.constant 0 : index
    %648 = vector.load %arg8[%c1_277, %c0_278, %c0_279] : memref<2x64x32xf32, #tpu.memory_space<vmem>>, vector<1x64x32xf32>
    %649 = vector.shape_cast %648 : vector<1x64x32xf32> to vector<64x32xf32>
    %c1_280 = arith.constant 1 : index
    %c0_281 = arith.constant 0 : index
    %c0_282 = arith.constant 0 : index
    %650 = vector.load %arg9[%c1_280, %c0_281, %c0_282] : memref<2x1x32xf32, #tpu.memory_space<vmem>>, vector<1x1x32xf32>
    %651 = vector.shape_cast %650 : vector<1x1x32xf32> to vector<1x32xf32>
    %652 = arith.truncf %647 : vector<8x64xf32> to vector<8x64xbf16>
    %653 = arith.truncf %649 : vector<64x32xf32> to vector<64x32xbf16>
    %cst_283 = arith.constant dense<0.000000e+00> : vector<8x32xf32>
    %654 = tpu.matmul %652, %653, %cst_283 {dimension_numbers = #tpu.dot_dimension_numbers<[1], [0], [0], [1], [0, 0, 1, 1], [], []>} : vector<8x64xbf16>, vector<64x32xbf16>, vector<8x32xf32> -> vector<8x32xf32>
    %655 = vector.broadcast %651 : vector<1x32xf32> to vector<8x32xf32>
    %656 = arith.addf %654, %655 : vector<8x32xf32>
    %657 = arith.addf %636, %656 : vector<8x32xf32>
    %c5_284 = arith.constant 5 : index
    %c0_285 = arith.constant 0 : index
    %c0_286 = arith.constant 0 : index
    %658 = vector.load %arg10[%c5_284, %c0_285, %c0_286] : memref<6x1x32xf32, #tpu.memory_space<vmem>>, vector<1x1x32xf32>
    %659 = vector.shape_cast %658 : vector<1x1x32xf32> to vector<1x32xf32>
    %c5_287 = arith.constant 5 : index
    %c0_288 = arith.constant 0 : index
    %c0_289 = arith.constant 0 : index
    %660 = vector.load %arg11[%c5_287, %c0_288, %c0_289] : memref<6x1x32xf32, #tpu.memory_space<vmem>>, vector<1x1x32xf32>
    %661 = vector.shape_cast %660 : vector<1x1x32xf32> to vector<1x32xf32>
    %cst_290 = arith.constant dense<0.000000e+00> : vector<8xf32>
    %662 = vector.multi_reduction <add>, %657, %cst_290 [1] : vector<8x32xf32> to vector<8xf32>
    %663 = vector.shape_cast %662 : vector<8xf32> to vector<8x1xf32>
    %cst_291 = arith.constant 3.200000e+01 : f32
    %664 = vector.broadcast %cst_291 : f32 to vector<8x1xf32>
    %665 = arith.divf %663, %664 : vector<8x1xf32>
    %666 = vector.broadcast %665 : vector<8x1xf32> to vector<8x32xf32>
    %667 = arith.subf %657, %666 : vector<8x32xf32>
    %668 = arith.mulf %667, %667 : vector<8x32xf32>
    %cst_292 = arith.constant dense<0.000000e+00> : vector<8xf32>
    %669 = vector.multi_reduction <add>, %668, %cst_292 [1] : vector<8x32xf32> to vector<8xf32>
    %670 = vector.shape_cast %669 : vector<8xf32> to vector<8x1xf32>
    %cst_293 = arith.constant 3.200000e+01 : f32
    %671 = vector.broadcast %cst_293 : f32 to vector<8x1xf32>
    %672 = arith.divf %670, %671 : vector<8x1xf32>
    %673 = vector.broadcast %665 : vector<8x1xf32> to vector<8x32xf32>
    %674 = arith.subf %657, %673 : vector<8x32xf32>
    %cst_294 = arith.constant 9.99999974E-6 : f32
    %675 = vector.broadcast %cst_294 : f32 to vector<8x1xf32>
    %676 = arith.addf %672, %675 : vector<8x1xf32>
    %677 = math.rsqrt %676 : vector<8x1xf32>
    %678 = vector.broadcast %677 : vector<8x1xf32> to vector<8x32xf32>
    %679 = arith.mulf %674, %678 : vector<8x32xf32>
    %680 = vector.broadcast %659 : vector<1x32xf32> to vector<8x32xf32>
    %681 = arith.mulf %679, %680 : vector<8x32xf32>
    %682 = vector.broadcast %661 : vector<1x32xf32> to vector<8x32xf32>
    %683 = arith.addf %681, %682 : vector<8x32xf32>
    %c0_295 = arith.constant 0 : index
    %c0_296 = arith.constant 0 : index
    %684 = vector.load %arg12[%c0_295, %c0_296] : memref<1x32xf32, #tpu.memory_space<vmem>>, vector<1x32xf32>
    %c0_297 = arith.constant 0 : index
    %c0_298 = arith.constant 0 : index
    %685 = vector.load %arg13[%c0_297, %c0_298] : memref<1x32xf32, #tpu.memory_space<vmem>>, vector<1x32xf32>
    %cst_299 = arith.constant dense<0.000000e+00> : vector<8xf32>
    %686 = vector.multi_reduction <add>, %683, %cst_299 [1] : vector<8x32xf32> to vector<8xf32>
    %687 = vector.shape_cast %686 : vector<8xf32> to vector<8x1xf32>
    %cst_300 = arith.constant 3.200000e+01 : f32
    %688 = vector.broadcast %cst_300 : f32 to vector<8x1xf32>
    %689 = arith.divf %687, %688 : vector<8x1xf32>
    %690 = vector.broadcast %689 : vector<8x1xf32> to vector<8x32xf32>
    %691 = arith.subf %683, %690 : vector<8x32xf32>
    %692 = arith.mulf %691, %691 : vector<8x32xf32>
    %cst_301 = arith.constant dense<0.000000e+00> : vector<8xf32>
    %693 = vector.multi_reduction <add>, %692, %cst_301 [1] : vector<8x32xf32> to vector<8xf32>
    %694 = vector.shape_cast %693 : vector<8xf32> to vector<8x1xf32>
    %cst_302 = arith.constant 3.200000e+01 : f32
    %695 = vector.broadcast %cst_302 : f32 to vector<8x1xf32>
    %696 = arith.divf %694, %695 : vector<8x1xf32>
    %697 = vector.broadcast %689 : vector<8x1xf32> to vector<8x32xf32>
    %698 = arith.subf %683, %697 : vector<8x32xf32>
    %cst_303 = arith.constant 9.99999974E-6 : f32
    %699 = vector.broadcast %cst_303 : f32 to vector<8x1xf32>
    %700 = arith.addf %696, %699 : vector<8x1xf32>
    %701 = math.rsqrt %700 : vector<8x1xf32>
    %702 = vector.broadcast %701 : vector<8x1xf32> to vector<8x32xf32>
    %703 = arith.mulf %698, %702 : vector<8x32xf32>
    %704 = vector.broadcast %684 : vector<1x32xf32> to vector<8x32xf32>
    %705 = arith.mulf %703, %704 : vector<8x32xf32>
    %706 = vector.broadcast %685 : vector<1x32xf32> to vector<8x32xf32>
    %707 = arith.addf %705, %706 : vector<8x32xf32>
    %c0_304 = arith.constant 0 : index
    %c0_305 = arith.constant 0 : index
    %708 = vector.load %arg14[%c0_304, %c0_305] : memref<32x16xf32, #tpu.memory_space<vmem>>, vector<32x16xf32>
    %c0_306 = arith.constant 0 : index
    %c0_307 = arith.constant 0 : index
    %709 = vector.load %arg15[%c0_306, %c0_307] : memref<1x16xf32, #tpu.memory_space<vmem>>, vector<1x16xf32>
    %710 = arith.truncf %707 : vector<8x32xf32> to vector<8x32xbf16>
    %711 = arith.truncf %708 : vector<32x16xf32> to vector<32x16xbf16>
    %cst_308 = arith.constant dense<0.000000e+00> : vector<8x16xf32>
    %712 = tpu.matmul %710, %711, %cst_308 {dimension_numbers = #tpu.dot_dimension_numbers<[1], [0], [0], [1], [0, 0, 1, 1], [], []>} : vector<8x32xbf16>, vector<32x16xbf16>, vector<8x16xf32> -> vector<8x16xf32>
    %713 = vector.broadcast %709 : vector<1x16xf32> to vector<8x16xf32>
    %714 = arith.addf %712, %713 : vector<8x16xf32>
    %c0_309 = arith.constant 0 : index
    %c0_310 = arith.constant 0 : index
    %c0_311 = arith.constant 0 : index
    %715 = vector.load %arg22[%c0_309, %c0_310, %c0_311] : memref<1x8x16xf32, #tpu.memory_space<vmem>>, vector<1x8x16xf32>
    %716 = vector.shape_cast %715 : vector<1x8x16xf32> to vector<8x16xf32>
    %717 = vector.shape_cast %714 : vector<8x16xf32> to vector<1x8x16xf32>
    tpu.vector_store %arg22[%c0_309, %c0_310, %c0_311], %717 {strides = array<i32>} : memref<1x8x16xf32, #tpu.memory_space<vmem>>, vector<1x8x16xf32>,
    %c0_312 = arith.constant 0 : index
    %c0_313 = arith.constant 0 : index
    %718 = vector.load %arg16[%c0_312, %c0_313] : memref<32x32xf32, #tpu.memory_space<vmem>>, vector<32x32xf32>
    %c0_314 = arith.constant 0 : index
    %c0_315 = arith.constant 0 : index
    %719 = vector.load %arg17[%c0_314, %c0_315] : memref<1x32xf32, #tpu.memory_space<vmem>>, vector<1x32xf32>
    %720 = arith.truncf %707 : vector<8x32xf32> to vector<8x32xbf16>
    %721 = arith.truncf %718 : vector<32x32xf32> to vector<32x32xbf16>
    %cst_316 = arith.constant dense<0.000000e+00> : vector<8x32xf32>
    %722 = tpu.matmul %720, %721, %cst_316 {dimension_numbers = #tpu.dot_dimension_numbers<[1], [0], [0], [1], [0, 0, 1, 1], [], []>} : vector<8x32xbf16>, vector<32x32xbf16>, vector<8x32xf32> -> vector<8x32xf32>
    %723 = vector.broadcast %719 : vector<1x32xf32> to vector<8x32xf32>
    %724 = arith.addf %722, %723 : vector<8x32xf32>
    %cst_317 = arith.constant 0.000000e+00 : f32
    %725 = vector.broadcast %cst_317 : f32 to vector<8x32xf32>
    %726 = arith.maximumf %724, %725 : vector<8x32xf32>
    %c0_318 = arith.constant 0 : index
    %c0_319 = arith.constant 0 : index
    %727 = vector.load %arg18[%c0_318, %c0_319] : memref<32x32xf32, #tpu.memory_space<vmem>>, vector<32x32xf32>
    %c0_320 = arith.constant 0 : index
    %c0_321 = arith.constant 0 : index
    %728 = vector.load %arg19[%c0_320, %c0_321] : memref<1x32xf32, #tpu.memory_space<vmem>>, vector<1x32xf32>
    %729 = arith.truncf %726 : vector<8x32xf32> to vector<8x32xbf16>
    %730 = arith.truncf %727 : vector<32x32xf32> to vector<32x32xbf16>
    %cst_322 = arith.constant dense<0.000000e+00> : vector<8x32xf32>
    %731 = tpu.matmul %729, %730, %cst_322 {dimension_numbers = #tpu.dot_dimension_numbers<[1], [0], [0], [1], [0, 0, 1, 1], [], []>} : vector<8x32xbf16>, vector<32x32xbf16>, vector<8x32xf32> -> vector<8x32xf32>
    %732 = vector.broadcast %728 : vector<1x32xf32> to vector<8x32xf32>
    %733 = arith.addf %731, %732 : vector<8x32xf32>
    %cst_323 = arith.constant 0.000000e+00 : f32
    %734 = vector.broadcast %cst_323 : f32 to vector<8x32xf32>
    %735 = arith.maximumf %733, %734 : vector<8x32xf32>
    %c0_324 = arith.constant 0 : index
    %c0_325 = arith.constant 0 : index
    %736 = vector.load %arg20[%c0_324, %c0_325] : memref<32x4xf32, #tpu.memory_space<vmem>>, vector<32x4xf32>
    %c0_326 = arith.constant 0 : index
    %c0_327 = arith.constant 0 : index
    %737 = vector.load %arg21[%c0_326, %c0_327] : memref<1x4xf32, #tpu.memory_space<vmem>>, vector<1x4xf32>
    %738 = arith.truncf %735 : vector<8x32xf32> to vector<8x32xbf16>
    %739 = arith.truncf %736 : vector<32x4xf32> to vector<32x4xbf16>
    %cst_328 = arith.constant dense<0.000000e+00> : vector<8x4xf32>
    %740 = tpu.matmul %738, %739, %cst_328 {dimension_numbers = #tpu.dot_dimension_numbers<[1], [0], [0], [1], [0, 0, 1, 1], [], []>} : vector<8x32xbf16>, vector<32x4xbf16>, vector<8x4xf32> -> vector<8x4xf32>
    %741 = vector.broadcast %737 : vector<1x4xf32> to vector<8x4xf32>
    %742 = arith.addf %740, %741 : vector<8x4xf32>
    %743 = arith.negf %742 : vector<8x4xf32>
    %744 = math.exp %743 : vector<8x4xf32>
    %cst_329 = arith.constant 1.000000e+00 : f32
    %745 = vector.broadcast %cst_329 : f32 to vector<8x4xf32>
    %746 = arith.addf %745, %744 : vector<8x4xf32>
    %747 = arith.divf %745, %746 : vector<8x4xf32>
    %c0_330 = arith.constant 0 : index
    %c0_331 = arith.constant 0 : index
    %c0_332 = arith.constant 0 : index
    %748 = vector.load %arg23[%c0_330, %c0_331, %c0_332] : memref<1x8x4xf32, #tpu.memory_space<vmem>>, vector<1x8x4xf32>
    %749 = vector.shape_cast %748 : vector<1x8x4xf32> to vector<8x4xf32>
    %750 = vector.shape_cast %747 : vector<8x4xf32> to vector<1x8x4xf32>
    tpu.vector_store %arg23[%c0_330, %c0_331, %c0_332], %750 {strides = array<i32>} : memref<1x8x4xf32, #tpu.memory_space<vmem>>, vector<1x8x4xf32>,
    return
  }
  func.func @transform_0(%arg0: i32) -> (i32, i32, i32) {
    %c0_i32 = arith.constant 0 : i32
    %c0_i32_0 = arith.constant 0 : i32
    %c0_i32_1 = arith.constant 0 : i32
    return %arg0, %c0_i32, %c0_i32_0 : i32, i32, i32
  }
  func.func @transform_1(%arg0: i32) -> (i32, i32) {
    %c0_i32 = arith.constant 0 : i32
    %c0_i32_0 = arith.constant 0 : i32
    %c0_i32_1 = arith.constant 0 : i32
    return %c0_i32, %c0_i32_0 : i32, i32
  }
  func.func @transform_2(%arg0: i32) -> (i32, i32) {
    %c0_i32 = arith.constant 0 : i32
    %c0_i32_0 = arith.constant 0 : i32
    %c0_i32_1 = arith.constant 0 : i32
    return %c0_i32, %c0_i32_0 : i32, i32
  }
  func.func @transform_3(%arg0: i32) -> (i32, i32, i32) {
    %c0_i32 = arith.constant 0 : i32
    %c0_i32_0 = arith.constant 0 : i32
    %c0_i32_1 = arith.constant 0 : i32
    %c0_i32_2 = arith.constant 0 : i32
    return %c0_i32, %c0_i32_0, %c0_i32_1 : i32, i32, i32
  }
  func.func @transform_4(%arg0: i32) -> (i32, i32, i32) {
    %c0_i32 = arith.constant 0 : i32
    %c0_i32_0 = arith.constant 0 : i32
    %c0_i32_1 = arith.constant 0 : i32
    %c0_i32_2 = arith.constant 0 : i32
    return %c0_i32, %c0_i32_0, %c0_i32_1 : i32, i32, i32
  }
  func.func @transform_5(%arg0: i32) -> (i32, i32, i32) {
    %c0_i32 = arith.constant 0 : i32
    %c0_i32_0 = arith.constant 0 : i32
    %c0_i32_1 = arith.constant 0 : i32
    %c0_i32_2 = arith.constant 0 : i32
    return %c0_i32, %c0_i32_0, %c0_i32_1 : i32, i32, i32
  }
  func.func @transform_6(%arg0: i32) -> (i32, i32, i32) {
    %c0_i32 = arith.constant 0 : i32
    %c0_i32_0 = arith.constant 0 : i32
    %c0_i32_1 = arith.constant 0 : i32
    %c0_i32_2 = arith.constant 0 : i32
    return %c0_i32, %c0_i32_0, %c0_i32_1 : i32, i32, i32
  }
  func.func @transform_7(%arg0: i32) -> (i32, i32, i32) {
    %c0_i32 = arith.constant 0 : i32
    %c0_i32_0 = arith.constant 0 : i32
    %c0_i32_1 = arith.constant 0 : i32
    %c0_i32_2 = arith.constant 0 : i32
    return %c0_i32, %c0_i32_0, %c0_i32_1 : i32, i32, i32
  }
  func.func @transform_8(%arg0: i32) -> (i32, i32, i32) {
    %c0_i32 = arith.constant 0 : i32
    %c0_i32_0 = arith.constant 0 : i32
    %c0_i32_1 = arith.constant 0 : i32
    %c0_i32_2 = arith.constant 0 : i32
    return %c0_i32, %c0_i32_0, %c0_i32_1 : i32, i32, i32
  }
  func.func @transform_9(%arg0: i32) -> (i32, i32, i32) {
    %c0_i32 = arith.constant 0 : i32
    %c0_i32_0 = arith.constant 0 : i32
    %c0_i32_1 = arith.constant 0 : i32
    %c0_i32_2 = arith.constant 0 : i32
    return %c0_i32, %c0_i32_0, %c0_i32_1 : i32, i32, i32
  }
  func.func @transform_10(%arg0: i32) -> (i32, i32, i32) {
    %c0_i32 = arith.constant 0 : i32
    %c0_i32_0 = arith.constant 0 : i32
    %c0_i32_1 = arith.constant 0 : i32
    %c0_i32_2 = arith.constant 0 : i32
    return %c0_i32, %c0_i32_0, %c0_i32_1 : i32, i32, i32
  }
  func.func @transform_11(%arg0: i32) -> (i32, i32) {
    %c0_i32 = arith.constant 0 : i32
    %c0_i32_0 = arith.constant 0 : i32
    %c0_i32_1 = arith.constant 0 : i32
    return %c0_i32, %c0_i32_0 : i32, i32
  }
  func.func @transform_12(%arg0: i32) -> (i32, i32) {
    %c0_i32 = arith.constant 0 : i32
    %c0_i32_0 = arith.constant 0 : i32
    %c0_i32_1 = arith.constant 0 : i32
    return %c0_i32, %c0_i32_0 : i32, i32
  }
  func.func @transform_13(%arg0: i32) -> (i32, i32) {
    %c0_i32 = arith.constant 0 : i32
    %c0_i32_0 = arith.constant 0 : i32
    %c0_i32_1 = arith.constant 0 : i32
    return %c0_i32, %c0_i32_0 : i32, i32
  }
  func.func @transform_14(%arg0: i32) -> (i32, i32) {
    %c0_i32 = arith.constant 0 : i32
    %c0_i32_0 = arith.constant 0 : i32
    %c0_i32_1 = arith.constant 0 : i32
    return %c0_i32, %c0_i32_0 : i32, i32
  }
  func.func @transform_15(%arg0: i32) -> (i32, i32) {
    %c0_i32 = arith.constant 0 : i32
    %c0_i32_0 = arith.constant 0 : i32
    %c0_i32_1 = arith.constant 0 : i32
    return %c0_i32, %c0_i32_0 : i32, i32
  }
  func.func @transform_16(%arg0: i32) -> (i32, i32) {
    %c0_i32 = arith.constant 0 : i32
    %c0_i32_0 = arith.constant 0 : i32
    %c0_i32_1 = arith.constant 0 : i32
    return %c0_i32, %c0_i32_0 : i32, i32
  }
  func.func @transform_17(%arg0: i32) -> (i32, i32) {
    %c0_i32 = arith.constant 0 : i32
    %c0_i32_0 = arith.constant 0 : i32
    %c0_i32_1 = arith.constant 0 : i32
    return %c0_i32, %c0_i32_0 : i32, i32
  }
  func.func @transform_18(%arg0: i32) -> (i32, i32) {
    %c0_i32 = arith.constant 0 : i32
    %c0_i32_0 = arith.constant 0 : i32
    %c0_i32_1 = arith.constant 0 : i32
    return %c0_i32, %c0_i32_0 : i32, i32
  }
  func.func @transform_19(%arg0: i32) -> (i32, i32) {
    %c0_i32 = arith.constant 0 : i32
    %c0_i32_0 = arith.constant 0 : i32
    %c0_i32_1 = arith.constant 0 : i32
    return %c0_i32, %c0_i32_0 : i32, i32
  }
  func.func @transform_20(%arg0: i32) -> (i32, i32) {
    %c0_i32 = arith.constant 0 : i32
    %c0_i32_0 = arith.constant 0 : i32
    %c0_i32_1 = arith.constant 0 : i32
    return %c0_i32, %c0_i32_0 : i32, i32
  }
  func.func @transform_21(%arg0: i32) -> (i32, i32, i32) {
    %c0_i32 = arith.constant 0 : i32
    %c0_i32_0 = arith.constant 0 : i32
    %c0_i32_1 = arith.constant 0 : i32
    return %arg0, %c0_i32, %c0_i32_0 : i32, i32, i32
  }
  func.func @transform_22(%arg0: i32) -> (i32, i32, i32) {
    %c0_i32 = arith.constant 0 : i32
    %c0_i32_0 = arith.constant 0 : i32
    %c0_i32_1 = arith.constant 0 : i32
    return %arg0, %c0_i32, %c0_i32_0 : i32, i32, i32
  }
}

</mosaic_0001>

<bundles_post_ra>
// kernel: detr_forward.2
= control target key start
LH: loop header
LB: loop body
LE: loop exit
PB: predicated region body
PF: predicated region fallthrough
CT: control target
= control target key end

     0   :  { %s4502_s29 = smov 0   ;;  %s5225_s0 = inlined_call_operand.vmem [shape: f32[2,16,192], index: 0, kind: input, shape index: {}]   ;;  %s5226_s1 = inlined_call_operand.vmem [shape: f32[16,32], index: 1, kind: input, shape index: {}]   ;;  %s5227_s2 = inlined_call_operand.vmem [shape: f32[192,64], index: 2, kind: input, shape index: {}]   ;;  %s5228_s3 = inlined_call_operand.vmem [shape: f32[1,64], index: 3, kind: input, shape index: {}]   ;;  %s5229_s4 = inlined_call_operand.vmem [shape: f32[64,32], index: 4, kind: input, shape index: {}]   ;;  %s5230_s5 = inlined_call_operand.vmem [shape: f32[1,32], index: 5, kind: input, shape index: {}]   ;;  %s5231_s6 = inlined_call_operand.vmem [shape: f32[8,32,32], index: 6, kind: input, shape index: {}]   ;;  %s5232_s7 = inlined_call_operand.vmem [shape: f32[8,1,32], index: 7, kind: input, shape index: {}]   ;;  %s5233_s8 = inlined_call_operand.vmem [shape: f32[2,32,64], index: 8, kind: input, shape index: {}]   ;;  %s5234_s9 = inlined_call_operand.vmem [shape: f32[2,1,64], index: 9, kind: input, shape index: {}]   ;;  %s5235_s10 = inlined_call_operand.vmem [shape: f32[2,64,32], index: 10, kind: input, shape index: {}]   ;;  %s5236_s11 = inlined_call_operand.vmem [shape: f32[2,1,32], index: 11, kind: input, shape index: {}]   ;;  %s5237_s12 = inlined_call_operand.vmem [shape: f32[4,1,32], index: 12, kind: input, shape index: {}]   ;;  %s5238_s13 = inlined_call_operand.vmem [shape: f32[4,1,32], index: 13, kind: input, shape index: {}]   ;;  %s5239_s14 = inlined_call_operand.vmem [shape: f32[2,16,32], index: 14, kind: output, shape index: {}]  }
   0x1 LB: > { %s3774_s30 = sadd.s32 4294967295, %s4419_s29   ;;  %p3778_p0 = scmp.ge.s32.totalorder %s4419_s29, 1  ;;  %s4419_s29 = sphi %s4502_s29, %s24_s29  }
   0x2   : > { %p412_p1 = scmp.lt.s32.totalorder %s4419_s29, 3 }
   0x4   : > { %p413_p2 = pnand %p3778_p0, %p412_p1 }
   0x5   : > { %p458_p3 = scmp.lt.s32.totalorder (!%p413_p2), %s3774_s30, 1  ;;  %s4424_s22 = smov (!%p413_p2), 120  }
   0x6   : > { %416 = sbr.rel (%p413_p2) target bundleno = 6846 (0x1abe), region = 76  ;;  %s4425_s28 = smov (!%p413_p2), 112  }
   0x7   : > { %s4426_s15 = smov (!%p413_p2), 104  }
   0xb   : > { %v487_v0 = vld [vmem:[%s5227_s2 + $0x70] sm:$0xff]  ;;  %v488_v1 = vld [vmem:[%s5227_s2 + $0x78] sm:$0xff]  ;;  %v485_v2 = vld [vmem:[%s5227_s2 + $0x60] sm:$0xff]  ;;  %v4421_v3 = vmov 0   ;;  %s5241_s30 = smov (!%p458_p3, %s3774_s30), 1  ;;  %v4422_v6 = vmov 0.0  }
   0xc   : > { %522 = vmatprep.subr.bf16.mxu0 %v4421_v3  ;;  %v507_v4 = vpack.c.bf16 %v488_v1, %v487_v0  ;;  %v486_v5 = vld [vmem:[%s5227_s2 + $0x68] sm:$0xff]  ;;  %4067 = vmatprep.subr.bf16.mxu1 %v4422_v6  ;;  %v483_v8 = vld [vmem:[%s5227_s2 + $0x50] sm:$0xff]  ;;  %v484_v9 = vld [vmem:[%s5227_s2 + $0x58] sm:$0xff]  ;;  %s3938_s27 = sshll.u32 %s5241_s30, 5  ;;  %vm518_vm0 = vcmask 523264   ;;  %vm4423_vm1 = vmmov 0  }
   0xd   : > { %v506_v7 = vpack.c.bf16 %v486_v5, %v485_v2  ;;  %s4537_s16 = scalar_lea.vmem %s5225_s0, %s3938_s27  ;;  %v505_v10 = vpack.c.bf16 %v484_v9, %v483_v8  ;;  %v481_v11 = vld [vmem:[%s5227_s2 + $0x40] sm:$0xff]  ;;  %v482_v12 = vld [vmem:[%s5227_s2 + $0x48] sm:$0xff]  ;;  %v571_v16 = vld [vmem:[%s5229_s4 + $0x30] sm:$0xff]  ;;  %4075 = vmatprep.mubr.msk.bf16.mxu1 %vm4423_vm1, %v4422_v6  ;;  %vm668_vm2 = vcmask 261120   ;;  %vm815_vm3 = vcmask 64512   ;;  %s3939_s26 = sshll.u32 %s5241_s30, 4 }
   0xe   : > { %523 = vmatpush1.bf16.msra.mxu0 %v507_v4  ;;  %v470_v13 = vld [vmem:[%s4537_s16 + $0x8] sm:$0xff]  ;;  %v472_v14 = vld [vmem:[%s4537_s16 + $0x18] sm:$0xff]  ;;  %v504_v19 = vpack.c.bf16 %v482_v12, %v481_v11  ;;  %v479_v20 = vld [vmem:[%s5227_s2 + $0x30] sm:$0xff]  ;;  %vm905_vm4 = vcmask 130048   ;;  %s467_s18 = scalar_lea.vmem %s5239_s14, %s3939_s26 }
   0xf   : > { %524 = vmatprep.subr.bf16.mxu0 %v4421_v3  ;;  %v499_v15 = vpack.c.bf16 %v472_v14, %v470_v13  ;;  %v572_v17 = vld [vmem:[%s5229_s4 + $0x38] sm:$0xff]  ;;  %v477_v23 = vld [vmem:[%s5227_s2 + $0x20] sm:$0xff]  ;;  %v478_v24 = vld [vmem:[%s5227_s2 + $0x28] sm:$0xff] }
  0x10   : > { %v578_v18 = vpack.c.bf16 %v572_v17, %v571_v16  ;;  %v480_v21 = vld [vmem:[%s5227_s2 + $0x38] sm:$0xff]  ;;  %v502_v25 = vpack.c.bf16 %v478_v24, %v477_v23  ;;  %v475_v26 = vld [vmem:[%s5227_s2 + $0x10] sm:$0xff]  ;;  %v473_v29 = vld [vmem:[%s5227_s2] sm:$0xff] }
  0x11   : > { %3784 = vmatprep.mubr.msk.bf16.mxu0 %vm518_vm0, %v499_v15  ;;  %v503_v22 = vpack.c.bf16 %v480_v21, %v479_v20  ;;  %v476_v27 = vld [vmem:[%s5227_s2 + $0x18] sm:$0xff]  ;;  %v474_v30 = vld [vmem:[%s5227_s2 + $0x8] sm:$0xff]  ;;  %v495_v32 = vld [vmem:[%s5227_s2 + $0xb0] sm:$0xff] }
  0x12   : > { %525 = vmatpush1.bf16.msra.mxu0 %v506_v7  ;;  %4068 = vmatpush3.bf16.msra.mxu1 %v578_v18  ;;  %v501_v28 = vpack.c.bf16 %v476_v27, %v475_v26  ;;  %v500_v31 = vpack.c.bf16 %v474_v30, %v473_v29  ;;  %v496_v33 = vld [vmem:[%s5227_s2 + $0xb8] sm:$0xff]  ;;  %v493_v35 = vld [vmem:[%s5227_s2 + $0xa0] sm:$0xff]  ;;  %v494_v36 = vld [vmem:[%s5227_s2 + $0xa8] sm:$0xff] }
  0x13   : > { %526 = vmatprep.subr.bf16.mxu0 %v4421_v3  ;;  %4069 = vmatprep.subr.bf16.mxu1 %v4422_v6  ;;  %v511_v34 = vpack.c.bf16 %v496_v33, %v495_v32  ;;  %v510_v37 = vpack.c.bf16 %v494_v36, %v493_v35  ;;  %v491_v38 = vld [vmem:[%s5227_s2 + $0x90] sm:$0xff]  ;;  %v492_v39 = vld [vmem:[%s5227_s2 + $0x98] sm:$0xff]  ;;  %v489_v41 = vld [vmem:[%s5227_s2 + $0x80] sm:$0xff] }
  0x14   : > { %v509_v40 = vpack.c.bf16 %v492_v39, %v491_v38  ;;  %v490_v42 = vld [vmem:[%s5227_s2 + $0x88] sm:$0xff]  ;;  %v469_v44 = vld [vmem:[%s4537_s16] sm:$0xff]  ;;  %v471_v45 = vld [vmem:[%s4537_s16 + $0x10] sm:$0xff] }
  0x15   : > { %v508_v43 = vpack.c.bf16 %v490_v42, %v489_v41  ;;  %v498_v46 = vpack.c.bf16 %v471_v45, %v469_v44  ;;  %v569_v47 = vld [vmem:[%s5229_s4 + $0x20] sm:$0xff]  ;;  %v570_v48 = vld [vmem:[%s5229_s4 + $0x28] sm:$0xff]  ;;  %v567_v50 = vld [vmem:[%s5229_s4 + $0x10] sm:$0xff] }
  0x16   : > { %527 = vmatpush1.bf16.msra.mxu0 %v505_v10  ;;  %v577_v49 = vpack.c.bf16 %v570_v48, %v569_v47  ;;  %v568_v51 = vld [vmem:[%s5229_s4 + $0x18] sm:$0xff]  ;;  %v565_v53 = vld [vmem:[%s5229_s4] sm:$0xff]  ;;  %v566_v54 = vld [vmem:[%s5229_s4 + $0x8] sm:$0xff] }
  0x17   : > { %528 = vmatprep.subr.bf16.mxu0 %v4421_v3  ;;  %v576_v52 = vpack.c.bf16 %v568_v51, %v567_v50  ;;  %v575_v55 = vpack.c.bf16 %v566_v54, %v565_v53  ;;  %v3783_v56 = vld [vmem:[%s5228_s3] ss:$0 sm:$0xff]  ;;  %v635_v2 = vld [vmem:[%s5231_s6 + $0x10] sm:$0xff]  ;;  %v634_v7 = vld [vmem:[%s5231_s6 + $0x8] sm:$0xff] }
  0x18   : > { %4070 = vmatpush3.bf16.msra.mxu1 %v577_v49  ;;  %v633_v5 = vld [vmem:[%s5231_s6] sm:$0xff]  ;;  %v4671_v15 = vld [vmem:[%s5226_s1 + $0x8] sm:$0xff]  ;;  %v3789_v17 = vld [vmem:[%s5231_s6 + $0x30] sm:$0xff] }
  0x19   : > { %4071 = vmatprep.subr.bf16.mxu1 %v4422_v6  ;;  %v660_v8 = vpack.c.bf16 %v634_v7, %v633_v5  ;;  %v3785_v9 = vld [vmem:[%s5230_s5] ss:$0 sm:$0xff]  ;;  %v3790_v18 = vld [vmem:[%s5231_s6 + $0x38] sm:$0xff]  ;;  %v3794_v27 = vld [vmem:[%s5231_s6 + $0x50] sm:$0xff] }
  0x1a   : > { %529 = vmatpush1.bf16.msra.mxu0 %v504_v19  ;;  %v4666_v13 = vld [vmem:[%s5226_s1] sm:$0xff] }
  0x1b   : > { %530 = vmatprep.subr.bf16.mxu0 %v4421_v3  ;;  %v3787_v24 = vld [vmem:[%s5231_s6 + $0x20] sm:$0xff] }
  0x1c   : > { %4072 = vmatpush3.bf16.msra.mxu1 %v576_v52  ;;  %v3792_v30 = vld [vmem:[%s5231_s6 + $0x40] sm:$0xff] }
  0x1d   : > { %4073 = vmatprep.subr.bf16.mxu1 %v4422_v6  ;;  %v3806_v50 = vld [vmem:[%s5232_s7 + $0x2] ss:$0 sm:$0xff] }
  0x1e   : > { %531 = vmatpush1.bf16.msra.mxu0 %v503_v22  ;;  %v714_v22 = vpack.c.bf16 %v3790_v18, %v3789_v17 }
  0x1f   : > { %532 = vmatprep.subr.bf16.mxu0 %v4421_v3 }
  0x20   : > { %4074 = vmatpush3.bf16.msra.mxu1 %v575_v55 }
  0x21   : > { %4079 = vmatprep.subr.bf16.mxu1 %v4422_v6 }
  0x22   : > { %533 = vmatpush1.bf16.msra.mxu0 %v502_v25  ;;  %v3788_v25 = vld [vmem:[%s5231_s6 + $0x28] sm:$0xff] }
  0x23   : > { %534 = vmatprep.subr.bf16.mxu0 %v4421_v3  ;;  %v713_v26 = vpack.c.bf16 %v3788_v25, %v3787_v24 }
  0x26   : > { %535 = vmatpush1.bf16.msra.mxu0 %v501_v28  ;;  %v3795_v28 = vld [vmem:[%s5231_s6 + $0x58] sm:$0xff] }
  0x27   : > { %536 = vmatprep.subr.bf16.mxu0 %v4421_v3  ;;  %v764_v29 = vpack.c.bf16 %v3795_v28, %v3794_v27 }
  0x2a   : > { %537 = vmatpush1.bf16.msra.mxu0 %v500_v31  ;;  %v3793_v31 = vld [vmem:[%s5231_s6 + $0x48] sm:$0xff] }
  0x2b   : > { %546 = vmatprep.subr.bf16.mxu0 %v4421_v3  ;;  %v763_v32 = vpack.c.bf16 %v3793_v31, %v3792_v30 }
  0x2e   : > { %547 = vmatpush2.bf16.msra.mxu0 %v511_v34  ;;  %v3802_v34 = vld [vmem:[%s5232_s7] ss:$0 sm:$0xff] }
  0x2f   : > { %548 = vmatprep.subr.bf16.mxu0 %v4421_v3 }
  0x32   : > { %549 = vmatpush2.bf16.msra.mxu0 %v510_v37 }
  0x33   : > { %550 = vmatprep.subr.bf16.mxu0 %v4421_v3 }
  0x36   : > { %551 = vmatpush2.bf16.msra.mxu0 %v509_v40 }
  0x37   : > { %552 = vmatprep.subr.bf16.mxu0 %v4421_v3  ;;  %v636_v3 = vld [vmem:[%s5231_s6 + $0x18] sm:$0xff] }
  0x38   : > { %v661_v4 = vpack.c.bf16 %v636_v3, %v635_v2 }
  0x3a   : > { %553 = vmatpush2.bf16.msra.mxu0 %v508_v43  ;;  %v3804_v43 = vld [vmem:[%s5232_s7 + $0x1] ss:$0 sm:$0xff] }
  0x3d   : > { %555 = vmatmul.mubr.bf16.vlgmr.msra.gmra.mxu0 %v498_v46 }
  0xfd   : > { %v556_v57 = vpop.f32.mrf.mxu0 }
  0xfe   : > { %v557_v59 = vadd.f32 %v3783_v56, %v556_v57 }
  0xff   : > { %v558_v58 = vpop.f32.mrf.mxu0 }
 0x100   : > { %v563_v63 = vmax.f32 %v557_v59, 0.0 }
 0x101   : > { %v559_v60 = vpop.f32.mrf.mxu0 }
 0x102   : > { %v560_v61 = vadd.f32 %v3783_v56, %v559_v60 }
 0x103   : > { %v561_v62 = vpop.f32.mrf.mxu0 }
 0x104   : > { %v564_v0 = vmax.f32 %v560_v61, 0.0 }
 0x106   : > { %v574_v1 = vpack.c.bf16 %v564_v0, %v563_v63 }
 0x108   : > { %4076 = vmatmul.mubr.msk.bf16.vlgmr.msra.gmra.mxu1 %vm518_vm0, %v574_v1 }
 0x109   : > { %4083 = vmatprep.mubr.msk.bf16.mxu1 %vm4423_vm1, %v4422_v6  ;;  %4080 = vmatpush3.bf16.msra.mxu1 %v661_v4 }
 0x10a   : > { %4081 = vmatprep.subr.bf16.mxu1 %v4422_v6 }
 0x10d   : > { %4082 = vmatpush3.bf16.msra.mxu1 %v660_v8 }
 0x10e   : > { %4087 = vmatprep.subr.bf16.mxu1 %v4422_v6 }
 0x1c8   : > { %v622_v10 = vpop.f32.mrf.mxu1 }
 0x1c9   : > { %v4661_v12 = vadd.f32 %v3785_v9, %v622_v10 }
 0x1ca   : > { %v4077_v11 = vpop.f32.mrf.mxu1 }
 0x1cb   : > { %v631_v20 = vadd.f32 %v4666_v13, %v4661_v12 }
 0x1cc   : > { %v625_v14 = vpop.f32.mrf.mxu1 }
 0x1cd   : > { %v4673_v16 = vadd.f32 %v3785_v9, %v625_v14 }
 0x1ce   : > { %v4078_v19 = vpop.f32.mrf.mxu1 }
 0x1cf   : > { %v632_v21 = vadd.f32 %v4671_v15, %v4673_v16  ;;  %v762_v33 = vpack.c.bf16 %v4673_v16, %v4661_v12 }
 0x1d1   : > { %v659_v23 = vpack.c.bf16 %v632_v21, %v631_v20 }
 0x1d3   : > { %4084 = vmatmul.mubr.msk.bf16.vlgmr.msra.gmra.mxu1 %vm668_vm2, %v659_v23 }
 0x1d4   : > { %4088 = vmatpush3.bf16.msra.mxu1 %v714_v22  ;;  %4091 = vmatprep.mubr.msk.bf16.mxu1 %vm4423_vm1, %v4422_v6 }
 0x1d5   : > { %4089 = vmatprep.subr.bf16.mxu1 %v4422_v6 }
 0x1d8   : > { %4090 = vmatpush3.bf16.msra.mxu1 %v713_v26 }
 0x1d9   : > { %4095 = vmatprep.subr.bf16.mxu1 %v4422_v6 }
 0x1db   : > { %4092 = vmatmul.mubr.msk.bf16.vlgmr.msra.gmra.mxu1 %vm668_vm2, %v659_v23 }
 0x1dc   : > { %4096 = vmatpush3.bf16.msra.mxu1 %v764_v29  ;;  %4099 = vmatprep.mubr.msk.bf16.mxu1 %vm4423_vm1, %v4422_v6 }
 0x1dd   : > { %4097 = vmatprep.subr.bf16.mxu1 %v4422_v6 }
 0x1e0   : > { %4098 = vmatpush3.bf16.msra.mxu1 %v763_v32  ;;  %v3798_v32 = vld [vmem:[%s5231_s6 + $0x68] sm:$0xff] }
 0x1e3   : > { %4100 = vmatmul.mubr.msk.bf16.vlgmr.msra.gmra.mxu1 %vm668_vm2, %v762_v33 }
 0x293   : > { %v706_v35 = vpop.f32.mrf.mxu1 }
 0x294   : > { %v4718_v36 = vadd.f32 %v3802_v34, %v706_v35 }
 0x295   : > { %v4085_v37 = vpop.f32.mrf.mxu1 }
 0x296   : > { %1009 = vrot.lane.b32.xlu1 %v4718_v36, %s4424_s22  ;;  %4107 = vmatprep.mubr.msk.f32.mxu1 %vm815_vm3, %v4718_v36 }
 0x297   : > { %v709_v38 = vpop.f32.mrf.mxu1 }
 0x298   : > { %v4724_v39 = vadd.f32 %v3802_v34, %v709_v38 }
 0x299   : > { %v4086_v40 = vpop.f32.mrf.mxu1 }
 0x29a   : > { %1011 = vrot.lane.b32.xlu1 %v4724_v39, %s4424_s22 }
 0x29b   : > { %v755_v41 = vpop.f32.mrf.mxu1 }
 0x29c   : > { %v4733_v47 = vadd.f32 %v3804_v43, %v755_v41 }
 0x29d   : > { %v4093_v42 = vpop.f32.mrf.mxu1 }
 0x29f   : > { %v758_v44 = vpop.f32.mrf.mxu1 }
 0x2a0   : > { %v4731_v45 = vadd.f32 %v3804_v43, %v758_v44 }
 0x2a1   : > { %v4094_v46 = vpop.f32.mrf.mxu1 }
 0x2a2   : > { %1015 = vrot.lane.b32.xlu0 %v4731_v45, %s4424_s22  ;;  %4103 = vmatprep.subr.msk.mxu1 %vm815_vm3, %v4731_v45 }
 0x2a3   : > { %v808_v48 = vpop.f32.mrf.mxu1  ;;  %4104 = vmatpush3.xpose.msk.msra.mxu1 %vm815_vm3, %v4731_v45 }
 0x2a4   : > { %4105 = vmatprep.subr.msk.mxu1 %vm815_vm3, %v4733_v47  ;;  %v4752_v54 = vadd.f32 %v3806_v50, %v808_v48 }
 0x2a5   : > { %v4101_v49 = vpop.f32.mrf.mxu1 }
 0x2a6   : > { %1013 = vrot.lane.b32.xlu0 %v4733_v47, %s4424_s22 }
 0x2a7   : > { %v811_v51 = vpop.f32.mrf.mxu1  ;;  %4106 = vmatpush3.xpose.msk.msra.mxu1 %vm815_vm3, %v4733_v47 }
 0x2a8   : > { %v4750_v52 = vadd.f32 %v3806_v50, %v811_v51 }
 0x2a9   : > { %v4102_v53 = vpop.f32.mrf.mxu1 }
 0x2aa   : > { %4108 = vmatmul.mubr.msk.f32.vlgmr.msra.gmra.mxu1 %vm815_vm3, %v4724_v39  ;;  %4110 = vmatprep.subr.mxu1 %v4750_v52 }
 0x2ab   : > { %4111 = vmatpush3.msra.mxu1 %v4750_v52 }
 0x2ac   : > { %4112 = vmatprep.subr.mxu1 %v4752_v54 }
 0x2ad   : > { %4113 = vmatpush3.msra.mxu1 %v4752_v54 }
 0x308   : > { %v1010_v55 = vpop.permute.xlu1 %1009 }
 0x309   : > { %4121 = vmatprep.mubr.msk.f32.mxu0 %vm815_vm3, %v1010_v55 }
 0x30c   : > { %v1012_v58 = vpop.permute.xlu1 %1011 }
 0x314   : > { %v1016_v56 = vpop.permute.xlu0 %1015 }
 0x315   : > { %4117 = vmatprep.subr.msk.mxu0 %vm815_vm3, %v1016_v56 }
 0x316   : > { %4118 = vmatpush3.xpose.msk.msra.mxu0 %vm815_vm3, %v1016_v56 }
 0x318   : > { %v1014_v57 = vpop.permute.xlu0 %1013 }
 0x319   : > { %4119 = vmatprep.subr.msk.mxu0 %vm815_vm3, %v1014_v57 }
 0x31a   : > { %4120 = vmatpush3.xpose.msk.msra.mxu0 %vm815_vm3, %v1014_v57 }
 0x31b   : > { %4131 = vmatprep.subr.mxu0 %v3798_v32 }
 0x31d   : > { %4122 = vmatmul.mubr.msk.f32.vlgmr.msra.gmra.mxu0 %vm815_vm3, %v1012_v58 }
 0x31e   : > { %4132 = vmatpush3.msra.mxu0 %v3798_v32 }
 0x36a   : > { %v4109_v59 = vpop.f32.mrf.mxu1 }
 0x36b   : > { %v904_v60 = vmul.f32 0.35355338, %v4109_v59 }
 0x36c   : > { %v894_v61 = vpop.f32.mrf.mxu1 }
 0x36d   : > { %v903_v62 = vmul.f32 0.35355338, %v894_v61  ;;  %v909_v63 = vsel %vm905_vm4, %v904_v60, -inf }
 0x36e   : > { %910 = vmax.xlane.f32.xlu1 %v909_v63 }
 0x36f   : > { %v906_v0 = vsel %vm905_vm4, %v903_v62, -inf }
 0x370   : > { %907 = vmax.xlane.f32.xlu0 %v906_v0 }
 0x3dd   : > { %v4123_v1 = vpop.f32.mrf.mxu0 }
 0x3de   : > { %v1101_v4 = vmul.f32 0.35355338, %v4123_v1 }
 0x3df   : > { %v1091_v2 = vpop.f32.mrf.mxu0 }
 0x3e0   : > { %v1100_v3 = vmul.f32 0.35355338, %v1091_v2  ;;  %v1105_v7 = vsel %vm905_vm4, %v1101_v4, -inf }
 0x3e2   : > { %v1102_v5 = vsel %vm905_vm4, %v1100_v3, -inf }
 0x3e3   : > { %1103 = vmax.xlane.f32.xlu0 %v1102_v5 }
 0x3e7   : > { %1106 = vmax.xlane.f32.xlu0 %v1105_v7 }
 0x3f7   : > { %v911_v8 = vpop.xlane.xlu1 %910 }
 0x3f8   : > { %v913_v9 = vsub.f32 %v904_v60, %v911_v8 }
 0x3f9   : > { %v908_v10 = vpop.xlane.xlu0 %907 }
 0x3fa   : > { %v916_v11 = vmul.f32 1.442695, %v913_v9  ;;  %v912_v14 = vsub.f32 %v903_v62, %v908_v10 }
 0x3fc   : > { %4333 = vpow2.f32 %v916_v11  ;;  %v914_v17 = vmul.f32 1.442695, %v912_v14 }
 0x3fe   : > { %4335 = vpow2.f32 %v914_v17 }
 0x409   : > { %v4334_v18 = vpop.eup %4333 }
 0x40a   : > { %v921_v19 = vsel %vm905_vm4, %v4334_v18, 0.0 }
 0x40b   : > { %v4336_v20 = vpop.eup %4335  ;;  %922 = vadd.xlane.f32.xlu0 %v921_v19 }
 0x40c   : > { %v918_v21 = vsel %vm905_vm4, %v4336_v20, 0.0 }
 0x40d   : > { %919 = vadd.xlane.f32.xlu1 %v918_v21 }
 0x46c   : > { %v1104_v22 = vpop.xlane.xlu0 %1103 }
 0x46d   : > { %v1108_v23 = vsub.f32 %v1100_v3, %v1104_v22 }
 0x46f   : > { %v1110_v24 = vmul.f32 1.442695, %v1108_v23 }
 0x470   : > { %v1107_v25 = vpop.xlane.xlu0 %1106 }
 0x471   : > { %4337 = vpow2.f32 %v1110_v24  ;;  %v1109_v26 = vsub.f32 %v1101_v4, %v1107_v25 }
 0x473   : > { %v1112_v27 = vmul.f32 1.442695, %v1109_v26 }
 0x475   : > { %4339 = vpow2.f32 %v1112_v27 }
 0x47e   : > { %v4338_v28 = vpop.eup %4337 }
 0x47f   : > { %v1114_v29 = vsel %vm905_vm4, %v4338_v28, 0.0 }
 0x480   : > { %1115 = vadd.xlane.f32.xlu1 %v1114_v29 }
 0x482   : > { %v4340_v30 = vpop.eup %4339 }
 0x483   : > { %v1117_v31 = vsel %vm905_vm4, %v4340_v30, 0.0 }
 0x484   : > { %1118 = vadd.xlane.f32.xlu0 %v1117_v31 }
 0x491   : > { %1128 = vrot.lane.b32.xlu1 %v4750_v52, %s4424_s22 }
 0x494   : > { %v923_v33 = vpop.xlane.xlu0 %922 }
 0x495   : > { %1381 = vrot.lane.b32.xlu1 %v4731_v45, %s4425_s28  ;;  %4341 = vrcp.f32 %v923_v33 }
 0x496   : > { %v920_v34 = vpop.xlane.xlu1 %919 }
 0x497   : > { %4343 = vrcp.f32 %v920_v34 }
 0x499   : > { %1379 = vrot.lane.b32.xlu1 %v4733_v47, %s4425_s28 }
 0x49a   : > { %1126 = vrot.lane.b32.xlu0 %v4752_v54, %s4424_s22 }
 0x49d   : > { %1377 = vrot.lane.b32.xlu1 %v4724_v39, %s4425_s28 }
 0x49e   : > { %1375 = vrot.lane.b32.xlu0 %v4718_v36, %s4425_s28 }
 0x4a1   : > { %1664 = vrot.lane.b32.xlu1 %v4733_v47, %s4426_s15 }
 0x4a2   : > { %1666 = vrot.lane.b32.xlu0 %v4731_v45, %s4426_s15  ;;  %v4342_v35 = vpop.eup %4341 }
 0x4a3   : > { %v927_v40 = vmul.f32 %v4342_v35, %v4334_v18 }
 0x4a4   : > { %v4344_v37 = vpop.eup %4343 }
 0x4a5   : > { %1662 = vrot.lane.b32.xlu1 %v4724_v39, %s4426_s15  ;;  %v926_v38 = vmul.f32 %v4344_v37, %v4336_v20  ;;  %v3797_v39 = vld [vmem:[%s5231_s6 + $0x60] sm:$0xff]  ;;  %v3799_v37 = vld [vmem:[%s5231_s6 + $0x70] sm:$0xff] }
 0x4a6   : > { %1660 = vrot.lane.b32.xlu0 %v4718_v36, %s4426_s15 }
 0x4a7   : > { %4114 = vmatprep.mubr.msk.f32.mxu1 %vm905_vm4, %v926_v38 }
 0x4a8   : > { %4115 = vmatmul.mubr.msk.f32.vlgmr.msra.gmra.mxu1 %vm905_vm4, %v927_v40 }
 0x509   : > { %v1116_v41 = vpop.xlane.xlu1 %1115 }
 0x50a   : > { %4345 = vrcp.f32 %v1116_v41 }
 0x50d   : > { %v1129_v42 = vpop.permute.xlu1 %1128  ;;  %v1119_v43 = vpop.xlane.xlu0 %1118 }
 0x50e   : > { %4347 = vrcp.f32 %v1119_v43  ;;  %4124 = vmatprep.subr.mxu1 %v1129_v42 }
 0x50f   : > { %4125 = vmatpush3.msra.mxu1 %v1129_v42 }
 0x511   : > { %v1382_v44 = vpop.permute.xlu1 %1381  ;;  %v1127_v45 = vpop.permute.xlu0 %1126 }
 0x512   : > { %4126 = vmatprep.subr.mxu1 %v1127_v45  ;;  %4141 = vmatprep.subr.msk.mxu0 %vm815_vm3, %v1382_v44 }
 0x513   : > { %4127 = vmatpush3.msra.mxu1 %v1127_v45 }
 0x514   : > { %4136 = vmatprep.subr.mxu1 %v3797_v39 }
 0x515   : > { %v1376_v51 = vpop.permute.xlu0 %1375  ;;  %v1380_v55 = vpop.permute.xlu1 %1379 }
 0x517   : > { %v4346_v36 = vpop.eup %4345 }
 0x518   : > { %v1122_v46 = vmul.f32 %v4346_v36, %v4338_v28 }
 0x519   : > { %v1667_v57 = vpop.permute.xlu0 %1666  ;;  %v1378_v58 = vpop.permute.xlu1 %1377 }
 0x51a   : > { %4128 = vmatprep.mubr.msk.f32.mxu1 %vm905_vm4, %v1122_v46 }
 0x51b   : > { %v4348_v47 = vpop.eup %4347 }
 0x51c   : > { %v1123_v48 = vmul.f32 %v4348_v47, %v4340_v30 }
 0x51d   : > { %v1661_v59 = vpop.permute.xlu0 %1660  ;;  %v1665_v60 = vpop.permute.xlu1 %1664 }
 0x51e   : > { %4129 = vmatmul.mubr.msk.f32.vlgmr.msra.gmra.mxu1 %vm905_vm4, %v1123_v48 }
 0x51f   : > { %4137 = vmatpush3.msra.mxu1 %v3797_v39 }
 0x521   : > { %v1663_v61 = vpop.permute.xlu1 %1662 }
 0x568   : > { %v4116_v49 = vpop.f32.mrf.mxu1 }
 0x56a   : > { %v1000_v50 = vpop.f32.mrf.mxu1 }
 0x56b   : > { %4138 = vmatprep.mubr.msk.f32.mxu1 %vm815_vm3, %v1000_v50 }
 0x56c   : > { %4139 = vmatmul.mubr.msk.f32.vlgmr.msra.gmra.mxu1 %vm815_vm3, %v4116_v49 }
 0x5de   : > { %v4130_v53 = vpop.f32.mrf.mxu1 }
 0x5e0   : > { %v1204_v56 = vpop.f32.mrf.mxu1 }
 0x5e1   : > { %4133 = vmatprep.mubr.msk.f32.mxu0 %vm815_vm3, %v1204_v56 }
 0x5e2   : > { %4134 = vmatmul.mubr.msk.f32.vlgmr.msra.gmra.mxu0 %vm815_vm3, %v4130_v53 }
 0x5e3   : > { %4142 = vmatpush3.xpose.msk.msra.mxu0 %vm815_vm3, %v1382_v44  ;;  %4145 = vmatprep.mubr.msk.f32.mxu0 %vm815_vm3, %v1376_v51 }
 0x5e4   : > { %4143 = vmatprep.subr.msk.mxu0 %vm815_vm3, %v1380_v55 }
 0x5e7   : > { %4144 = vmatpush3.xpose.msk.msra.mxu0 %vm815_vm3, %v1380_v55 }
 0x5e8   : > { %4160 = vmatprep.subr.msk.mxu0 %vm815_vm3, %v1667_v57 }
 0x5ea   : > { %4146 = vmatmul.mubr.msk.f32.vlgmr.msra.gmra.mxu0 %vm815_vm3, %v1378_v58  ;;  %v3800_v58 = vld [vmem:[%s5231_s6 + $0x78] sm:$0xff] }
 0x5eb   : > { %4161 = vmatpush3.xpose.msk.msra.mxu0 %vm815_vm3, %v1667_v57  ;;  %4164 = vmatprep.mubr.msk.f32.mxu0 %vm815_vm3, %v1661_v59 }
 0x5ec   : > { %4162 = vmatprep.subr.msk.mxu0 %vm815_vm3, %v1665_v60 }
 0x5ef   : > { %4163 = vmatpush3.xpose.msk.msra.mxu0 %vm815_vm3, %v1665_v60 }
 0x5f0   : > { %4179 = vmatprep.subr.bf16.mxu0 %v4422_v6 }
 0x5f2   : > { %4165 = vmatmul.mubr.msk.f32.vlgmr.msra.gmra.mxu0 %vm815_vm3, %v1663_v61 }
 0x5f3   : > { %4183 = vmatprep.mubr.msk.bf16.mxu0 %vm4423_vm1, %v4422_v6 }
 0x62c   : > { %v4140_v47 = vpop.f32.mrf.mxu1 }
 0x62e   : > { %v1366_v48 = vpop.f32.mrf.mxu1 }
 0x6a2   : > { %v4823_v62 = vpop.f32.mrf.mxu0 }
 0x6a3   : > { %v1372_v59 = vadd.f32 %v4140_v47, %v4823_v62  ;;  %v3842_v47 = vld [vmem:[%s5238_s13] ss:$0 sm:$0xff] }
 0x6a4   : > { %v4825_v63 = vpop.f32.mrf.mxu0 }
 0x6a5   : > { %v1367_v61 = vadd.f32 %v1366_v48, %v4825_v63 }
 0x6aa   : > { %v4147_v0 = vpop.f32.mrf.mxu0 }
 0x6ab   : > { %v1467_v1 = vmul.f32 0.35355338, %v4147_v0 }
 0x6ac   : > { %v1457_v2 = vpop.f32.mrf.mxu0 }
 0x6ad   : > { %v1466_v3 = vmul.f32 0.35355338, %v1457_v2  ;;  %v1471_v4 = vsel %vm905_vm4, %v1467_v1, -inf }
 0x6ae   : > { %1472 = vmax.xlane.f32.xlu1 %v1471_v4 }
 0x6af   : > { %v1468_v5 = vsel %vm905_vm4, %v1466_v3, -inf }
 0x6b0   : > { %1469 = vmax.xlane.f32.xlu0 %v1468_v5  ;;  %v3840_v5 = vld [vmem:[%s5232_s7 + $0x3] ss:$0 sm:$0xff] }
 0x6b2   : > { %v4166_v7 = vpop.f32.mrf.mxu0 }
 0x6b3   : > { %v1752_v30 = vmul.f32 0.35355338, %v4166_v7 }
 0x6b4   : > { %v1742_v8 = vpop.f32.mrf.mxu0 }
 0x6b5   : > { %v1751_v9 = vmul.f32 0.35355338, %v1742_v8  ;;  %v1756_v32 = vsel %vm905_vm4, %v1752_v30, -inf }
 0x6b7   : > { %v1753_v10 = vsel %vm905_vm4, %v1751_v9, -inf }
 0x6bf   : > { %1492 = vrot.lane.b32.xlu1 %v4750_v52, %s4425_s28 }
 0x6e3   : > { %1754 = vmax.xlane.f32.xlu1 %v1753_v10 }
 0x737   : > { %v1473_v11 = vpop.xlane.xlu1 %1472 }
 0x738   : > { %v1475_v14 = vsub.f32 %v1467_v1, %v1473_v11 }
 0x739   : > { %v1470_v17 = vpop.xlane.xlu0 %1469 }
 0x73a   : > { %v1478_v18 = vmul.f32 1.442695, %v1475_v14  ;;  %v1474_v19 = vsub.f32 %v1466_v3, %v1470_v17 }
 0x73b   : > { %v1493_v20 = vpop.permute.xlu1 %1492 }
 0x73c   : > { %4349 = vpow2.f32 %v1478_v18  ;;  %v1476_v21 = vmul.f32 1.442695, %v1474_v19  ;;  %4148 = vmatprep.subr.mxu1 %v1493_v20 }
 0x73d   : > { %4149 = vmatpush3.msra.mxu1 %v1493_v20 }
 0x73e   : > { %4351 = vpow2.f32 %v1476_v21 }
 0x749   : > { %v4350_v22 = vpop.eup %4349 }
 0x74a   : > { %v1483_v23 = vsel %vm905_vm4, %v4350_v22, 0.0 }
 0x74b   : > { %v4352_v24 = vpop.eup %4351  ;;  %1484 = vadd.xlane.f32.xlu0 %v1483_v23 }
 0x74c   : > { %v1480_v25 = vsel %vm905_vm4, %v4352_v24, 0.0 }
 0x74f   : > { %1481 = vadd.xlane.f32.xlu0 %v1480_v25 }
 0x765   : > { %1490 = vrot.lane.b32.xlu0 %v4752_v54, %s4425_s28 }
 0x76c   : > { %v1755_v26 = vpop.xlane.xlu1 %1754 }
 0x76d   : > { %v1759_v27 = vsub.f32 %v1751_v9, %v1755_v26 }
 0x76f   : > { %v1761_v28 = vmul.f32 1.442695, %v1759_v27 }
 0x771   : > { %4353 = vpow2.f32 %v1761_v28  ;;  %v2003_v28 = vld [vmem:[%s5233_s8 + $0x18] sm:$0xff] }
 0x77e   : > { %v4354_v29 = vpop.eup %4353 }
 0x77f   : > { %v1765_v31 = vsel %vm905_vm4, %v4354_v29, 0.0 }
 0x780   : > { %1766 = vadd.xlane.f32.xlu1 %v1765_v31  ;;  %v2001_v31 = vld [vmem:[%s5233_s8 + $0x8] sm:$0xff] }
 0x784   : > { %1757 = vmax.xlane.f32.xlu0 %v1756_v32 }
 0x791   : > { %1777 = vrot.lane.b32.xlu1 %v4750_v52, %s4426_s15 }
 0x7d4   : > { %v1485_v33 = vpop.xlane.xlu0 %1484 }
 0x7d5   : > { %4355 = vrcp.f32 %v1485_v33  ;;  %v2066_v33 = vld [vmem:[%s5235_s10 + $0x30] sm:$0xff] }
 0x7d8   : > { %v1482_v34 = vpop.xlane.xlu0 %1481 }
 0x7d9   : > { %4357 = vrcp.f32 %v1482_v34  ;;  %v2067_v34 = vld [vmem:[%s5235_s10 + $0x38] sm:$0xff] }
 0x7dc   : > { %v1491_v35 = vpop.permute.xlu0 %1490 }
 0x7dd   : > { %4150 = vmatprep.subr.mxu1 %v1491_v35 }
 0x7de   : > { %4151 = vmatpush3.msra.mxu1 %v1491_v35  ;;  %v2073_v35 = vpack.c.bf16 %v2067_v34, %v2066_v33  ;;  %v3864_v33 = vld [vmem:[%s5231_s6 + $0xd8] sm:$0xff] }
 0x7df   : > { %4155 = vmatprep.subr.mxu1 %v3799_v37 }
 0x7e2   : > { %v4356_v38 = vpop.eup %4355 }
 0x7e3   : > { %v1489_v42 = vmul.f32 %v4356_v38, %v4350_v22 }
 0x7e6   : > { %v4358_v40 = vpop.eup %4357 }
 0x7e7   : > { %v1488_v41 = vmul.f32 %v4358_v40, %v4352_v24 }
 0x7e9   : > { %4152 = vmatprep.mubr.msk.f32.mxu1 %vm905_vm4, %v1488_v41 }
 0x7ea   : > { %4153 = vmatmul.mubr.msk.f32.vlgmr.msra.gmra.mxu1 %vm905_vm4, %v1489_v42 }
 0x7eb   : > { %4156 = vmatpush3.msra.mxu1 %v3799_v37 }
 0x809   : > { %v1767_v52 = vpop.xlane.xlu1 %1766 }
 0x80d   : > { %v1778_v43 = vpop.permute.xlu1 %1777  ;;  %v1758_v44 = vpop.xlane.xlu0 %1757 }
 0x80e   : > { %v1760_v45 = vsub.f32 %v1752_v30, %v1758_v44  ;;  %4167 = vmatprep.subr.mxu1 %v1778_v43  ;;  %v2000_v30 = vld [vmem:[%s5233_s8] sm:$0xff] }
 0x80f   : > { %v2006_v32 = vpack.c.bf16 %v2001_v31, %v2000_v30  ;;  %v3841_v44 = vld [vmem:[%s5237_s12] ss:$0 sm:$0xff] }
 0x810   : > { %v1763_v39 = vmul.f32 1.442695, %v1760_v45 }
 0x812   : > { %4359 = vpow2.f32 %v1763_v39 }
 0x813   : > { %4361 = vrcp.f32 %v1767_v52 }
 0x81f   : > { %v4360_v36 = vpop.eup %4359 }
 0x820   : > { %v1768_v46 = vsel %vm905_vm4, %v4360_v36, 0.0  ;;  %v4362_v49 = vpop.eup %4361 }
 0x821   : > { %1769 = vadd.xlane.f32.xlu0 %v1768_v46  ;;  %v1773_v55 = vmul.f32 %v4362_v49, %v4354_v29 }
 0x837   : > { %1775 = vrot.lane.b32.xlu0 %v4752_v54, %s4426_s15 }
 0x8aa   : > { %v4154_v50 = vpop.f32.mrf.mxu1  ;;  %v1770_v51 = vpop.xlane.xlu0 %1769 }
 0x8ab   : > { %4363 = vrcp.f32 %v1770_v51 }
 0x8ac   : > { %v1568_v53 = vpop.f32.mrf.mxu1 }
 0x8ad   : > { %4157 = vmatprep.mubr.msk.f32.mxu1 %vm815_vm3, %v1568_v53  ;;  %v2064_v53 = vld [vmem:[%s5235_s10 + $0x20] sm:$0xff] }
 0x8ae   : > { %4158 = vmatmul.mubr.msk.f32.vlgmr.msra.gmra.mxu1 %vm815_vm3, %v4154_v50  ;;  %v1776_v56 = vpop.permute.xlu0 %1775 }
 0x8af   : > { %4168 = vmatpush3.msra.mxu1 %v1778_v43  ;;  %4171 = vmatprep.mubr.msk.f32.mxu1 %vm905_vm4, %v1773_v55  ;;  %v2065_v55 = vld [vmem:[%s5235_s10 + $0x28] sm:$0xff] }
 0x8b0   : > { %4169 = vmatprep.subr.mxu1 %v1776_v56 }
 0x8b1   : > { %4170 = vmatpush3.msra.mxu1 %v1776_v56  ;;  %v2072_v56 = vpack.c.bf16 %v2065_v55, %v2064_v53 }
 0x8b2   : > { %4174 = vmatprep.subr.mxu1 %v3800_v58 }
 0x8b8   : > { %v4364_v54 = vpop.eup %4363 }
 0x8b9   : > { %v1774_v57 = vmul.f32 %v4364_v54, %v4360_v36  ;;  %v2062_v54 = vld [vmem:[%s5235_s10 + $0x10] sm:$0xff] }
 0x8bb   : > { %4172 = vmatmul.mubr.msk.f32.vlgmr.msra.gmra.mxu1 %vm905_vm4, %v1774_v57  ;;  %v2063_v57 = vld [vmem:[%s5235_s10 + $0x18] sm:$0xff] }
 0x8bc   : > { %4175 = vmatpush3.msra.mxu1 %v3800_v58  ;;  %v2071_v58 = vpack.c.bf16 %v2063_v57, %v2062_v54 }
 0x8bd   : > { %4187 = vmatprep.subr.bf16.mxu1 %v4422_v6 }
 0x96e   : > { %v4159_v60 = vpop.f32.mrf.mxu1 }
 0x96f   : > { %v1659_v0 = vadd.f32 %v4159_v60, %v1372_v59  ;;  %v2060_v59 = vld [vmem:[%s5235_s10] sm:$0xff]  ;;  %v2061_v60 = vld [vmem:[%s5235_s10 + $0x8] sm:$0xff] }
 0x970   : > { %v1649_v1 = vpop.f32.mrf.mxu1 }
 0x971   : > { %v1658_v2 = vadd.f32 %v1649_v1, %v1367_v61  ;;  %v2070_v61 = vpack.c.bf16 %v2061_v60, %v2060_v59  ;;  %v3858_v60 = vld [vmem:[%s5231_s6 + $0xb0] sm:$0xff] }
 0x97b   : > { %v4173_v3 = vpop.f32.mrf.mxu1 }
 0x97d   : > { %v1853_v4 = vpop.f32.mrf.mxu1 }
 0x97e   : > { %4176 = vmatprep.mubr.msk.f32.mxu1 %vm815_vm3, %v1853_v4 }
 0x97f   : > { %4177 = vmatmul.mubr.msk.f32.vlgmr.msra.gmra.mxu1 %vm815_vm3, %v4173_v3 }
 0x980   : > { %4195 = vmatprep.mubr.msk.bf16.mxu1 %vm4423_vm1, %v4422_v6  ;;  %4188 = vmatpush3.bf16.msra.mxu1 %v2073_v35  ;;  %v3853_v35 = vld [vmem:[%s5231_s6 + $0x90] sm:$0xff] }
 0x981   : > { %4189 = vmatprep.subr.bf16.mxu1 %v4422_v6 }
 0x984   : > { %4190 = vmatpush3.bf16.msra.mxu1 %v2072_v56  ;;  %v3850_v56 = vld [vmem:[%s5238_s13 + $0x1] ss:$0 sm:$0xff] }
 0x985   : > { %4191 = vmatprep.subr.bf16.mxu1 %v4422_v6 }
 0x988   : > { %4192 = vmatpush3.bf16.msra.mxu1 %v2071_v58 }
 0x989   : > { %4193 = vmatprep.subr.bf16.mxu1 %v4422_v6 }
 0x98c   : > { %4194 = vmatpush3.bf16.msra.mxu1 %v2070_v61  ;;  %v3859_v61 = vld [vmem:[%s5231_s6 + $0xb8] sm:$0xff] }
 0x98d   : > { %4215 = vmatprep.subr.bf16.mxu1 %v4422_v6 }
 0xa3f   : > { %v4178_v62 = vpop.f32.mrf.mxu1 }
 0xa40   : > { %v1944_v7 = vadd.f32 %v4178_v62, %v1659_v0  ;;  %v3843_v0 = vld [vmem:[%s5234_s9] ss:$0 sm:$0xff] }
 0xa41   : > { %v1934_v8 = vpop.f32.mrf.mxu1 }
 0xa42   : > { %v1952_v63 = vadd.f32 %v3840_v5, %v1944_v7  ;;  %v1943_v9 = vadd.f32 %v1934_v8, %v1658_v2 }
 0xa44   : > { %v1951_v10 = vadd.f32 %v3840_v5, %v1943_v9  ;;  %v1954_v11 = vadd.f32 %v1952_v63, %v4673_v16  ;;  %v3845_v9 = vld [vmem:[%s5236_s11] ss:$0 sm:$0xff] }
 0xa46   : > { %v1960_v14 = vsel %vm668_vm2, %v1954_v11, 0.0  ;;  %v1953_v17 = vadd.f32 %v1951_v10, %v4661_v12  ;;  %v2002_v12 = vld [vmem:[%s5233_s8 + $0x10] sm:$0xff] }
 0xa47   : > { %1961 = vadd.xlane.f32.xlu0 %v1960_v14  ;;  %v2007_v29 = vpack.c.bf16 %v2003_v28, %v2002_v12 }
 0xa48   : > { %v1957_v18 = vsel %vm668_vm2, %v1953_v17, 0.0 }
 0xa49   : > { %1958 = vadd.xlane.f32.xlu1 %v1957_v18  ;;  %4180 = vmatpush3.bf16.msra.mxu0 %v2007_v29 }
 0xa4a   : > { %4181 = vmatprep.subr.bf16.mxu0 %v4422_v6 }
 0xa4d   : > { %4182 = vmatpush3.bf16.msra.mxu0 %v2006_v32  ;;  %v3863_v32 = vld [vmem:[%s5231_s6 + $0xd0] sm:$0xff] }
 0xa4e   : > { %4199 = vmatprep.subr.bf16.mxu0 %v4422_v6  ;;  %v2306_v34 = vpack.c.bf16 %v3864_v33, %v3863_v32 }
 0xad0   : > { %v1962_v19 = vpop.xlane.xlu0 %1961 }
 0xad1   : > { %v1965_v20 = vmul.f32 0.03125, %v1962_v19 }
 0xad2   : > { %v1959_v21 = vpop.xlane.xlu1 %1958 }
 0xad3   : > { %v1967_v22 = vsub.f32 %v1954_v11, %v1965_v20  ;;  %v1964_v23 = vmul.f32 0.03125, %v1959_v21 }
 0xad5   : > { %v1966_v24 = vsub.f32 %v1953_v17, %v1964_v23  ;;  %v1969_v25 = vmul.f32 %v1967_v22, %v1967_v22 }
 0xad7   : > { %v1973_v26 = vsel %vm668_vm2, %v1969_v25, 0.0  ;;  %v1968_v27 = vmul.f32 %v1966_v24, %v1966_v24 }
 0xad8   : > { %1974 = vadd.xlane.f32.xlu0 %v1973_v26 }
 0xad9   : > { %v1970_v16 = vsel %vm668_vm2, %v1968_v27, 0.0 }
 0xada   : > { %1971 = vadd.xlane.f32.xlu1 %v1970_v16 }
 0xb61   : > { %v1975_v37 = vpop.xlane.xlu0 %1974 }
 0xb62   : > { %v1977_v38 = vmul.f32 0.03125, %v1975_v37  ;;  %v3854_v37 = vld [vmem:[%s5231_s6 + $0x98] sm:$0xff] }
 0xb63   : > { %v1972_v40 = vpop.xlane.xlu1 %1971 }
 0xb64   : > { %v1979_v41 = vadd.f32 1e-05, %v1977_v38  ;;  %v1976_v42 = vmul.f32 0.03125, %v1972_v40  ;;  %v2204_v38 = vpack.c.bf16 %v3854_v37, %v3853_v35  ;;  %v3861_v40 = vld [vmem:[%s5231_s6 + $0xc0] sm:$0xff] }
 0xb66   : > { %4365 = vrsqrt.f32 %v1979_v41  ;;  %v1978_v52 = vadd.f32 1e-05, %v1976_v42  ;;  %v3862_v41 = vld [vmem:[%s5231_s6 + $0xc8] sm:$0xff]  ;;  %v3851_v42 = vld [vmem:[%s5231_s6 + $0x80] sm:$0xff] }
 0xb68   : > { %4367 = vrsqrt.f32 %v1978_v52  ;;  %v2305_v52 = vpack.c.bf16 %v3862_v41, %v3861_v40 }
 0xb73   : > { %v4366_v43 = vpop.eup %4365 }
 0xb74   : > { %v1983_v45 = vmul.f32 %v4366_v43, %v1967_v22  ;;  %v3852_v43 = vld [vmem:[%s5231_s6 + $0x88] sm:$0xff] }
 0xb75   : > { %v4368_v39 = vpop.eup %4367 }
 0xb76   : > { %v1982_v36 = vmul.f32 %v4368_v39, %v1966_v24  ;;  %v1991_v46 = vmul.f32 %v3841_v44, %v1983_v45 }
 0xb78   : > { %v1990_v48 = vmul.f32 %v3841_v44, %v1982_v36  ;;  %v1999_v50 = vadd.f32 %v3842_v47, %v1991_v46  ;;  %v2203_v44 = vpack.c.bf16 %v3852_v43, %v3851_v42 }
 0xb7a   : > { %v1998_v49 = vadd.f32 %v3842_v47, %v1990_v48 }
 0xb7c   : > { %v2005_v51 = vpack.c.bf16 %v1999_v50, %v1998_v49 }
 0xb7e   : > { %4184 = vmatmul.mubr.msk.bf16.vlgmr.msra.gmra.mxu0 %vm668_vm2, %v2005_v51 }
 0xb7f   : > { %4203 = vmatprep.mubr.msk.bf16.mxu0 %vm4423_vm1, %v4422_v6  ;;  %4200 = vmatpush3.bf16.msra.mxu0 %v2204_v38 }
 0xb80   : > { %4201 = vmatprep.subr.bf16.mxu0 %v4422_v6 }
 0xb83   : > { %4202 = vmatpush3.bf16.msra.mxu0 %v2203_v44 }
 0xb84   : > { %4207 = vmatprep.subr.bf16.mxu0 %v4422_v6 }
 0xc3e   : > { %v2051_v1 = vpop.f32.mrf.mxu0 }
 0xc3f   : > { %v2052_v3 = vadd.f32 %v3843_v0, %v2051_v1 }
 0xc40   : > { %v4185_v2 = vpop.f32.mrf.mxu0 }
 0xc41   : > { %v2058_v7 = vmax.f32 %v2052_v3, 0.0  ;;  %v2256_v3 = vpack.c.bf16 %v3859_v61, %v3858_v60 }
 0xc42   : > { %v2054_v4 = vpop.f32.mrf.mxu0 }
 0xc43   : > { %v2055_v5 = vadd.f32 %v3843_v0, %v2054_v4 }
 0xc44   : > { %v4186_v62 = vpop.f32.mrf.mxu0 }
 0xc45   : > { %v2059_v8 = vmax.f32 %v2055_v5, 0.0  ;;  %v3856_v5 = vld [vmem:[%s5231_s6 + $0xa0] sm:$0xff]  ;;  %v3857_v62 = vld [vmem:[%s5231_s6 + $0xa8] sm:$0xff] }
 0xc47   : > { %v2069_v63 = vpack.c.bf16 %v2059_v8, %v2058_v7  ;;  %v2255_v7 = vpack.c.bf16 %v3857_v62, %v3856_v5 }
 0xc49   : > { %4196 = vmatmul.mubr.msk.bf16.vlgmr.msra.gmra.mxu1 %vm518_vm0, %v2069_v63 }
 0xc4a   : > { %4219 = vmatprep.mubr.msk.bf16.mxu1 %vm4423_vm1, %v4422_v6  ;;  %4216 = vmatpush3.bf16.msra.mxu1 %v2306_v34 }
 0xc4b   : > { %4217 = vmatprep.subr.bf16.mxu1 %v4422_v6 }
 0xc4e   : > { %4218 = vmatpush3.bf16.msra.mxu1 %v2305_v52 }
 0xd09   : > { %v2117_v10 = vpop.f32.mrf.mxu1 }
 0xd0a   : > { %v2118_v11 = vadd.f32 %v3845_v9, %v2117_v10 }
 0xd0b   : > { %v4197_v14 = vpop.f32.mrf.mxu1 }
 0xd0c   : > { %v2124_v17 = vadd.f32 %v2118_v11, %v1998_v49 }
 0xd0d   : > { %v2120_v18 = vpop.f32.mrf.mxu1 }
 0xd0e   : > { %v2121_v19 = vadd.f32 %v3845_v9, %v2120_v18  ;;  %v2130_v20 = vsel %vm668_vm2, %v2124_v17, 0.0 }
 0xd0f   : > { %2131 = vadd.xlane.f32.xlu1 %v2130_v20  ;;  %v4198_v21 = vpop.f32.mrf.mxu1 }
 0xd10   : > { %v2125_v22 = vadd.f32 %v2121_v19, %v1999_v50  ;;  %v3849_v50 = vld [vmem:[%s5237_s12 + $0x1] ss:$0 sm:$0xff]  ;;  %v3873_v19 = vld [vmem:[%s5232_s7 + $0x5] ss:$0 sm:$0xff] }
 0xd12   : > { %v2133_v23 = vsel %vm668_vm2, %v2125_v22, 0.0 }
 0xd13   : > { %2134 = vadd.xlane.f32.xlu0 %v2133_v23 }
 0xd98   : > { %v2132_v24 = vpop.xlane.xlu1 %2131 }
 0xd99   : > { %v2136_v25 = vmul.f32 0.03125, %v2132_v24 }
 0xd9b   : > { %v2138_v26 = vsub.f32 %v2124_v17, %v2136_v25 }
 0xd9c   : > { %v2135_v27 = vpop.xlane.xlu0 %2134 }
 0xd9d   : > { %v2137_v16 = vmul.f32 0.03125, %v2135_v27  ;;  %v2140_v12 = vmul.f32 %v2138_v26, %v2138_v26 }
 0xd9f   : > { %v2139_v28 = vsub.f32 %v2125_v22, %v2137_v16  ;;  %v2142_v29 = vsel %vm668_vm2, %v2140_v12, 0.0 }
 0xda0   : > { %2143 = vadd.xlane.f32.xlu1 %v2142_v29 }
 0xda1   : > { %v2141_v30 = vmul.f32 %v2139_v28, %v2139_v28 }
 0xda3   : > { %v2145_v31 = vsel %vm668_vm2, %v2141_v30, 0.0 }
 0xda4   : > { %2146 = vadd.xlane.f32.xlu0 %v2145_v31 }
 0xe29   : > { %v2144_v45 = vpop.xlane.xlu1 %2143 }
 0xe2a   : > { %v2148_v39 = vmul.f32 0.03125, %v2144_v45 }
 0xe2c   : > { %v2150_v36 = vadd.f32 1e-05, %v2148_v39 }
 0xe2d   : > { %v2147_v46 = vpop.xlane.xlu0 %2146 }
 0xe2e   : > { %4369 = vrsqrt.f32 %v2150_v36  ;;  %v2149_v47 = vmul.f32 0.03125, %v2147_v46 }
 0xe30   : > { %v2151_v48 = vadd.f32 1e-05, %v2149_v47 }
 0xe32   : > { %4371 = vrsqrt.f32 %v2151_v48 }
 0xe3b   : > { %v4370_v49 = vpop.eup %4369 }
 0xe3c   : > { %v2154_v51 = vmul.f32 %v4370_v49, %v2138_v26  ;;  %v3875_v26 = vld [vmem:[%s5232_s7 + $0x6] ss:$0 sm:$0xff] }
 0xe3e   : > { %v2162_v53 = vmul.f32 %v3849_v50, %v2154_v51 }
 0xe3f   : > { %v4372_v55 = vpop.eup %4371 }
 0xe40   : > { %v2155_v54 = vmul.f32 %v4372_v55, %v2139_v28  ;;  %v4968_v58 = vadd.f32 %v3850_v56, %v2162_v53 }
 0xe42   : > { %v2163_v57 = vmul.f32 %v3849_v50, %v2155_v54  ;;  %v2172_v1 = vadd.f32 %v4968_v58, %v4666_v13 }
 0xe44   : > { %v4970_v59 = vadd.f32 %v3850_v56, %v2163_v57 }
 0xe46   : > { %v2304_v0 = vpack.c.bf16 %v4970_v59, %v4968_v58  ;;  %v2173_v2 = vadd.f32 %v4970_v59, %v4671_v15  ;;  %v3871_v15 = vld [vmem:[%s5232_s7 + $0x4] ss:$0 sm:$0xff] }
 0xe48   : > { %4220 = vmatmul.mubr.msk.bf16.vlgmr.msra.gmra.mxu1 %vm668_vm2, %v2304_v0  ;;  %v2202_v4 = vpack.c.bf16 %v2173_v2, %v2172_v1 }
 0xe4a   : > { %4204 = vmatmul.mubr.msk.bf16.vlgmr.msra.gmra.mxu0 %vm668_vm2, %v2202_v4 }
 0xe4b   : > { %4208 = vmatpush3.bf16.msra.mxu0 %v2256_v3  ;;  %4211 = vmatprep.mubr.msk.bf16.mxu0 %vm4423_vm1, %v4422_v6 }
 0xe4c   : > { %4209 = vmatprep.subr.bf16.mxu0 %v4422_v6 }
 0xe4f   : > { %4210 = vmatpush3.bf16.msra.mxu0 %v2255_v7 }
 0xe52   : > { %4212 = vmatmul.mubr.msk.bf16.vlgmr.msra.gmra.mxu0 %vm668_vm2, %v2202_v4 }
 0xf08   : > { %v2350_v13 = vpop.f32.mrf.mxu1 }
 0xf09   : > { %v5032_v12 = vadd.f32 %v3875_v26, %v2350_v13 }
 0xf0a   : > { %v2248_v8 = vpop.f32.mrf.mxu0  ;;  %v4221_v63 = vpop.f32.mrf.mxu1 }
 0xf0b   : > { %v4999_v9 = vadd.f32 %v3871_v15, %v2248_v8  ;;  %v3866_v8 = vld [vmem:[%s5231_s6 + $0xe0] sm:$0xff] }
 0xf0c   : > { %v4205_v10 = vpop.f32.mrf.mxu0  ;;  %v2353_v11 = vpop.f32.mrf.mxu1 }
 0xf0d   : > { %4227 = vmatprep.mubr.msk.f32.mxu1 %vm815_vm3, %v4999_v9  ;;  %v5023_v27 = vadd.f32 %v3875_v26, %v2353_v11 }
 0xf0e   : > { %v2251_v14 = vpop.f32.mrf.mxu0  ;;  %v4222_v17 = vpop.f32.mrf.mxu1 }
 0xf0f   : > { %v5029_v16 = vadd.f32 %v3871_v15, %v2251_v14 }
 0xf10   : > { %v4206_v18 = vpop.f32.mrf.mxu0 }
 0xf12   : > { %v2297_v20 = vpop.f32.mrf.mxu0 }
 0xf13   : > { %v5006_v21 = vadd.f32 %v3873_v19, %v2297_v20 }
 0xf14   : > { %v4213_v22 = vpop.f32.mrf.mxu0 }
 0xf15   : > { %2553 = vrot.lane.b32.xlu0 %v5006_v21, %s4424_s22 }
 0xf16   : > { %v2300_v23 = vpop.f32.mrf.mxu0 }
 0xf17   : > { %v5010_v24 = vadd.f32 %v3873_v19, %v2300_v23 }
 0xf18   : > { %v4214_v25 = vpop.f32.mrf.mxu0 }
 0xf19   : > { %2555 = vrot.lane.b32.xlu1 %v5010_v24, %s4424_s22  ;;  %4223 = vmatprep.subr.msk.mxu1 %vm815_vm3, %v5010_v24 }
 0xf1a   : > { %4224 = vmatpush3.xpose.msk.msra.mxu1 %vm815_vm3, %v5010_v24 }
 0xf1b   : > { %4225 = vmatprep.subr.msk.mxu1 %vm815_vm3, %v5006_v21 }
 0xf1d   : > { %2549 = vrot.lane.b32.xlu1 %v4999_v9, %s4424_s22 }
 0xf1e   : > { %4226 = vmatpush3.xpose.msk.msra.mxu1 %vm815_vm3, %v5006_v21 }
 0xf1f   : > { %4230 = vmatprep.subr.mxu1 %v5023_v27 }
 0xf21   : > { %2551 = vrot.lane.b32.xlu1 %v5029_v16, %s4424_s22  ;;  %4228 = vmatmul.mubr.msk.f32.vlgmr.msra.gmra.mxu1 %vm815_vm3, %v5029_v16 }
 0xf22   : > { %4231 = vmatpush3.msra.mxu1 %v5023_v27 }
 0xf23   : > { %4232 = vmatprep.subr.mxu1 %v5032_v12 }
 0xf24   : > { %4233 = vmatpush3.msra.mxu1 %v5032_v12 }
 0xf87   : > { %v2554_v29 = vpop.permute.xlu0 %2553 }
 0xf8b   : > { %v2556_v28 = vpop.permute.xlu1 %2555 }
 0xf8c   : > { %4237 = vmatprep.subr.msk.mxu0 %vm815_vm3, %v2556_v28 }
 0xf8d   : > { %4238 = vmatpush3.xpose.msk.msra.mxu0 %vm815_vm3, %v2556_v28 }
 0xf8e   : > { %4239 = vmatprep.subr.msk.mxu0 %vm815_vm3, %v2554_v29 }
 0xf8f   : > { %v2550_v30 = vpop.permute.xlu1 %2549 }
 0xf90   : > { %4241 = vmatprep.mubr.msk.f32.mxu0 %vm815_vm3, %v2550_v30 }
 0xf91   : > { %4240 = vmatpush3.xpose.msk.msra.mxu0 %vm815_vm3, %v2554_v29 }
 0xf92   : > { %4256 = vmatprep.subr.mxu0 %v3866_v8 }
 0xf93   : > { %v2552_v31 = vpop.permute.xlu1 %2551 }
 0xf94   : > { %4242 = vmatmul.mubr.msk.f32.vlgmr.msra.gmra.mxu0 %vm815_vm3, %v2552_v31 }
 0xf95   : > { %4257 = vmatpush3.msra.mxu0 %v3866_v8 }
 0xfe1   : > { %v4229_v32 = vpop.f32.mrf.mxu1 }
 0xfe2   : > { %v2445_v33 = vmul.f32 0.35355338, %v4229_v32 }
 0xfe3   : > { %v2435_v34 = vpop.f32.mrf.mxu1 }
 0xfe4   : > { %v2444_v35 = vmul.f32 0.35355338, %v2435_v34  ;;  %v2449_v37 = vsel %vm905_vm4, %v2445_v33, -inf }
 0xfe5   : > { %2450 = vmax.xlane.f32.xlu1 %v2449_v37 }
 0xfe6   : > { %v2446_v38 = vsel %vm905_vm4, %v2444_v35, -inf }
 0xfe7   : > { %2447 = vmax.xlane.f32.xlu0 %v2446_v38 }
0x1054   : > { %v4243_v40 = vpop.f32.mrf.mxu0 }
0x1055   : > { %v2641_v52 = vmul.f32 0.35355338, %v4243_v40 }
0x1056   : > { %v2631_v41 = vpop.f32.mrf.mxu0 }
0x1057   : > { %v2640_v42 = vmul.f32 0.35355338, %v2631_v41  ;;  %v2645_v44 = vsel %vm905_vm4, %v2641_v52, -inf }
0x1059   : > { %v2642_v43 = vsel %vm905_vm4, %v2640_v42, -inf }
0x105a   : > { %2643 = vmax.xlane.f32.xlu0 %v2642_v43 }
0x105e   : > { %2646 = vmax.xlane.f32.xlu0 %v2645_v44 }
0x106e   : > { %v2451_v45 = vpop.xlane.xlu1 %2450 }
0x106f   : > { %v2453_v39 = vsub.f32 %v2445_v33, %v2451_v45 }
0x1070   : > { %v2448_v36 = vpop.xlane.xlu0 %2447 }
0x1071   : > { %v2456_v46 = vmul.f32 1.442695, %v2453_v39  ;;  %v2452_v47 = vsub.f32 %v2444_v35, %v2448_v36 }
0x1073   : > { %4373 = vpow2.f32 %v2456_v46  ;;  %v2454_v48 = vmul.f32 1.442695, %v2452_v47 }
0x1075   : > { %4375 = vpow2.f32 %v2454_v48 }
0x1080   : > { %v4374_v49 = vpop.eup %4373 }
0x1081   : > { %v2461_v50 = vsel %vm905_vm4, %v4374_v49, 0.0 }
0x1082   : > { %v4376_v51 = vpop.eup %4375  ;;  %2462 = vadd.xlane.f32.xlu0 %v2461_v50 }
0x1083   : > { %v2458_v53 = vsel %vm905_vm4, %v4376_v51, 0.0 }
0x1084   : > { %2459 = vadd.xlane.f32.xlu1 %v2458_v53 }
0x10e3   : > { %v2644_v55 = vpop.xlane.xlu0 %2643 }
0x10e4   : > { %v2648_v56 = vsub.f32 %v2640_v42, %v2644_v55 }
0x10e6   : > { %v2650_v54 = vmul.f32 1.442695, %v2648_v56 }
0x10e7   : > { %v2647_v57 = vpop.xlane.xlu0 %2646 }
0x10e8   : > { %4377 = vpow2.f32 %v2650_v54  ;;  %v2649_v60 = vsub.f32 %v2641_v52, %v2647_v57 }
0x10ea   : > { %v2652_v61 = vmul.f32 1.442695, %v2649_v60 }
0x10ec   : > { %4379 = vpow2.f32 %v2652_v61 }
0x10f5   : > { %v4378_v0 = vpop.eup %4377 }
0x10f6   : > { %v2654_v1 = vsel %vm905_vm4, %v4378_v0, 0.0 }
0x10f7   : > { %2655 = vadd.xlane.f32.xlu1 %v2654_v1 }
0x10f9   : > { %v4380_v2 = vpop.eup %4379 }
0x10fa   : > { %v2657_v3 = vsel %vm905_vm4, %v4380_v2, 0.0 }
0x10fb   : > { %2658 = vadd.xlane.f32.xlu0 %v2657_v3 }
0x1108   : > { %2668 = vrot.lane.b32.xlu1 %v5023_v27, %s4424_s22 }
0x110b   : > { %v2463_v4 = vpop.xlane.xlu0 %2462 }
0x110c   : > { %2921 = vrot.lane.b32.xlu1 %v5010_v24, %s4425_s28  ;;  %4381 = vrcp.f32 %v2463_v4 }
0x110d   : > { %v2460_v5 = vpop.xlane.xlu1 %2459 }
0x110e   : > { %4383 = vrcp.f32 %v2460_v5 }
0x1110   : > { %2919 = vrot.lane.b32.xlu1 %v5006_v21, %s4425_s28 }
0x1111   : > { %2666 = vrot.lane.b32.xlu0 %v5032_v12, %s4424_s22 }
0x1114   : > { %2917 = vrot.lane.b32.xlu1 %v5029_v16, %s4425_s28 }
0x1115   : > { %2915 = vrot.lane.b32.xlu0 %v4999_v9, %s4425_s28 }
0x1118   : > { %3204 = vrot.lane.b32.xlu1 %v5006_v21, %s4426_s15 }
0x1119   : > { %3206 = vrot.lane.b32.xlu0 %v5010_v24, %s4426_s15  ;;  %v4382_v62 = vpop.eup %4381 }
0x111a   : > { %v2467_v15 = vmul.f32 %v4382_v62, %v4374_v49  ;;  %v3868_v62 = vld [vmem:[%s5231_s6 + $0xf0] sm:$0xff] }
0x111b   : > { %v4384_v7 = vpop.eup %4383 }
0x111c   : > { %3202 = vrot.lane.b32.xlu1 %v5029_v16, %s4426_s15  ;;  %v2466_v13 = vmul.f32 %v4384_v7, %v4376_v51 }
0x111d   : > { %3200 = vrot.lane.b32.xlu0 %v4999_v9, %s4426_s15  ;;  %v3867_v9 = vld [vmem:[%s5231_s6 + $0xe8] sm:$0xff] }
0x111e   : > { %4234 = vmatprep.mubr.msk.f32.mxu1 %vm905_vm4, %v2466_v13 }
0x111f   : > { %4235 = vmatmul.mubr.msk.f32.vlgmr.msra.gmra.mxu1 %vm905_vm4, %v2467_v15 }
0x1180   : > { %v2656_v63 = vpop.xlane.xlu1 %2655 }
0x1181   : > { %4385 = vrcp.f32 %v2656_v63 }
0x1184   : > { %v2669_v10 = vpop.permute.xlu1 %2668  ;;  %v2659_v11 = vpop.xlane.xlu0 %2658 }
0x1185   : > { %4387 = vrcp.f32 %v2659_v11  ;;  %4244 = vmatprep.subr.mxu1 %v2669_v10 }
0x1186   : > { %4245 = vmatpush3.msra.mxu1 %v2669_v10 }
0x1188   : > { %v2667_v14 = vpop.permute.xlu0 %2666  ;;  %v2922_v21 = vpop.permute.xlu1 %2921 }
0x1189   : > { %4246 = vmatprep.subr.mxu1 %v2667_v14 }
0x118a   : > { %4247 = vmatpush3.msra.mxu1 %v2667_v14 }
0x118b   : > { %4251 = vmatprep.subr.mxu1 %v3867_v9 }
0x118c   : > { %v2916_v24 = vpop.permute.xlu0 %2915  ;;  %v2920_v26 = vpop.permute.xlu1 %2919 }
0x118e   : > { %v4386_v17 = vpop.eup %4385 }
0x118f   : > { %v2662_v18 = vmul.f32 %v4386_v17, %v4378_v0 }
0x1190   : > { %v3207_v28 = vpop.permute.xlu0 %3206  ;;  %v2918_v29 = vpop.permute.xlu1 %2917 }
0x1191   : > { %4248 = vmatprep.mubr.msk.f32.mxu1 %vm905_vm4, %v2662_v18 }
0x1192   : > { %v4388_v19 = vpop.eup %4387 }
0x1193   : > { %v2663_v20 = vmul.f32 %v4388_v19, %v4380_v2 }
0x1194   : > { %v3201_v30 = vpop.permute.xlu0 %3200  ;;  %v3205_v31 = vpop.permute.xlu1 %3204 }
0x1195   : > { %4249 = vmatmul.mubr.msk.f32.vlgmr.msra.gmra.mxu1 %vm905_vm4, %v2663_v20 }
0x1196   : > { %4252 = vmatpush3.msra.mxu1 %v3867_v9 }
0x1197   : > { %4261 = vmatprep.subr.msk.mxu1 %vm815_vm3, %v2922_v21 }
0x1198   : > { %v3203_v32 = vpop.permute.xlu1 %3202 }
0x11df   : > { %v4236_v22 = vpop.f32.mrf.mxu1 }
0x11e1   : > { %v2540_v23 = vpop.f32.mrf.mxu1 }
0x11e2   : > { %4258 = vmatprep.mubr.msk.f32.mxu0 %vm815_vm3, %v2540_v23 }
0x11e3   : > { %4259 = vmatmul.mubr.msk.f32.vlgmr.msra.gmra.mxu0 %vm815_vm3, %v4236_v22 }
0x1255   : > { %v4250_v25 = vpop.f32.mrf.mxu1 }
0x1257   : > { %v2744_v16 = vpop.f32.mrf.mxu1 }
0x1258   : > { %4253 = vmatprep.mubr.msk.f32.mxu1 %vm815_vm3, %v2744_v16  ;;  %v3869_v16 = vld [vmem:[%s5231_s6 + $0xf8] sm:$0xff] }
0x1259   : > { %4254 = vmatmul.mubr.msk.f32.vlgmr.msra.gmra.mxu1 %vm815_vm3, %v4250_v25 }
0x125a   : > { %4262 = vmatpush3.xpose.msk.msra.mxu1 %vm815_vm3, %v2922_v21  ;;  %4265 = vmatprep.mubr.msk.f32.mxu1 %vm815_vm3, %v2916_v24 }
0x125b   : > { %4263 = vmatprep.subr.msk.mxu1 %vm815_vm3, %v2920_v26 }
0x125e   : > { %4264 = vmatpush3.xpose.msk.msra.mxu1 %vm815_vm3, %v2920_v26 }
0x125f   : > { %4280 = vmatprep.subr.msk.mxu1 %vm815_vm3, %v3207_v28 }
0x1261   : > { %4266 = vmatmul.mubr.msk.f32.vlgmr.msra.gmra.mxu1 %vm815_vm3, %v2918_v29 }
0x1262   : > { %4281 = vmatpush3.xpose.msk.msra.mxu1 %vm815_vm3, %v3207_v28  ;;  %4284 = vmatprep.mubr.msk.f32.mxu1 %vm815_vm3, %v3201_v30 }
0x1263   : > { %4282 = vmatprep.subr.msk.mxu1 %vm815_vm3, %v3205_v31 }
0x1266   : > { %4283 = vmatpush3.xpose.msk.msra.mxu1 %vm815_vm3, %v3205_v31 }
0x1267   : > { %4299 = vmatprep.subr.bf16.mxu1 %v4422_v6 }
0x1269   : > { %4285 = vmatmul.mubr.msk.f32.vlgmr.msra.gmra.mxu1 %vm815_vm3, %v3203_v32 }
0x126a   : > { %4303 = vmatprep.mubr.msk.bf16.mxu1 %vm4423_vm1, %v4422_v6 }
0x12a3   : > { %v4260_v18 = vpop.f32.mrf.mxu0 }
0x12a5   : > { %v2906_v19 = vpop.f32.mrf.mxu0 }
0x1319   : > { %v5104_v33 = vpop.f32.mrf.mxu1 }
0x131a   : > { %v2912_v28 = vadd.f32 %v4260_v18, %v5104_v33 }
0x131b   : > { %v5106_v34 = vpop.f32.mrf.mxu1 }
0x131c   : > { %v2907_v30 = vadd.f32 %v2906_v19, %v5106_v34 }
0x1321   : > { %v4267_v35 = vpop.f32.mrf.mxu1 }
0x1322   : > { %v3007_v37 = vmul.f32 0.35355338, %v4267_v35 }
0x1323   : > { %v2997_v38 = vpop.f32.mrf.mxu1 }
0x1324   : > { %v3006_v40 = vmul.f32 0.35355338, %v2997_v38  ;;  %v3011_v41 = vsel %vm905_vm4, %v3007_v37, -inf }
0x1325   : > { %3012 = vmax.xlane.f32.xlu1 %v3011_v41 }
0x1326   : > { %v3008_v42 = vsel %vm905_vm4, %v3006_v40, -inf }
0x1327   : > { %3009 = vmax.xlane.f32.xlu0 %v3008_v42 }
0x1329   : > { %v4286_v52 = vpop.f32.mrf.mxu1 }
0x132a   : > { %v3292_v0 = vmul.f32 0.35355338, %v4286_v52 }
0x132b   : > { %v3282_v43 = vpop.f32.mrf.mxu1 }
0x132c   : > { %v3291_v44 = vmul.f32 0.35355338, %v3282_v43  ;;  %v3296_v2 = vsel %vm905_vm4, %v3292_v0, -inf }
0x132e   : > { %v3293_v45 = vsel %vm905_vm4, %v3291_v44, -inf }
0x1336   : > { %3032 = vrot.lane.b32.xlu1 %v5023_v27, %s4425_s28 }
0x135a   : > { %3294 = vmax.xlane.f32.xlu1 %v3293_v45 }
0x13ae   : > { %v3013_v39 = vpop.xlane.xlu1 %3012 }
0x13af   : > { %v3015_v36 = vsub.f32 %v3007_v37, %v3013_v39 }
0x13b0   : > { %v3010_v46 = vpop.xlane.xlu0 %3009 }
0x13b1   : > { %v3018_v47 = vmul.f32 1.442695, %v3015_v36  ;;  %v3014_v48 = vsub.f32 %v3006_v40, %v3010_v46  ;;  %v3909_v40 = vld [vmem:[%s5232_s7 + $0x7] ss:$0 sm:$0xff] }
0x13b2   : > { %v3033_v49 = vpop.permute.xlu1 %3032 }
0x13b3   : > { %4389 = vpow2.f32 %v3018_v47  ;;  %v3016_v50 = vmul.f32 1.442695, %v3014_v48  ;;  %4268 = vmatprep.subr.mxu0 %v3033_v49 }
0x13b4   : > { %4269 = vmatpush3.msra.mxu0 %v3033_v49 }
0x13b5   : > { %4391 = vpow2.f32 %v3016_v50 }
0x13c0   : > { %v4390_v51 = vpop.eup %4389 }
0x13c1   : > { %v3023_v53 = vsel %vm905_vm4, %v4390_v51, 0.0 }
0x13c2   : > { %v4392_v55 = vpop.eup %4391  ;;  %3024 = vadd.xlane.f32.xlu0 %v3023_v53 }
0x13c3   : > { %v3020_v56 = vsel %vm905_vm4, %v4392_v55, 0.0 }
0x13c6   : > { %3021 = vadd.xlane.f32.xlu0 %v3020_v56 }
0x13dc   : > { %3030 = vrot.lane.b32.xlu0 %v5032_v12, %s4425_s28 }
0x13e3   : > { %v3295_v54 = vpop.xlane.xlu1 %3294 }
0x13e4   : > { %v3299_v57 = vsub.f32 %v3291_v44, %v3295_v54  ;;  %v3917_v54 = vld [vmem:[%s5233_s8 + $0x38] sm:$0xff] }
0x13e6   : > { %v3301_v60 = vmul.f32 1.442695, %v3299_v57 }
0x13e8   : > { %4393 = vpow2.f32 %v3301_v60  ;;  %v3914_v60 = vld [vmem:[%s5233_s8 + $0x20] sm:$0xff] }
0x13f5   : > { %v4394_v61 = vpop.eup %4393 }
0x13f6   : > { %v3305_v1 = vsel %vm905_vm4, %v4394_v61, 0.0 }
0x13f7   : > { %3306 = vadd.xlane.f32.xlu1 %v3305_v1  ;;  %v3927_v1 = vld [vmem:[%s5235_s10 + $0x70] sm:$0xff] }
0x13fb   : > { %3297 = vmax.xlane.f32.xlu0 %v3296_v2  ;;  %v3928_v2 = vld [vmem:[%s5235_s10 + $0x78] sm:$0xff] }
0x1408   : > { %3317 = vrot.lane.b32.xlu1 %v5023_v27, %s4426_s15 }
0x144b   : > { %v3025_v3 = vpop.xlane.xlu0 %3024 }
0x144c   : > { %4395 = vrcp.f32 %v3025_v3  ;;  %v3618_v3 = vpack.c.bf16 %v3928_v2, %v3927_v1 }
0x144f   : > { %v3022_v4 = vpop.xlane.xlu0 %3021 }
0x1450   : > { %4397 = vrcp.f32 %v3022_v4 }
0x1453   : > { %v3031_v5 = vpop.permute.xlu0 %3030 }
0x1454   : > { %4270 = vmatprep.subr.mxu0 %v3031_v5 }
0x1455   : > { %4271 = vmatpush3.msra.mxu0 %v3031_v5 }
0x1456   : > { %4275 = vmatprep.subr.mxu0 %v3868_v62 }
0x1459   : > { %v4396_v7 = vpop.eup %4395 }
0x145a   : > { %v3029_v8 = vmul.f32 %v4396_v7, %v4390_v51 }
0x145d   : > { %v4398_v13 = vpop.eup %4397 }
0x145e   : > { %v3028_v15 = vmul.f32 %v4398_v13, %v4392_v55 }
0x1460   : > { %4272 = vmatprep.mubr.msk.f32.mxu0 %vm905_vm4, %v3028_v15 }
0x1461   : > { %4273 = vmatmul.mubr.msk.f32.vlgmr.msra.gmra.mxu0 %vm905_vm4, %v3029_v8 }
0x1462   : > { %4276 = vmatpush3.msra.mxu0 %v3868_v62 }
0x1480   : > { %v3307_v27 = vpop.xlane.xlu1 %3306 }
0x1484   : > { %v3318_v63 = vpop.permute.xlu1 %3317  ;;  %v3298_v10 = vpop.xlane.xlu0 %3297 }
0x1485   : > { %v3300_v11 = vsub.f32 %v3292_v0, %v3298_v10  ;;  %4287 = vmatprep.subr.mxu0 %v3318_v63 }
0x1487   : > { %v3303_v14 = vmul.f32 1.442695, %v3300_v11 }
0x1489   : > { %4399 = vpow2.f32 %v3303_v14 }
0x148a   : > { %4401 = vrcp.f32 %v3307_v27  ;;  %v3912_v27 = vld [vmem:[%s5237_s12 + $0x2] ss:$0 sm:$0xff] }
0x1496   : > { %v4400_v9 = vpop.eup %4399 }
0x1497   : > { %v3308_v17 = vsel %vm905_vm4, %v4400_v9, 0.0  ;;  %v4402_v20 = vpop.eup %4401 }
0x1498   : > { %3309 = vadd.xlane.f32.xlu0 %v3308_v17  ;;  %v3313_v24 = vmul.f32 %v4402_v20, %v4394_v61  ;;  %v3915_v61 = vld [vmem:[%s5233_s8 + $0x28] sm:$0xff] }
0x1499   : > { %v3549_v0 = vpack.c.bf16 %v3915_v61, %v3914_v60 }
0x14ae   : > { %3315 = vrot.lane.b32.xlu0 %v5032_v12, %s4426_s15 }
0x1521   : > { %v4274_v21 = vpop.f32.mrf.mxu0  ;;  %v3310_v22 = vpop.xlane.xlu0 %3309 }
0x1522   : > { %4403 = vrcp.f32 %v3310_v22  ;;  %v3926_v22 = vld [vmem:[%s5235_s10 + $0x68] sm:$0xff] }
0x1523   : > { %v3108_v23 = vpop.f32.mrf.mxu0 }
0x1524   : > { %4277 = vmatprep.mubr.msk.f32.mxu0 %vm815_vm3, %v3108_v23 }
0x1525   : > { %4278 = vmatmul.mubr.msk.f32.vlgmr.msra.gmra.mxu0 %vm815_vm3, %v4274_v21  ;;  %v3316_v25 = vpop.permute.xlu0 %3315  ;;  %v3925_v21 = vld [vmem:[%s5235_s10 + $0x60] sm:$0xff] }
0x1526   : > { %4288 = vmatpush3.msra.mxu0 %v3318_v63  ;;  %4291 = vmatprep.mubr.msk.f32.mxu0 %vm905_vm4, %v3313_v24  ;;  %v3617_v23 = vpack.c.bf16 %v3926_v22, %v3925_v21  ;;  %v3923_v24 = vld [vmem:[%s5235_s10 + $0x50] sm:$0xff] }
0x1527   : > { %4289 = vmatprep.subr.mxu0 %v3316_v25 }
0x1528   : > { %4290 = vmatpush3.msra.mxu0 %v3316_v25  ;;  %v3924_v25 = vld [vmem:[%s5235_s10 + $0x58] sm:$0xff] }
0x1529   : > { %4294 = vmatprep.subr.mxu0 %v3869_v16 }
0x152f   : > { %v4404_v12 = vpop.eup %4403 }
0x1530   : > { %v3314_v26 = vmul.f32 %v4404_v12, %v4400_v9  ;;  %v3913_v9 = vld [vmem:[%s5238_s13 + $0x2] ss:$0 sm:$0xff]  ;;  %v3616_v12 = vpack.c.bf16 %v3924_v25, %v3923_v24 }
0x1532   : > { %4292 = vmatmul.mubr.msk.f32.vlgmr.msra.gmra.mxu0 %vm905_vm4, %v3314_v26  ;;  %v3921_v26 = vld [vmem:[%s5235_s10 + $0x40] sm:$0xff] }
0x1533   : > { %4295 = vmatpush3.msra.mxu0 %v3869_v16  ;;  %v3922_v16 = vld [vmem:[%s5235_s10 + $0x48] sm:$0xff] }
0x1534   : > { %4307 = vmatprep.subr.bf16.mxu0 %v4422_v6 }
0x15e5   : > { %v4279_v29 = vpop.f32.mrf.mxu0 }
0x15e6   : > { %v3199_v31 = vadd.f32 %v4279_v29, %v2912_v28  ;;  %v3615_v28 = vpack.c.bf16 %v3922_v16, %v3921_v26  ;;  %v3919_v29 = vld [vmem:[%s5234_s9 + $0x1] ss:$0 sm:$0xff] }
0x15e7   : > { %v3189_v32 = vpop.f32.mrf.mxu0 }
0x15e8   : > { %v3198_v35 = vadd.f32 %v3189_v32, %v2907_v30 }
0x15f2   : > { %v4293_v37 = vpop.f32.mrf.mxu0 }
0x15f4   : > { %v3393_v38 = vpop.f32.mrf.mxu0 }
0x15f5   : > { %4296 = vmatprep.mubr.msk.f32.mxu0 %vm815_vm3, %v3393_v38 }
0x15f6   : > { %4297 = vmatmul.mubr.msk.f32.vlgmr.msra.gmra.mxu0 %vm815_vm3, %v4293_v37 }
0x15f7   : > { %4315 = vmatprep.mubr.msk.bf16.mxu0 %vm4423_vm1, %v4422_v6  ;;  %4308 = vmatpush3.bf16.msra.mxu0 %v3618_v3 }
0x15f8   : > { %4309 = vmatprep.subr.bf16.mxu0 %v4422_v6 }
0x15fb   : > { %4310 = vmatpush3.bf16.msra.mxu0 %v3617_v23 }
0x15fc   : > { %4311 = vmatprep.subr.bf16.mxu0 %v4422_v6 }
0x15ff   : > { %4312 = vmatpush3.bf16.msra.mxu0 %v3616_v12 }
0x1600   : > { %4313 = vmatprep.subr.bf16.mxu0 %v4422_v6 }
0x1603   : > { %4314 = vmatpush3.bf16.msra.mxu0 %v3615_v28 }
0x16b6   : > { %v4298_v33 = vpop.f32.mrf.mxu0 }
0x16b7   : > { %v3484_v41 = vadd.f32 %v4298_v33, %v3199_v31 }
0x16b8   : > { %v3474_v42 = vpop.f32.mrf.mxu0 }
0x16b9   : > { %v3492_v34 = vadd.f32 %v3909_v40, %v3484_v41  ;;  %v3483_v52 = vadd.f32 %v3474_v42, %v3198_v35  ;;  %v3930_v41 = vld [vmem:[%s5236_s11 + $0x1] ss:$0 sm:$0xff] }
0x16bb   : > { %v3491_v43 = vadd.f32 %v3909_v40, %v3483_v52  ;;  %v3494_v44 = vadd.f32 %v3492_v34, %v4970_v59 }
0x16bd   : > { %v3502_v45 = vsel %vm668_vm2, %v3494_v44, 0.0  ;;  %v3493_v39 = vadd.f32 %v3491_v43, %v4968_v58  ;;  %v3916_v58 = vld [vmem:[%s5233_s8 + $0x30] sm:$0xff] }
0x16be   : > { %3503 = vadd.xlane.f32.xlu0 %v3502_v45  ;;  %v3550_v57 = vpack.c.bf16 %v3917_v54, %v3916_v58 }
0x16bf   : > { %v3499_v36 = vsel %vm668_vm2, %v3493_v39, 0.0 }
0x16c0   : > { %3500 = vadd.xlane.f32.xlu1 %v3499_v36  ;;  %4300 = vmatpush3.bf16.msra.mxu1 %v3550_v57 }
0x16c1   : > { %4301 = vmatprep.subr.bf16.mxu1 %v4422_v6 }
0x16c4   : > { %4302 = vmatpush3.bf16.msra.mxu1 %v3549_v0 }
0x1747   : > { %v3504_v46 = vpop.xlane.xlu0 %3503 }
0x1748   : > { %v3506_v47 = vmul.f32 0.03125, %v3504_v46 }
0x1749   : > { %v3501_v48 = vpop.xlane.xlu1 %3500 }
0x174a   : > { %v3508_v49 = vsub.f32 %v3494_v44, %v3506_v47  ;;  %v3505_v50 = vmul.f32 0.03125, %v3501_v48 }
0x174c   : > { %v3507_v51 = vsub.f32 %v3493_v39, %v3505_v50  ;;  %v3510_v53 = vmul.f32 %v3508_v49, %v3508_v49 }
0x174e   : > { %v3514_v55 = vsel %vm668_vm2, %v3510_v53, 0.0  ;;  %v3509_v56 = vmul.f32 %v3507_v51, %v3507_v51 }
0x174f   : > { %3515 = vadd.xlane.f32.xlu0 %v3514_v55 }
0x1750   : > { %v3511_v59 = vsel %vm668_vm2, %v3509_v56, 0.0 }
0x1751   : > { %3512 = vadd.xlane.f32.xlu1 %v3511_v59 }
0x17d8   : > { %v3516_v4 = vpop.xlane.xlu0 %3515 }
0x17d9   : > { %v3518_v5 = vmul.f32 0.03125, %v3516_v4  ;;  %v3934_v4 = vld [vmem:[%s5237_s12 + $0x3] ss:$0 sm:$0xff] }
0x17da   : > { %v3513_v62 = vpop.xlane.xlu1 %3512 }
0x17db   : > { %v3520_v7 = vadd.f32 1e-05, %v3518_v5  ;;  %v3517_v13 = vmul.f32 0.03125, %v3513_v62  ;;  %v3935_v62 = vld [vmem:[%s5238_s13 + $0x3] ss:$0 sm:$0xff] }
0x17dd   : > { %4405 = vrsqrt.f32 %v3520_v7  ;;  %v3519_v15 = vadd.f32 1e-05, %v3517_v13 }
0x17df   : > { %4407 = vrsqrt.f32 %v3519_v15 }
0x17ea   : > { %v4406_v8 = vpop.eup %4405 }
0x17eb   : > { %v3524_v63 = vmul.f32 %v4406_v8, %v3508_v49 }
0x17ec   : > { %v4408_v10 = vpop.eup %4407 }
0x17ed   : > { %v3523_v11 = vmul.f32 %v4408_v10, %v3507_v51  ;;  %v3532_v14 = vmul.f32 %v3912_v27, %v3524_v63 }
0x17ef   : > { %v3531_v17 = vmul.f32 %v3912_v27, %v3523_v11  ;;  %v3540_v19 = vadd.f32 %v3913_v9, %v3532_v14 }
0x17f1   : > { %v3539_v18 = vadd.f32 %v3913_v9, %v3531_v17 }
0x17f3   : > { %v3548_v20 = vpack.c.bf16 %v3540_v19, %v3539_v18 }
0x17f5   : > { %4304 = vmatmul.mubr.msk.bf16.vlgmr.msra.gmra.mxu1 %vm668_vm2, %v3548_v20 }
0x18b5   : > { %v3594_v30 = vpop.f32.mrf.mxu1 }
0x18b6   : > { %v3595_v32 = vadd.f32 %v3919_v29, %v3594_v30 }
0x18b7   : > { %v4305_v31 = vpop.f32.mrf.mxu1 }
0x18b8   : > { %v3601_v38 = vmax.f32 %v3595_v32, 0.0 }
0x18b9   : > { %v3597_v35 = vpop.f32.mrf.mxu1 }
0x18ba   : > { %v3598_v37 = vadd.f32 %v3919_v29, %v3597_v35 }
0x18bb   : > { %v4306_v6 = vpop.f32.mrf.mxu1 }
0x18bc   : > { %v3602_v40 = vmax.f32 %v3598_v37, 0.0 }
0x18be   : > { %v3614_v33 = vpack.c.bf16 %v3602_v40, %v3601_v38 }
0x18c0   : > { %4316 = vmatmul.mubr.msk.bf16.vlgmr.msra.gmra.mxu0 %vm518_vm0, %v3614_v33 }
0x1980   : > { %v3662_v42 = vpop.f32.mrf.mxu0 }
0x1981   : > { %v3663_v34 = vadd.f32 %v3930_v41, %v3662_v42 }
0x1982   : > { %v4317_v52 = vpop.f32.mrf.mxu0 }
0x1983   : > { %v3669_v43 = vadd.f32 %v3663_v34, %v3539_v18 }
0x1984   : > { %v3665_v44 = vpop.f32.mrf.mxu0 }
0x1985   : > { %v3666_v45 = vadd.f32 %v3930_v41, %v3665_v44  ;;  %v3675_v39 = vsel %vm668_vm2, %v3669_v43, 0.0 }
0x1986   : > { %3676 = vadd.xlane.f32.xlu1 %v3675_v39  ;;  %v4318_v36 = vpop.f32.mrf.mxu0 }
0x1987   : > { %v3670_v46 = vadd.f32 %v3666_v45, %v3540_v19 }
0x1989   : > { %v3678_v47 = vsel %vm668_vm2, %v3670_v46, 0.0 }
0x198a   : > { %3679 = vadd.xlane.f32.xlu0 %v3678_v47 }
0x1a0f   : > { %v3677_v48 = vpop.xlane.xlu1 %3676 }
0x1a10   : > { %v3681_v49 = vmul.f32 0.03125, %v3677_v48 }
0x1a12   : > { %v3683_v50 = vsub.f32 %v3669_v43, %v3681_v49 }
0x1a13   : > { %v3680_v51 = vpop.xlane.xlu0 %3679 }
0x1a14   : > { %v3682_v53 = vmul.f32 0.03125, %v3680_v51  ;;  %v3685_v55 = vmul.f32 %v3683_v50, %v3683_v50 }
0x1a16   : > { %v3684_v56 = vsub.f32 %v3670_v46, %v3682_v53  ;;  %v3687_v59 = vsel %vm668_vm2, %v3685_v55, 0.0 }
0x1a17   : > { %3688 = vadd.xlane.f32.xlu1 %v3687_v59 }
0x1a18   : > { %v3686_v58 = vmul.f32 %v3684_v56, %v3684_v56 }
0x1a1a   : > { %v3690_v54 = vsel %vm668_vm2, %v3686_v58, 0.0 }
0x1a1b   : > { %3691 = vadd.xlane.f32.xlu0 %v3690_v54 }
0x1aa0   : > { %v3689_v57 = vpop.xlane.xlu1 %3688 }
0x1aa1   : > { %v3693_v60 = vmul.f32 0.03125, %v3689_v57 }
0x1aa3   : > { %v3695_v61 = vadd.f32 1e-05, %v3693_v60 }
0x1aa4   : > { %v3692_v0 = vpop.xlane.xlu0 %3691 }
0x1aa5   : > { %4409 = vrsqrt.f32 %v3695_v61  ;;  %v3694_v1 = vmul.f32 0.03125, %v3692_v0 }
0x1aa7   : > { %v3696_v2 = vadd.f32 1e-05, %v3694_v1 }
0x1aa9   : > { %4411 = vrsqrt.f32 %v3696_v2 }
0x1ab2   : > { %v4410_v3 = vpop.eup %4409 }
0x1ab3   : > { %v3699_v5 = vmul.f32 %v4410_v3, %v3683_v50 }
0x1ab5   : > { %v3707_v7 = vmul.f32 %v3934_v4, %v3699_v5 }
0x1ab6   : > { %v4412_v13 = vpop.eup %4411 }
0x1ab7   : > { %v3715_v15 = vadd.f32 %v3935_v62, %v3707_v7  ;;  %v3700_v8 = vmul.f32 %v4412_v13, %v3684_v56 }
0x1ab9   : > { %3717 = vst.msk [vmem:[%s467_s18] sm:$0xff] %vm668_vm2, %v3715_v15  ;;  %v3708_v27 = vmul.f32 %v3934_v4, %v3700_v8 }
0x1abb   : > { %v3716_v63 = vadd.f32 %v3935_v62, %v3708_v27 }
0x1abd   : > { %3718 = vst.msk [vmem:[%s467_s18 + $0x8] sm:$0xff] %vm668_vm2, %v3716_v63 }
0x1abe PF: > { %s24_s29 = sadd.s32 1, %s4419_s29  }
0x1abf   : > { %p21_p4 = scmp.ge.s32.totalorder %s24_s29, 4  }
0x1ac1   :  { %23 = sbr.rel (!%p21_p4) target bundleno = 1 (0x1), region = 130 }

// kernel: detr_forward.3
= control target key start
LH: loop header
LB: loop body
LE: loop exit
PB: predicated region body
PF: predicated region fallthrough
CT: control target
= control target key end

     0   :  { %s8399_s0 = inlined_call_operand.vmem [shape: f32[2,16,32], index: 0, kind: input, shape index: {}]   ;;  %s8400_s1 = inlined_call_operand.vmem [shape: f32[16,32], index: 1, kind: input, shape index: {}]   ;;  %s8401_s2 = inlined_call_operand.vmem [shape: f32[8,32], index: 2, kind: input, shape index: {}]   ;;  %s8402_s3 = inlined_call_operand.vmem [shape: f32[16,32,32], index: 3, kind: input, shape index: {}]   ;;  %s8403_s4 = inlined_call_operand.vmem [shape: f32[16,1,32], index: 4, kind: input, shape index: {}]   ;;  %s8404_s5 = inlined_call_operand.vmem [shape: f32[2,32,64], index: 5, kind: input, shape index: {}]   ;;  %s8405_s6 = inlined_call_operand.vmem [shape: f32[2,1,64], index: 6, kind: input, shape index: {}]   ;;  %s8406_s7 = inlined_call_operand.vmem [shape: f32[2,64,32], index: 7, kind: input, shape index: {}]   ;;  %s8407_s8 = inlined_call_operand.vmem [shape: f32[2,1,32], index: 8, kind: input, shape index: {}]   ;;  %s8408_s9 = inlined_call_operand.vmem [shape: f32[6,1,32], index: 9, kind: input, shape index: {}]   ;;  %s8409_s10 = inlined_call_operand.vmem [shape: f32[6,1,32], index: 10, kind: input, shape index: {}]   ;;  %s8410_s11 = inlined_call_operand.vmem [shape: f32[1,32], index: 11, kind: input, shape index: {}]   ;;  %s8411_s12 = inlined_call_operand.vmem [shape: f32[1,32], index: 12, kind: input, shape index: {}]   ;;  %s8412_s13 = inlined_call_operand.vmem [shape: f32[32,16], index: 13, kind: input, shape index: {}]   ;;  %s8413_s14 = inlined_call_operand.vmem [shape: f32[1,16], index: 14, kind: input, shape index: {}]   ;;  %s8414_s15 = inlined_call_operand.vmem [shape: f32[32,32], index: 15, kind: input, shape index: {}]   ;;  %s8415_s16 = inlined_call_operand.vmem [shape: f32[1,32], index: 16, kind: input, shape index: {}]   ;;  %s8416_s17 = inlined_call_operand.vmem [shape: f32[32,32], index: 17, kind: input, shape index: {}]   ;;  %s8417_s18 = inlined_call_operand.vmem [shape: f32[1,32], index: 18, kind: input, shape index: {}]   ;;  %s8418_s19 = inlined_call_operand.vmem [shape: f32[32,4], index: 19, kind: input, shape index: {}]   ;;  %s8419_s20 = inlined_call_operand.vmem [shape: f32[1,4], index: 20, kind: input, shape index: {}]   ;;  %s8420_s21 = inlined_call_operand.hbm [shape: f32[2,8,16], index: 21, kind: output, shape index: {0}]   ;;  %s8421_s22 = inlined_call_operand.vmem [shape: f32[2,8,4], index: 22, kind: output, shape index: {1}]  }
   0x1   :  { %8449 = sst [smem:[#allocation14_spill]] %s8399_s0 }
   0x2   :  { %8450 = sst [smem:[#allocation15_spill]] %s8400_s1 }
   0x3   :  { %8451 = sst [smem:[#allocation16_spill]] %s8401_s2 }
   0x4   :  { %8452 = sst [smem:[#allocation17_spill]] %s8402_s3 }
   0x5   :  { %8453 = sst [smem:[#allocation18_spill]] %s8403_s4 }
   0x6   :  { %8454 = sst [smem:[#allocation19_spill]] %s8404_s5 }
   0x7   :  { %8455 = sst [smem:[#allocation20_spill]] %s8405_s6 }
   0x8   :  { %8456 = sst [smem:[#allocation21_spill]] %s8406_s7 }
   0x9   :  { %8457 = sst [smem:[#allocation22_spill]] %s8417_s18 }
   0xa   :  { %8458 = sst [smem:[#allocation23_spill]] %s8419_s20 }
   0xb   :  { %8459 = sst [smem:[#allocation24_spill]] %s8420_s21 }
   0xc   :  { %8460 = sst [smem:[#allocation25_spill]] %s8421_s22 }
   0xd   :  { %28 = vsyncpa [#allocation3], 0 }
   0xe   :  { %30 = vsyncpa [#allocation3 + $0x1], 0  ;;  %s7299_s3 = smov 0   ;;  %s7301_s28 = smov 0  }
   0xf   :  { %s7303_s29 = smov 0   ;;  %s7305_s30 = smov 0  }
  0x10 LB: > { %8461 = sst [smem:[#allocation5_spill]] %s7163_s3  ;;  %s7320_s4 = sadd.s32 4294967295, %s7175_s30   ;;  %s7175_s30 = sphi %s7305_s30, %s8496_s30   ;;  %s7171_s29 = sphi %s7303_s29, %s8498_s29   ;;  %s7167_s28 = sphi %s7301_s28, %s8500_s28   ;;  %s7163_s3 = sphi %s7299_s3, %s8499_s3  }
  0x11   : > { %8462 = sst [smem:[#allocation6_spill]] %s7171_s29  ;;  %s6129_s0 = sadd.s32 4294967294, %s7175_s30  }
  0x12   : > { %8463 = sst [smem:[#allocation7_spill]] %s7175_s30  ;;  %s7324_s23 = sadd.s32 1, %s7175_s30  }
  0x13   : > { %8464 = sst [smem:[#allocation8_spill]] %s7320_s4  ;;  %s489_s1 = sadd.s32 1, %s7171_s29 }
  0x14   : > { %8465 = sst [smem:[#allocation9_spill]] %s7324_s23  ;;  %s486_s5 = ssub.s32 %s7175_s30, %s7324_s23 }
  0x15   : > { %p499_p0 = scmp.ne.s32.totalorder %s7171_s29, %s7167_s28  ;;  %p487_p1 = scmp.eq.s32.totalorder %s486_s5, 0 }
  0x16   : > { %p500_p2 = scmp.eq.s32.totalorder %s7320_s4, 1  ;;  %p505_p3 = scmp.ne.s32.totalorder %s7167_s28, %s7163_s3 }
  0x17   : > { %p506_p4 = scmp.eq.s32.totalorder %s6129_s0, 1  ;;  %p6132_p7 = scmp.ge.s32.totalorder %s7175_s30, 1 }
  0x18   : > { %s7335_s24 = scalar_select %p487_p1, %s7171_s29, %s489_s1  }
  0x19   : > { %p7337_p5 = por %p500_p2, %p499_p0  ;;  %p7341_p6 = por %p506_p4, %p505_p3 }
  0x1a   : > { %8466 = sst [smem:[#allocation10_spill]] %s7335_s24  ;;  %p618_p8 = scmp.lt.s32.totalorder %s7175_s30, 3 }
  0x1b   : > { %s8467_s6 = scalar_select %p7337_p5, 1, 0 }
  0x1c   : > { %s8469_s25 = scalar_select %p7341_p6, 1, 0 }
  0x1d   : > { %8468 = sst [smem:[#allocation11_spill]] %s8467_s6  ;;  %p619_p9 = pnand %p6132_p7, %p618_p8 }
  0x1e   : > { %8470 = sst [smem:[#allocation12_spill]] %s8469_s25 }
  0x1f   : > { %622 = sbr.rel (%p619_p9) target bundleno = 13136 (0x3350), region = 104 }
  0x24   : > { %s8471_s27 = sld [smem:[#allocation17_spill]]  ;;  %v7177_v3 = vmov 0.0   ;;  %vm7178_vm0 = vmmov 0   ;;  %vm737_vm1 = vcmask 261120   ;;  %vm880_vm2 = vcmask 64512   ;;  %s8438_s24 = smov 120  }
  0x25   : > { %6555 = vmatprep.subr.bf16.mxu1 %v7177_v3  ;;  %6547 = vmatprep.subr.bf16.mxu0 %v7177_v3  ;;  %s8472_s26 = sld [smem:[#allocation16_spill]]  ;;  %v7180_v33 = vmov 0   ;;  %s8434_s29 = smov 112   ;;  %vm2140_vm3 = vcmask 130048   ;;  %vm3157_vm4 = vcmask 523264  }
  0x26   : > { %6559 = vmatprep.mubr.msk.bf16.mxu1 %vm7178_vm0, %v7177_v3  ;;  %6551 = vmatprep.mubr.msk.bf16.mxu0 %vm7178_vm0, %v7177_v3  ;;  %s8473_s2 = sld [smem:[#allocation18_spill]]  ;;  %s8436_s23 = smov 104  }
  0x27   : > { %p684_p10 = scmp.lt.s32.totalorder %s7320_s4, 1  ;;  %s8475_s3 = sld [smem:[#allocation14_spill]] }
  0x28   : > { %s8477_s20 = smov 120   ;;  %s8478_s21 = smov 104  }
  0x29   : > { %s7531_s5 = scalar_select %p684_p10, %s7320_s4, 1 }
  0x2a   : > { %v6139_v0 = vld [vmem:[%s8471_s27 + $0x30] sm:$0xff]  ;;  %v6140_v1 = vld [vmem:[%s8471_s27 + $0x38] sm:$0xff]  ;;  %v6137_v6 = vld [vmem:[%s8471_s27 + $0x20] sm:$0xff]  ;;  %s8479_s18 = smov 112   ;;  %s8482_s7 = sld [smem:[#allocation21_spill]] }
  0x2b   : > { %v704_v2 = vld [vmem:[%s8471_s27 + $0x10] sm:$0xff]  ;;  %v782_v4 = vpack.c.bf16 %v6140_v1, %v6139_v0  ;;  %v705_v5 = vld [vmem:[%s8471_s27 + $0x18] sm:$0xff]  ;;  %v6138_v7 = vld [vmem:[%s8471_s27 + $0x28] sm:$0xff]  ;;  %8474 = sst [smem:[#allocation13_spill]] %s7531_s5  ;;  %s6370_s0 = sshll.u32 %s7531_s5, 4 }
  0x2c   : > { %v730_v8 = vpack.c.bf16 %v705_v5, %v704_v2  ;;  %v702_v9 = vld [vmem:[%s8471_s27] sm:$0xff]  ;;  %v703_v10 = vld [vmem:[%s8471_s27 + $0x8] sm:$0xff]  ;;  %v781_v11 = vpack.c.bf16 %v6138_v7, %v6137_v6  ;;  %v6144_v27 = vld [vmem:[%s8471_s27 + $0x50] sm:$0xff]  ;;  %s8476_s5 = sld [smem:[#allocation15_spill]]  ;;  %s8446_s4 = sand.u32 1, %s7167_s28  }
  0x2d   : > { %6556 = vmatpush3.bf16.msra.mxu1 %v782_v4  ;;  %v7380_v12 = vld [vmem:[%s8472_s26] sm:$0xff]  ;;  %v729_v13 = vpack.c.bf16 %v703_v10, %v702_v9  ;;  %v6145_v28 = vld [vmem:[%s8471_s27 + $0x58] sm:$0xff]  ;;  %v6143_v31 = vld [vmem:[%s8471_s27 + $0x48] sm:$0xff]  ;;  %s688_s25 = scalar_lea.vmem %s8475_s3, %s6370_s0  ;;  %s8483_s30 = sld [smem:[#allocation20_spill]] }
  0x2e   : > { %6548 = vmatpush3.bf16.msra.mxu0 %v730_v8  ;;  %6557 = vmatprep.subr.bf16.mxu1 %v7177_v3  ;;  %v728_v14 = vpack.c.bf16 %v7380_v12, %v7380_v12  ;;  %v6154_v15 = vld [vmem:[%s8473_s2 + $0x1] ss:$0 sm:$0xff]  ;;  %v6152_v16 = vld [vmem:[%s8473_s2] ss:$0 sm:$0xff]  ;;  %v830_v30 = vpack.c.bf16 %v6145_v28, %v6144_v27  ;;  %v6156_v43 = vld [vmem:[%s8473_s2 + $0x2] ss:$0 sm:$0xff] }
  0x2f   : > { %6549 = vmatprep.subr.bf16.mxu0 %v7177_v3  ;;  %v6142_v29 = vld [vmem:[%s8471_s27 + $0x40] sm:$0xff]  ;;  %v6148_v2 = vld [vmem:[%s8471_s27 + $0x68] sm:$0xff]  ;;  %s8485_s0 = sld [smem:[#allocation8_spill]]  ;;  %s8489_s6 = sand.u32 1, %s7167_s28  }
  0x30   : > { %v829_v32 = vpack.c.bf16 %v6143_v31, %v6142_v29  ;;  %v6147_v7 = vld [vmem:[%s8471_s27 + $0x60] sm:$0xff]  ;;  %s8488_s22 = sld [smem:[#allocation24_spill]] }
  0x31   : > { %6558 = vmatpush3.bf16.msra.mxu1 %v781_v11 }
  0x32   : > { %6550 = vmatpush3.bf16.msra.mxu0 %v729_v13  ;;  %6571 = vmatprep.subr.mxu1 %v7177_v3 }
  0x33   : > { %6563 = vmatprep.subr.bf16.mxu0 %v7177_v3  ;;  %s8484_s1 = smov %s8483_s30 }
  0x34   : > { %6560 = vmatmul.mubr.msk.bf16.vlgmr.msra.gmra.mxu1 %vm737_vm1, %v728_v14 }
  0x35   : > { %6552 = vmatmul.mubr.msk.bf16.vlgmr.msra.gmra.mxu0 %vm737_vm1, %v728_v14  ;;  %6573 = vmatprep.mubr.msk.f32.mxu1 %vm7178_vm0, %v7177_v3 }
  0x36   : > { %6567 = vmatprep.mubr.msk.bf16.mxu0 %vm7178_vm0, %v7177_v3  ;;  %6564 = vmatpush3.bf16.msra.mxu0 %v830_v30 }
  0x37   : > { %6565 = vmatprep.subr.bf16.mxu0 %v7177_v3 }
  0x3a   : > { %6566 = vmatpush3.bf16.msra.mxu0 %v829_v32 }
  0x3b   : > { %6591 = vmatprep.subr.mxu0 %v7177_v3 }
  0x3d   : > { %6568 = vmatmul.mubr.bf16.vlgmr.msra.gmra.mxu0 %v7180_v33 }
  0x3e   : > { %6593 = vmatprep.mubr.msk.f32.mxu0 %vm7178_vm0, %v7177_v3  ;;  %6592 = vmatpush3.msra.mxu0 %v6148_v2  ;;  %v6183_v2 = vld [vmem:[%s8471_s27 + $0xb0] sm:$0xff] }
  0x3f   : > { %6601 = vmatprep.subr.mxu0 %v7177_v3 }
  0xf4   : > { %v823_v17 = vpop.f32.mrf.mxu1 }
  0xf5   : > { %v7400_v18 = vadd.f32 %v6154_v15, %v823_v17  ;;  %v775_v19 = vpop.f32.mrf.mxu0 }
  0xf6   : > { %v7402_v20 = vadd.f32 %v6152_v16, %v775_v19  ;;  %v6561_v21 = vpop.f32.mrf.mxu1 }
  0xf7   : > { %1044 = vrot.lane.b32.xlu1 %v7400_v18, %s8438_s24  ;;  %v6553_v22 = vpop.f32.mrf.mxu0  ;;  %6572 = vmatpush3.xpose.msk.msra.mxu1 %vm880_vm2, %v7400_v18 }
  0xf8   : > { %v826_v23 = vpop.f32.mrf.mxu1  ;;  %6576 = vmatprep.subr.mxu1 %v7177_v3 }
  0xf9   : > { %v778_v24 = vpop.f32.mrf.mxu0 }
  0xfa   : > { %v6562_v25 = vpop.f32.mrf.mxu1  ;;  %6574 = vmatmul.mubr.msk.f32.vlgmr.msra.gmra.mxu1 %vm880_vm2, %v7402_v20 }
  0xfb   : > { %v6554_v26 = vpop.f32.mrf.mxu0  ;;  %1042 = vrot.lane.b32.xlu1 %v7402_v20, %s8438_s24  ;;  %6578 = vmatprep.mubr.msk.f32.mxu1 %vm7178_vm0, %v7177_v3 }
  0xfd   : > { %v874_v44 = vpop.f32.mrf.mxu0 }
  0xfe   : > { %v7436_v45 = vadd.f32 %v6156_v43, %v874_v44 }
  0xff   : > { %v6569_v46 = vpop.f32.mrf.mxu0 }
 0x100   : > { %6577 = vmatpush3.msra.mxu1 %v7436_v45 }
 0x101   : > { %v877_v47 = vpop.f32.mrf.mxu0  ;;  %6581 = vmatprep.subr.mxu1 %v7177_v3 }
 0x103   : > { %v6570_v48 = vpop.f32.mrf.mxu0 }
 0x169   : > { %v1045_v51 = vpop.permute.xlu1 %1044 }
 0x16d   : > { %v1043_v53 = vpop.permute.xlu1 %1042 }
 0x1ba   : > { %v953_v34 = vpop.f32.mrf.mxu1 }
 0x1bb   : > { %v957_v35 = vmul.f32 0.35355338, %v953_v34 }
 0x1bc   : > { %v6575_v36 = vpop.f32.mrf.mxu1 }
 0x1bd   : > { %v958_v37 = vsel %vm880_vm2, %v957_v35, -inf }
 0x1be   : > { %959 = vmax.xlane.f32.xlu0 %v958_v37 }
 0x247   : > { %v960_v38 = vpop.xlane.xlu0 %959 }
 0x248   : > { %v961_v39 = vsub.f32 %v957_v35, %v960_v38 }
 0x24a   : > { %v962_v40 = vmul.f32 1.442695, %v961_v39 }
 0x24c   : > { %7032 = vpow2.f32 %v962_v40 }
 0x259   : > { %v7033_v41 = vpop.eup %7032 }
 0x25a   : > { %v964_v42 = vsel %vm880_vm2, %v7033_v41, 0.0 }
 0x25b   : > { %965 = vadd.xlane.f32.xlu0 %v964_v42 }
 0x2e4   : > { %v966_v49 = vpop.xlane.xlu0 %965 }
 0x2e5   : > { %7034 = vrcp.f32 %v966_v49 }
 0x2f2   : > { %v7035_v50 = vpop.eup %7034 }
 0x2f3   : > { %v968_v52 = vmul.f32 %v7035_v50, %v7033_v41 }
 0x2f5   : > { %6579 = vmatmul.mubr.msk.f32.vlgmr.msra.gmra.mxu1 %vm880_vm2, %v968_v52  ;;  %v6150_v52 = vld [vmem:[%s8471_s27 + $0x78] sm:$0xff] }
 0x2f6   : > { %6582 = vmatpush3.xpose.msk.msra.mxu1 %vm880_vm2, %v1045_v51  ;;  %6583 = vmatprep.mubr.msk.f32.mxu1 %vm7178_vm0, %v7177_v3 }
 0x2f7   : > { %6586 = vmatprep.subr.mxu1 %v7177_v3 }
 0x2f9   : > { %6584 = vmatmul.mubr.msk.f32.vlgmr.msra.gmra.mxu1 %vm880_vm2, %v1043_v53 }
 0x2fa   : > { %6588 = vmatprep.mubr.msk.f32.mxu1 %vm7178_vm0, %v7177_v3 }
 0x3b5   : > { %v1038_v54 = vpop.f32.mrf.mxu1 }
 0x3b7   : > { %v6580_v55 = vpop.f32.mrf.mxu1 }
 0x3b9   : > { %v1116_v56 = vpop.f32.mrf.mxu1 }
 0x3ba   : > { %v1120_v57 = vmul.f32 0.35355338, %v1116_v56  ;;  %v6173_v56 = vld [vmem:[%s8473_s2 + $0x3] ss:$0 sm:$0xff] }
 0x3bb   : > { %v6585_v58 = vpop.f32.mrf.mxu1 }
 0x3bc   : > { %v1121_v59 = vsel %vm880_vm2, %v1120_v57, -inf }
 0x3bd   : > { %1122 = vmax.xlane.f32.xlu0 %v1121_v59 }
 0x3d3   : > { %1133 = vrot.lane.b32.xlu0 %v7436_v45, %s8438_s24  ;;  %s6026_s24 = scalar_lea.sflag [#allocation3], %s8489_s6 }
 0x3d7   : > { %1357 = vrot.lane.b32.xlu0 %v7400_v18, %s8434_s29 }
 0x3db   : > { %1355 = vrot.lane.b32.xlu0 %v7402_v20, %s8434_s29 }
 0x446   : > { %v1123_v60 = vpop.xlane.xlu0 %1122 }
 0x447   : > { %v1124_v61 = vsub.f32 %v1120_v57, %v1123_v60 }
 0x449   : > { %v1125_v62 = vmul.f32 1.442695, %v1124_v61 }
 0x44a   : > { %v1134_v63 = vpop.permute.xlu0 %1133 }
 0x44b   : > { %7036 = vpow2.f32 %v1125_v62  ;;  %6587 = vmatpush3.msra.mxu1 %v1134_v63 }
 0x44c   : > { %6596 = vmatprep.subr.mxu1 %v7177_v3 }
 0x44e   : > { %v1358_v9 = vpop.permute.xlu0 %1357 }
 0x452   : > { %v1356_v13 = vpop.permute.xlu0 %1355 }
 0x458   : > { %v7037_v0 = vpop.eup %7036 }
 0x459   : > { %v1127_v1 = vsel %vm880_vm2, %v7037_v0, 0.0 }
 0x45a   : > { %1128 = vadd.xlane.f32.xlu1 %v1127_v1 }
 0x46b   : > { %1445 = vrot.lane.b32.xlu1 %v7436_v45, %s8434_s29  ;;  %s8480_s29 = sld [smem:[#allocation19_spill]] }
 0x46f   : > { %1597 = vrot.lane.b32.xlu1 %v7400_v18, %s8436_s23 }
 0x4e3   : > { %v1129_v4 = vpop.xlane.xlu1 %1128 }
 0x4e4   : > { %7038 = vrcp.f32 %v1129_v4  ;;  %v6184_v4 = vld [vmem:[%s8471_s27 + $0xb8] sm:$0xff] }
 0x4e7   : > { %v1446_v8 = vpop.permute.xlu1 %1445 }
 0x4eb   : > { %v1598_v28 = vpop.permute.xlu1 %1597 }
 0x4f1   : > { %v7039_v5 = vpop.eup %7038 }
 0x4f2   : > { %v1131_v6 = vmul.f32 %v7039_v5, %v7037_v0  ;;  %v1956_v5 = vpack.c.bf16 %v6184_v4, %v6183_v2 }
 0x4f4   : > { %6589 = vmatmul.mubr.msk.f32.vlgmr.msra.gmra.mxu1 %vm880_vm2, %v1131_v6  ;;  %v6181_v6 = vld [vmem:[%s8471_s27 + $0xa0] sm:$0xff] }
 0x4f5   : > { %6597 = vmatpush3.msra.mxu1 %v6147_v7  ;;  %6598 = vmatprep.mubr.msk.f32.mxu1 %vm7178_vm0, %v7177_v3  ;;  %v6182_v7 = vld [vmem:[%s8471_s27 + $0xa8] sm:$0xff] }
 0x4f6   : > { %6606 = vmatprep.subr.mxu1 %v7177_v3 }
 0x4f8   : > { %6599 = vmatmul.mubr.msk.f32.vlgmr.msra.gmra.mxu1 %vm880_vm2, %v1038_v54 }
 0x4f9   : > { %6607 = vmatpush3.msra.mxu1 %v1446_v8  ;;  %6608 = vmatprep.mubr.msk.f32.mxu1 %vm7178_vm0, %v7177_v3  ;;  %v1955_v8 = vpack.c.bf16 %v6182_v7, %v6181_v6 }
 0x4fa   : > { %6616 = vmatprep.subr.mxu1 %v7177_v3 }
 0x5b4   : > { %v1205_v10 = vpop.f32.mrf.mxu1 }
 0x5b5   : > { %6594 = vmatmul.mubr.msk.f32.vlgmr.msra.gmra.mxu0 %vm880_vm2, %v1205_v10  ;;  %v695_v10 = vld [vmem:[%s688_s25 + $0x8] sm:$0xff] }
 0x5b6   : > { %6602 = vmatpush3.xpose.msk.msra.mxu0 %vm880_vm2, %v1358_v9  ;;  %v6590_v11 = vpop.f32.mrf.mxu1  ;;  %6603 = vmatprep.mubr.msk.f32.mxu0 %vm7178_vm0, %v7177_v3  ;;  %v694_v9 = vld [vmem:[%s688_s25] sm:$0xff] }
 0x5b7   : > { %6611 = vmatprep.subr.mxu0 %v7177_v3  ;;  %v696_v11 = vld [vmem:[%s8476_s5] sm:$0xff] }
 0x5b8   : > { %v1351_v14 = vpop.f32.mrf.mxu1 }
 0x5b9   : > { %6604 = vmatmul.mubr.msk.f32.vlgmr.msra.gmra.mxu0 %vm880_vm2, %v1356_v13  ;;  %v697_v13 = vld [vmem:[%s8476_s5 + $0x8] sm:$0xff]  ;;  %s8325_s5 = sshll.u32 %s8446_s4, 3 }
 0x5ba   : > { %v6600_v15 = vpop.f32.mrf.mxu1  ;;  %6613 = vmatprep.mubr.msk.f32.mxu0 %vm7178_vm0, %v7177_v3 }
 0x5bb   : > { %v700_v15 = vadd.f32 %v697_v13, %v695_v10 }
 0x675   : > { %v1278_v16 = vpop.f32.mrf.mxu0 }
 0x676   : > { %v1352_v46 = vadd.f32 %v1351_v14, %v1278_v16  ;;  %v699_v14 = vadd.f32 %v696_v11, %v694_v9 }
 0x677   : > { %v6595_v17 = vpop.f32.mrf.mxu0 }
 0x678   : > { %v7551_v16 = vpack.c.bf16 %v700_v15, %v699_v14  ;;  %v6178_v17 = vld [vmem:[%s8471_s27 + $0x90] sm:$0xff] }
 0x679   : > { %v1429_v18 = vpop.f32.mrf.mxu0 }
 0x67a   : > { %v1433_v19 = vmul.f32 0.35355338, %v1429_v18  ;;  %v6179_v18 = vld [vmem:[%s8471_s27 + $0x98] sm:$0xff] }
 0x67b   : > { %v6605_v21 = vpop.f32.mrf.mxu0 }
 0x67c   : > { %v1434_v22 = vsel %vm880_vm2, %v1433_v19, -inf  ;;  %v1904_v21 = vpack.c.bf16 %v6179_v18, %v6178_v17 }
 0x67d   : > { %1435 = vmax.xlane.f32.xlu0 %v1434_v22  ;;  %v6177_v22 = vld [vmem:[%s8471_s27 + $0x88] sm:$0xff] }
 0x706   : > { %v1436_v23 = vpop.xlane.xlu0 %1435 }
 0x707   : > { %v1437_v24 = vsub.f32 %v1433_v19, %v1436_v23  ;;  %v6176_v19 = vld [vmem:[%s8471_s27 + $0x80] sm:$0xff] }
 0x708   : > { %v1903_v23 = vpack.c.bf16 %v6177_v22, %v6176_v19 }
 0x709   : > { %v1438_v25 = vmul.f32 1.442695, %v1437_v24 }
 0x70b   : > { %7040 = vpow2.f32 %v1438_v25 }
 0x718   : > { %v7041_v26 = vpop.eup %7040 }
 0x719   : > { %v1440_v27 = vsel %vm880_vm2, %v7041_v26, 0.0 }
 0x71a   : > { %1441 = vadd.xlane.f32.xlu1 %v1440_v27 }
 0x72b   : > { %1595 = vrot.lane.b32.xlu1 %v7402_v20, %s8436_s23  ;;  %v6149_v20 = vld [vmem:[%s8471_s27 + $0x70] sm:$0xff] }
 0x72c   : > { %6612 = vmatpush3.msra.mxu0 %v6149_v20 }
 0x72d   : > { %6621 = vmatprep.subr.mxu0 %v7177_v3 }
 0x7a3   : > { %v1442_v29 = vpop.xlane.xlu1 %1441 }
 0x7a4   : > { %7042 = vrcp.f32 %v1442_v29 }
 0x7a7   : > { %v1596_v32 = vpop.permute.xlu1 %1595 }
 0x7b1   : > { %v7043_v30 = vpop.eup %7042 }
 0x7b2   : > { %v1444_v31 = vmul.f32 %v7043_v30, %v7041_v26  ;;  %v6175_v30 = vld [vmem:[%s8409_s10] ss:$0 sm:$0xff] }
 0x7b4   : > { %6609 = vmatmul.mubr.msk.f32.vlgmr.msra.gmra.mxu1 %vm880_vm2, %v1444_v31 }
 0x7b5   : > { %6617 = vmatpush3.xpose.msk.msra.mxu1 %vm880_vm2, %v1598_v28  ;;  %6618 = vmatprep.mubr.msk.f32.mxu1 %vm7178_vm0, %v7177_v3  ;;  %v6174_v28 = vld [vmem:[%s8408_s9] ss:$0 sm:$0xff] }
 0x7b6   : > { %6626 = vmatprep.subr.mxu1 %v7177_v3 }
 0x7b8   : > { %6619 = vmatmul.mubr.msk.f32.vlgmr.msra.gmra.mxu1 %vm880_vm2, %v1596_v32 }
 0x7b9   : > { %6628 = vmatprep.mubr.msk.f32.mxu1 %vm7178_vm0, %v7177_v3  ;;  %6627 = vmatpush3.msra.mxu1 %v6150_v52 }
 0x7ba   : > { %6639 = vmatprep.subr.bf16.mxu1 %v7177_v3 }
 0x874   : > { %v1517_v33 = vpop.f32.mrf.mxu1 }
 0x875   : > { %6614 = vmatmul.mubr.msk.f32.vlgmr.msra.gmra.mxu0 %vm880_vm2, %v1517_v33 }
 0x876   : > { %v6610_v34 = vpop.f32.mrf.mxu1  ;;  %6623 = vmatprep.mubr.msk.f32.mxu0 %vm7178_vm0, %v7177_v3 }
 0x877   : > { %v6198_v34 = vld [vmem:[%s8473_s2 + $0x5] ss:$0 sm:$0xff] }
 0x878   : > { %v1669_v35 = vpop.f32.mrf.mxu1 }
 0x879   : > { %v1673_v36 = vmul.f32 0.35355338, %v1669_v35 }
 0x87a   : > { %v6620_v37 = vpop.f32.mrf.mxu1 }
 0x87b   : > { %v1674_v38 = vsel %vm880_vm2, %v1673_v36, -inf }
 0x87c   : > { %1675 = vmax.xlane.f32.xlu0 %v1674_v38 }
 0x892   : > { %1685 = vrot.lane.b32.xlu0 %v7436_v45, %s8436_s23  ;;  %s8481_s23 = smov %s8480_s29 }
 0x905   : > { %v1676_v39 = vpop.xlane.xlu0 %1675 }
 0x906   : > { %v1677_v40 = vsub.f32 %v1673_v36, %v1676_v39 }
 0x908   : > { %v1678_v41 = vmul.f32 1.442695, %v1677_v40  ;;  %v6188_v40 = vld [vmem:[%s8471_s27 + $0xd0] sm:$0xff] }
 0x909   : > { %v1686_v42 = vpop.permute.xlu0 %1685 }
 0x90a   : > { %7044 = vpow2.f32 %v1678_v41  ;;  %6622 = vmatpush3.msra.mxu0 %v1686_v42  ;;  %v6189_v41 = vld [vmem:[%s8471_s27 + $0xd8] sm:$0xff]  ;;  %v6186_v42 = vld [vmem:[%s8471_s27 + $0xc0] sm:$0xff] }
 0x90b   : > { %6631 = vmatprep.subr.bf16.mxu0 %v7177_v3 }
 0x917   : > { %v7045_v43 = vpop.eup %7044 }
 0x918   : > { %v1680_v44 = vsel %vm880_vm2, %v7045_v43, 0.0 }
 0x919   : > { %1681 = vadd.xlane.f32.xlu1 %v1680_v44  ;;  %v6187_v44 = vld [vmem:[%s8471_s27 + $0xc8] sm:$0xff] }
 0x935   : > { %v1590_v47 = vpop.f32.mrf.mxu0 }
 0x936   : > { %v1594_v48 = vadd.f32 %v1590_v47, %v1352_v46  ;;  %v2008_v46 = vpack.c.bf16 %v6187_v44, %v6186_v42  ;;  %v7614_v47 = vpack.c.bf16 %v695_v10, %v694_v9 }
 0x937   : > { %v6615_v49 = vpop.f32.mrf.mxu0 }
 0x9a2   : > { %v1682_v50 = vpop.xlane.xlu1 %1681 }
 0x9a3   : > { %7046 = vrcp.f32 %v1682_v50  ;;  %v6196_v50 = vld [vmem:[%s8473_s2 + $0x4] ss:$0 sm:$0xff] }
 0x9b0   : > { %v7047_v51 = vpop.eup %7046 }
 0x9b1   : > { %v1684_v45 = vmul.f32 %v7047_v51, %v7045_v43  ;;  %v2009_v43 = vpack.c.bf16 %v6189_v41, %v6188_v40 }
 0x9b3   : > { %6624 = vmatmul.mubr.msk.f32.vlgmr.msra.gmra.mxu0 %vm880_vm2, %v1684_v45 }
 0x9b4   : > { %6635 = vmatprep.mubr.msk.bf16.mxu0 %vm7178_vm0, %v7177_v3  ;;  %6632 = vmatpush3.bf16.msra.mxu0 %v1904_v21 }
 0x9b5   : > { %6633 = vmatprep.subr.bf16.mxu0 %v7177_v3 }
 0x9b8   : > { %6634 = vmatpush3.bf16.msra.mxu0 %v1903_v23 }
 0x9b9   : > { %6647 = vmatprep.subr.bf16.mxu0 %v7177_v3 }
 0xa73   : > { %v1757_v53 = vpop.f32.mrf.mxu0 }
 0xa74   : > { %6629 = vmatmul.mubr.msk.f32.vlgmr.msra.gmra.mxu1 %vm880_vm2, %v1757_v53 }
 0xa75   : > { %v6625_v54 = vpop.f32.mrf.mxu0  ;;  %6643 = vmatprep.mubr.msk.bf16.mxu1 %vm7178_vm0, %v7177_v3  ;;  %6640 = vmatpush3.bf16.msra.mxu1 %v1956_v5 }
 0xa76   : > { %6641 = vmatprep.subr.bf16.mxu1 %v7177_v3 }
 0xa79   : > { %6642 = vmatpush3.bf16.msra.mxu1 %v1955_v8 }
 0xa7a   : > { %6655 = vmatprep.subr.mxu1 %v7177_v3 }
 0xa7c   : > { %6644 = vmatmul.mubr.msk.bf16.vlgmr.msra.gmra.mxu1 %vm737_vm1, %v7551_v16 }
 0xa7d   : > { %6659 = vmatprep.mubr.msk.f32.mxu1 %vm7178_vm0, %v7177_v3 }
 0xb34   : > { %v1830_v55 = vpop.f32.mrf.mxu1 }
 0xb35   : > { %v1834_v57 = vadd.f32 %v1830_v55, %v1594_v48 }
 0xb36   : > { %v6630_v58 = vpop.f32.mrf.mxu1 }
 0xb37   : > { %v1841_v59 = vadd.f32 %v6173_v56, %v1834_v57  ;;  %v6200_v56 = vld [vmem:[%s8473_s2 + $0x6] ss:$0 sm:$0xff] }
 0xb39   : > { %v1845_v60 = vsel %vm737_vm1, %v1841_v59, 0.0 }
 0xb3a   : > { %1846 = vadd.xlane.f32.xlu0 %v1845_v60 }
 0xb3c   : > { %v2000_v35 = vpop.f32.mrf.mxu1 }
 0xb3d   : > { %v7587_v36 = vadd.f32 %v6198_v34, %v2000_v35 }
 0xb3e   : > { %v6645_v37 = vpop.f32.mrf.mxu1 }
 0xb40   : > { %v2003_v38 = vpop.f32.mrf.mxu1 }
 0xb41   : > { %v7591_v39 = vadd.f32 %v6198_v34, %v2003_v38 }
 0xb43   : > { %6656 = vmatpush3.xpose.msk.msra.mxu1 %vm880_vm2, %v7591_v39 }
 0xb44   : > { %6657 = vmatprep.subr.mxu1 %v7177_v3 }
 0xb47   : > { %6658 = vmatpush3.xpose.msk.msra.mxu1 %vm880_vm2, %v7587_v36 }
 0xb48   : > { %6662 = vmatprep.subr.mxu1 %v7177_v3 }
 0xb50   : > { %2227 = vrot.lane.b32.xlu0 %v7587_v36, %s8477_s20 }
 0xbc3   : > { %v1847_v61 = vpop.xlane.xlu0 %1846 }
 0xbc4   : > { %v1849_v62 = vmul.f32 0.03125, %v1847_v61 }
 0xbc6   : > { %v1850_v63 = vsub.f32 %v1841_v59, %v1849_v62 }
 0xbc7   : > { %v2228_v49 = vpop.permute.xlu0 %2227 }
 0xbc8   : > { %v1851_v0 = vmul.f32 %v1850_v63, %v1850_v63 }
 0xbca   : > { %v1852_v1 = vsel %vm737_vm1, %v1851_v0, 0.0 }
 0xbcb   : > { %1853 = vadd.xlane.f32.xlu1 %v1852_v1 }
 0xbdc   : > { %2229 = vrot.lane.b32.xlu1 %v7591_v39, %s8477_s20 }
 0xc54   : > { %v1854_v24 = vpop.xlane.xlu1 %1853 }
 0xc55   : > { %v1855_v25 = vmul.f32 0.03125, %v1854_v24  ;;  %v6192_v24 = vld [vmem:[%s8471_s27 + $0xe8] sm:$0xff] }
 0xc57   : > { %v1856_v26 = vadd.f32 1e-05, %v1855_v25 }
 0xc58   : > { %v2230_v48 = vpop.permute.xlu1 %2229 }
 0xc59   : > { %7048 = vrsqrt.f32 %v1856_v26 }
 0xc66   : > { %v7049_v27 = vpop.eup %7048 }
 0xc67   : > { %v1858_v29 = vmul.f32 %v7049_v27, %v1850_v63 }
 0xc69   : > { %v1865_v31 = vmul.f32 %v6174_v28, %v1858_v29 }
 0xc6b   : > { %v7577_v32 = vadd.f32 %v6175_v30, %v1865_v31  ;;  %v6191_v30 = vld [vmem:[%s8471_s27 + $0xe0] sm:$0xff] }
 0xc6d   : > { %v1873_v20 = vadd.f32 %v7577_v32, %v7380_v12  ;;  %v6646_v12 = vpop.f32.mrf.mxu1 }
 0xc6f   : > { %v1902_v33 = vpack.c.bf16 %v1873_v20, %v1873_v20 }
 0xc71   : > { %6636 = vmatmul.mubr.msk.bf16.vlgmr.msra.gmra.mxu0 %vm737_vm1, %v1902_v33 }
 0xc72   : > { %6651 = vmatprep.mubr.msk.bf16.mxu0 %vm7178_vm0, %v7177_v3  ;;  %6648 = vmatpush3.bf16.msra.mxu0 %v2009_v43 }
 0xc73   : > { %6649 = vmatprep.subr.bf16.mxu0 %v7177_v3 }
 0xc76   : > { %6650 = vmatpush3.bf16.msra.mxu0 %v2008_v46 }
 0xc77   : > { %6669 = vmatprep.subr.mxu0 %v7177_v3 }
 0xc79   : > { %6652 = vmatmul.mubr.msk.bf16.vlgmr.msra.gmra.mxu0 %vm737_vm1, %v7614_v47 }
 0xc7a   : > { %6673 = vmatprep.mubr.msk.f32.mxu0 %vm7178_vm0, %v7177_v3  ;;  %6670 = vmatpush3.xpose.msk.msra.mxu0 %vm880_vm2, %v2230_v48 }
 0xc7b   : > { %6671 = vmatprep.subr.mxu0 %v7177_v3 }
 0xc7e   : > { %6672 = vmatpush3.xpose.msk.msra.mxu0 %vm880_vm2, %v2228_v49 }
 0xc7f   : > { %6683 = vmatprep.subr.mxu0 %v7177_v3 }
 0xd31   : > { %v1948_v51 = vpop.f32.mrf.mxu0 }
 0xd32   : > { %v1949_v45 = vadd.f32 %v6196_v50, %v1948_v51 }
 0xd33   : > { %v6637_v52 = vpop.f32.mrf.mxu0 }
 0xd34   : > { %2225 = vrot.lane.b32.xlu1 %v1949_v45, %s8477_s20  ;;  %6660 = vmatmul.mubr.msk.f32.vlgmr.msra.gmra.mxu1 %vm880_vm2, %v1949_v45 }
 0xd35   : > { %v1951_v53 = vpop.f32.mrf.mxu0  ;;  %6666 = vmatprep.mubr.msk.f32.mxu1 %vm7178_vm0, %v7177_v3 }
 0xd37   : > { %v6638_v54 = vpop.f32.mrf.mxu0 }
 0xd39   : > { %v2053_v55 = vpop.f32.mrf.mxu0 }
 0xd3a   : > { %v7635_v59 = vadd.f32 %v6200_v56, %v2053_v55 }
 0xd3b   : > { %v6653_v57 = vpop.f32.mrf.mxu0 }
 0xd3d   : > { %v2056_v58 = vpop.f32.mrf.mxu0 }
 0xd3e   : > { %v7637_v60 = vadd.f32 %v6200_v56, %v2056_v58 }
 0xd3f   : > { %v6654_v61 = vpop.f32.mrf.mxu0 }
 0xd40   : > { %6663 = vmatpush3.msra.mxu1 %v7637_v60 }
 0xd41   : > { %6664 = vmatprep.subr.mxu1 %v7177_v3 }
 0xd42   : > { %6665 = vmatpush3.msra.mxu1 %v7635_v59 }
 0xd43   : > { %6676 = vmatprep.subr.mxu1 %v7177_v3 }
 0xda6   : > { %v2226_v62 = vpop.permute.xlu1 %2225 }
 0xda7   : > { %6674 = vmatmul.mubr.msk.f32.vlgmr.msra.gmra.mxu0 %vm880_vm2, %v2226_v62 }
 0xda8   : > { %6685 = vmatprep.mubr.msk.f32.mxu0 %vm7178_vm0, %v7177_v3  ;;  %6684 = vmatpush3.msra.mxu0 %v6192_v24 }
 0xda9   : > { %6693 = vmatprep.subr.mxu0 %v7177_v3 }
 0xdf4   : > { %v2135_v63 = vpop.f32.mrf.mxu1 }
 0xdf5   : > { %v2139_v0 = vmul.f32 0.35355338, %v2135_v63 }
 0xdf6   : > { %v6661_v1 = vpop.f32.mrf.mxu1 }
 0xdf7   : > { %v2141_v2 = vsel %vm2140_vm3, %v2139_v0, -inf }
 0xdf8   : > { %2142 = vmax.xlane.f32.xlu1 %v2141_v2 }
 0xe67   : > { %v2303_v4 = vpop.f32.mrf.mxu0 }
 0xe68   : > { %v2307_v5 = vmul.f32 0.35355338, %v2303_v4 }
 0xe69   : > { %v6675_v6 = vpop.f32.mrf.mxu0 }
 0xe6a   : > { %v2308_v7 = vsel %vm2140_vm3, %v2307_v5, -inf  ;;  %v6193_v6 = vld [vmem:[%s8471_s27 + $0xf0] sm:$0xff] }
 0xe6b   : > { %2309 = vmax.xlane.f32.xlu0 %v2308_v7 }
 0xe81   : > { %2321 = vrot.lane.b32.xlu0 %v7635_v59, %s8477_s20  ;;  %v2143_v8 = vpop.xlane.xlu1 %2142 }
 0xe82   : > { %v2144_v9 = vsub.f32 %v2139_v0, %v2143_v8 }
 0xe84   : > { %v2145_v10 = vmul.f32 1.442695, %v2144_v9 }
 0xe85   : > { %2797 = vrot.lane.b32.xlu0 %v7591_v39, %s8478_s21 }
 0xe86   : > { %7050 = vpow2.f32 %v2145_v10 }
 0xe89   : > { %2793 = vrot.lane.b32.xlu0 %v1949_v45, %s8478_s21 }
 0xe93   : > { %v7051_v11 = vpop.eup %7050 }
 0xe94   : > { %v2147_v13 = vsel %vm2140_vm3, %v7051_v11, 0.0 }
 0xe95   : > { %2148 = vadd.xlane.f32.xlu1 %v2147_v13 }
 0xef4   : > { %v2310_v14 = vpop.xlane.xlu0 %2309 }
 0xef5   : > { %v2311_v15 = vsub.f32 %v2307_v5, %v2310_v14  ;;  %v6194_v14 = vld [vmem:[%s8471_s27 + $0xf8] sm:$0xff] }
 0xef7   : > { %v2312_v17 = vmul.f32 1.442695, %v2311_v15 }
 0xef8   : > { %v2322_v27 = vpop.permute.xlu0 %2321 }
 0xef9   : > { %7052 = vpow2.f32 %v2312_v17 }
 0xefc   : > { %v2798_v38 = vpop.permute.xlu0 %2797 }
 0xf00   : > { %v2794_v12 = vpop.permute.xlu0 %2793 }
 0xf06   : > { %v7053_v18 = vpop.eup %7052 }
 0xf07   : > { %v2314_v19 = vsel %vm2140_vm3, %v7053_v18, 0.0 }
 0xf08   : > { %2315 = vadd.xlane.f32.xlu1 %v2314_v19 }
 0xf19   : > { %2323 = vrot.lane.b32.xlu1 %v7637_v60, %s8477_s20 }
 0xf1d   : > { %2550 = vrot.lane.b32.xlu1 %v7591_v39, %s8479_s18 }
 0xf1e   : > { %v2149_v21 = vpop.xlane.xlu1 %2148 }
 0xf1f   : > { %7054 = vrcp.f32 %v2149_v21 }
 0xf21   : > { %2548 = vrot.lane.b32.xlu1 %v7587_v36, %s8479_s18 }
 0xf25   : > { %2546 = vrot.lane.b32.xlu1 %v1949_v45, %s8479_s18 }
 0xf29   : > { %2795 = vrot.lane.b32.xlu1 %v7587_v36, %s8478_s21 }
 0xf2c   : > { %v7055_v22 = vpop.eup %7054 }
 0xf2d   : > { %v2151_v23 = vmul.f32 %v7055_v22, %v7051_v11 }
 0xf2f   : > { %6667 = vmatmul.mubr.msk.f32.vlgmr.msra.gmra.mxu1 %vm2140_vm3, %v2151_v23  ;;  %v6222_v23 = vld [vmem:[%s8473_s2 + $0x7] ss:$0 sm:$0xff] }
 0xf30   : > { %6680 = vmatprep.mubr.msk.f32.mxu1 %vm7178_vm0, %v7177_v3 }
 0xf91   : > { %v2316_v25 = vpop.xlane.xlu1 %2315 }
 0xf92   : > { %7056 = vrcp.f32 %v2316_v25 }
 0xf95   : > { %v2324_v26 = vpop.permute.xlu1 %2323 }
 0xf96   : > { %6677 = vmatpush3.msra.mxu1 %v2324_v26 }
 0xf97   : > { %6678 = vmatprep.subr.mxu1 %v7177_v3 }
 0xf98   : > { %6679 = vmatpush3.msra.mxu1 %v2322_v27 }
 0xf99   : > { %6688 = vmatprep.subr.mxu1 %v7177_v3  ;;  %v2551_v33 = vpop.permute.xlu1 %2550 }
 0xf9d   : > { %v2549_v35 = vpop.permute.xlu1 %2548 }
 0xf9f   : > { %v7057_v28 = vpop.eup %7056 }
 0xfa0   : > { %v2318_v29 = vmul.f32 %v7057_v28, %v7053_v18 }
 0xfa1   : > { %v2547_v37 = vpop.permute.xlu1 %2546 }
 0xfa2   : > { %6681 = vmatmul.mubr.msk.f32.vlgmr.msra.gmra.mxu1 %vm2140_vm3, %v2318_v29 }
 0xfa3   : > { %6689 = vmatpush3.msra.mxu1 %v6191_v30  ;;  %6690 = vmatprep.mubr.msk.f32.mxu1 %vm7178_vm0, %v7177_v3 }
 0xfa4   : > { %6700 = vmatprep.subr.mxu1 %v7177_v3 }
 0xfa5   : > { %v2796_v39 = vpop.permute.xlu1 %2795 }
 0xfef   : > { %v2221_v31 = vpop.f32.mrf.mxu1 }
 0xff0   : > { %6691 = vmatmul.mubr.msk.f32.vlgmr.msra.gmra.mxu1 %vm880_vm2, %v2221_v31 }
 0xff1   : > { %v6668_v20 = vpop.f32.mrf.mxu1  ;;  %6704 = vmatprep.mubr.msk.f32.mxu1 %vm7178_vm0, %v7177_v3 }
0x1062   : > { %v2396_v34 = vpop.f32.mrf.mxu1 }
0x1063   : > { %6686 = vmatmul.mubr.msk.f32.vlgmr.msra.gmra.mxu0 %vm880_vm2, %v2396_v34 }
0x1064   : > { %6694 = vmatpush3.xpose.msk.msra.mxu0 %vm880_vm2, %v2551_v33  ;;  %v6682_v36 = vpop.f32.mrf.mxu1  ;;  %6697 = vmatprep.mubr.msk.f32.mxu0 %vm7178_vm0, %v7177_v3 }
0x1065   : > { %6695 = vmatprep.subr.mxu0 %v7177_v3  ;;  %v3082_v36 = vld [vmem:[%s8481_s23 + $0x18] sm:$0xff] }
0x1068   : > { %6696 = vmatpush3.xpose.msk.msra.mxu0 %vm880_vm2, %v2549_v35  ;;  %v3081_v35 = vld [vmem:[%s8480_s29 + $0x10] sm:$0xff] }
0x1069   : > { %6712 = vmatprep.subr.mxu0 %v7177_v3 }
0x106b   : > { %6698 = vmatmul.mubr.msk.f32.vlgmr.msra.gmra.mxu0 %vm880_vm2, %v2547_v37  ;;  %v3086_v37 = vpack.c.bf16 %v3082_v36, %v3081_v35 }
0x106c   : > { %6713 = vmatpush3.xpose.msk.msra.mxu0 %vm880_vm2, %v2798_v38  ;;  %6716 = vmatprep.mubr.msk.f32.mxu0 %vm7178_vm0, %v7177_v3  ;;  %v3080_v38 = vld [vmem:[%s8481_s23 + $0x8] sm:$0xff] }
0x106d   : > { %6714 = vmatprep.subr.mxu0 %v7177_v3 }
0x1070   : > { %6715 = vmatpush3.xpose.msk.msra.mxu0 %vm880_vm2, %v2796_v39 }
0x1071   : > { %6731 = vmatprep.subr.bf16.mxu0 %v7177_v3 }
0x1073   : > { %6717 = vmatmul.mubr.msk.f32.vlgmr.msra.gmra.mxu0 %vm880_vm2, %v2794_v12  ;;  %v3143_v12 = vld [vmem:[%s8482_s7 + $0x30] sm:$0xff] }
0x1074   : > { %6735 = vmatprep.mubr.msk.bf16.mxu0 %vm7178_vm0, %v7177_v3  ;;  %6732 = vmatpush3.bf16.msra.mxu0 %v3086_v37 }
0x1075   : > { %6733 = vmatprep.subr.bf16.mxu0 %v7177_v3 }
0x10b0   : > { %v7700_v40 = vpop.f32.mrf.mxu1 }
0x10b2   : > { %v6692_v41 = vpop.f32.mrf.mxu1 }
0x10b3   : > { %v3141_v41 = vld [vmem:[%s8482_s7 + $0x20] sm:$0xff] }
0x1123   : > { %v7702_v42 = vpop.f32.mrf.mxu0 }
0x1124   : > { %v2543_v15 = vadd.f32 %v7700_v40, %v7702_v42  ;;  %v3144_v40 = vld [vmem:[%s8482_s7 + $0x38] sm:$0xff] }
0x1125   : > { %v6687_v43 = vpop.f32.mrf.mxu0  ;;  %v3150_v42 = vpack.c.bf16 %v3144_v40, %v3143_v12  ;;  %v6234_v12 = vld [vmem:[%s8409_s10 + $0x2] ss:$0 sm:$0xff] }
0x1126   : > { %v3142_v43 = vld [vmem:[%s8482_s7 + $0x28] sm:$0xff] }
0x112b   : > { %v2624_v44 = vpop.f32.mrf.mxu0 }
0x112c   : > { %v2628_v46 = vmul.f32 0.35355338, %v2624_v44  ;;  %v3149_v44 = vpack.c.bf16 %v3142_v43, %v3141_v41  ;;  %v6243_v43 = vld [vmem:[%s8471_s27 + $0x138] sm:$0xff] }
0x112d   : > { %v6699_v48 = vpop.f32.mrf.mxu0 }
0x112e   : > { %v2629_v49 = vsel %vm2140_vm3, %v2628_v46, -inf }
0x112f   : > { %2630 = vmax.xlane.f32.xlu1 %v2629_v49 }
0x1133   : > { %v2871_v50 = vpop.f32.mrf.mxu0 }
0x1134   : > { %v2875_v45 = vmul.f32 0.35355338, %v2871_v50 }
0x1135   : > { %v6718_v51 = vpop.f32.mrf.mxu0 }
0x1136   : > { %v2876_v52 = vsel %vm2140_vm3, %v2875_v45, -inf  ;;  %v6225_v51 = vld [vmem:[%s8408_s9 + $0x1] ss:$0 sm:$0xff] }
0x1140   : > { %2640 = vrot.lane.b32.xlu1 %v7635_v59, %s8479_s18 }
0x1164   : > { %2877 = vmax.xlane.f32.xlu1 %v2876_v52  ;;  %v6226_v52 = vld [vmem:[%s8409_s10 + $0x1] ss:$0 sm:$0xff] }
0x1175   : > { %2887 = vrot.lane.b32.xlu1 %v7635_v59, %s8478_s21 }
0x11b8   : > { %v2631_v53 = vpop.xlane.xlu1 %2630 }
0x11b9   : > { %v2632_v54 = vsub.f32 %v2628_v46, %v2631_v53 }
0x11bb   : > { %v2633_v55 = vmul.f32 1.442695, %v2632_v54 }
0x11bc   : > { %v2641_v58 = vpop.permute.xlu1 %2640 }
0x11bd   : > { %7058 = vpow2.f32 %v2633_v55 }
0x11ca   : > { %v7059_v56 = vpop.eup %7058 }
0x11cb   : > { %v2635_v57 = vsel %vm2140_vm3, %v7059_v56, 0.0 }
0x11cc   : > { %2636 = vadd.xlane.f32.xlu0 %v2635_v57  ;;  %v3140_v57 = vld [vmem:[%s8482_s7 + $0x18] sm:$0xff] }
0x11e2   : > { %2642 = vrot.lane.b32.xlu0 %v7637_v60, %s8479_s18 }
0x11ed   : > { %v2878_v61 = vpop.xlane.xlu1 %2877 }
0x11ee   : > { %v2879_v62 = vsub.f32 %v2875_v45, %v2878_v61  ;;  %v3137_v61 = vld [vmem:[%s8482_s7] sm:$0xff] }
0x11f0   : > { %v2880_v63 = vmul.f32 1.442695, %v2879_v62  ;;  %v3138_v62 = vld [vmem:[%s8482_s7 + $0x8] sm:$0xff] }
0x11f1   : > { %v2888_v11 = vpop.permute.xlu1 %2887 }
0x11f2   : > { %7060 = vpow2.f32 %v2880_v63  ;;  %v3147_v63 = vpack.c.bf16 %v3138_v62, %v3137_v61 }
0x11ff   : > { %v7061_v0 = vpop.eup %7060 }
0x1200   : > { %v2882_v1 = vsel %vm2140_vm3, %v7061_v0, 0.0 }
0x1201   : > { %2883 = vadd.xlane.f32.xlu0 %v2882_v1 }
0x1217   : > { %2889 = vrot.lane.b32.xlu0 %v7637_v60, %s8478_s21 }
0x1255   : > { %v2637_v59 = vpop.xlane.xlu0 %2636 }
0x1256   : > { %7062 = vrcp.f32 %v2637_v59 }
0x1259   : > { %v2643_v2 = vpop.permute.xlu0 %2642 }
0x125a   : > { %6701 = vmatpush3.msra.mxu1 %v2643_v2 }
0x125b   : > { %6702 = vmatprep.subr.mxu1 %v7177_v3 }
0x125c   : > { %6703 = vmatpush3.msra.mxu1 %v2641_v58 }
0x125d   : > { %6707 = vmatprep.subr.mxu1 %v7177_v3 }
0x1263   : > { %v7063_v4 = vpop.eup %7062 }
0x1264   : > { %v2639_v5 = vmul.f32 %v7063_v4, %v7059_v56  ;;  %v3139_v56 = vld [vmem:[%s8482_s7 + $0x10] sm:$0xff] }
0x1265   : > { %v3148_v58 = vpack.c.bf16 %v3140_v57, %v3139_v56 }
0x1266   : > { %6705 = vmatmul.mubr.msk.f32.vlgmr.msra.gmra.mxu1 %vm2140_vm3, %v2639_v5 }
0x1267   : > { %6708 = vmatpush3.msra.mxu1 %v6193_v6  ;;  %6709 = vmatprep.mubr.msk.f32.mxu1 %vm7178_vm0, %v7177_v3 }
0x1268   : > { %6719 = vmatprep.subr.mxu1 %v7177_v3 }
0x128a   : > { %v2884_v60 = vpop.xlane.xlu0 %2883 }
0x128b   : > { %7064 = vrcp.f32 %v2884_v60 }
0x128e   : > { %v2890_v9 = vpop.permute.xlu0 %2889 }
0x1298   : > { %v7065_v7 = vpop.eup %7064 }
0x1299   : > { %v2886_v13 = vmul.f32 %v7065_v7, %v7061_v0  ;;  %v6227_v0 = vld [vmem:[%s8483_s30] ss:$0 sm:$0xff] }
0x129a   : > { %v6229_v7 = vld [vmem:[%s8407_s8] ss:$0 sm:$0xff] }
0x1326   : > { %v2715_v8 = vpop.f32.mrf.mxu1 }
0x1327   : > { %6710 = vmatmul.mubr.msk.f32.vlgmr.msra.gmra.mxu1 %vm880_vm2, %v2715_v8 }
0x1328   : > { %6720 = vmatpush3.msra.mxu1 %v2890_v9  ;;  %v6706_v10 = vpop.f32.mrf.mxu1  ;;  %6723 = vmatprep.mubr.msk.f32.mxu1 %vm7178_vm0, %v7177_v3 }
0x1329   : > { %6721 = vmatprep.subr.mxu1 %v7177_v3 }
0x132a   : > { %6722 = vmatpush3.msra.mxu1 %v2888_v11 }
0x132b   : > { %6724 = vmatmul.mubr.msk.f32.vlgmr.msra.gmra.mxu1 %vm2140_vm3, %v2886_v13  ;;  %6726 = vmatprep.subr.mxu1 %v7177_v3 }
0x132c   : > { %6728 = vmatprep.mubr.msk.f32.mxu1 %vm7178_vm0, %v7177_v3  ;;  %6727 = vmatpush3.msra.mxu1 %v6194_v14 }
0x132d   : > { %6739 = vmatprep.subr.bf16.mxu1 %v7177_v3 }
0x13e7   : > { %v2788_v17 = vpop.f32.mrf.mxu1 }
0x13e8   : > { %v2792_v18 = vadd.f32 %v2788_v17, %v2543_v15 }
0x13e9   : > { %v6711_v19 = vpop.f32.mrf.mxu1 }
0x13eb   : > { %v2962_v21 = vpop.f32.mrf.mxu1 }
0x13ec   : > { %6729 = vmatmul.mubr.msk.f32.vlgmr.msra.gmra.mxu1 %vm880_vm2, %v2962_v21 }
0x13ed   : > { %v6725_v22 = vpop.f32.mrf.mxu1  ;;  %6747 = vmatprep.mubr.msk.bf16.mxu1 %vm7178_vm0, %v7177_v3  ;;  %6740 = vmatpush3.bf16.msra.mxu1 %v3150_v42  ;;  %v6242_v42 = vld [vmem:[%s8471_s27 + $0x130] sm:$0xff] }
0x13ee   : > { %6741 = vmatprep.subr.bf16.mxu1 %v7177_v3 }
0x13f1   : > { %6742 = vmatpush3.bf16.msra.mxu1 %v3149_v44 }
0x13f2   : > { %6743 = vmatprep.subr.bf16.mxu1 %v7177_v3 }
0x13f5   : > { %6744 = vmatpush3.bf16.msra.mxu1 %v3148_v58 }
0x13f6   : > { %6745 = vmatprep.subr.bf16.mxu1 %v7177_v3 }
0x13f9   : > { %6746 = vmatpush3.bf16.msra.mxu1 %v3147_v63 }
0x13fa   : > { %6767 = vmatprep.subr.bf16.mxu1 %v7177_v3 }
0x14ac   : > { %v3035_v24 = vpop.f32.mrf.mxu1 }
0x14ad   : > { %v3039_v25 = vadd.f32 %v3035_v24, %v2792_v18  ;;  %v6248_v24 = vld [vmem:[%s8471_s27 + $0x158] sm:$0xff] }
0x14ae   : > { %v6730_v26 = vpop.f32.mrf.mxu1 }
0x14af   : > { %v3046_v27 = vadd.f32 %v6222_v23, %v3039_v25  ;;  %v6247_v23 = vld [vmem:[%s8471_s27 + $0x150] sm:$0xff] }
0x14b0   : > { %v3364_v25 = vpack.c.bf16 %v6248_v24, %v6247_v23  ;;  %v6237_v26 = vld [vmem:[%s8471_s27 + $0x110] sm:$0xff] }
0x14b1   : > { %v3047_v28 = vadd.f32 %v3046_v27, %v7577_v32  ;;  %v3079_v32 = vld [vmem:[%s8481_s23] sm:$0xff]  ;;  %v6238_v27 = vld [vmem:[%s8471_s27 + $0x118] sm:$0xff] }
0x14b2   : > { %v3085_v39 = vpack.c.bf16 %v3080_v38, %v3079_v32  ;;  %v6233_v38 = vld [vmem:[%s8408_s9 + $0x2] ss:$0 sm:$0xff] }
0x14b3   : > { %v3052_v29 = vsel %vm737_vm1, %v3047_v28, 0.0 }
0x14b4   : > { %3053 = vadd.xlane.f32.xlu1 %v3052_v29  ;;  %6734 = vmatpush3.bf16.msra.mxu0 %v3085_v39  ;;  %v6245_v29 = vld [vmem:[%s8471_s27 + $0x140] sm:$0xff] }
0x14b5   : > { %6751 = vmatprep.subr.bf16.mxu0 %v7177_v3 }
0x153d   : > { %v3054_v30 = vpop.xlane.xlu1 %3053 }
0x153e   : > { %v3055_v31 = vmul.f32 0.03125, %v3054_v30  ;;  %v6246_v30 = vld [vmem:[%s8471_s27 + $0x148] sm:$0xff] }
0x1540   : > { %v3056_v20 = vsub.f32 %v3047_v28, %v3055_v31  ;;  %v3264_v28 = vpack.c.bf16 %v6238_v27, %v6237_v26  ;;  %v6235_v31 = vld [vmem:[%s8471_s27 + $0x100] sm:$0xff] }
0x1542   : > { %v3057_v33 = vmul.f32 %v3056_v20, %v3056_v20 }
0x1544   : > { %v3058_v34 = vsel %vm737_vm1, %v3057_v33, 0.0  ;;  %v6236_v33 = vld [vmem:[%s8471_s27 + $0x108] sm:$0xff] }
0x1545   : > { %3059 = vadd.xlane.f32.xlu0 %v3058_v34  ;;  %v3263_v34 = vpack.c.bf16 %v6236_v33, %v6235_v31 }
0x15ce   : > { %v3060_v46 = vpop.xlane.xlu0 %3059 }
0x15cf   : > { %v3061_v48 = vmul.f32 0.03125, %v3060_v46  ;;  %v7857_v46 = vld [vmem:[%s8472_s26] sm:$0xff] }
0x15d1   : > { %v3062_v49 = vadd.f32 1e-05, %v3061_v48 }
0x15d3   : > { %7066 = vrsqrt.f32 %v3062_v49  ;;  %v3315_v49 = vpack.c.bf16 %v6243_v43, %v6242_v42 }
0x15e0   : > { %v7067_v50 = vpop.eup %7066 }
0x15e1   : > { %v3064_v45 = vmul.f32 %v7067_v50, %v3056_v20  ;;  %v3363_v20 = vpack.c.bf16 %v6246_v30, %v6245_v29 }
0x15e3   : > { %v3071_v53 = vmul.f32 %v6225_v51, %v3064_v45  ;;  %v6240_v51 = vld [vmem:[%s8471_s27 + $0x120] sm:$0xff]  ;;  %v6241_v45 = vld [vmem:[%s8471_s27 + $0x128] sm:$0xff] }
0x15e5   : > { %v3078_v54 = vadd.f32 %v6226_v52, %v3071_v53  ;;  %v3314_v52 = vpack.c.bf16 %v6241_v45, %v6240_v51  ;;  %v6259_v53 = vld [vmem:[%s8473_s2 + $0xa] ss:$0 sm:$0xff] }
0x15e7   : > { %v3084_v55 = vpack.c.bf16 %v3078_v54, %v3078_v54 }
0x15e9   : > { %6736 = vmatmul.mubr.msk.bf16.vlgmr.msra.gmra.mxu0 %vm737_vm1, %v3084_v55  ;;  %v6255_v55 = vld [vmem:[%s8473_s2 + $0x8] ss:$0 sm:$0xff] }
0x15ea   : > { %6755 = vmatprep.mubr.msk.bf16.mxu0 %vm7178_vm0, %v7177_v3  ;;  %6752 = vmatpush3.bf16.msra.mxu0 %v3264_v28 }
0x15eb   : > { %6753 = vmatprep.subr.bf16.mxu0 %v7177_v3 }
0x15ee   : > { %6754 = vmatpush3.bf16.msra.mxu0 %v3263_v34 }
0x15ef   : > { %6759 = vmatprep.subr.bf16.mxu0 %v7177_v3 }
0x16a9   : > { %v3130_v1 = vpop.f32.mrf.mxu0 }
0x16aa   : > { %v3131_v59 = vadd.f32 %v6227_v0, %v3130_v1 }
0x16ab   : > { %v6737_v2 = vpop.f32.mrf.mxu0 }
0x16ac   : > { %v3136_v4 = vmax.f32 %v3131_v59, 0.0  ;;  %v6257_v2 = vld [vmem:[%s8473_s2 + $0x9] ss:$0 sm:$0xff] }
0x16ad   : > { %v3133_v5 = vpop.f32.mrf.mxu0 }
0x16ae   : > { %v3146_v6 = vpack.c.bf16 %v3136_v4, %v3136_v4 }
0x16af   : > { %v6738_v60 = vpop.f32.mrf.mxu0 }
0x16b0   : > { %6748 = vmatmul.mubr.msk.bf16.vlgmr.msra.gmra.mxu1 %vm3157_vm4, %v3146_v6 }
0x16b1   : > { %6771 = vmatprep.mubr.msk.bf16.mxu1 %vm7178_vm0, %v7177_v3  ;;  %6768 = vmatpush3.bf16.msra.mxu1 %v3364_v25 }
0x16b2   : > { %6769 = vmatprep.subr.bf16.mxu1 %v7177_v3 }
0x16b5   : > { %6770 = vmatpush3.bf16.msra.mxu1 %v3363_v20 }
0x16b6   : > { %6780 = vmatprep.subr.mxu1 %v7177_v3 }
0x1770   : > { %v3195_v8 = vpop.f32.mrf.mxu1 }
0x1771   : > { %v3196_v9 = vadd.f32 %v6229_v7, %v3195_v8 }
0x1772   : > { %v6749_v10 = vpop.f32.mrf.mxu1 }
0x1773   : > { %v3201_v11 = vadd.f32 %v3196_v9, %v3078_v54 }
0x1774   : > { %v3198_v13 = vpop.f32.mrf.mxu1 }
0x1775   : > { %v3206_v14 = vsel %vm737_vm1, %v3201_v11, 0.0 }
0x1776   : > { %3207 = vadd.xlane.f32.xlu0 %v3206_v14  ;;  %v6750_v15 = vpop.f32.mrf.mxu1 }
0x17ff   : > { %v3208_v17 = vpop.xlane.xlu0 %3207 }
0x1800   : > { %v3209_v18 = vmul.f32 0.03125, %v3208_v17 }
0x1802   : > { %v3210_v19 = vsub.f32 %v3201_v11, %v3209_v18 }
0x1804   : > { %v3211_v21 = vmul.f32 %v3210_v19, %v3210_v19 }
0x1806   : > { %v3212_v22 = vsel %vm737_vm1, %v3211_v21, 0.0 }
0x1807   : > { %3213 = vadd.xlane.f32.xlu1 %v3212_v22 }
0x1890   : > { %v3214_v35 = vpop.xlane.xlu1 %3213 }
0x1891   : > { %v3215_v36 = vmul.f32 0.03125, %v3214_v35  ;;  %v6251_v35 = vld [vmem:[%s8471_s27 + $0x168] sm:$0xff] }
0x1893   : > { %v3216_v37 = vadd.f32 1e-05, %v3215_v36 }
0x1895   : > { %7068 = vrsqrt.f32 %v3216_v37 }
0x18a2   : > { %v7069_v32 = vpop.eup %7068 }
0x18a3   : > { %v3218_v39 = vmul.f32 %v7069_v32, %v3210_v19 }
0x18a5   : > { %v3225_v40 = vmul.f32 %v6233_v38, %v3218_v39  ;;  %v6250_v38 = vld [vmem:[%s8471_s27 + $0x160] sm:$0xff] }
0x18a7   : > { %v7844_v41 = vadd.f32 %v6234_v12, %v3225_v40 }
0x18a9   : > { %v3362_v44 = vpack.c.bf16 %v7844_v41, %v7844_v41  ;;  %v3233_v48 = vadd.f32 %v7857_v46, %v7844_v41 }
0x18ab   : > { %6772 = vmatmul.mubr.msk.bf16.vlgmr.msra.gmra.mxu1 %vm737_vm1, %v3362_v44  ;;  %v3262_v50 = vpack.c.bf16 %v3233_v48, %v3233_v48 }
0x18ac   : > { %6782 = vmatprep.mubr.msk.f32.mxu1 %vm7178_vm0, %v7177_v3 }
0x18ad   : > { %6756 = vmatmul.mubr.msk.bf16.vlgmr.msra.gmra.mxu0 %vm737_vm1, %v3262_v50 }
0x18ae   : > { %6760 = vmatpush3.bf16.msra.mxu0 %v3315_v49  ;;  %6763 = vmatprep.mubr.msk.bf16.mxu0 %vm7178_vm0, %v7177_v3 }
0x18af   : > { %6761 = vmatprep.subr.bf16.mxu0 %v7177_v3 }
0x18b2   : > { %6762 = vmatpush3.bf16.msra.mxu0 %v3314_v52 }
0x18b3   : > { %6775 = vmatprep.subr.mxu0 %v7177_v3 }
0x18b5   : > { %6764 = vmatmul.mubr.msk.bf16.vlgmr.msra.gmra.mxu0 %vm737_vm1, %v3262_v50 }
0x18b6   : > { %6777 = vmatprep.mubr.msk.f32.mxu0 %vm7178_vm0, %v7177_v3 }
0x196b   : > { %v3408_v54 = vpop.f32.mrf.mxu1 }
0x196c   : > { %v7884_v56 = vadd.f32 %v6259_v53, %v3408_v54 }
0x196d   : > { %v3308_v57 = vpop.f32.mrf.mxu0  ;;  %v6773_v58 = vpop.f32.mrf.mxu1 }
0x196e   : > { %v7886_v61 = vadd.f32 %v6255_v55, %v3308_v57  ;;  %6781 = vmatpush3.msra.mxu1 %v7884_v56 }
0x196f   : > { %v6757_v62 = vpop.f32.mrf.mxu0  ;;  %v3411_v63 = vpop.f32.mrf.mxu1  ;;  %6790 = vmatprep.subr.mxu1 %v7177_v3 }
0x1970   : > { %3575 = vrot.lane.b32.xlu1 %v7886_v61, %s8477_s20 }
0x1971   : > { %v3311_v0 = vpop.f32.mrf.mxu0  ;;  %v6774_v1 = vpop.f32.mrf.mxu1 }
0x1973   : > { %v6758_v59 = vpop.f32.mrf.mxu0 }
0x1975   : > { %v3356_v4 = vpop.f32.mrf.mxu0 }
0x1976   : > { %v7895_v5 = vadd.f32 %v6257_v2, %v3356_v4 }
0x1977   : > { %v6765_v6 = vpop.f32.mrf.mxu0 }
0x1978   : > { %3577 = vrot.lane.b32.xlu0 %v7895_v5, %s8477_s20  ;;  %6776 = vmatpush3.xpose.msk.msra.mxu0 %vm880_vm2, %v7895_v5 }
0x1979   : > { %v3359_v60 = vpop.f32.mrf.mxu0  ;;  %6785 = vmatprep.subr.mxu0 %v7177_v3 }
0x197b   : > { %v6766_v7 = vpop.f32.mrf.mxu0  ;;  %6778 = vmatmul.mubr.msk.f32.vlgmr.msra.gmra.mxu0 %vm880_vm2, %v7886_v61 }
0x197c   : > { %6787 = vmatprep.mubr.msk.f32.mxu0 %vm7178_vm0, %v7177_v3 }
0x19e2   : > { %v3576_v9 = vpop.permute.xlu1 %3575 }
0x19ea   : > { %v3578_v8 = vpop.permute.xlu0 %3577 }
0x19eb   : > { %6786 = vmatpush3.xpose.msk.msra.mxu0 %vm880_vm2, %v3578_v8 }
0x19ec   : > { %6795 = vmatprep.subr.mxu0 %v7177_v3 }
0x19ee   : > { %6788 = vmatmul.mubr.msk.f32.vlgmr.msra.gmra.mxu0 %vm880_vm2, %v3576_v9 }
0x19ef   : > { %6797 = vmatprep.mubr.msk.f32.mxu0 %vm7178_vm0, %v7177_v3  ;;  %6796 = vmatpush3.msra.mxu0 %v6251_v35 }
0x19f0   : > { %6805 = vmatprep.subr.mxu0 %v7177_v3 }
0x1a3b   : > { %v3486_v10 = vpop.f32.mrf.mxu0 }
0x1a3c   : > { %v3490_v11 = vmul.f32 0.35355338, %v3486_v10 }
0x1a3d   : > { %v6779_v13 = vpop.f32.mrf.mxu0 }
0x1a3e   : > { %v3491_v14 = vsel %vm880_vm2, %v3490_v11, -inf }
0x1a3f   : > { %3492 = vmax.xlane.f32.xlu1 %v3491_v14 }
0x1aae   : > { %v3649_v15 = vpop.f32.mrf.mxu0 }
0x1aaf   : > { %v3653_v17 = vmul.f32 0.35355338, %v3649_v15 }
0x1ab0   : > { %v6789_v18 = vpop.f32.mrf.mxu0 }
0x1ab1   : > { %v3654_v19 = vsel %vm880_vm2, %v3653_v17, -inf }
0x1ab2   : > { %3655 = vmax.xlane.f32.xlu0 %v3654_v19 }
0x1ac8   : > { %v3493_v21 = vpop.xlane.xlu1 %3492 }
0x1ac9   : > { %v3494_v22 = vsub.f32 %v3490_v11, %v3493_v21 }
0x1acb   : > { %v3495_v23 = vmul.f32 1.442695, %v3494_v22 }
0x1acd   : > { %7070 = vpow2.f32 %v3495_v23 }
0x1ada   : > { %v7071_v24 = vpop.eup %7070 }
0x1adb   : > { %v3497_v25 = vsel %vm880_vm2, %v7071_v24, 0.0 }
0x1adc   : > { %3498 = vadd.xlane.f32.xlu0 %v3497_v25 }
0x1af2   : > { %3666 = vrot.lane.b32.xlu0 %v7884_v56, %s8477_s20 }
0x1b3b   : > { %v3656_v26 = vpop.xlane.xlu0 %3655 }
0x1b3c   : > { %v3657_v27 = vsub.f32 %v3653_v17, %v3656_v26 }
0x1b3e   : > { %v3658_v28 = vmul.f32 1.442695, %v3657_v27 }
0x1b40   : > { %7072 = vpow2.f32 %v3658_v28 }
0x1b4d   : > { %v7073_v29 = vpop.eup %7072 }
0x1b4e   : > { %v3660_v30 = vsel %vm880_vm2, %v7073_v29, 0.0 }
0x1b4f   : > { %3661 = vadd.xlane.f32.xlu1 %v3660_v30 }
0x1b60   : > { %3890 = vrot.lane.b32.xlu1 %v7895_v5, %s8479_s18 }
0x1b64   : > { %3888 = vrot.lane.b32.xlu1 %v7886_v61, %s8479_s18 }
0x1b65   : > { %v3499_v31 = vpop.xlane.xlu0 %3498 }
0x1b66   : > { %7074 = vrcp.f32 %v3499_v31 }
0x1b69   : > { %v3667_v34 = vpop.permute.xlu0 %3666 }
0x1b73   : > { %v7075_v20 = vpop.eup %7074 }
0x1b74   : > { %v3501_v33 = vmul.f32 %v7075_v20, %v7071_v24 }
0x1b76   : > { %6783 = vmatmul.mubr.msk.f32.vlgmr.msra.gmra.mxu1 %vm880_vm2, %v3501_v33 }
0x1b77   : > { %6791 = vmatpush3.msra.mxu1 %v3667_v34  ;;  %6792 = vmatprep.mubr.msk.f32.mxu1 %vm7178_vm0, %v7177_v3 }
0x1b78   : > { %6800 = vmatprep.subr.mxu1 %v7177_v3 }
0x1bd8   : > { %v3662_v36 = vpop.xlane.xlu1 %3661 }
0x1bd9   : > { %7076 = vrcp.f32 %v3662_v36 }
0x1bdc   : > { %v3891_v40 = vpop.permute.xlu1 %3890 }
0x1be0   : > { %v3889_v44 = vpop.permute.xlu1 %3888 }
0x1be6   : > { %v7077_v37 = vpop.eup %7076 }
0x1be7   : > { %v3664_v32 = vmul.f32 %v7077_v37, %v7073_v29  ;;  %v6277_v29 = vld [vmem:[%s8473_s2 + $0xb] ss:$0 sm:$0xff] }
0x1be9   : > { %6793 = vmatmul.mubr.msk.f32.vlgmr.msra.gmra.mxu1 %vm880_vm2, %v3664_v32 }
0x1bea   : > { %6801 = vmatpush3.msra.mxu1 %v6250_v38  ;;  %6802 = vmatprep.mubr.msk.f32.mxu1 %vm7178_vm0, %v7177_v3 }
0x1beb   : > { %6810 = vmatprep.subr.mxu1 %v7177_v3 }
0x1c36   : > { %v3571_v39 = vpop.f32.mrf.mxu1 }
0x1c37   : > { %6803 = vmatmul.mubr.msk.f32.vlgmr.msra.gmra.mxu1 %vm880_vm2, %v3571_v39 }
0x1c38   : > { %v6784_v12 = vpop.f32.mrf.mxu1  ;;  %6812 = vmatprep.mubr.msk.f32.mxu1 %vm7178_vm0, %v7177_v3 }
0x1c39   : > { %v6289_v12 = vld [vmem:[%s8471_s27 + $0x1b0] sm:$0xff] }
0x1ca9   : > { %v3738_v42 = vpop.f32.mrf.mxu1 }
0x1caa   : > { %6798 = vmatmul.mubr.msk.f32.vlgmr.msra.gmra.mxu0 %vm880_vm2, %v3738_v42 }
0x1cab   : > { %6806 = vmatpush3.xpose.msk.msra.mxu0 %vm880_vm2, %v3891_v40  ;;  %v6794_v43 = vpop.f32.mrf.mxu1  ;;  %6807 = vmatprep.mubr.msk.f32.mxu0 %vm7178_vm0, %v7177_v3  ;;  %v6290_v40 = vld [vmem:[%s8471_s27 + $0x1b8] sm:$0xff] }
0x1cac   : > { %6815 = vmatprep.subr.mxu0 %v7177_v3  ;;  %v4489_v42 = vpack.c.bf16 %v6290_v40, %v6289_v12  ;;  %v6288_v43 = vld [vmem:[%s8471_s27 + $0x1a8] sm:$0xff] }
0x1cae   : > { %6808 = vmatmul.mubr.msk.f32.vlgmr.msra.gmra.mxu0 %vm880_vm2, %v3889_v44 }
0x1caf   : > { %6817 = vmatprep.mubr.msk.f32.mxu0 %vm7178_vm0, %v7177_v3 }
0x1cf7   : > { %v3884_v48 = vpop.f32.mrf.mxu1 }
0x1cf9   : > { %v6804_v49 = vpop.f32.mrf.mxu1 }
0x1cfa   : > { %v6285_v49 = vld [vmem:[%s8471_s27 + $0x198] sm:$0xff] }
0x1d6a   : > { %v3811_v50 = vpop.f32.mrf.mxu0 }
0x1d6b   : > { %v3885_v18 = vadd.f32 %v3884_v48, %v3811_v50  ;;  %v6284_v48 = vld [vmem:[%s8471_s27 + $0x190] sm:$0xff]  ;;  %v6282_v50 = vld [vmem:[%s8471_s27 + $0x180] sm:$0xff] }
0x1d6c   : > { %v6799_v51 = vpop.f32.mrf.mxu0 }
0x1d6d   : > { %v4438_v51 = vpack.c.bf16 %v6285_v49, %v6284_v48 }
0x1d6e   : > { %v3962_v45 = vpop.f32.mrf.mxu0 }
0x1d6f   : > { %v3966_v52 = vmul.f32 0.35355338, %v3962_v45 }
0x1d70   : > { %v6809_v53 = vpop.f32.mrf.mxu0 }
0x1d71   : > { %v3967_v54 = vsel %vm880_vm2, %v3966_v52, -inf }
0x1d72   : > { %3968 = vmax.xlane.f32.xlu0 %v3967_v54 }
0x1d88   : > { %3978 = vrot.lane.b32.xlu0 %v7884_v56, %s8479_s18 }
0x1d8c   : > { %4128 = vrot.lane.b32.xlu0 %v7886_v61, %s8478_s21 }
0x1dfb   : > { %v3969_v55 = vpop.xlane.xlu0 %3968 }
0x1dfc   : > { %v3970_v57 = vsub.f32 %v3966_v52, %v3969_v55 }
0x1dfe   : > { %v3971_v58 = vmul.f32 1.442695, %v3970_v57  ;;  %v6280_v57 = vld [vmem:[%s8408_s9 + $0x3] ss:$0 sm:$0xff] }
0x1dff   : > { %v3979_v62 = vpop.permute.xlu0 %3978 }
0x1e00   : > { %7078 = vpow2.f32 %v3971_v58  ;;  %6811 = vmatpush3.msra.mxu1 %v3979_v62  ;;  %v6281_v62 = vld [vmem:[%s8409_s10 + $0x3] ss:$0 sm:$0xff] }
0x1e01   : > { %6820 = vmatprep.subr.mxu1 %v7177_v3 }
0x1e03   : > { %v4129_v4 = vpop.permute.xlu0 %4128 }
0x1e0d   : > { %v7079_v63 = vpop.eup %7078 }
0x1e0e   : > { %v3973_v0 = vsel %vm880_vm2, %v7079_v63, 0.0 }
0x1e0f   : > { %3974 = vadd.xlane.f32.xlu1 %v3973_v0 }
0x1e20   : > { %4130 = vrot.lane.b32.xlu1 %v7895_v5, %s8478_s21  ;;  %v6252_v5 = vld [vmem:[%s8471_s27 + $0x170] sm:$0xff] }
0x1e21   : > { %6816 = vmatpush3.msra.mxu0 %v6252_v5 }
0x1e22   : > { %6825 = vmatprep.subr.mxu0 %v7177_v3 }
0x1e98   : > { %v3975_v1 = vpop.xlane.xlu1 %3974 }
0x1e99   : > { %7080 = vrcp.f32 %v3975_v1 }
0x1e9c   : > { %v4131_v61 = vpop.permute.xlu1 %4130 }
0x1ea6   : > { %v7081_v59 = vpop.eup %7080 }
0x1ea7   : > { %v3977_v2 = vmul.f32 %v7081_v59, %v7079_v63 }
0x1ea9   : > { %6813 = vmatmul.mubr.msk.f32.vlgmr.msra.gmra.mxu1 %vm880_vm2, %v3977_v2  ;;  %v6304_v2 = vld [vmem:[%s8473_s2 + $0xd] ss:$0 sm:$0xff] }
0x1eaa   : > { %6821 = vmatpush3.xpose.msk.msra.mxu1 %vm880_vm2, %v4131_v61  ;;  %6822 = vmatprep.mubr.msk.f32.mxu1 %vm7178_vm0, %v7177_v3 }
0x1eab   : > { %6830 = vmatprep.subr.mxu1 %v7177_v3 }
0x1ead   : > { %6823 = vmatmul.mubr.msk.f32.vlgmr.msra.gmra.mxu1 %vm880_vm2, %v4129_v4 }
0x1eae   : > { %6832 = vmatprep.mubr.msk.f32.mxu1 %vm7178_vm0, %v7177_v3 }
0x1f69   : > { %v4050_v6 = vpop.f32.mrf.mxu1 }
0x1f6a   : > { %6818 = vmatmul.mubr.msk.f32.vlgmr.msra.gmra.mxu0 %vm880_vm2, %v4050_v6 }
0x1f6b   : > { %v6814_v60 = vpop.f32.mrf.mxu1  ;;  %6827 = vmatprep.mubr.msk.f32.mxu0 %vm7178_vm0, %v7177_v3 }
0x1f6d   : > { %v4202_v7 = vpop.f32.mrf.mxu1 }
0x1f6e   : > { %v4206_v8 = vmul.f32 0.35355338, %v4202_v7  ;;  %v6294_v7 = vld [vmem:[%s8471_s27 + $0x1d0] sm:$0xff] }
0x1f6f   : > { %v6824_v9 = vpop.f32.mrf.mxu1 }
0x1f70   : > { %v4207_v10 = vsel %vm880_vm2, %v4206_v8, -inf  ;;  %v6292_v9 = vld [vmem:[%s8471_s27 + $0x1c0] sm:$0xff] }
0x1f71   : > { %4208 = vmax.xlane.f32.xlu1 %v4207_v10 }
0x1ffa   : > { %v4209_v11 = vpop.xlane.xlu1 %4208 }
0x1ffb   : > { %v4210_v13 = vsub.f32 %v4206_v8, %v4209_v11  ;;  %v6295_v8 = vld [vmem:[%s8471_s27 + $0x1d8] sm:$0xff]  ;;  %v6293_v11 = vld [vmem:[%s8471_s27 + $0x1c8] sm:$0xff] }
0x1ffc   : > { %v4538_v10 = vpack.c.bf16 %v6295_v8, %v6294_v7 }
0x1ffd   : > { %v4211_v14 = vmul.f32 1.442695, %v4210_v13  ;;  %v4537_v13 = vpack.c.bf16 %v6293_v11, %v6292_v9 }
0x1fff   : > { %7082 = vpow2.f32 %v4211_v14 }
0x200c   : > { %v7083_v15 = vpop.eup %7082 }
0x200d   : > { %v4213_v17 = vsel %vm880_vm2, %v7083_v15, 0.0 }
0x200e   : > { %4214 = vadd.xlane.f32.xlu0 %v4213_v17  ;;  %v6302_v17 = vld [vmem:[%s8473_s2 + $0xc] ss:$0 sm:$0xff] }
0x2024   : > { %4218 = vrot.lane.b32.xlu0 %v7884_v56, %s8478_s21  ;;  %v6253_v56 = vld [vmem:[%s8471_s27 + $0x178] sm:$0xff] }
0x2025   : > { %6831 = vmatpush3.msra.mxu1 %v6253_v56 }
0x2026   : > { %6843 = vmatprep.subr.bf16.mxu1 %v7177_v3 }
0x202a   : > { %v4123_v19 = vpop.f32.mrf.mxu0 }
0x202b   : > { %v4127_v21 = vadd.f32 %v4123_v19, %v3885_v18 }
0x202c   : > { %v6819_v22 = vpop.f32.mrf.mxu0 }
0x2097   : > { %v4215_v23 = vpop.xlane.xlu0 %4214 }
0x2098   : > { %7084 = vrcp.f32 %v4215_v23 }
0x209b   : > { %v4219_v24 = vpop.permute.xlu0 %4218 }
0x209c   : > { %6826 = vmatpush3.msra.mxu0 %v4219_v24  ;;  %v6306_v24 = vld [vmem:[%s8473_s2 + $0xe] ss:$0 sm:$0xff] }
0x209d   : > { %6835 = vmatprep.subr.bf16.mxu0 %v7177_v3 }
0x20a5   : > { %v7085_v25 = vpop.eup %7084 }
0x20a6   : > { %v4217_v26 = vmul.f32 %v7085_v25, %v7083_v15 }
0x20a8   : > { %6828 = vmatmul.mubr.msk.f32.vlgmr.msra.gmra.mxu0 %vm880_vm2, %v4217_v26 }
0x20a9   : > { %6839 = vmatprep.mubr.msk.bf16.mxu0 %vm7178_vm0, %v7177_v3  ;;  %6836 = vmatpush3.bf16.msra.mxu0 %v4438_v51 }
0x20aa   : > { %6837 = vmatprep.subr.bf16.mxu0 %v7177_v3 }
0x2168   : > { %v4290_v27 = vpop.f32.mrf.mxu0 }
0x2169   : > { %6833 = vmatmul.mubr.msk.f32.vlgmr.msra.gmra.mxu1 %vm880_vm2, %v4290_v27 }
0x216a   : > { %v6829_v28 = vpop.f32.mrf.mxu0  ;;  %6847 = vmatprep.mubr.msk.bf16.mxu1 %vm7178_vm0, %v7177_v3  ;;  %6844 = vmatpush3.bf16.msra.mxu1 %v4489_v42 }
0x216b   : > { %6845 = vmatprep.subr.bf16.mxu1 %v7177_v3 }
0x2229   : > { %v4363_v30 = vpop.f32.mrf.mxu1 }
0x222a   : > { %v4367_v31 = vadd.f32 %v4363_v30, %v4127_v21 }
0x222b   : > { %v6834_v20 = vpop.f32.mrf.mxu1 }
0x222c   : > { %v4374_v33 = vadd.f32 %v6277_v29, %v4367_v31 }
0x222e   : > { %v4375_v34 = vadd.f32 %v4374_v33, %v7844_v41  ;;  %v6287_v41 = vld [vmem:[%s8471_s27 + $0x1a0] sm:$0xff] }
0x222f   : > { %v4488_v44 = vpack.c.bf16 %v6288_v43, %v6287_v41 }
0x2230   : > { %v4380_v35 = vsel %vm737_vm1, %v4375_v34, 0.0 }
0x2231   : > { %4381 = vadd.xlane.f32.xlu1 %v4380_v35  ;;  %6846 = vmatpush3.bf16.msra.mxu1 %v4488_v44 }
0x2232   : > { %6859 = vmatprep.subr.mxu1 %v7177_v3 }
0x2234   : > { %6848 = vmatmul.mubr.msk.bf16.vlgmr.msra.gmra.mxu1 %vm737_vm1, %v7551_v16  ;;  %v6283_v16 = vld [vmem:[%s8471_s27 + $0x188] sm:$0xff] }
0x2235   : > { %6863 = vmatprep.mubr.msk.f32.mxu1 %vm7178_vm0, %v7177_v3  ;;  %v4437_v45 = vpack.c.bf16 %v6283_v16, %v6282_v50 }
0x2237   : > { %6838 = vmatpush3.bf16.msra.mxu0 %v4437_v45  ;;  %v6298_v45 = vld [vmem:[%s8471_s27 + $0x1e8] sm:$0xff] }
0x2238   : > { %6851 = vmatprep.subr.bf16.mxu0 %v7177_v3 }
0x22ba   : > { %v4382_v36 = vpop.xlane.xlu1 %4381 }
0x22bb   : > { %v4383_v37 = vmul.f32 0.03125, %v4382_v36 }
0x22bd   : > { %v4384_v32 = vsub.f32 %v4375_v34, %v4383_v37 }
0x22bf   : > { %v4385_v38 = vmul.f32 %v4384_v32, %v4384_v32 }
0x22c1   : > { %v4386_v39 = vsel %vm737_vm1, %v4385_v38, 0.0 }
0x22c2   : > { %4387 = vadd.xlane.f32.xlu1 %v4386_v39 }
0x22f4   : > { %v4530_v61 = vpop.f32.mrf.mxu1 }
0x22f5   : > { %v8040_v4 = vadd.f32 %v6304_v2, %v4530_v61 }
0x22f6   : > { %v6849_v5 = vpop.f32.mrf.mxu1 }
0x22f7   : > { %4752 = vrot.lane.b32.xlu0 %v8040_v4, %s8477_s20 }
0x22f8   : > { %v4533_v6 = vpop.f32.mrf.mxu1 }
0x22f9   : > { %v8044_v60 = vadd.f32 %v6304_v2, %v4533_v6 }
0x22fb   : > { %4754 = vrot.lane.b32.xlu1 %v8044_v60, %s8477_s20  ;;  %6860 = vmatpush3.xpose.msk.msra.mxu1 %vm880_vm2, %v8044_v60 }
0x22fc   : > { %6861 = vmatprep.subr.mxu1 %v7177_v3 }
0x22ff   : > { %6862 = vmatpush3.xpose.msk.msra.mxu1 %vm880_vm2, %v8040_v4 }
0x2300   : > { %6866 = vmatprep.subr.mxu1 %v7177_v3 }
0x234b   : > { %v4388_v52 = vpop.xlane.xlu1 %4387 }
0x234c   : > { %v4389_v53 = vmul.f32 0.03125, %v4388_v52 }
0x234e   : > { %v4390_v54 = vadd.f32 1e-05, %v4389_v53 }
0x2350   : > { %7086 = vrsqrt.f32 %v4390_v54 }
0x235d   : > { %v7087_v55 = vpop.eup %7086 }
0x235e   : > { %v4392_v58 = vmul.f32 %v7087_v55, %v4384_v32 }
0x2360   : > { %v4399_v63 = vmul.f32 %v6280_v57, %v4392_v58  ;;  %v6297_v57 = vld [vmem:[%s8471_s27 + $0x1e0] sm:$0xff] }
0x2362   : > { %v8030_v0 = vadd.f32 %v6281_v62, %v4399_v63 }
0x2364   : > { %v4407_v1 = vadd.f32 %v7857_v46, %v8030_v0  ;;  %v6850_v46 = vpop.f32.mrf.mxu1 }
0x2366   : > { %v4436_v59 = vpack.c.bf16 %v4407_v1, %v4407_v1 }
0x2368   : > { %6840 = vmatmul.mubr.msk.bf16.vlgmr.msra.gmra.mxu0 %vm737_vm1, %v4436_v59 }
0x2369   : > { %6855 = vmatprep.mubr.msk.bf16.mxu0 %vm7178_vm0, %v7177_v3  ;;  %6852 = vmatpush3.bf16.msra.mxu0 %v4538_v10  ;;  %v4753_v15 = vpop.permute.xlu0 %4752 }
0x236a   : > { %6853 = vmatprep.subr.bf16.mxu0 %v7177_v3 }
0x236d   : > { %6854 = vmatpush3.bf16.msra.mxu0 %v4537_v13  ;;  %v4755_v14 = vpop.permute.xlu1 %4754 }
0x236e   : > { %6873 = vmatprep.subr.mxu0 %v7177_v3 }
0x2370   : > { %6856 = vmatmul.mubr.msk.bf16.vlgmr.msra.gmra.mxu0 %vm737_vm1, %v7614_v47 }
0x2371   : > { %6877 = vmatprep.mubr.msk.f32.mxu0 %vm7178_vm0, %v7177_v3  ;;  %6874 = vmatpush3.xpose.msk.msra.mxu0 %vm880_vm2, %v4755_v14 }
0x2372   : > { %6875 = vmatprep.subr.mxu0 %v7177_v3 }
0x2375   : > { %6876 = vmatpush3.xpose.msk.msra.mxu0 %vm880_vm2, %v4753_v15 }
0x2376   : > { %6887 = vmatprep.subr.mxu0 %v7177_v3 }
0x2428   : > { %v4482_v18 = vpop.f32.mrf.mxu0 }
0x2429   : > { %v4483_v19 = vadd.f32 %v6302_v17, %v4482_v18 }
0x242a   : > { %v6841_v47 = vpop.f32.mrf.mxu0 }
0x242b   : > { %4750 = vrot.lane.b32.xlu0 %v4483_v19, %s8477_s20  ;;  %6864 = vmatmul.mubr.msk.f32.vlgmr.msra.gmra.mxu1 %vm880_vm2, %v4483_v19 }
0x242c   : > { %v4485_v21 = vpop.f32.mrf.mxu0  ;;  %6870 = vmatprep.mubr.msk.f32.mxu1 %vm7178_vm0, %v7177_v3 }
0x242e   : > { %v6842_v22 = vpop.f32.mrf.mxu0 }
0x2430   : > { %v4579_v23 = vpop.f32.mrf.mxu0 }
0x2431   : > { %v8086_v56 = vadd.f32 %v6306_v24, %v4579_v23 }
0x2432   : > { %v6857_v25 = vpop.f32.mrf.mxu0 }
0x2434   : > { %v4582_v26 = vpop.f32.mrf.mxu0 }
0x2435   : > { %v8088_v27 = vadd.f32 %v6306_v24, %v4582_v26 }
0x2436   : > { %v6858_v28 = vpop.f32.mrf.mxu0 }
0x2437   : > { %6867 = vmatpush3.msra.mxu1 %v8088_v27 }
0x2438   : > { %6868 = vmatprep.subr.mxu1 %v7177_v3 }
0x2439   : > { %6869 = vmatpush3.msra.mxu1 %v8086_v56 }
0x243a   : > { %6880 = vmatprep.subr.mxu1 %v7177_v3 }
0x249d   : > { %v4751_v29 = vpop.permute.xlu0 %4750 }
0x249e   : > { %6878 = vmatmul.mubr.msk.f32.vlgmr.msra.gmra.mxu0 %vm880_vm2, %v4751_v29 }
0x249f   : > { %6889 = vmatprep.mubr.msk.f32.mxu0 %vm7178_vm0, %v7177_v3  ;;  %6888 = vmatpush3.msra.mxu0 %v6298_v45 }
0x24a0   : > { %6897 = vmatprep.subr.mxu0 %v7177_v3 }
0x24eb   : > { %v4661_v30 = vpop.f32.mrf.mxu1 }
0x24ec   : > { %v4665_v31 = vmul.f32 0.35355338, %v4661_v30 }
0x24ed   : > { %v6865_v20 = vpop.f32.mrf.mxu1 }
0x24ee   : > { %v4666_v33 = vsel %vm2140_vm3, %v4665_v31, -inf }
0x24ef   : > { %4667 = vmax.xlane.f32.xlu1 %v4666_v33 }
0x255e   : > { %v4828_v34 = vpop.f32.mrf.mxu0 }
0x255f   : > { %v4832_v35 = vmul.f32 0.35355338, %v4828_v34  ;;  %v6299_v34 = vld [vmem:[%s8471_s27 + $0x1f0] sm:$0xff] }
0x2560   : > { %v6879_v36 = vpop.f32.mrf.mxu0 }
0x2561   : > { %v4833_v37 = vsel %vm2140_vm3, %v4832_v35, -inf }
0x2562   : > { %4834 = vmax.xlane.f32.xlu0 %v4833_v37 }
0x2578   : > { %v4668_v32 = vpop.xlane.xlu1 %4667 }
0x2579   : > { %v4669_v38 = vsub.f32 %v4665_v31, %v4668_v32 }
0x257b   : > { %v4670_v39 = vmul.f32 1.442695, %v4669_v38 }
0x257d   : > { %7088 = vpow2.f32 %v4670_v39 }
0x258a   : > { %v7089_v12 = vpop.eup %7088 }
0x258b   : > { %v4672_v40 = vsel %vm2140_vm3, %v7089_v12, 0.0 }
0x258c   : > { %4673 = vadd.xlane.f32.xlu0 %v4672_v40 }
0x25a2   : > { %4848 = vrot.lane.b32.xlu0 %v8088_v27, %s8477_s20 }
0x25a6   : > { %5073 = vrot.lane.b32.xlu0 %v8040_v4, %s8479_s18 }
0x25aa   : > { %5322 = vrot.lane.b32.xlu0 %v8044_v60, %s8478_s21 }
0x25ae   : > { %5318 = vrot.lane.b32.xlu0 %v4483_v19, %s8478_s21 }
0x25eb   : > { %v4835_v42 = vpop.xlane.xlu0 %4834 }
0x25ec   : > { %v4836_v41 = vsub.f32 %v4832_v35, %v4835_v42 }
0x25ee   : > { %v4837_v43 = vmul.f32 1.442695, %v4836_v41 }
0x25f0   : > { %7090 = vpow2.f32 %v4837_v43 }
0x25fd   : > { %v7091_v44 = vpop.eup %7090 }
0x25fe   : > { %v4839_v48 = vsel %vm2140_vm3, %v7091_v44, 0.0 }
0x25ff   : > { %4840 = vadd.xlane.f32.xlu1 %v4839_v48 }
0x2610   : > { %4846 = vrot.lane.b32.xlu1 %v8086_v56, %s8477_s20  ;;  %s677_s20 = scalar_lea.vmem [#allocation2], %s8325_s5 }
0x2611   : > { %s6043_s30 = sshll.u32 %s677_s20, 4  ;;  %s6044_s30 = int_to_ptr.vmem [resolvable:$true] %s6043_s30 }
0x2614   : > { %5075 = vrot.lane.b32.xlu1 %v8044_v60, %s8479_s18 }
0x2615   : > { %v4674_v49 = vpop.xlane.xlu0 %4673 }
0x2616   : > { %7092 = vrcp.f32 %v4674_v49  ;;  %v6328_v49 = vld [vmem:[%s8473_s2 + $0xf] ss:$0 sm:$0xff] }
0x2618   : > { %5071 = vrot.lane.b32.xlu1 %v4483_v19, %s8479_s18 }
0x2619   : > { %v4849_v16 = vpop.permute.xlu0 %4848 }
0x261c   : > { %5320 = vrot.lane.b32.xlu1 %v8040_v4, %s8478_s21 }
0x261d   : > { %v5074_v2 = vpop.permute.xlu0 %5073 }
0x2621   : > { %v5323_v4 = vpop.permute.xlu0 %5322 }
0x2623   : > { %v7093_v50 = vpop.eup %7092 }
0x2624   : > { %v4676_v51 = vmul.f32 %v7093_v50, %v7089_v12  ;;  %v6300_v12 = vld [vmem:[%s8471_s27 + $0x1f8] sm:$0xff] }
0x2625   : > { %v5319_v6 = vpop.permute.xlu0 %5318 }
0x2626   : > { %6871 = vmatmul.mubr.msk.f32.vlgmr.msra.gmra.mxu1 %vm2140_vm3, %v4676_v51 }
0x2627   : > { %6881 = vmatpush3.msra.mxu1 %v4849_v16  ;;  %6884 = vmatprep.mubr.msk.f32.mxu1 %vm7178_vm0, %v7177_v3 }
0x2628   : > { %6882 = vmatprep.subr.mxu1 %v7177_v3 }
0x2688   : > { %v4841_v52 = vpop.xlane.xlu1 %4840 }
0x2689   : > { %7094 = vrcp.f32 %v4841_v52 }
0x268c   : > { %v4847_v53 = vpop.permute.xlu1 %4846 }
0x268d   : > { %6883 = vmatpush3.msra.mxu1 %v4847_v53 }
0x268e   : > { %6892 = vmatprep.subr.mxu1 %v7177_v3 }
0x2690   : > { %v5076_v1 = vpop.permute.xlu1 %5075 }
0x2694   : > { %v5072_v61 = vpop.permute.xlu1 %5071 }
0x2696   : > { %v7095_v54 = vpop.eup %7094 }
0x2697   : > { %v4843_v55 = vmul.f32 %v7095_v54, %v7091_v44 }
0x2698   : > { %v5321_v5 = vpop.permute.xlu1 %5320 }
0x2699   : > { %6885 = vmatmul.mubr.msk.f32.vlgmr.msra.gmra.mxu1 %vm2140_vm3, %v4843_v55 }
0x269a   : > { %6893 = vmatpush3.msra.mxu1 %v6297_v57  ;;  %6894 = vmatprep.mubr.msk.f32.mxu1 %vm7178_vm0, %v7177_v3 }
0x269b   : > { %6904 = vmatprep.subr.mxu1 %v7177_v3 }
0x26e6   : > { %v4746_v58 = vpop.f32.mrf.mxu1 }
0x26e7   : > { %6895 = vmatmul.mubr.msk.f32.vlgmr.msra.gmra.mxu1 %vm880_vm2, %v4746_v58 }
0x26e8   : > { %v6872_v62 = vpop.f32.mrf.mxu1  ;;  %6908 = vmatprep.mubr.msk.f32.mxu1 %vm7178_vm0, %v7177_v3 }
0x2759   : > { %v4921_v63 = vpop.f32.mrf.mxu1 }
0x275a   : > { %6890 = vmatmul.mubr.msk.f32.vlgmr.msra.gmra.mxu0 %vm880_vm2, %v4921_v63  ;;  %v6335_v63 = vld [vmem:[%s8481_s23 + $0x30] sm:$0xff] }
0x275b   : > { %6898 = vmatpush3.xpose.msk.msra.mxu0 %vm880_vm2, %v5076_v1  ;;  %v6886_v59 = vpop.f32.mrf.mxu1  ;;  %6901 = vmatprep.mubr.msk.f32.mxu0 %vm7178_vm0, %v7177_v3  ;;  %v6336_v1 = vld [vmem:[%s8481_s23 + $0x38] sm:$0xff] }
0x275c   : > { %6899 = vmatprep.subr.mxu0 %v7177_v3  ;;  %v5613_v59 = vpack.c.bf16 %v6336_v1, %v6335_v63  ;;  %v5792_v1 = vld [vmem:[%s8412_s13 + $0x10] sm:$0xff] }
0x275f   : > { %6900 = vmatpush3.xpose.msk.msra.mxu0 %vm880_vm2, %v5074_v2  ;;  %v6334_v2 = vld [vmem:[%s8481_s23 + $0x28] sm:$0xff] }
0x2760   : > { %6916 = vmatprep.subr.mxu0 %v7177_v3 }
0x2762   : > { %6902 = vmatmul.mubr.msk.f32.vlgmr.msra.gmra.mxu0 %vm880_vm2, %v5072_v61 }
0x2763   : > { %6917 = vmatpush3.xpose.msk.msra.mxu0 %vm880_vm2, %v5323_v4  ;;  %6920 = vmatprep.mubr.msk.f32.mxu0 %vm7178_vm0, %v7177_v3  ;;  %v6346_v4 = vld [vmem:[%s8482_s7 + $0x70] sm:$0xff] }
0x2764   : > { %6918 = vmatprep.subr.mxu0 %v7177_v3 }
0x2767   : > { %6919 = vmatpush3.xpose.msk.msra.mxu0 %vm880_vm2, %v5321_v5  ;;  %v6347_v5 = vld [vmem:[%s8482_s7 + $0x78] sm:$0xff] }
0x2768   : > { %6935 = vmatprep.subr.bf16.mxu0 %v7177_v3 }
0x276a   : > { %6921 = vmatmul.mubr.msk.f32.vlgmr.msra.gmra.mxu0 %vm880_vm2, %v5319_v6  ;;  %v6344_v6 = vld [vmem:[%s8482_s7 + $0x60] sm:$0xff] }
0x276b   : > { %6939 = vmatprep.mubr.msk.bf16.mxu0 %vm7178_vm0, %v7177_v3  ;;  %6936 = vmatpush3.bf16.msra.mxu0 %v5613_v59  ;;  %v5793_v59 = vld [vmem:[%s8412_s13 + $0x18] sm:$0xff] }
0x276c   : > { %6937 = vmatprep.subr.bf16.mxu0 %v7177_v3 }
0x27a7   : > { %v8151_v60 = vpop.f32.mrf.mxu1 }
0x27a9   : > { %v6896_v46 = vpop.f32.mrf.mxu1 }
0x27aa   : > { %v6345_v46 = vld [vmem:[%s8482_s7 + $0x68] sm:$0xff] }
0x281a   : > { %v8153_v7 = vpop.f32.mrf.mxu0 }
0x281b   : > { %v5068_v40 = vadd.f32 %v8151_v60, %v8153_v7  ;;  %v5679_v60 = vpack.c.bf16 %v6347_v5, %v6346_v4  ;;  %v5678_v7 = vpack.c.bf16 %v6345_v46, %v6344_v6 }
0x281c   : > { %v6891_v8 = vpop.f32.mrf.mxu0 }
0x2822   : > { %v5149_v9 = vpop.f32.mrf.mxu0 }
0x2823   : > { %v5153_v10 = vmul.f32 0.35355338, %v5149_v9 }
0x2824   : > { %v6903_v11 = vpop.f32.mrf.mxu0 }
0x2825   : > { %v5154_v13 = vsel %vm2140_vm3, %v5153_v10, -inf }
0x2826   : > { %5155 = vmax.xlane.f32.xlu1 %v5154_v13  ;;  %v6331_v13 = vld [vmem:[%s8408_s9 + $0x4] ss:$0 sm:$0xff] }
0x282a   : > { %v5396_v14 = vpop.f32.mrf.mxu0 }
0x282b   : > { %v5400_v17 = vmul.f32 0.35355338, %v5396_v14 }
0x282c   : > { %v6922_v15 = vpop.f32.mrf.mxu0 }
0x282d   : > { %v5401_v18 = vsel %vm2140_vm3, %v5400_v17, -inf  ;;  %v6332_v15 = vld [vmem:[%s8409_s10 + $0x4] ss:$0 sm:$0xff] }
0x2837   : > { %5165 = vrot.lane.b32.xlu1 %v8086_v56, %s8479_s18 }
0x285b   : > { %5402 = vmax.xlane.f32.xlu1 %v5401_v18 }
0x286c   : > { %5412 = vrot.lane.b32.xlu1 %v8086_v56, %s8478_s21 }
0x28af   : > { %v5156_v19 = vpop.xlane.xlu1 %5155 }
0x28b0   : > { %v5157_v47 = vsub.f32 %v5153_v10, %v5156_v19 }
0x28b2   : > { %v5158_v21 = vmul.f32 1.442695, %v5157_v47  ;;  %v6342_v47 = vld [vmem:[%s8482_s7 + $0x50] sm:$0xff] }
0x28b3   : > { %v5166_v24 = vpop.permute.xlu1 %5165 }
0x28b4   : > { %7096 = vpow2.f32 %v5158_v21  ;;  %v6343_v21 = vld [vmem:[%s8482_s7 + $0x58] sm:$0xff] }
0x28c1   : > { %v7097_v22 = vpop.eup %7096 }
0x28c2   : > { %v5160_v23 = vsel %vm2140_vm3, %v7097_v22, 0.0 }
0x28c3   : > { %5161 = vadd.xlane.f32.xlu0 %v5160_v23  ;;  %v6340_v23 = vld [vmem:[%s8482_s7 + $0x40] sm:$0xff] }
0x28d9   : > { %5167 = vrot.lane.b32.xlu0 %v8088_v27, %s8479_s18  ;;  %s8486_s18 = sld [smem:[#allocation22_spill]] }
0x28e4   : > { %v5403_v25 = vpop.xlane.xlu1 %5402 }
0x28e5   : > { %v5404_v26 = vsub.f32 %v5400_v17, %v5403_v25 }
0x28e7   : > { %v5405_v28 = vmul.f32 1.442695, %v5404_v26  ;;  %v6338_v26 = vld [vmem:[%s8484_s1 + $0x1] ss:$0 sm:$0xff]  ;;  %s7183_s1 = smov [#allocation2]  }
0x28e8   : > { %v5413_v38 = vpop.permute.xlu1 %5412  ;;  %s7119_s2 = sshll.u32 %s7183_s1, 4  ;;  %s7120_s2 = int_to_ptr.vmem [resolvable:$false] %s7119_s2 }
0x28e9   : > { %7098 = vpow2.f32 %v5405_v28  ;;  %p7122_p0 = scmp.lt.s32.totalorder %s6044_s30, %s7120_s2 }
0x28f6   : > { %v7099_v29 = vpop.eup %7098 }
0x28f7   : > { %v5407_v30 = vsel %vm2140_vm3, %v7099_v29, 0.0 }
0x28f8   : > { %5408 = vadd.xlane.f32.xlu0 %v5407_v30 }
0x290e   : > { %5414 = vrot.lane.b32.xlu0 %v8088_v27, %s8478_s21  ;;  %s6367_s21 = sshll.u32 %s8485_s0, 7 }
0x290f   : > { %s6041_s4 = scalar_lea.hbm %s8488_s22, %s6367_s21 }
0x294c   : > { %v5162_v56 = vpop.xlane.xlu0 %5161 }
0x294d   : > { %7100 = vrcp.f32 %v5162_v56 }
0x2950   : > { %v5168_v31 = vpop.permute.xlu0 %5167 }
0x2951   : > { %6905 = vmatpush3.msra.mxu1 %v5168_v31 }
0x2952   : > { %6906 = vmatprep.subr.mxu1 %v7177_v3 }
0x2953   : > { %6907 = vmatpush3.msra.mxu1 %v5166_v24  ;;  %v6341_v24 = vld [vmem:[%s8482_s7 + $0x48] sm:$0xff]  ;;  %s7121_s7 = scalar_lea.vmem %s7120_s2, 256 }
0x2954   : > { %6911 = vmatprep.subr.mxu1 %v7177_v3  ;;  %v5676_v25 = vpack.c.bf16 %v6341_v24, %v6340_v23  ;;  %v5902_v24 = vld [vmem:[%s8416_s17] sm:$0xff] }
0x295a   : > { %v7101_v20 = vpop.eup %7100 }
0x295b   : > { %v5164_v33 = vmul.f32 %v7101_v20, %v7097_v22  ;;  %v5677_v22 = vpack.c.bf16 %v6343_v21, %v6342_v47  ;;  %v5904_v21 = vld [vmem:[%s8416_s17 + $0x10] sm:$0xff] }
0x295d   : > { %6909 = vmatmul.mubr.msk.f32.vlgmr.msra.gmra.mxu1 %vm2140_vm3, %v5164_v33 }
0x295e   : > { %6912 = vmatpush3.msra.mxu1 %v6299_v34  ;;  %6913 = vmatprep.mubr.msk.f32.mxu1 %vm7178_vm0, %v7177_v3  ;;  %v6349_v34 = vld [vmem:[%s8407_s8 + $0x1] ss:$0 sm:$0xff] }
0x295f   : > { %6923 = vmatprep.subr.mxu1 %v7177_v3 }
0x2981   : > { %v5409_v27 = vpop.xlane.xlu0 %5408 }
0x2982   : > { %7102 = vrcp.f32 %v5409_v27 }
0x2985   : > { %v5415_v37 = vpop.permute.xlu0 %5414 }
0x298f   : > { %v7103_v35 = vpop.eup %7102 }
0x2990   : > { %v5411_v39 = vmul.f32 %v7103_v35, %v7099_v29 }
0x2a1d   : > { %v5240_v36 = vpop.f32.mrf.mxu1 }
0x2a1e   : > { %6914 = vmatmul.mubr.msk.f32.vlgmr.msra.gmra.mxu1 %vm880_vm2, %v5240_v36 }
0x2a1f   : > { %6924 = vmatpush3.msra.mxu1 %v5415_v37  ;;  %v6910_v32 = vpop.f32.mrf.mxu1  ;;  %6927 = vmatprep.mubr.msk.f32.mxu1 %vm7178_vm0, %v7177_v3 }
0x2a20   : > { %6925 = vmatprep.subr.mxu1 %v7177_v3 }
0x2a21   : > { %6926 = vmatpush3.msra.mxu1 %v5413_v38 }
0x2a22   : > { %6928 = vmatmul.mubr.msk.f32.vlgmr.msra.gmra.mxu1 %vm2140_vm3, %v5411_v39  ;;  %6930 = vmatprep.subr.mxu1 %v7177_v3 }
0x2a23   : > { %6932 = vmatprep.mubr.msk.f32.mxu1 %vm7178_vm0, %v7177_v3  ;;  %6931 = vmatpush3.msra.mxu1 %v6300_v12 }
0x2a24   : > { %6943 = vmatprep.subr.bf16.mxu1 %v7177_v3 }
0x2ade   : > { %v5313_v42 = vpop.f32.mrf.mxu1 }
0x2adf   : > { %v5317_v41 = vadd.f32 %v5313_v42, %v5068_v40 }
0x2ae0   : > { %v6915_v43 = vpop.f32.mrf.mxu1 }
0x2ae2   : > { %v5487_v44 = vpop.f32.mrf.mxu1 }
0x2ae3   : > { %6933 = vmatmul.mubr.msk.f32.vlgmr.msra.gmra.mxu1 %vm880_vm2, %v5487_v44 }
0x2ae4   : > { %v6929_v48 = vpop.f32.mrf.mxu1  ;;  %6951 = vmatprep.mubr.msk.bf16.mxu1 %vm7178_vm0, %v7177_v3  ;;  %6944 = vmatpush3.bf16.msra.mxu1 %v5679_v60 }
0x2ae5   : > { %6945 = vmatprep.subr.bf16.mxu1 %v7177_v3 }
0x2ae8   : > { %6946 = vmatpush3.bf16.msra.mxu1 %v5678_v7  ;;  %v6355_v7 = vld [vmem:[%s8410_s11] ss:$0 sm:$0xff] }
0x2ae9   : > { %6947 = vmatprep.subr.bf16.mxu1 %v7177_v3 }
0x2aec   : > { %6948 = vmatpush3.bf16.msra.mxu1 %v5677_v22  ;;  %v5905_v22 = vld [vmem:[%s8416_s17 + $0x18] sm:$0xff] }
0x2aed   : > { %6949 = vmatprep.subr.bf16.mxu1 %v7177_v3  ;;  %v5909_v23 = vpack.c.bf16 %v5905_v22, %v5904_v21 }
0x2af0   : > { %6950 = vmatpush3.bf16.msra.mxu1 %v5676_v25  ;;  %v5903_v25 = vld [vmem:[%s8416_s17 + $0x8] sm:$0xff] }
0x2af1   : > { %6971 = vmatprep.subr.bf16.mxu1 %v7177_v3 }
0x2ba3   : > { %v5560_v50 = vpop.f32.mrf.mxu1 }
0x2ba4   : > { %v5564_v51 = vadd.f32 %v5560_v50, %v5317_v41 }
0x2ba5   : > { %v6934_v16 = vpop.f32.mrf.mxu1 }
0x2ba6   : > { %v5571_v45 = vadd.f32 %v6328_v49, %v5564_v51  ;;  %v6353_v51 = vld [vmem:[%s8408_s9 + $0x5] ss:$0 sm:$0xff] }
0x2ba8   : > { %v5572_v52 = vadd.f32 %v5571_v45, %v8030_v0  ;;  %v6333_v0 = vld [vmem:[%s8481_s23 + $0x20] sm:$0xff] }
0x2ba9   : > { %v5612_v61 = vpack.c.bf16 %v6334_v2, %v6333_v0  ;;  %v6354_v45 = vld [vmem:[%s8409_s10 + $0x5] ss:$0 sm:$0xff]  ;;  %v5797_v0 = vpack.c.bf16 %v5793_v59, %v5792_v1 }
0x2baa   : > { %v5577_v53 = vsel %vm737_vm1, %v5572_v52, 0.0  ;;  %v5790_v2 = vld [vmem:[%s8412_s13] sm:$0xff] }
0x2bab   : > { %5578 = vadd.xlane.f32.xlu1 %v5577_v53  ;;  %6938 = vmatpush3.bf16.msra.mxu0 %v5612_v61  ;;  %v5791_v61 = vld [vmem:[%s8412_s13 + $0x8] sm:$0xff] }
0x2bac   : > { %6955 = vmatprep.subr.bf16.mxu0 %v7177_v3  ;;  %v5796_v4 = vpack.c.bf16 %v5791_v61, %v5790_v2 }
0x2c34   : > { %v5579_v54 = vpop.xlane.xlu1 %5578 }
0x2c35   : > { %v5580_v55 = vmul.f32 0.03125, %v5579_v54 }
0x2c37   : > { %v5581_v57 = vsub.f32 %v5572_v52, %v5580_v55 }
0x2c39   : > { %v5582_v58 = vmul.f32 %v5581_v57, %v5581_v57 }
0x2c3b   : > { %v5583_v62 = vsel %vm737_vm1, %v5582_v58, 0.0 }
0x2c3c   : > { %5584 = vadd.xlane.f32.xlu0 %v5583_v62 }
0x2cc5   : > { %v5585_v8 = vpop.xlane.xlu0 %5584 }
0x2cc6   : > { %v5586_v9 = vmul.f32 0.03125, %v5585_v8 }
0x2cc8   : > { %v5587_v10 = vadd.f32 1e-05, %v5586_v9  ;;  %v6356_v9 = vld [vmem:[%s8411_s12] ss:$0 sm:$0xff] }
0x2cca   : > { %7104 = vrsqrt.f32 %v5587_v10 }
0x2cd7   : > { %v7105_v11 = vpop.eup %7104 }
0x2cd8   : > { %v5589_v14 = vmul.f32 %v7105_v11, %v5581_v57  ;;  %v5850_v11 = vld [vmem:[%s8414_s15 + $0x10] sm:$0xff] }
0x2cda   : > { %v5596_v17 = vmul.f32 %v6331_v13, %v5589_v14  ;;  %v5851_v13 = vld [vmem:[%s8414_s15 + $0x18] sm:$0xff] }
0x2cdc   : > { %v5603_v18 = vadd.f32 %v6332_v15, %v5596_v17  ;;  %v5854_v15 = vpack.c.bf16 %v5851_v13, %v5850_v11 }
0x2cde   : > { %v5611_v19 = vpack.c.bf16 %v5603_v18, %v5603_v18 }
0x2ce0   : > { %6940 = vmatmul.mubr.msk.bf16.vlgmr.msra.gmra.mxu0 %vm737_vm1, %v5611_v19  ;;  %v5849_v19 = vld [vmem:[%s8414_s15 + $0x8] sm:$0xff] }
0x2ce1   : > { %6959 = vmatprep.mubr.msk.bf16.mxu0 %vm7178_vm0, %v7177_v3  ;;  %6956 = vmatpush3.bf16.msra.mxu0 %v5797_v0 }
0x2ce2   : > { %6957 = vmatprep.subr.bf16.mxu0 %v7177_v3 }
0x2ce5   : > { %6958 = vmatpush3.bf16.msra.mxu0 %v5796_v4 }
0x2ce6   : > { %6963 = vmatprep.subr.bf16.mxu0 %v7177_v3 }
0x2da0   : > { %v5657_v28 = vpop.f32.mrf.mxu0 }
0x2da1   : > { %v5658_v29 = vadd.f32 %v6338_v26, %v5657_v28  ;;  %v5908_v26 = vpack.c.bf16 %v5903_v25, %v5902_v24  ;;  %v6357_v28 = vld [vmem:[%s8413_s14] ss:$0 sm:$0xff] }
0x2da2   : > { %v6941_v30 = vpop.f32.mrf.mxu0 }
0x2da3   : > { %v5663_v56 = vmax.f32 %v5658_v29, 0.0 }
0x2da4   : > { %v5660_v31 = vpop.f32.mrf.mxu0 }
0x2da5   : > { %v5675_v20 = vpack.c.bf16 %v5663_v56, %v5663_v56 }
0x2da6   : > { %v6942_v33 = vpop.f32.mrf.mxu0 }
0x2da7   : > { %6952 = vmatmul.mubr.msk.bf16.vlgmr.msra.gmra.mxu1 %vm3157_vm4, %v5675_v20  ;;  %v6359_v33 = vld [vmem:[%s8415_s16] ss:$0 sm:$0xff] }
0x2da8   : > { %6975 = vmatprep.mubr.msk.bf16.mxu1 %vm7178_vm0, %v7177_v3  ;;  %6972 = vmatpush3.bf16.msra.mxu1 %v5909_v23 }
0x2da9   : > { %6973 = vmatprep.subr.bf16.mxu1 %v7177_v3 }
0x2dac   : > { %6974 = vmatpush3.bf16.msra.mxu1 %v5908_v26 }
0x2e67   : > { %v5723_v27 = vpop.f32.mrf.mxu1 }
0x2e68   : > { %v5724_v35 = vadd.f32 %v6349_v34, %v5723_v27 }
0x2e69   : > { %v6953_v36 = vpop.f32.mrf.mxu1 }
0x2e6a   : > { %v5729_v37 = vadd.f32 %v5724_v35, %v5603_v18  ;;  %v5848_v18 = vld [vmem:[%s8414_s15] sm:$0xff] }
0x2e6b   : > { %v5726_v32 = vpop.f32.mrf.mxu1  ;;  %v5853_v47 = vpack.c.bf16 %v5849_v19, %v5848_v18 }
0x2e6c   : > { %v5734_v38 = vsel %vm737_vm1, %v5729_v37, 0.0 }
0x2e6d   : > { %5735 = vadd.xlane.f32.xlu0 %v5734_v38  ;;  %v6954_v39 = vpop.f32.mrf.mxu1 }
0x2e6e   : > { %v5962_v39 = vld [vmem:[%s8418_s19 + $0x10] sm:$0xff] }
0x2ef6   : > { %v5736_v12 = vpop.xlane.xlu0 %5735 }
0x2ef7   : > { %v5737_v40 = vmul.f32 0.03125, %v5736_v12  ;;  %v5963_v12 = vld [vmem:[%s8418_s19 + $0x18] sm:$0xff] }
0x2ef9   : > { %v5738_v42 = vsub.f32 %v5729_v37, %v5737_v40  ;;  %v5967_v40 = vpack.c.bf16 %v5963_v12, %v5962_v39 }
0x2efb   : > { %v5739_v41 = vmul.f32 %v5738_v42, %v5738_v42 }
0x2efd   : > { %v5740_v43 = vsel %vm737_vm1, %v5739_v41, 0.0  ;;  %v5961_v41 = vld [vmem:[%s8418_s19 + $0x8] sm:$0xff] }
0x2efe   : > { %5741 = vadd.xlane.f32.xlu1 %v5740_v43 }
0x2f87   : > { %v5742_v44 = vpop.xlane.xlu1 %5741 }
0x2f88   : > { %v5743_v48 = vmul.f32 0.03125, %v5742_v44  ;;  %v6361_v44 = vld [vmem:[%s8486_s18] ss:$0 sm:$0xff]  ;;  %s7115_s18 = scalar_lea.vmem %s6044_s30, 128 }
0x2f89   : > { %p7116_p11 = scmp.ne.s32.totalorder %s6044_s30, %s7115_s18  ;;  %p7123_p1 = scmp.lt.s32.totalorder %s7121_s7, %s7115_s18 }
0x2f8a   : > { %v5744_v49 = vadd.f32 1e-05, %v5743_v48 }
0x2f8b   : > { %p7117_p12 = pnand %p7116_p11, %p7337_p5  ;;  %p7124_p2 = por %p7123_p1, %p7122_p0 }
0x2f8c   : > { %7106 = vrsqrt.f32 %v5744_v49 }
0x2f8d   : > { %p7118_p13 = pneg %p7117_p12 }
0x2f8f   : > { %p7125_p3 = pnand %p7124_p2, %p7118_p13 }
0x2f99   : > { %v7107_v50 = vpop.eup %7106 }
0x2f9a   : > { %v5746_v16 = vmul.f32 %v7107_v50, %v5738_v42  ;;  %v5960_v42 = vld [vmem:[%s8418_s19] sm:$0xff] }
0x2f9b   : > { %v5966_v43 = vpack.c.bf16 %v5961_v41, %v5960_v42 }
0x2f9c   : > { %v5753_v52 = vmul.f32 %v6353_v51, %v5746_v16 }
0x2f9e   : > { %v5760_v53 = vadd.f32 %v6354_v45, %v5753_v52 }
0x2fa0   : > { %v5763_v54 = vsel %vm737_vm1, %v5760_v53, 0.0 }
0x2fa1   : > { %5764 = vadd.xlane.f32.xlu0 %v5763_v54 }
0x302a   : > { %v5765_v55 = vpop.xlane.xlu0 %5764 }
0x302b   : > { %v5766_v57 = vmul.f32 0.03125, %v5765_v55 }
0x302d   : > { %v5767_v58 = vsub.f32 %v5760_v53, %v5766_v57 }
0x302f   : > { %v5768_v62 = vmul.f32 %v5767_v58, %v5767_v58 }
0x3031   : > { %v5769_v63 = vsel %vm737_vm1, %v5768_v62, 0.0 }
0x3032   : > { %5770 = vadd.xlane.f32.xlu1 %v5769_v63 }
0x30bb   : > { %v5771_v5 = vpop.xlane.xlu1 %5770 }
0x30bc   : > { %v5772_v6 = vmul.f32 0.03125, %v5771_v5 }
0x30be   : > { %v5773_v60 = vadd.f32 1e-05, %v5772_v6 }
0x30c0   : > { %7108 = vrsqrt.f32 %v5773_v60 }
0x30cd   : > { %v7109_v46 = vpop.eup %7108 }
0x30ce   : > { %v5775_v8 = vmul.f32 %v7109_v46, %v5767_v58 }
0x30d0   : > { %v5782_v10 = vmul.f32 %v6355_v7, %v5775_v8 }
0x30d2   : > { %v5789_v14 = vadd.f32 %v6356_v9, %v5782_v10 }
0x30d4   : > { %v5795_v17 = vpack.c.bf16 %v5789_v14, %v5789_v14 }
0x30d6   : > { %6960 = vmatmul.mubr.msk.bf16.vlgmr.msra.gmra.mxu0 %vm737_vm1, %v5795_v17 }
0x30d7   : > { %6964 = vmatpush3.bf16.msra.mxu0 %v5854_v15  ;;  %6967 = vmatprep.mubr.msk.bf16.mxu0 %vm7178_vm0, %v7177_v3 }
0x30d8   : > { %6965 = vmatprep.subr.bf16.mxu0 %v7177_v3 }
0x30db   : > { %6966 = vmatpush3.bf16.msra.mxu0 %v5853_v47 }
0x30dc   : > { %6979 = vmatprep.subr.bf16.mxu0 %v7177_v3 }
0x30de   : > { %6968 = vmatmul.mubr.msk.bf16.vlgmr.msra.gmra.mxu0 %vm737_vm1, %v5795_v17 }
0x30df   : > { %6983 = vmatprep.mubr.msk.bf16.mxu0 %vm7178_vm0, %v7177_v3  ;;  %6980 = vmatpush3.bf16.msra.mxu0 %v5967_v40 }
0x30e0   : > { %6981 = vmatprep.subr.bf16.mxu0 %v7177_v3 }
0x30e3   : > { %6982 = vmatpush3.bf16.msra.mxu0 %v5966_v43 }
0x3196   : > { %v5841_v29 = vpop.f32.mrf.mxu0 }
0x3197   : > { %v5842_v30 = vadd.f32 %v6357_v28, %v5841_v29 }
0x3198   : > { %v6961_v56 = vpop.f32.mrf.mxu0 }
0x3199   : > { %5847 = vst.msk [vmem:[%s677_s20] sm:$0xff] %vm2140_vm3, %v5842_v30 }
0x319a   : > { %v5844_v31 = vpop.f32.mrf.mxu0 }
0x319c   : > { %v6962_v20 = vpop.f32.mrf.mxu0 }
0x319e   : > { %v5895_v34 = vpop.f32.mrf.mxu0 }
0x319f   : > { %v5896_v27 = vadd.f32 %v6359_v33, %v5895_v34 }
0x31a0   : > { %v6969_v35 = vpop.f32.mrf.mxu0 }
0x31a1   : > { %v5901_v36 = vmax.f32 %v5896_v27, 0.0 }
0x31a2   : > { %v5898_v37 = vpop.f32.mrf.mxu0 }
0x31a3   : > { %v5907_v32 = vpack.c.bf16 %v5901_v36, %v5901_v36 }
0x31a4   : > { %v6970_v38 = vpop.f32.mrf.mxu0 }
0x31a5   : > { %6976 = vmatmul.mubr.msk.bf16.vlgmr.msra.gmra.mxu1 %vm737_vm1, %v5907_v32 }
0x3265   : > { %v5953_v48 = vpop.f32.mrf.mxu1 }
0x3266   : > { %v5954_v49 = vadd.f32 %v6361_v44, %v5953_v48 }
0x3267   : > { %v6977_v50 = vpop.f32.mrf.mxu1 }
0x3268   : > { %v5959_v3 = vmax.f32 %v5954_v49, 0.0 }
0x3269   : > { %v5956_v51 = vpop.f32.mrf.mxu1 }
0x326a   : > { %v5965_v16 = vpack.c.bf16 %v5959_v3, %v5959_v3 }
0x326b   : > { %v6978_v45 = vpop.f32.mrf.mxu1 }
0x326c   : > { %6984 = vmatmul.mubr.msk.bf16.vlgmr.msra.gmra.mxu0 %vm737_vm1, %v5965_v16 }
0x326d   : > { %7128 = shalt.err (!%p7125_p3)
}
0x326e   : > { %s7129_s5 = scalar_lea.hbm %s6041_s4, 128  ;;  %s7133_s21 = scalar_lea.hbm %s8488_s22, 256 }
0x326f   : > { %p7130_p4 = scmp.ne.s32.totalorder %s6041_s4, %s7129_s5  ;;  %p7134_p9 = scmp.lt.s32.totalorder %s6041_s4, %s8488_s22 }
0x3270   : > { %p7135_p10 = scmp.lt.s32.totalorder %s7133_s21, %s7129_s5 }
0x3271   : > { %p7131_p7 = pnand %p7130_p4, %p7337_p5 }
0x3272   : > { %p7136_p11 = por %p7135_p10, %p7134_p9 }
0x3273   : > { %p7132_p8 = pneg %p7131_p7 }
0x3275   : > { %p7137_p12 = pnand %p7136_p11, %p7132_p8 }
0x3277   : > { %7140 = shalt.err (!%p7137_p12)
}
0x3278   : > { %s8490_s7 = sld [smem:[#allocation13_spill]]  ;;  %vm6023_vm5 = vcmask 31744  }
0x3279   : > { %6987 = dma.vmem_to_hbm [thread:$0]  (%p7337_p5), %s6044_s30, 128, %s6041_s4, %s6026_s24  }
0x327a   : > { %s8491_s6 = sld [smem:[#allocation23_spill]] }
0x327b   : > { %s8492_s29 = sld [smem:[#allocation25_spill]] }
0x327e   : > { %s6136_s18 = sshll.u32 %s8490_s7, 3 }
0x3280   : > { %v6363_v52 = vld [vmem:[%s8491_s6] ss:$0 sm:$0xff] }
0x3281   : > { %s692_s0 = scalar_lea.vmem %s8492_s29, %s6136_s18 }
0x332c   : > { %v6011_v53 = vpop.f32.mrf.mxu0 }
0x332d   : > { %v6012_v54 = vadd.f32 %v6363_v52, %v6011_v53 }
0x332e   : > { %v6985_v55 = vpop.f32.mrf.mxu0 }
0x332f   : > { %v6365_v57 = vmul.f32 -1.442695, %v6012_v54 }
0x3330   : > { %v6014_v58 = vpop.f32.mrf.mxu0 }
0x3331   : > { %7110 = vpow2.f32 %v6365_v57 }
0x3332   : > { %v6986_v62 = vpop.f32.mrf.mxu0 }
0x333e   : > { %v7111_v63 = vpop.eup %7110 }
0x333f   : > { %v6020_v1 = vadd.f32 1.0, %v7111_v63 }
0x3341   : > { %7112 = vrcp.f32 %v6020_v1 }
0x334e   : > { %v7113_v59 = vpop.eup %7112 }
0x334f   : > { %6024 = vst.msk [vmem:[%s692_s0] sm:$0xff] %vm6023_vm5, %v7113_v59 }
0x3350 PF: > { %s8493_s4 = sld [smem:[#allocation7_spill]] }
0x3351   : > { %s8494_s30 = sld [smem:[#allocation5_spill]] }
0x3356   : > { %p6993_p5 = scmp.ge.s32.totalorder %s8493_s4, 2 }
0x3357   : > { %s6058_s21 = sand.u32 1, %s8494_s30  }
0x3358   : > { %p6990_p13 = pnand %p6993_p5, %p7341_p6  ;;  %s6059_s3 = scalar_lea.sflag [#allocation3], %s6058_s21 }
0x335a   : > { %p6991_p0 = pneg %p6990_p13 }
0x335c   : > { %7158 = dma.done.wait (%p6991_p0), %s6059_s3, 128  }
0x335d   : > { %7160 = vsyncadd (%p6991_p0), %s6059_s3, 4294967168  ;;  %s8496_s30 = sld [smem:[#allocation9_spill]]  ;;  %s8499_s3 = smov %s7167_s28 }
0x335e   : > { %s8497_s25 = sld [smem:[#allocation6_spill]] }
0x335f   : > { %s8498_s29 = sld [smem:[#allocation10_spill]] }
0x3363   : > { %p33_p1 = scmp.ge.s32.totalorder %s8496_s30, 4  }
0x3364   : > { %s8500_s28 = smov %s8497_s25 }
0x3365   :  { %35 = sbr.rel (!%p33_p1) target bundleno = 16 (0x10), region = 195 }
0x336a   :  { %6071 = vsyncpa [#allocation3], 1 }
0x336b   :  { %6073 = vsyncpa [#allocation3 + $0x1], 1 }

</bundles_post_ra>
